<compile_context>
chip_gen: v7x
topology: tpu7x:2x2x1
jax: 0.10.0
libtpu: 0.0.40
codegen_flags: <defaults>
</compile_context>

<pallas_src>
import functools

import jax
import jax.numpy as jnp
from jax.experimental import pallas as pl
from jax.experimental.pallas import tpu as pltpu


def _round_up(x, m):
    return (x + m - 1) // m * m


def _vmem_limit_bytes():
    cap = 64 * 1024 * 1024
    try:
        cap = int(getattr(pltpu.get_tpu_info(), "vmem_capacity_bytes", cap))
    except Exception:
        pass
    # ~3/4 of physical VMEM, capped at 96 MiB (fits v5e/v6e 128 MiB, v7x 64 MiB).
    return min((cap * 3) // 4, 96 * 1024 * 1024)


def _compiler_params():
    return pltpu.CompilerParams(
        dimension_semantics=("parallel",),
        vmem_limit_bytes=_vmem_limit_bytes(),
    )


# ---------------------------------------------------------------------------
# In-kernel GroupNorm helpers (all f32, two-pass variance)
# ---------------------------------------------------------------------------
def _group_mean(col_sums, group_size, count):
    """Per-channel broadcast of the group mean, from per-channel column sums (1, C)."""
    if group_size == 1:
        return col_sums * (1.0 / count)
    # Tiny (C, C) group-averaging matrix built in-kernel (no HBM stream).
    C = col_sums.shape[-1]
    gi = jax.lax.broadcasted_iota(jnp.int32, (C, C), 0) // group_size
    gj = jax.lax.broadcasted_iota(jnp.int32, (C, C), 1) // group_size
    avg = jnp.where(gi == gj, 1.0 / count, 0.0).astype(jnp.float32)
    return jnp.dot(col_sums, avg, preferred_element_type=jnp.float32)


def _group_norm(x, gamma, beta, *, num_groups, eps, n_valid, mask=None):
    """GroupNorm over rows of x (R, C) f32.  Rows with mask == 0 are excluded
    from the statistics (their outputs are junk; caller must mask them)."""
    C = x.shape[-1]
    gs = C // num_groups
    count = float(n_valid * gs)
    xm = x if mask is None else x * mask
    mean = _group_mean(jnp.sum(xm, axis=0, keepdims=True), gs, count)
    cx = x - mean
    cxm = cx if mask is None else cx * mask
    var = _group_mean(jnp.sum(cxm * cxm, axis=0, keepdims=True), gs, count)
    inv = jax.lax.rsqrt(var + eps)
    return cx * (inv * gamma) + beta


# ---------------------------------------------------------------------------
# Fully-fused ResnetBlock kernel: one image per grid step
# ---------------------------------------------------------------------------
def _resnet_block_kernel(*refs, H, W, Wp, P, halo, num_groups, eps, has_proj):
    if has_proj:
        (xpad_ref, xt_ref, mask_ref,
         w1_ref, b1_ref, g1_ref, be1_ref,
         w2_ref, b2_ref, g2_ref, be2_ref,
         wp_ref, bp_ref,
         o_ref, h1s_ref, cmp_ref) = refs
    else:
        (xpad_ref, xt_ref, mask_ref,
         w1_ref, b1_ref, g1_ref, be1_ref,
         w2_ref, b2_ref, g2_ref, be2_ref,
         o_ref, h1s_ref, cmp_ref) = refs
        wp_ref = bp_ref = None

    cdt = w1_ref.dtype                 # MXU operand dtype (bf16 or f32)
    Cout = b1_ref.shape[-1]
    HW = H * W
    # flattened-row offset of conv tap (dy, dx) in the padded (H+2, Wp) image
    shifts = tuple((dy - 1) * Wp + (dx - 1) for dy in range(3) for dx in range(3))
    mask = mask_ref[...]               # (P, 1) f32: 1 on real pixels, 0 on the pad ring

    def conv3x3(read_tap, w_ref, b_ref):
        # ONE MXU matmul with K = 9*C: lane-concatenate the 9 shifted slices
        # instead of 9 accumulation passes over a (P, Cout) f32 accumulator.
        xcat = jnp.concatenate([read_tap(s) for s in shifts], axis=-1)   # (P, 9C) f32
        return jnp.dot(xcat.astype(cdt), w_ref[...],
                       preferred_element_type=jnp.float32) + b_ref[...]  # (P, Cout) f32

    # ---- conv1 + GroupNorm1 + ReLU (padded layout; pad ring forced to 0) ----
    h1 = conv3x3(lambda s: xpad_ref[0, pl.ds(halo + s, P), :], w1_ref, b1_ref)
    h1 = _group_norm(h1, g1_ref[...], be1_ref[...],
                     num_groups=num_groups, eps=eps, n_valid=HW, mask=mask)
    h1 = jnp.maximum(h1, 0.0) * mask   # ReLU; ring rows -> 0 == conv2's zero padding

    # Stage h1 in a halo'd VMEM scratch so conv2's shifted reads stay in bounds.
    h1s_ref[pl.ds(0, halo), :] = jnp.zeros((halo, Cout), jnp.float32)
    h1s_ref[pl.ds(halo + P, halo), :] = jnp.zeros((halo, Cout), jnp.float32)
    h1s_ref[pl.ds(halo, P), :] = h1

    # ---- conv2 (padded layout; ring rows are junk and dropped below) ----
    h2 = conv3x3(lambda s: h1s_ref[pl.ds(halo + s, P), :], w2_ref, b2_ref)

    # Compact the pad ring away: valid rows -> (H*W, Cout).
    for h in range(H):
        src0 = (h + 1) * Wp + 1
        cmp_ref[h * W:(h + 1) * W, :] = h2[src0:src0 + W, :]

    # ---- GroupNorm2 + residual (1x1 projection or identity) + ReLU ----
    h2n = _group_norm(cmp_ref[...], g2_ref[...], be2_ref[...],
                      num_groups=num_groups, eps=eps, n_valid=HW)
    h2nT = h2n.T                                   # (Cout, HW): lane-dense, NCHW order
    if has_proj:
        res = jnp.dot(wp_ref[...], xt_ref[0].astype(cdt),
                      preferred_element_type=jnp.float32) + bp_ref[...]
    else:
        res = xt_ref[0].astype(jnp.float32)
    o_ref[0] = jnp.maximum(h2nT + res, 0.0)


# ---------------------------------------------------------------------------
# Wrapper (NCHW in / NCHW out, PyTorch-shaped parameters)
# ---------------------------------------------------------------------------
@functools.partial(jax.jit, static_argnames=("num_groups", "eps", "compute_dtype"))
def resnet_block(x_nchw, params, *, num_groups=32, eps=1e-5,
                 compute_dtype=jnp.bfloat16):
    """params: conv1_w (Cout,Cin,3,3), conv1_b, norm1_g, norm1_b,
               conv2_w (Cout,Cout,3,3), conv2_b, norm2_g, norm2_b,
               and iff Cin != Cout: proj_w (Cout,Cin,1,1), proj_b."""
    N, Cin, H, W = x_nchw.shape
    Cout = params["conv1_w"].shape[0]
    has_proj = Cin != Cout
    assert Cout % num_groups == 0, "GroupNorm requires Cout % num_groups == 0"

    f32 = jnp.float32
    HW = H * W
    Hp = H + 2
    Wp = _round_up(W + 2, 8)           # width-pad to 8 => dx==0 taps are 8-aligned
    P = Hp * Wp
    halo = _round_up(Wp + 1, 8)
    Pext = P + 2 * halo

    # ---- operand layout plumbing (tiny vs. the fused kernel) ----
    # TODO(synk): fold this transpose+pad of x into the kernel's conv1 load so
    # the NCHW input never takes an XLA relayout pass.
    x_nhwc = jnp.transpose(x_nchw, (0, 2, 3, 1))
    x_pad = jnp.pad(x_nhwc, ((0, 0), (1, 1), (1, Wp - W - 1), (0, 0)))
    x_pad = jnp.pad(x_pad.reshape(N, P, Cin), ((0, 0), (halo, halo), (0, 0)))
    x_pad = x_pad.astype(f32)
    # Residual / projection operand taken straight from the NCHW view (free).
    x_t = x_nchw.reshape(N, Cin, HW).astype(f32)

    def conv_w(w):  # (Cout, Cin, 3, 3) -> (9*Cin, Cout), tap-major rows
        co, ci = w.shape[0], w.shape[1]
        return jnp.transpose(w, (2, 3, 1, 0)).reshape(9 * ci, co).astype(compute_dtype)

    w1 = conv_w(params["conv1_w"])
    w2 = conv_w(params["conv2_w"])
    b1 = params["conv1_b"].reshape(1, Cout).astype(f32)
    b2 = params["conv2_b"].reshape(1, Cout).astype(f32)
    g1 = params["norm1_g"].reshape(1, Cout).astype(f32)
    be1 = params["norm1_b"].reshape(1, Cout).astype(f32)
    g2 = params["norm2_g"].reshape(1, Cout).astype(f32)
    be2 = params["norm2_b"].reshape(1, Cout).astype(f32)

    # pad-ring mask (1 on the H x W real pixels of the padded (Hp, Wp) image)
    hh = jnp.arange(Hp)[:, None]
    ww = jnp.arange(Wp)[None, :]
    mask = ((hh >= 1) & (hh <= H) & (ww >= 1) & (ww <= W)).astype(f32).reshape(P, 1)

    def rep(shape):                      # replicated (grid-invariant) operand
        return pl.BlockSpec(shape, lambda n: (0,) * len(shape))

    def per_im(shape):                   # one image per grid step
        return pl.BlockSpec((1,) + shape, lambda n: (n, 0, 0))

    in_specs = [
        per_im((Pext, Cin)),             # x_pad
        per_im((Cin, HW)),               # x_t (residual / projection operand)
        rep((P, 1)),                     # pad-ring mask
        rep((9 * Cin, Cout)), rep((1, Cout)), rep((1, Cout)), rep((1, Cout)),
        rep((9 * Cout, Cout)), rep((1, Cout)), rep((1, Cout)), rep((1, Cout)),
    ]
    args = [x_pad, x_t, mask, w1, b1, g1, be1, w2, b2, g2, be2]
    if has_proj:
        wp = params["proj_w"].reshape(Cout, Cin).astype(compute_dtype)
        bp = params["proj_b"].reshape(Cout, 1).astype(f32)
        in_specs += [rep((Cout, Cin)), rep((Cout, 1))]
        args += [wp, bp]

    kernel = functools.partial(
        _resnet_block_kernel, H=H, W=W, Wp=Wp, P=P, halo=halo,
        num_groups=num_groups, eps=eps, has_proj=has_proj)

    out = pl.pallas_call(
        kernel,
        out_shape=jax.ShapeDtypeStruct((N, Cout, HW), f32),
        grid=(N,),
        in_specs=in_specs,
        out_specs=pl.BlockSpec((1, Cout, HW), lambda n: (n, 0, 0)),
        scratch_shapes=[
            pltpu.VMEM((Pext, Cout), f32),   # halo'd GN1 output staged for conv2
            pltpu.VMEM((HW, Cout), f32),     # pad-ring-free conv2 output
        ],
        compiler_params=_compiler_params(),
    )(*args)

    return out.reshape(N, Cout, H, W)


# ---------------------------------------------------------------------------
# Pure-JAX f32 reference (mirrors the PyTorch module)
# ---------------------------------------------------------------------------
def ref_forward(x, params, *, num_groups=32, eps=1e-5):
    def conv(x, w, b):
        y = jax.lax.conv_general_dilated(
            x, w, window_strides=(1, 1), padding="SAME",
            dimension_numbers=("NCHW", "OIHW", "NCHW"),
            precision=jax.lax.Precision.HIGHEST)
        return y + b.reshape(1, -1, 1, 1)

    def gn(x, gamma, beta):
        N, C, H, W = x.shape
        xg = x.reshape(N, num_groups, (C // num_groups) * H * W)
        mean = xg.mean(axis=-1, keepdims=True)
        var = ((xg - mean) ** 2).mean(axis=-1, keepdims=True)
        y = ((xg - mean) / jnp.sqrt(var + eps)).reshape(N, C, H, W)
        return y * gamma.reshape(1, -1, 1, 1) + beta.reshape(1, -1, 1, 1)

    h = jax.nn.relu(gn(conv(x, params["conv1_w"], params["conv1_b"]),
                       params["norm1_g"], params["norm1_b"]))
    h = gn(conv(h, params["conv2_w"], params["conv2_b"]),
           params["norm2_g"], params["norm2_b"])
    xr = conv(x, params["proj_w"], params["proj_b"]) if "proj_w" in params else x
    return jax.nn.relu(xr + h)


# ---------------------------------------------------------------------------
if __name__ == "__main__":
    key = jax.random.PRNGKey(0)
    ks = jax.random.split(key, 8)

    # --- projection variant (Cin != Cout) ---
    N, Cin, H, W, Cout = 2, 4, 16, 16, 32
    x = jax.random.normal(ks[0], (N, Cin, H, W), jnp.float32)
    params = {
        "conv1_w": jax.random.normal(ks[1], (Cout, Cin, 3, 3), jnp.float32) * 0.20,
        "conv1_b": jax.random.normal(ks[2], (Cout,), jnp.float32) * 0.10,
        "conv2_w": jax.random.normal(ks[3], (Cout, Cout, 3, 3), jnp.float32) * 0.08,
        "conv2_b": jax.random.normal(ks[4], (Cout,), jnp.float32) * 0.10,
        "norm1_g": jnp.ones((Cout,), jnp.float32),
        "norm1_b": jnp.zeros((Cout,), jnp.float32),
        "norm2_g": jnp.ones((Cout,), jnp.float32),
        "norm2_b": jnp.zeros((Cout,), jnp.float32),
        "proj_w": jax.random.normal(ks[5], (Cout, Cin, 1, 1), jnp.float32) * 0.20,
        "proj_b": jax.random.normal(ks[6], (Cout,), jnp.float32) * 0.10,
    }
    ref = jax.block_until_ready(ref_forward(x, params))

    # f32-operand path: structural validation (tap order / shifts / GN / compaction).
    out32 = jax.block_until_ready(resnet_block(x, params, compute_dtype=jnp.float32))
    assert out32.shape == (N, Cout, H, W), out32.shape
    err32 = float(jnp.max(jnp.abs(out32 - ref)))
    assert err32 < 5e-2, f"f32-path max abs error too large: {err32}"

    # bf16 MXU path (default / fast).
    outbf = jax.block_until_ready(resnet_block(x, params))
    errbf = float(jnp.max(jnp.abs(outbf - ref)))
    assert errbf < 1e-1, f"bf16-path max abs error too large: {errbf}"

    # --- identity-residual variant (Cin == Cout) ---
    x2 = jax.random.normal(ks[7], (N, Cout, H, W), jnp.float32)
    params_id = {k: v for k, v in params.items() if not k.startswith("proj")}
    params_id["conv1_w"] = (
        jax.random.normal(ks[1], (Cout, Cout, 3, 3), jnp.float32) * 0.08)
    ref_id = jax.block_until_ready(ref_forward(x2, params_id))
    out_id = jax.block_until_ready(resnet_block(x2, params_id))
    assert out_id.shape == (N, Cout, H, W), out_id.shape
    err_id = float(jnp.max(jnp.abs(out_id - ref_id)))
    assert err_id < 1e-1, f"identity-path max abs error too large: {err_id}"

    print("KERNEL_OK")
</pallas_src>

<mosaic_0001>
module attributes {stable_mosaic.version = 11 : i64} {
  func.func @_resnet_block_kernel(%arg0: i32, %arg1: memref<1x496x4xf32, #tpu.memory_space<vmem>>, %arg2: memref<1x4x256xf32, #tpu.memory_space<vmem>>, %arg3: memref<432x1xf32, #tpu.memory_space<vmem>>, %arg4: memref<36x32xf32, #tpu.memory_space<vmem>>, %arg5: memref<1x32xf32, #tpu.memory_space<vmem>>, %arg6: memref<1x32xf32, #tpu.memory_space<vmem>>, %arg7: memref<1x32xf32, #tpu.memory_space<vmem>>, %arg8: memref<288x32xf32, #tpu.memory_space<vmem>>, %arg9: memref<1x32xf32, #tpu.memory_space<vmem>>, %arg10: memref<1x32xf32, #tpu.memory_space<vmem>>, %arg11: memref<1x32xf32, #tpu.memory_space<vmem>>, %arg12: memref<32x4xf32, #tpu.memory_space<vmem>>, %arg13: memref<32x1xf32, #tpu.memory_space<vmem>>, %arg14: memref<1x32x256xf32, #tpu.memory_space<vmem>>, %arg15: memref<496x32xf32, #tpu.memory_space<vmem>>, %arg16: memref<256x32xf32, #tpu.memory_space<vmem>>) attributes {dimension_semantics = [#tpu.dimension_semantics<parallel>], iteration_bounds = array<i64: 2>, scalar_prefetch = 0 : i64, scratch_operands = 2 : i64, tpu.core_type = #tpu.core_type<tc>, window_params = [{transform_indices = @transform_0, window_bounds = array<i64: 1, 496, 4>}, {transform_indices = @transform_1, window_bounds = array<i64: 1, 4, 256>}, {pipeline_mode = #tpu.pipeline_mode<synchronous>, transform_indices = @transform_2, window_bounds = array<i64: 432, 1>}, {pipeline_mode = #tpu.pipeline_mode<synchronous>, transform_indices = @transform_3, window_bounds = array<i64: 36, 32>}, {pipeline_mode = #tpu.pipeline_mode<synchronous>, transform_indices = @transform_4, window_bounds = array<i64: 1, 32>}, {pipeline_mode = #tpu.pipeline_mode<synchronous>, transform_indices = @transform_5, window_bounds = array<i64: 1, 32>}, {pipeline_mode = #tpu.pipeline_mode<synchronous>, transform_indices = @transform_6, window_bounds = array<i64: 1, 32>}, {pipeline_mode = #tpu.pipeline_mode<synchronous>, transform_indices = @transform_7, window_bounds = array<i64: 288, 32>}, {pipeline_mode = #tpu.pipeline_mode<synchronous>, transform_indices = @transform_8, window_bounds = array<i64: 1, 32>}, {pipeline_mode = #tpu.pipeline_mode<synchronous>, transform_indices = @transform_9, window_bounds = array<i64: 1, 32>}, {pipeline_mode = #tpu.pipeline_mode<synchronous>, transform_indices = @transform_10, window_bounds = array<i64: 1, 32>}, {pipeline_mode = #tpu.pipeline_mode<synchronous>, transform_indices = @transform_11, window_bounds = array<i64: 32, 4>}, {pipeline_mode = #tpu.pipeline_mode<synchronous>, transform_indices = @transform_12, window_bounds = array<i64: 32, 1>}, {transform_indices = @transform_13, window_bounds = array<i64: 1, 32, 256>}]} {
    %c0 = arith.constant 0 : index
    %c0_0 = arith.constant 0 : index
    %0 = vector.load %arg3[%c0, %c0_0] : memref<432x1xf32, #tpu.memory_space<vmem>>, vector<432x1xf32>
    %c0_1 = arith.constant 0 : index
    %c7 = arith.constant 7 : index
    %c0_2 = arith.constant 0 : index
    %1 = vector.load %arg1[%c0_1, %c7, %c0_2] : memref<1x496x4xf32, #tpu.memory_space<vmem>>, vector<1x432x4xf32>
    %2 = vector.shape_cast %1 : vector<1x432x4xf32> to vector<432x4xf32>
    %c0_3 = arith.constant 0 : index
    %c8 = arith.constant 8 : index
    %c0_4 = arith.constant 0 : index
    %3 = vector.load %arg1[%c0_3, %c8, %c0_4] : memref<1x496x4xf32, #tpu.memory_space<vmem>>, vector<1x432x4xf32>
    %4 = vector.shape_cast %3 : vector<1x432x4xf32> to vector<432x4xf32>
    %c0_5 = arith.constant 0 : index
    %c9 = arith.constant 9 : index
    %c0_6 = arith.constant 0 : index
    %5 = vector.load %arg1[%c0_5, %c9, %c0_6] : memref<1x496x4xf32, #tpu.memory_space<vmem>>, vector<1x432x4xf32>
    %6 = vector.shape_cast %5 : vector<1x432x4xf32> to vector<432x4xf32>
    %c0_7 = arith.constant 0 : index
    %c31 = arith.constant 31 : index
    %c0_8 = arith.constant 0 : index
    %7 = vector.load %arg1[%c0_7, %c31, %c0_8] : memref<1x496x4xf32, #tpu.memory_space<vmem>>, vector<1x432x4xf32>
    %8 = vector.shape_cast %7 : vector<1x432x4xf32> to vector<432x4xf32>
    %c0_9 = arith.constant 0 : index
    %c32 = arith.constant 32 : index
    %c0_10 = arith.constant 0 : index
    %9 = vector.load %arg1[%c0_9, %c32, %c0_10] : memref<1x496x4xf32, #tpu.memory_space<vmem>>, vector<1x432x4xf32>
    %10 = vector.shape_cast %9 : vector<1x432x4xf32> to vector<432x4xf32>
    %c0_11 = arith.constant 0 : index
    %c33 = arith.constant 33 : index
    %c0_12 = arith.constant 0 : index
    %11 = vector.load %arg1[%c0_11, %c33, %c0_12] : memref<1x496x4xf32, #tpu.memory_space<vmem>>, vector<1x432x4xf32>
    %12 = vector.shape_cast %11 : vector<1x432x4xf32> to vector<432x4xf32>
    %c0_13 = arith.constant 0 : index
    %c55 = arith.constant 55 : index
    %c0_14 = arith.constant 0 : index
    %13 = vector.load %arg1[%c0_13, %c55, %c0_14] : memref<1x496x4xf32, #tpu.memory_space<vmem>>, vector<1x432x4xf32>
    %14 = vector.shape_cast %13 : vector<1x432x4xf32> to vector<432x4xf32>
    %c0_15 = arith.constant 0 : index
    %c56 = arith.constant 56 : index
    %c0_16 = arith.constant 0 : index
    %15 = vector.load %arg1[%c0_15, %c56, %c0_16] : memref<1x496x4xf32, #tpu.memory_space<vmem>>, vector<1x432x4xf32>
    %16 = vector.shape_cast %15 : vector<1x432x4xf32> to vector<432x4xf32>
    %c0_17 = arith.constant 0 : index
    %c57 = arith.constant 57 : index
    %c0_18 = arith.constant 0 : index
    %17 = vector.load %arg1[%c0_17, %c57, %c0_18] : memref<1x496x4xf32, #tpu.memory_space<vmem>>, vector<1x432x4xf32>
    %18 = vector.shape_cast %17 : vector<1x432x4xf32> to vector<432x4xf32>
    %19 = tpu.concatenate %2, %4, %6, %8, %10, %12, %14, %16, %18 in 1 : vector<432x4xf32>, vector<432x4xf32>, vector<432x4xf32>, vector<432x4xf32>, vector<432x4xf32>, vector<432x4xf32>, vector<432x4xf32>, vector<432x4xf32>, vector<432x4xf32> -> vector<432x36xf32>
    %c0_19 = arith.constant 0 : index
    %c0_20 = arith.constant 0 : index
    %20 = vector.load %arg4[%c0_19, %c0_20] : memref<36x32xf32, #tpu.memory_space<vmem>>, vector<36x32xf32>
    %cst = arith.constant dense<0.000000e+00> : vector<432x32xf32>
    %21 = tpu.matmul %19, %20, %cst {dimension_numbers = #tpu.dot_dimension_numbers<[1], [0], [0], [1], [0, 0, 1, 1], [], []>} : vector<432x36xf32>, vector<36x32xf32>, vector<432x32xf32> -> vector<432x32xf32>
    %c0_21 = arith.constant 0 : index
    %c0_22 = arith.constant 0 : index
    %22 = vector.load %arg5[%c0_21, %c0_22] : memref<1x32xf32, #tpu.memory_space<vmem>>, vector<1x32xf32>
    %23 = vector.broadcast %22 : vector<1x32xf32> to vector<432x32xf32>
    %24 = arith.addf %21, %23 : vector<432x32xf32>
    %c0_23 = arith.constant 0 : index
    %c0_24 = arith.constant 0 : index
    %25 = vector.load %arg6[%c0_23, %c0_24] : memref<1x32xf32, #tpu.memory_space<vmem>>, vector<1x32xf32>
    %c0_25 = arith.constant 0 : index
    %c0_26 = arith.constant 0 : index
    %26 = vector.load %arg7[%c0_25, %c0_26] : memref<1x32xf32, #tpu.memory_space<vmem>>, vector<1x32xf32>
    %27 = vector.broadcast %0 : vector<432x1xf32> to vector<432x32xf32>
    %28 = arith.mulf %24, %27 : vector<432x32xf32>
    %cst_27 = arith.constant dense<0.000000e+00> : vector<32xf32>
    %29 = vector.multi_reduction <add>, %28, %cst_27 [0] : vector<432x32xf32> to vector<32xf32>
    %30 = vector.shape_cast %29 : vector<32xf32> to vector<1x32xf32>
    %cst_28 = arith.constant 3.906250e-03 : f32
    %31 = vector.broadcast %cst_28 : f32 to vector<1x32xf32>
    %32 = arith.mulf %30, %31 : vector<1x32xf32>
    %33 = vector.broadcast %32 : vector<1x32xf32> to vector<432x32xf32>
    %34 = arith.subf %24, %33 : vector<432x32xf32>
    %35 = vector.broadcast %0 : vector<432x1xf32> to vector<432x32xf32>
    %36 = arith.mulf %34, %35 : vector<432x32xf32>
    %37 = arith.mulf %36, %36 : vector<432x32xf32>
    %cst_29 = arith.constant dense<0.000000e+00> : vector<32xf32>
    %38 = vector.multi_reduction <add>, %37, %cst_29 [0] : vector<432x32xf32> to vector<32xf32>
    %39 = vector.shape_cast %38 : vector<32xf32> to vector<1x32xf32>
    %cst_30 = arith.constant 3.906250e-03 : f32
    %40 = vector.broadcast %cst_30 : f32 to vector<1x32xf32>
    %41 = arith.mulf %39, %40 : vector<1x32xf32>
    %cst_31 = arith.constant 9.99999974E-6 : f32
    %42 = vector.broadcast %cst_31 : f32 to vector<1x32xf32>
    %43 = arith.addf %41, %42 : vector<1x32xf32>
    %44 = math.rsqrt %43 : vector<1x32xf32>
    %45 = arith.mulf %44, %25 : vector<1x32xf32>
    %46 = vector.broadcast %45 : vector<1x32xf32> to vector<432x32xf32>
    %47 = arith.mulf %34, %46 : vector<432x32xf32>
    %48 = vector.broadcast %26 : vector<1x32xf32> to vector<432x32xf32>
    %49 = arith.addf %47, %48 : vector<432x32xf32>
    %cst_32 = arith.constant 0.000000e+00 : f32
    %50 = vector.broadcast %cst_32 : f32 to vector<432x32xf32>
    %51 = arith.maximumf %49, %50 : vector<432x32xf32>
    %52 = vector.broadcast %0 : vector<432x1xf32> to vector<432x32xf32>
    %53 = arith.mulf %51, %52 : vector<432x32xf32>
    %cst_33 = arith.constant 0.000000e+00 : f32
    %54 = vector.broadcast %cst_33 : f32 to vector<32x32xf32>
    %c0_34 = arith.constant 0 : index
    %c0_35 = arith.constant 0 : index
    %55 = vector.load %arg15[%c0_34, %c0_35] : memref<496x32xf32, #tpu.memory_space<vmem>>, vector<32x32xf32>
    tpu.vector_store %arg15[%c0_34, %c0_35], %54 {strides = array<i32>} : memref<496x32xf32, #tpu.memory_space<vmem>>, vector<32x32xf32>,
    %cst_36 = arith.constant 0.000000e+00 : f32
    %56 = vector.broadcast %cst_36 : f32 to vector<32x32xf32>
    %c464 = arith.constant 464 : index
    %c0_37 = arith.constant 0 : index
    %57 = vector.load %arg15[%c464, %c0_37] : memref<496x32xf32, #tpu.memory_space<vmem>>, vector<32x32xf32>
    tpu.vector_store %arg15[%c464, %c0_37], %56 {strides = array<i32>} : memref<496x32xf32, #tpu.memory_space<vmem>>, vector<32x32xf32>,
    %c32_38 = arith.constant 32 : index
    %c0_39 = arith.constant 0 : index
    %58 = vector.load %arg15[%c32_38, %c0_39] : memref<496x32xf32, #tpu.memory_space<vmem>>, vector<432x32xf32>
    tpu.vector_store %arg15[%c32_38, %c0_39], %53 {strides = array<i32>} : memref<496x32xf32, #tpu.memory_space<vmem>>, vector<432x32xf32>,
    %c7_40 = arith.constant 7 : index
    %c0_41 = arith.constant 0 : index
    %59 = vector.load %arg15[%c7_40, %c0_41] : memref<496x32xf32, #tpu.memory_space<vmem>>, vector<432x32xf32>
    %c8_42 = arith.constant 8 : index
    %c0_43 = arith.constant 0 : index
    %60 = vector.load %arg15[%c8_42, %c0_43] : memref<496x32xf32, #tpu.memory_space<vmem>>, vector<432x32xf32>
    %c9_44 = arith.constant 9 : index
    %c0_45 = arith.constant 0 : index
    %61 = vector.load %arg15[%c9_44, %c0_45] : memref<496x32xf32, #tpu.memory_space<vmem>>, vector<432x32xf32>
    %c31_46 = arith.constant 31 : index
    %c0_47 = arith.constant 0 : index
    %62 = vector.load %arg15[%c31_46, %c0_47] : memref<496x32xf32, #tpu.memory_space<vmem>>, vector<432x32xf32>
    %c32_48 = arith.constant 32 : index
    %c0_49 = arith.constant 0 : index
    %63 = vector.load %arg15[%c32_48, %c0_49] : memref<496x32xf32, #tpu.memory_space<vmem>>, vector<432x32xf32>
    %c33_50 = arith.constant 33 : index
    %c0_51 = arith.constant 0 : index
    %64 = vector.load %arg15[%c33_50, %c0_51] : memref<496x32xf32, #tpu.memory_space<vmem>>, vector<432x32xf32>
    %c55_52 = arith.constant 55 : index
    %c0_53 = arith.constant 0 : index
    %65 = vector.load %arg15[%c55_52, %c0_53] : memref<496x32xf32, #tpu.memory_space<vmem>>, vector<432x32xf32>
    %c56_54 = arith.constant 56 : index
    %c0_55 = arith.constant 0 : index
    %66 = vector.load %arg15[%c56_54, %c0_55] : memref<496x32xf32, #tpu.memory_space<vmem>>, vector<432x32xf32>
    %c57_56 = arith.constant 57 : index
    %c0_57 = arith.constant 0 : index
    %67 = vector.load %arg15[%c57_56, %c0_57] : memref<496x32xf32, #tpu.memory_space<vmem>>, vector<432x32xf32>
    %68 = tpu.concatenate %59, %60, %61, %62, %63, %64, %65, %66, %67 in 1 : vector<432x32xf32>, vector<432x32xf32>, vector<432x32xf32>, vector<432x32xf32>, vector<432x32xf32>, vector<432x32xf32>, vector<432x32xf32>, vector<432x32xf32>, vector<432x32xf32> -> vector<432x288xf32>
    %c0_58 = arith.constant 0 : index
    %c0_59 = arith.constant 0 : index
    %69 = vector.load %arg8[%c0_58, %c0_59] : memref<288x32xf32, #tpu.memory_space<vmem>>, vector<288x32xf32>
    %cst_60 = arith.constant dense<0.000000e+00> : vector<432x32xf32>
    %70 = tpu.matmul %68, %69, %cst_60 {dimension_numbers = #tpu.dot_dimension_numbers<[1], [0], [0], [1], [0, 0, 1, 1], [], []>} : vector<432x288xf32>, vector<288x32xf32>, vector<432x32xf32> -> vector<432x32xf32>
    %c0_61 = arith.constant 0 : index
    %c0_62 = arith.constant 0 : index
    %71 = vector.load %arg9[%c0_61, %c0_62] : memref<1x32xf32, #tpu.memory_space<vmem>>, vector<1x32xf32>
    %72 = vector.broadcast %71 : vector<1x32xf32> to vector<432x32xf32>
    %73 = arith.addf %70, %72 : vector<432x32xf32>
    %74 = vector.extract_strided_slice %73 {offsets = [25, 0], sizes = [16, 32], strides = [1, 1]} : vector<432x32xf32> to vector<16x32xf32>
    %c0_63 = arith.constant 0 : index
    %c0_64 = arith.constant 0 : index
    %75 = vector.load %arg16[%c0_63, %c0_64] : memref<256x32xf32, #tpu.memory_space<vmem>>, vector<16x32xf32>
    tpu.vector_store %arg16[%c0_63, %c0_64], %74 {strides = array<i32>} : memref<256x32xf32, #tpu.memory_space<vmem>>, vector<16x32xf32>,
    %76 = vector.extract_strided_slice %73 {offsets = [49, 0], sizes = [16, 32], strides = [1, 1]} : vector<432x32xf32> to vector<16x32xf32>
    %c16 = arith.constant 16 : index
    %c0_65 = arith.constant 0 : index
    %77 = vector.load %arg16[%c16, %c0_65] : memref<256x32xf32, #tpu.memory_space<vmem>>, vector<16x32xf32>
    tpu.vector_store %arg16[%c16, %c0_65], %76 {strides = array<i32>} : memref<256x32xf32, #tpu.memory_space<vmem>>, vector<16x32xf32>,
    %78 = vector.extract_strided_slice %73 {offsets = [73, 0], sizes = [16, 32], strides = [1, 1]} : vector<432x32xf32> to vector<16x32xf32>
    %c32_66 = arith.constant 32 : index
    %c0_67 = arith.constant 0 : index
    %79 = vector.load %arg16[%c32_66, %c0_67] : memref<256x32xf32, #tpu.memory_space<vmem>>, vector<16x32xf32>
    tpu.vector_store %arg16[%c32_66, %c0_67], %78 {strides = array<i32>} : memref<256x32xf32, #tpu.memory_space<vmem>>, vector<16x32xf32>,
    %80 = vector.extract_strided_slice %73 {offsets = [97, 0], sizes = [16, 32], strides = [1, 1]} : vector<432x32xf32> to vector<16x32xf32>
    %c48 = arith.constant 48 : index
    %c0_68 = arith.constant 0 : index
    %81 = vector.load %arg16[%c48, %c0_68] : memref<256x32xf32, #tpu.memory_space<vmem>>, vector<16x32xf32>
    tpu.vector_store %arg16[%c48, %c0_68], %80 {strides = array<i32>} : memref<256x32xf32, #tpu.memory_space<vmem>>, vector<16x32xf32>,
    %82 = vector.extract_strided_slice %73 {offsets = [121, 0], sizes = [16, 32], strides = [1, 1]} : vector<432x32xf32> to vector<16x32xf32>
    %c64 = arith.constant 64 : index
    %c0_69 = arith.constant 0 : index
    %83 = vector.load %arg16[%c64, %c0_69] : memref<256x32xf32, #tpu.memory_space<vmem>>, vector<16x32xf32>
    tpu.vector_store %arg16[%c64, %c0_69], %82 {strides = array<i32>} : memref<256x32xf32, #tpu.memory_space<vmem>>, vector<16x32xf32>,
    %84 = vector.extract_strided_slice %73 {offsets = [145, 0], sizes = [16, 32], strides = [1, 1]} : vector<432x32xf32> to vector<16x32xf32>
    %c80 = arith.constant 80 : index
    %c0_70 = arith.constant 0 : index
    %85 = vector.load %arg16[%c80, %c0_70] : memref<256x32xf32, #tpu.memory_space<vmem>>, vector<16x32xf32>
    tpu.vector_store %arg16[%c80, %c0_70], %84 {strides = array<i32>} : memref<256x32xf32, #tpu.memory_space<vmem>>, vector<16x32xf32>,
    %86 = vector.extract_strided_slice %73 {offsets = [169, 0], sizes = [16, 32], strides = [1, 1]} : vector<432x32xf32> to vector<16x32xf32>
    %c96 = arith.constant 96 : index
    %c0_71 = arith.constant 0 : index
    %87 = vector.load %arg16[%c96, %c0_71] : memref<256x32xf32, #tpu.memory_space<vmem>>, vector<16x32xf32>
    tpu.vector_store %arg16[%c96, %c0_71], %86 {strides = array<i32>} : memref<256x32xf32, #tpu.memory_space<vmem>>, vector<16x32xf32>,
    %88 = vector.extract_strided_slice %73 {offsets = [193, 0], sizes = [16, 32], strides = [1, 1]} : vector<432x32xf32> to vector<16x32xf32>
    %c112 = arith.constant 112 : index
    %c0_72 = arith.constant 0 : index
    %89 = vector.load %arg16[%c112, %c0_72] : memref<256x32xf32, #tpu.memory_space<vmem>>, vector<16x32xf32>
    tpu.vector_store %arg16[%c112, %c0_72], %88 {strides = array<i32>} : memref<256x32xf32, #tpu.memory_space<vmem>>, vector<16x32xf32>,
    %90 = vector.extract_strided_slice %73 {offsets = [217, 0], sizes = [16, 32], strides = [1, 1]} : vector<432x32xf32> to vector<16x32xf32>
    %c128 = arith.constant 128 : index
    %c0_73 = arith.constant 0 : index
    %91 = vector.load %arg16[%c128, %c0_73] : memref<256x32xf32, #tpu.memory_space<vmem>>, vector<16x32xf32>
    tpu.vector_store %arg16[%c128, %c0_73], %90 {strides = array<i32>} : memref<256x32xf32, #tpu.memory_space<vmem>>, vector<16x32xf32>,
    %92 = vector.extract_strided_slice %73 {offsets = [241, 0], sizes = [16, 32], strides = [1, 1]} : vector<432x32xf32> to vector<16x32xf32>
    %c144 = arith.constant 144 : index
    %c0_74 = arith.constant 0 : index
    %93 = vector.load %arg16[%c144, %c0_74] : memref<256x32xf32, #tpu.memory_space<vmem>>, vector<16x32xf32>
    tpu.vector_store %arg16[%c144, %c0_74], %92 {strides = array<i32>} : memref<256x32xf32, #tpu.memory_space<vmem>>, vector<16x32xf32>,
    %94 = vector.extract_strided_slice %73 {offsets = [265, 0], sizes = [16, 32], strides = [1, 1]} : vector<432x32xf32> to vector<16x32xf32>
    %c160 = arith.constant 160 : index
    %c0_75 = arith.constant 0 : index
    %95 = vector.load %arg16[%c160, %c0_75] : memref<256x32xf32, #tpu.memory_space<vmem>>, vector<16x32xf32>
    tpu.vector_store %arg16[%c160, %c0_75], %94 {strides = array<i32>} : memref<256x32xf32, #tpu.memory_space<vmem>>, vector<16x32xf32>,
    %96 = vector.extract_strided_slice %73 {offsets = [289, 0], sizes = [16, 32], strides = [1, 1]} : vector<432x32xf32> to vector<16x32xf32>
    %c176 = arith.constant 176 : index
    %c0_76 = arith.constant 0 : index
    %97 = vector.load %arg16[%c176, %c0_76] : memref<256x32xf32, #tpu.memory_space<vmem>>, vector<16x32xf32>
    tpu.vector_store %arg16[%c176, %c0_76], %96 {strides = array<i32>} : memref<256x32xf32, #tpu.memory_space<vmem>>, vector<16x32xf32>,
    %98 = vector.extract_strided_slice %73 {offsets = [313, 0], sizes = [16, 32], strides = [1, 1]} : vector<432x32xf32> to vector<16x32xf32>
    %c192 = arith.constant 192 : index
    %c0_77 = arith.constant 0 : index
    %99 = vector.load %arg16[%c192, %c0_77] : memref<256x32xf32, #tpu.memory_space<vmem>>, vector<16x32xf32>
    tpu.vector_store %arg16[%c192, %c0_77], %98 {strides = array<i32>} : memref<256x32xf32, #tpu.memory_space<vmem>>, vector<16x32xf32>,
    %100 = vector.extract_strided_slice %73 {offsets = [337, 0], sizes = [16, 32], strides = [1, 1]} : vector<432x32xf32> to vector<16x32xf32>
    %c208 = arith.constant 208 : index
    %c0_78 = arith.constant 0 : index
    %101 = vector.load %arg16[%c208, %c0_78] : memref<256x32xf32, #tpu.memory_space<vmem>>, vector<16x32xf32>
    tpu.vector_store %arg16[%c208, %c0_78], %100 {strides = array<i32>} : memref<256x32xf32, #tpu.memory_space<vmem>>, vector<16x32xf32>,
    %102 = vector.extract_strided_slice %73 {offsets = [361, 0], sizes = [16, 32], strides = [1, 1]} : vector<432x32xf32> to vector<16x32xf32>
    %c224 = arith.constant 224 : index
    %c0_79 = arith.constant 0 : index
    %103 = vector.load %arg16[%c224, %c0_79] : memref<256x32xf32, #tpu.memory_space<vmem>>, vector<16x32xf32>
    tpu.vector_store %arg16[%c224, %c0_79], %102 {strides = array<i32>} : memref<256x32xf32, #tpu.memory_space<vmem>>, vector<16x32xf32>,
    %104 = vector.extract_strided_slice %73 {offsets = [385, 0], sizes = [16, 32], strides = [1, 1]} : vector<432x32xf32> to vector<16x32xf32>
    %c240 = arith.constant 240 : index
    %c0_80 = arith.constant 0 : index
    %105 = vector.load %arg16[%c240, %c0_80] : memref<256x32xf32, #tpu.memory_space<vmem>>, vector<16x32xf32>
    tpu.vector_store %arg16[%c240, %c0_80], %104 {strides = array<i32>} : memref<256x32xf32, #tpu.memory_space<vmem>>, vector<16x32xf32>,
    %c0_81 = arith.constant 0 : index
    %c0_82 = arith.constant 0 : index
    %106 = vector.load %arg16[%c0_81, %c0_82] : memref<256x32xf32, #tpu.memory_space<vmem>>, vector<256x32xf32>
    %c0_83 = arith.constant 0 : index
    %c0_84 = arith.constant 0 : index
    %107 = vector.load %arg10[%c0_83, %c0_84] : memref<1x32xf32, #tpu.memory_space<vmem>>, vector<1x32xf32>
    %c0_85 = arith.constant 0 : index
    %c0_86 = arith.constant 0 : index
    %108 = vector.load %arg11[%c0_85, %c0_86] : memref<1x32xf32, #tpu.memory_space<vmem>>, vector<1x32xf32>
    %cst_87 = arith.constant dense<0.000000e+00> : vector<32xf32>
    %109 = vector.multi_reduction <add>, %106, %cst_87 [0] : vector<256x32xf32> to vector<32xf32>
    %110 = vector.shape_cast %109 : vector<32xf32> to vector<1x32xf32>
    %cst_88 = arith.constant 3.906250e-03 : f32
    %111 = vector.broadcast %cst_88 : f32 to vector<1x32xf32>
    %112 = arith.mulf %110, %111 : vector<1x32xf32>
    %113 = vector.broadcast %112 : vector<1x32xf32> to vector<256x32xf32>
    %114 = arith.subf %106, %113 : vector<256x32xf32>
    %115 = arith.mulf %114, %114 : vector<256x32xf32>
    %cst_89 = arith.constant dense<0.000000e+00> : vector<32xf32>
    %116 = vector.multi_reduction <add>, %115, %cst_89 [0] : vector<256x32xf32> to vector<32xf32>
    %117 = vector.shape_cast %116 : vector<32xf32> to vector<1x32xf32>
    %cst_90 = arith.constant 3.906250e-03 : f32
    %118 = vector.broadcast %cst_90 : f32 to vector<1x32xf32>
    %119 = arith.mulf %117, %118 : vector<1x32xf32>
    %cst_91 = arith.constant 9.99999974E-6 : f32
    %120 = vector.broadcast %cst_91 : f32 to vector<1x32xf32>
    %121 = arith.addf %119, %120 : vector<1x32xf32>
    %122 = math.rsqrt %121 : vector<1x32xf32>
    %123 = arith.mulf %122, %107 : vector<1x32xf32>
    %124 = vector.broadcast %123 : vector<1x32xf32> to vector<256x32xf32>
    %125 = arith.mulf %114, %124 : vector<256x32xf32>
    %126 = vector.broadcast %108 : vector<1x32xf32> to vector<256x32xf32>
    %127 = arith.addf %125, %126 : vector<256x32xf32>
    %128 = tpu.transpose %127, [1, 0] : vector<256x32xf32> -> vector<32x256xf32>
    %c0_92 = arith.constant 0 : index
    %c0_93 = arith.constant 0 : index
    %129 = vector.load %arg12[%c0_92, %c0_93] : memref<32x4xf32, #tpu.memory_space<vmem>>, vector<32x4xf32>
    %c0_94 = arith.constant 0 : index
    %c0_95 = arith.constant 0 : index
    %c0_96 = arith.constant 0 : index
    %130 = vector.load %arg2[%c0_94, %c0_95, %c0_96] : memref<1x4x256xf32, #tpu.memory_space<vmem>>, vector<1x4x256xf32>
    %131 = vector.shape_cast %130 : vector<1x4x256xf32> to vector<4x256xf32>
    %cst_97 = arith.constant dense<0.000000e+00> : vector<32x256xf32>
    %132 = tpu.matmul %129, %131, %cst_97 {dimension_numbers = #tpu.dot_dimension_numbers<[1], [0], [0], [1], [0, 0, 1, 1], [], []>} : vector<32x4xf32>, vector<4x256xf32>, vector<32x256xf32> -> vector<32x256xf32>
    %c0_98 = arith.constant 0 : index
    %c0_99 = arith.constant 0 : index
    %133 = vector.load %arg13[%c0_98, %c0_99] : memref<32x1xf32, #tpu.memory_space<vmem>>, vector<32x1xf32>
    %134 = vector.broadcast %133 : vector<32x1xf32> to vector<32x256xf32>
    %135 = arith.addf %132, %134 : vector<32x256xf32>
    %136 = arith.addf %128, %135 : vector<32x256xf32>
    %cst_100 = arith.constant 0.000000e+00 : f32
    %137 = vector.broadcast %cst_100 : f32 to vector<32x256xf32>
    %138 = arith.maximumf %136, %137 : vector<32x256xf32>
    %c0_101 = arith.constant 0 : index
    %c0_102 = arith.constant 0 : index
    %c0_103 = arith.constant 0 : index
    %139 = vector.load %arg14[%c0_101, %c0_102, %c0_103] : memref<1x32x256xf32, #tpu.memory_space<vmem>>, vector<1x32x256xf32>
    %140 = vector.shape_cast %139 : vector<1x32x256xf32> to vector<32x256xf32>
    %141 = vector.shape_cast %138 : vector<32x256xf32> to vector<1x32x256xf32>
    tpu.vector_store %arg14[%c0_101, %c0_102, %c0_103], %141 {strides = array<i32>} : memref<1x32x256xf32, #tpu.memory_space<vmem>>, vector<1x32x256xf32>,
    return
  }
  func.func @transform_0(%arg0: i32) -> (i32, i32, i32) {
    %c0_i32 = arith.constant 0 : i32
    %c0_i32_0 = arith.constant 0 : i32
    %c0_i32_1 = arith.constant 0 : i32
    return %arg0, %c0_i32, %c0_i32_0 : i32, i32, i32
  }
  func.func @transform_1(%arg0: i32) -> (i32, i32, i32) {
    %c0_i32 = arith.constant 0 : i32
    %c0_i32_0 = arith.constant 0 : i32
    %c0_i32_1 = arith.constant 0 : i32
    return %arg0, %c0_i32, %c0_i32_0 : i32, i32, i32
  }
  func.func @transform_2(%arg0: i32) -> (i32, i32) {
    %c0_i32 = arith.constant 0 : i32
    %c0_i32_0 = arith.constant 0 : i32
    %c0_i32_1 = arith.constant 0 : i32
    return %c0_i32, %c0_i32_0 : i32, i32
  }
  func.func @transform_3(%arg0: i32) -> (i32, i32) {
    %c0_i32 = arith.constant 0 : i32
    %c0_i32_0 = arith.constant 0 : i32
    %c0_i32_1 = arith.constant 0 : i32
    return %c0_i32, %c0_i32_0 : i32, i32
  }
  func.func @transform_4(%arg0: i32) -> (i32, i32) {
    %c0_i32 = arith.constant 0 : i32
    %c0_i32_0 = arith.constant 0 : i32
    %c0_i32_1 = arith.constant 0 : i32
    return %c0_i32, %c0_i32_0 : i32, i32
  }
  func.func @transform_5(%arg0: i32) -> (i32, i32) {
    %c0_i32 = arith.constant 0 : i32
    %c0_i32_0 = arith.constant 0 : i32
    %c0_i32_1 = arith.constant 0 : i32
    return %c0_i32, %c0_i32_0 : i32, i32
  }
  func.func @transform_6(%arg0: i32) -> (i32, i32) {
    %c0_i32 = arith.constant 0 : i32
    %c0_i32_0 = arith.constant 0 : i32
    %c0_i32_1 = arith.constant 0 : i32
    return %c0_i32, %c0_i32_0 : i32, i32
  }
  func.func @transform_7(%arg0: i32) -> (i32, i32) {
    %c0_i32 = arith.constant 0 : i32
    %c0_i32_0 = arith.constant 0 : i32
    %c0_i32_1 = arith.constant 0 : i32
    return %c0_i32, %c0_i32_0 : i32, i32
  }
  func.func @transform_8(%arg0: i32) -> (i32, i32) {
    %c0_i32 = arith.constant 0 : i32
    %c0_i32_0 = arith.constant 0 : i32
    %c0_i32_1 = arith.constant 0 : i32
    return %c0_i32, %c0_i32_0 : i32, i32
  }
  func.func @transform_9(%arg0: i32) -> (i32, i32) {
    %c0_i32 = arith.constant 0 : i32
    %c0_i32_0 = arith.constant 0 : i32
    %c0_i32_1 = arith.constant 0 : i32
    return %c0_i32, %c0_i32_0 : i32, i32
  }
  func.func @transform_10(%arg0: i32) -> (i32, i32) {
    %c0_i32 = arith.constant 0 : i32
    %c0_i32_0 = arith.constant 0 : i32
    %c0_i32_1 = arith.constant 0 : i32
    return %c0_i32, %c0_i32_0 : i32, i32
  }
  func.func @transform_11(%arg0: i32) -> (i32, i32) {
    %c0_i32 = arith.constant 0 : i32
    %c0_i32_0 = arith.constant 0 : i32
    %c0_i32_1 = arith.constant 0 : i32
    return %c0_i32, %c0_i32_0 : i32, i32
  }
  func.func @transform_12(%arg0: i32) -> (i32, i32) {
    %c0_i32 = arith.constant 0 : i32
    %c0_i32_0 = arith.constant 0 : i32
    %c0_i32_1 = arith.constant 0 : i32
    return %c0_i32, %c0_i32_0 : i32, i32
  }
  func.func @transform_13(%arg0: i32) -> (i32, i32, i32) {
    %c0_i32 = arith.constant 0 : i32
    %c0_i32_0 = arith.constant 0 : i32
    %c0_i32_1 = arith.constant 0 : i32
    return %arg0, %c0_i32, %c0_i32_0 : i32, i32, i32
  }
}

</mosaic_0001>

<bundles_post_ra>
// kernel: resnet_block.1
= control target key start
LH: loop header
LB: loop body
LE: loop exit
PB: predicated region body
PF: predicated region fallthrough
CT: control target
= control target key end

     0   :  { %s9012_s25 = smov 0   ;;  %s15353_s0 = inlined_call_operand.vmem [shape: f32[2,496,4], index: 0, kind: input, shape index: {}]   ;;  %s15354_s1 = inlined_call_operand.vmem [shape: f32[2,4,256], index: 1, kind: input, shape index: {}]   ;;  %s15355_s2 = inlined_call_operand.vmem [shape: f32[432,1], index: 2, kind: input, shape index: {}]   ;;  %s15356_s3 = inlined_call_operand.vmem [shape: f32[36,32], index: 3, kind: input, shape index: {}]   ;;  %s15357_s4 = inlined_call_operand.vmem [shape: f32[1,32], index: 4, kind: input, shape index: {}]   ;;  %s15358_s5 = inlined_call_operand.vmem [shape: f32[1,32], index: 5, kind: input, shape index: {}]   ;;  %s15359_s6 = inlined_call_operand.vmem [shape: f32[1,32], index: 6, kind: input, shape index: {}]   ;;  %s15360_s7 = inlined_call_operand.vmem [shape: f32[288,32], index: 7, kind: input, shape index: {}]   ;;  %s15361_s8 = inlined_call_operand.vmem [shape: f32[1,32], index: 8, kind: input, shape index: {}]   ;;  %s15362_s9 = inlined_call_operand.vmem [shape: f32[1,32], index: 9, kind: input, shape index: {}]   ;;  %s15363_s10 = inlined_call_operand.vmem [shape: f32[1,32], index: 10, kind: input, shape index: {}]   ;;  %s15364_s11 = inlined_call_operand.vmem [shape: f32[32,4], index: 11, kind: input, shape index: {}]   ;;  %s15365_s12 = inlined_call_operand.vmem [shape: f32[32,1], index: 12, kind: input, shape index: {}]   ;;  %s15366_s13 = inlined_call_operand.vmem [shape: f32[2,32,256], index: 13, kind: output, shape index: {}]  }
   0x1 LB: > { %s7249_s26 = sadd.s32 4294967295, %s8927_s25   ;;  %p7253_p0 = scmp.ge.s32.totalorder %s8927_s25, 1  ;;  %s8927_s25 = sphi %s9012_s25, %s23_s25  }
   0x2   : > { %p397_p1 = scmp.lt.s32.totalorder %s8927_s25, 3 }
   0x4   : > { %p398_p2 = pnand %p7253_p0, %p397_p1 }
   0x6   : > { %401 = sbr.rel (%p398_p2) target bundleno = 2390 (0x956), region = 72 }
   0xd   : > { %p446_p3 = scmp.lt.s32.totalorder %s7249_s26, 1  ;;  %s8929_s14 = smov 4   ;;  %vm2783_vm0 = vcmask 1043456   ;;  %vm2168_vm1 = vcmask 31744   ;;  %vm2223_vm2 = vcmask 64512   ;;  %vm2278_vm3 = vcmask 97280  }
   0xe   : > { %s8930_s15 = smov 8   ;;  %s8931_s16 = smov 12   ;;  %vm2333_vm4 = vcmask 130048   ;;  %vm2388_vm5 = vcmask 162816   ;;  %vm2443_vm6 = vcmask 195584   ;;  %vm2498_vm7 = vcmask 228352  }
   0xf   : > { %s16595_s26 = smov (!%p446_p3, %s7249_s26), 1  ;;  %s8932_s17 = smov 16   ;;  %vm2553_vm8 = vcmask 261120   ;;  %vm2620_vm9 = vcmask 293888   ;;  %vm5509_vm10 = vcmask 523264   ;;  %vm5564_vm11 = vcmask 785408  }
  0x10   : > { %s7777_s27 = smul.u32 496, %s16595_s26  ;;  %s8933_s18 = smov 20   ;;  %vm6593_vm12 = vcmask 261121   ;;  %vm6596_vm13 = vcmask 253952  }
  0x11   : > { %s8934_s19 = smov 24   ;;  %s8940_s29 = smov 96  }
  0x12   : > { %s9026_s30 = scalar_lea.vmem %s15353_s0, %s7777_s27  ;;  %s7381_s23 = sshll.u32 %s16595_s26, 6 }
  0x13   : > { %v571_v0 = vld [vmem:[%s9026_s30 + $0x18] sm:$0xff]  ;;  %v569_v1 = vld [vmem:[%s9026_s30 + $0x8] sm:$0xff]  ;;  %v9033_v2 = vld [vmem:[%s9026_s30 + $0x20] sm:$0xff]  ;;  %s15334_s28 = scalar_lea.vmem %s15366_s13, %s7381_s23 }
  0x14   : > { %753 = vrot.lane.b32.xlu1 %v571_v0, %s8929_s14  ;;  %749 = vrot.lane.b32.xlu0 %v569_v1, %s8929_s14  ;;  %v570_v3 = vld [vmem:[%s9026_s30 + $0x10] sm:$0xff]  ;;  %v9043_v5 = vld [vmem:[%s9026_s30 + $0x28] sm:$0xff] }
  0x15   : > { %v9040_v4 = vld [vmem:[%s9026_s30 + $0x30] sm:$0xff]  ;;  %v9050_v6 = vld [vmem:[%s9026_s30 + $0x40] sm:$0xff]  ;;  %v9053_v7 = vld [vmem:[%s9026_s30 + $0x38] sm:$0xff] }
  0x16   : > { %v9060_v8 = vld [vmem:[%s9026_s30 + $0x50] sm:$0xff]  ;;  %v9063_v9 = vld [vmem:[%s9026_s30 + $0x48] sm:$0xff]  ;;  %v9070_v10 = vld [vmem:[%s9026_s30 + $0x60] sm:$0xff] }
  0x17   : > { %v9073_v11 = vld [vmem:[%s9026_s30 + $0x58] sm:$0xff]  ;;  %v9080_v12 = vld [vmem:[%s9026_s30 + $0x70] sm:$0xff]  ;;  %v9083_v13 = vld [vmem:[%s9026_s30 + $0x68] sm:$0xff] }
  0x18   : > { %755 = vrot.lane.b32.xlu1 %v9033_v2, %s8929_s14  ;;  %751 = vrot.lane.b32.xlu0 %v570_v3, %s8929_s14  ;;  %v9090_v14 = vld [vmem:[%s9026_s30 + $0x80] sm:$0xff]  ;;  %v9093_v15 = vld [vmem:[%s9026_s30 + $0x78] sm:$0xff] }
  0x19   : > { %v9100_v16 = vld [vmem:[%s9026_s30 + $0x90] sm:$0xff]  ;;  %v9103_v17 = vld [vmem:[%s9026_s30 + $0x88] sm:$0xff]  ;;  %v9110_v18 = vld [vmem:[%s9026_s30 + $0xa0] sm:$0xff] }
  0x1a   : > { %v9113_v19 = vld [vmem:[%s9026_s30 + $0x98] sm:$0xff]  ;;  %v9120_v20 = vld [vmem:[%s9026_s30 + $0xb0] sm:$0xff]  ;;  %v9123_v21 = vld [vmem:[%s9026_s30 + $0xa8] sm:$0xff] }
  0x1b   : > { %v9130_v22 = vld [vmem:[%s9026_s30 + $0xc0] sm:$0xff]  ;;  %v9133_v23 = vld [vmem:[%s9026_s30 + $0xb8] sm:$0xff]  ;;  %v9140_v24 = vld [vmem:[%s9026_s30 + $0xd0] sm:$0xff] }
  0x1c   : > { %759 = vrot.lane.b32.xlu1 %v9040_v4, %s8929_s14  ;;  %757 = vrot.lane.b32.xlu0 %v9043_v5, %s8929_s14  ;;  %v9143_v25 = vld [vmem:[%s9026_s30 + $0xc8] sm:$0xff]  ;;  %v9150_v26 = vld [vmem:[%s9026_s30 + $0xe0] sm:$0xff] }
  0x1d   : > { %v9153_v27 = vld [vmem:[%s9026_s30 + $0xd8] sm:$0xff]  ;;  %v9160_v28 = vld [vmem:[%s9026_s30 + $0xf0] sm:$0xff]  ;;  %v9163_v29 = vld [vmem:[%s9026_s30 + $0xe8] sm:$0xff] }
  0x1e   : > { %v9170_v30 = vld [vmem:[%s9026_s30 + $0x100] sm:$0xff]  ;;  %v9173_v31 = vld [vmem:[%s9026_s30 + $0xf8] sm:$0xff]  ;;  %v9180_v32 = vld [vmem:[%s9026_s30 + $0x110] sm:$0xff] }
  0x1f   : > { %v9183_v33 = vld [vmem:[%s9026_s30 + $0x108] sm:$0xff]  ;;  %v9190_v34 = vld [vmem:[%s9026_s30 + $0x120] sm:$0xff]  ;;  %v9193_v35 = vld [vmem:[%s9026_s30 + $0x118] sm:$0xff] }
  0x20   : > { %763 = vrot.lane.b32.xlu1 %v9050_v6, %s8929_s14  ;;  %761 = vrot.lane.b32.xlu0 %v9053_v7, %s8929_s14  ;;  %v9200_v36 = vld [vmem:[%s9026_s30 + $0x130] sm:$0xff]  ;;  %v9203_v37 = vld [vmem:[%s9026_s30 + $0x128] sm:$0xff] }
  0x21   : > { %v9210_v38 = vld [vmem:[%s9026_s30 + $0x140] sm:$0xff]  ;;  %v9213_v39 = vld [vmem:[%s9026_s30 + $0x138] sm:$0xff]  ;;  %v9220_v40 = vld [vmem:[%s9026_s30 + $0x150] sm:$0xff] }
  0x22   : > { %v9223_v41 = vld [vmem:[%s9026_s30 + $0x148] sm:$0xff]  ;;  %v9230_v42 = vld [vmem:[%s9026_s30 + $0x160] sm:$0xff]  ;;  %v9233_v43 = vld [vmem:[%s9026_s30 + $0x158] sm:$0xff] }
  0x23   : > { %v9240_v44 = vld [vmem:[%s9026_s30 + $0x170] sm:$0xff]  ;;  %v9243_v45 = vld [vmem:[%s9026_s30 + $0x168] sm:$0xff]  ;;  %v9250_v46 = vld [vmem:[%s9026_s30 + $0x180] sm:$0xff] }
  0x24   : > { %767 = vrot.lane.b32.xlu1 %v9060_v8, %s8929_s14  ;;  %765 = vrot.lane.b32.xlu0 %v9063_v9, %s8929_s14  ;;  %v9253_v47 = vld [vmem:[%s9026_s30 + $0x178] sm:$0xff]  ;;  %v9260_v48 = vld [vmem:[%s9026_s30 + $0x190] sm:$0xff] }
  0x25   : > { %v9263_v49 = vld [vmem:[%s9026_s30 + $0x188] sm:$0xff]  ;;  %v9270_v50 = vld [vmem:[%s9026_s30 + $0x1a0] sm:$0xff]  ;;  %v9273_v51 = vld [vmem:[%s9026_s30 + $0x198] sm:$0xff] }
  0x26   : > { %v9280_v52 = vld [vmem:[%s9026_s30 + $0x1b0] sm:$0xff]  ;;  %v9283_v53 = vld [vmem:[%s9026_s30 + $0x1a8] sm:$0xff]  ;;  %v625_v57 = vld [vmem:[%s9026_s30 + $0x19] sm:$0xff] }
  0x27   : > { %v624_v54 = vld [vmem:[%s9026_s30 + $0x11] sm:$0xff]  ;;  %v623_v55 = vld [vmem:[%s9026_s30 + $0x9] sm:$0xff]  ;;  %v9294_v56 = vld [vmem:[%s9026_s30 + $0x21] sm:$0xff] }
  0x28   : > { %771 = vrot.lane.b32.xlu1 %v9070_v10, %s8929_s14  ;;  %769 = vrot.lane.b32.xlu0 %v9073_v11, %s8929_s14  ;;  %v9301_v58 = vld [vmem:[%s9026_s30 + $0x31] sm:$0xff]  ;;  %v9304_v59 = vld [vmem:[%s9026_s30 + $0x29] sm:$0xff] }
  0x29   : > { %15612 = vst [vmem:[#allocation4_spill] sm:$0xff] %v9301_v58  ;;  %v9315_v62 = vld [vmem:[%s9026_s30 + $0x41] sm:$0xff]  ;;  %v9318_v63 = vld [vmem:[%s9026_s30 + $0x39] sm:$0xff]  ;;  %v9329_v3 = vld [vmem:[%s9026_s30 + $0x51] sm:$0xff] }
  0x2a   : > { %15615 = vst [vmem:[#allocation7_spill] sm:$0xff] %v9315_v62  ;;  %15618 = vst [vmem:[#allocation10_spill] sm:$0xff] %v9329_v3 }
  0x2c   : > { %775 = vrot.lane.b32.xlu1 %v9080_v12, %s8929_s14  ;;  %773 = vrot.lane.b32.xlu0 %v9083_v13, %s8929_s14 }
  0x30   : > { %779 = vrot.lane.b32.xlu1 %v9090_v14, %s8929_s14  ;;  %777 = vrot.lane.b32.xlu0 %v9093_v15, %s8929_s14 }
  0x34   : > { %783 = vrot.lane.b32.xlu1 %v9100_v16, %s8929_s14  ;;  %781 = vrot.lane.b32.xlu0 %v9103_v17, %s8929_s14 }
  0x38   : > { %787 = vrot.lane.b32.xlu1 %v9110_v18, %s8929_s14  ;;  %785 = vrot.lane.b32.xlu0 %v9113_v19, %s8929_s14 }
  0x3c   : > { %791 = vrot.lane.b32.xlu1 %v9120_v20, %s8929_s14  ;;  %789 = vrot.lane.b32.xlu0 %v9123_v21, %s8929_s14 }
  0x40   : > { %795 = vrot.lane.b32.xlu1 %v9130_v22, %s8929_s14  ;;  %793 = vrot.lane.b32.xlu0 %v9133_v23, %s8929_s14 }
  0x44   : > { %799 = vrot.lane.b32.xlu1 %v9140_v24, %s8929_s14  ;;  %797 = vrot.lane.b32.xlu0 %v9143_v25, %s8929_s14 }
  0x48   : > { %803 = vrot.lane.b32.xlu1 %v9150_v26, %s8929_s14  ;;  %801 = vrot.lane.b32.xlu0 %v9153_v27, %s8929_s14 }
  0x4c   : > { %807 = vrot.lane.b32.xlu1 %v9160_v28, %s8929_s14  ;;  %805 = vrot.lane.b32.xlu0 %v9163_v29, %s8929_s14 }
  0x50   : > { %811 = vrot.lane.b32.xlu1 %v9170_v30, %s8929_s14  ;;  %809 = vrot.lane.b32.xlu0 %v9173_v31, %s8929_s14 }
  0x54   : > { %815 = vrot.lane.b32.xlu1 %v9180_v32, %s8929_s14  ;;  %813 = vrot.lane.b32.xlu0 %v9183_v33, %s8929_s14 }
  0x58   : > { %819 = vrot.lane.b32.xlu1 %v9190_v34, %s8929_s14  ;;  %817 = vrot.lane.b32.xlu0 %v9193_v35, %s8929_s14 }
  0x5c   : > { %823 = vrot.lane.b32.xlu1 %v9200_v36, %s8929_s14  ;;  %821 = vrot.lane.b32.xlu0 %v9203_v37, %s8929_s14 }
  0x60   : > { %827 = vrot.lane.b32.xlu1 %v9210_v38, %s8929_s14  ;;  %825 = vrot.lane.b32.xlu0 %v9213_v39, %s8929_s14 }
  0x64   : > { %831 = vrot.lane.b32.xlu1 %v9220_v40, %s8929_s14  ;;  %829 = vrot.lane.b32.xlu0 %v9223_v41, %s8929_s14 }
  0x68   : > { %835 = vrot.lane.b32.xlu1 %v9230_v42, %s8929_s14  ;;  %833 = vrot.lane.b32.xlu0 %v9233_v43, %s8929_s14 }
  0x6c   : > { %839 = vrot.lane.b32.xlu1 %v9240_v44, %s8929_s14  ;;  %837 = vrot.lane.b32.xlu0 %v9243_v45, %s8929_s14 }
  0x70   : > { %843 = vrot.lane.b32.xlu1 %v9250_v46, %s8929_s14  ;;  %841 = vrot.lane.b32.xlu0 %v9253_v47, %s8929_s14 }
  0x74   : > { %847 = vrot.lane.b32.xlu1 %v9260_v48, %s8929_s14  ;;  %845 = vrot.lane.b32.xlu0 %v9263_v49, %s8929_s14 }
  0x78   : > { %851 = vrot.lane.b32.xlu1 %v9270_v50, %s8929_s14  ;;  %849 = vrot.lane.b32.xlu0 %v9273_v51, %s8929_s14 }
  0x7c   : > { %855 = vrot.lane.b32.xlu1 %v9280_v52, %s8929_s14  ;;  %853 = vrot.lane.b32.xlu0 %v9283_v53, %s8929_s14  ;;  %s8941_s14 = smov 64  }
  0x80   : > { %967 = vrot.lane.b32.xlu1 %v624_v54, %s8930_s15  ;;  %965 = vrot.lane.b32.xlu0 %v623_v55, %s8930_s15  ;;  %v9332_v54 = vld [vmem:[%s9026_s30 + $0x49] sm:$0xff] }
  0x81   : > { %15619 = vst [vmem:[#allocation11_spill] sm:$0xff] %v9332_v54 }
  0x84   : > { %971 = vrot.lane.b32.xlu1 %v9294_v56, %s8930_s15  ;;  %969 = vrot.lane.b32.xlu0 %v625_v57, %s8930_s15 }
  0x86   : > { %v9306_v60 = vpop.permute.xlu1 %753  ;;  %v9308_v61 = vpop.permute.xlu0 %749 }
  0x87   : > { %15613 = vst [vmem:[#allocation5_spill] sm:$0xff] %v9306_v60  ;;  %15614 = vst [vmem:[#allocation6_spill] sm:$0xff] %v9308_v61  ;;  %v9346_v60 = vld [vmem:[%s9026_s30 + $0x59] sm:$0xff] }
  0x88   : > { %975 = vrot.lane.b32.xlu1 %v9301_v58, %s8930_s15  ;;  %973 = vrot.lane.b32.xlu0 %v9304_v59, %s8930_s15  ;;  %15623 = vst [vmem:[#allocation15_spill] sm:$0xff] %v9346_v60  ;;  %v568_v58 = vld [vmem:[%s9026_s30 + $0x1af] sm:$0xff] }
  0x8a   : > { %v9320_v0 = vpop.permute.xlu1 %755  ;;  %v9322_v1 = vpop.permute.xlu0 %751 }
  0x8b   : > { %15616 = vst [vmem:[#allocation8_spill] sm:$0xff] %v9320_v0  ;;  %15617 = vst [vmem:[#allocation9_spill] sm:$0xff] %v9322_v1  ;;  %v9343_v0 = vld [vmem:[%s9026_s30 + $0x61] sm:$0xff] }
  0x8c   : > { %979 = vrot.lane.b32.xlu1 %v9315_v62, %s8930_s15  ;;  %977 = vrot.lane.b32.xlu0 %v9318_v63, %s8930_s15  ;;  %15622 = vst [vmem:[#allocation14_spill] sm:$0xff] %v9343_v0 }
  0x8e   : > { %v9334_v55 = vpop.permute.xlu1 %759  ;;  %v9336_v57 = vpop.permute.xlu0 %757 }
  0x8f   : > { %15620 = vst [vmem:[#allocation12_spill] sm:$0xff] %v9334_v55  ;;  %15621 = vst [vmem:[#allocation13_spill] sm:$0xff] %v9336_v57  ;;  %v9357_v55 = vld [vmem:[%s9026_s30 + $0x71] sm:$0xff]  ;;  %v9360_v57 = vld [vmem:[%s9026_s30 + $0x69] sm:$0xff] }
  0x90   : > { %983 = vrot.lane.b32.xlu1 %v9329_v3, %s8930_s15  ;;  %981 = vrot.lane.b32.xlu0 %v9332_v54, %s8930_s15  ;;  %15626 = vst [vmem:[#allocation18_spill] sm:$0xff] %v9357_v55  ;;  %15627 = vst [vmem:[#allocation19_spill] sm:$0xff] %v9360_v57  ;;  %v557_v54 = vld [vmem:[%s9026_s30 + $0x157] sm:$0xff] }
  0x92   : > { %v9348_v1 = vpop.permute.xlu1 %763  ;;  %v9350_v61 = vpop.permute.xlu0 %761 }
  0x93   : > { %15624 = vst [vmem:[#allocation16_spill] sm:$0xff] %v9348_v1  ;;  %15625 = vst [vmem:[#allocation17_spill] sm:$0xff] %v9350_v61  ;;  %v9371_v1 = vld [vmem:[%s9026_s30 + $0x81] sm:$0xff]  ;;  %v9374_v61 = vld [vmem:[%s9026_s30 + $0x79] sm:$0xff] }
  0x94   : > { %987 = vrot.lane.b32.xlu1 %v9343_v0, %s8930_s15  ;;  %985 = vrot.lane.b32.xlu0 %v9346_v60, %s8930_s15  ;;  %15630 = vst [vmem:[#allocation22_spill] sm:$0xff] %v9371_v1  ;;  %15631 = vst [vmem:[#allocation23_spill] sm:$0xff] %v9374_v61 }
  0x96   : > { %v9362_v3 = vpop.permute.xlu1 %767  ;;  %v9364_v62 = vpop.permute.xlu0 %765 }
  0x97   : > { %15628 = vst [vmem:[#allocation20_spill] sm:$0xff] %v9362_v3  ;;  %15629 = vst [vmem:[#allocation21_spill] sm:$0xff] %v9364_v62  ;;  %v9385_v3 = vld [vmem:[%s9026_s30 + $0x91] sm:$0xff]  ;;  %v9388_v62 = vld [vmem:[%s9026_s30 + $0x89] sm:$0xff] }
  0x98   : > { %991 = vrot.lane.b32.xlu1 %v9357_v55, %s8930_s15  ;;  %989 = vrot.lane.b32.xlu0 %v9360_v57, %s8930_s15  ;;  %15634 = vst [vmem:[#allocation26_spill] sm:$0xff] %v9385_v3  ;;  %15635 = vst [vmem:[#allocation27_spill] sm:$0xff] %v9388_v62 }
  0x9a   : > { %v9376_v0 = vpop.permute.xlu1 %771  ;;  %v9378_v60 = vpop.permute.xlu0 %769 }
  0x9b   : > { %15632 = vst [vmem:[#allocation24_spill] sm:$0xff] %v9376_v0  ;;  %15633 = vst [vmem:[#allocation25_spill] sm:$0xff] %v9378_v60  ;;  %v9399_v0 = vld [vmem:[%s9026_s30 + $0xa1] sm:$0xff]  ;;  %v9402_v60 = vld [vmem:[%s9026_s30 + $0x99] sm:$0xff] }
  0x9c   : > { %995 = vrot.lane.b32.xlu1 %v9371_v1, %s8930_s15  ;;  %993 = vrot.lane.b32.xlu0 %v9374_v61, %s8930_s15  ;;  %15638 = vst [vmem:[#allocation30_spill] sm:$0xff] %v9399_v0  ;;  %15639 = vst [vmem:[#allocation31_spill] sm:$0xff] %v9402_v60 }
  0x9e   : > { %v9390_v55 = vpop.permute.xlu1 %775  ;;  %v9392_v57 = vpop.permute.xlu0 %773 }
  0x9f   : > { %15636 = vst [vmem:[#allocation28_spill] sm:$0xff] %v9390_v55  ;;  %15637 = vst [vmem:[#allocation29_spill] sm:$0xff] %v9392_v57  ;;  %v9413_v55 = vld [vmem:[%s9026_s30 + $0xb1] sm:$0xff]  ;;  %v9416_v57 = vld [vmem:[%s9026_s30 + $0xa9] sm:$0xff] }
  0xa0   : > { %999 = vrot.lane.b32.xlu1 %v9385_v3, %s8930_s15  ;;  %997 = vrot.lane.b32.xlu0 %v9388_v62, %s8930_s15  ;;  %15642 = vst [vmem:[#allocation34_spill] sm:$0xff] %v9413_v55  ;;  %15643 = vst [vmem:[#allocation35_spill] sm:$0xff] %v9416_v57 }
  0xa2   : > { %v9404_v1 = vpop.permute.xlu1 %779  ;;  %v9406_v61 = vpop.permute.xlu0 %777 }
  0xa3   : > { %15640 = vst [vmem:[#allocation32_spill] sm:$0xff] %v9404_v1  ;;  %15641 = vst [vmem:[#allocation33_spill] sm:$0xff] %v9406_v61  ;;  %v9427_v1 = vld [vmem:[%s9026_s30 + $0xc1] sm:$0xff]  ;;  %v9430_v61 = vld [vmem:[%s9026_s30 + $0xb9] sm:$0xff] }
  0xa4   : > { %1003 = vrot.lane.b32.xlu1 %v9399_v0, %s8930_s15  ;;  %1001 = vrot.lane.b32.xlu0 %v9402_v60, %s8930_s15  ;;  %15646 = vst [vmem:[#allocation38_spill] sm:$0xff] %v9427_v1  ;;  %15647 = vst [vmem:[#allocation39_spill] sm:$0xff] %v9430_v61 }
  0xa6   : > { %v9418_v3 = vpop.permute.xlu1 %783  ;;  %v9420_v62 = vpop.permute.xlu0 %781 }
  0xa7   : > { %15644 = vst [vmem:[#allocation36_spill] sm:$0xff] %v9418_v3  ;;  %15645 = vst [vmem:[#allocation37_spill] sm:$0xff] %v9420_v62  ;;  %v9441_v3 = vld [vmem:[%s9026_s30 + $0xd1] sm:$0xff]  ;;  %v9444_v62 = vld [vmem:[%s9026_s30 + $0xc9] sm:$0xff] }
  0xa8   : > { %1007 = vrot.lane.b32.xlu1 %v9413_v55, %s8930_s15  ;;  %1005 = vrot.lane.b32.xlu0 %v9416_v57, %s8930_s15  ;;  %15650 = vst [vmem:[#allocation42_spill] sm:$0xff] %v9441_v3  ;;  %15651 = vst [vmem:[#allocation43_spill] sm:$0xff] %v9444_v62 }
  0xaa   : > { %v9432_v0 = vpop.permute.xlu1 %787  ;;  %v9434_v60 = vpop.permute.xlu0 %785 }
  0xab   : > { %15648 = vst [vmem:[#allocation40_spill] sm:$0xff] %v9432_v0  ;;  %15649 = vst [vmem:[#allocation41_spill] sm:$0xff] %v9434_v60  ;;  %v9455_v0 = vld [vmem:[%s9026_s30 + $0xe1] sm:$0xff]  ;;  %v9458_v60 = vld [vmem:[%s9026_s30 + $0xd9] sm:$0xff] }
  0xac   : > { %1011 = vrot.lane.b32.xlu1 %v9427_v1, %s8930_s15  ;;  %1009 = vrot.lane.b32.xlu0 %v9430_v61, %s8930_s15  ;;  %15654 = vst [vmem:[#allocation46_spill] sm:$0xff] %v9455_v0  ;;  %15655 = vst [vmem:[#allocation47_spill] sm:$0xff] %v9458_v60 }
  0xae   : > { %v9446_v55 = vpop.permute.xlu1 %791  ;;  %v9448_v57 = vpop.permute.xlu0 %789 }
  0xaf   : > { %15652 = vst [vmem:[#allocation44_spill] sm:$0xff] %v9446_v55  ;;  %15653 = vst [vmem:[#allocation45_spill] sm:$0xff] %v9448_v57  ;;  %v9469_v55 = vld [vmem:[%s9026_s30 + $0xf1] sm:$0xff]  ;;  %v9472_v57 = vld [vmem:[%s9026_s30 + $0xe9] sm:$0xff] }
  0xb0   : > { %1015 = vrot.lane.b32.xlu1 %v9441_v3, %s8930_s15  ;;  %1013 = vrot.lane.b32.xlu0 %v9444_v62, %s8930_s15  ;;  %15658 = vst [vmem:[#allocation50_spill] sm:$0xff] %v9469_v55  ;;  %15659 = vst [vmem:[#allocation51_spill] sm:$0xff] %v9472_v57 }
  0xb2   : > { %v9460_v1 = vpop.permute.xlu1 %795  ;;  %v9462_v61 = vpop.permute.xlu0 %793 }
  0xb3   : > { %15656 = vst [vmem:[#allocation48_spill] sm:$0xff] %v9460_v1  ;;  %15657 = vst [vmem:[#allocation49_spill] sm:$0xff] %v9462_v61  ;;  %v9483_v1 = vld [vmem:[%s9026_s30 + $0x101] sm:$0xff]  ;;  %v9486_v61 = vld [vmem:[%s9026_s30 + $0xf9] sm:$0xff] }
  0xb4   : > { %1019 = vrot.lane.b32.xlu1 %v9455_v0, %s8930_s15  ;;  %1017 = vrot.lane.b32.xlu0 %v9458_v60, %s8930_s15  ;;  %15662 = vst [vmem:[#allocation54_spill] sm:$0xff] %v9483_v1  ;;  %15663 = vst [vmem:[#allocation55_spill] sm:$0xff] %v9486_v61 }
  0xb6   : > { %v9474_v3 = vpop.permute.xlu1 %799  ;;  %v9476_v62 = vpop.permute.xlu0 %797 }
  0xb7   : > { %15660 = vst [vmem:[#allocation52_spill] sm:$0xff] %v9474_v3  ;;  %15661 = vst [vmem:[#allocation53_spill] sm:$0xff] %v9476_v62  ;;  %v9497_v3 = vld [vmem:[%s9026_s30 + $0x111] sm:$0xff]  ;;  %v9500_v62 = vld [vmem:[%s9026_s30 + $0x109] sm:$0xff] }
  0xb8   : > { %1023 = vrot.lane.b32.xlu1 %v9469_v55, %s8930_s15  ;;  %1021 = vrot.lane.b32.xlu0 %v9472_v57, %s8930_s15  ;;  %15666 = vst [vmem:[#allocation58_spill] sm:$0xff] %v9497_v3  ;;  %15667 = vst [vmem:[#allocation59_spill] sm:$0xff] %v9500_v62 }
  0xba   : > { %v9488_v0 = vpop.permute.xlu1 %803  ;;  %v9490_v60 = vpop.permute.xlu0 %801 }
  0xbb   : > { %15664 = vst [vmem:[#allocation56_spill] sm:$0xff] %v9488_v0  ;;  %15665 = vst [vmem:[#allocation57_spill] sm:$0xff] %v9490_v60  ;;  %v9511_v0 = vld [vmem:[%s9026_s30 + $0x121] sm:$0xff]  ;;  %v9514_v60 = vld [vmem:[%s9026_s30 + $0x119] sm:$0xff] }
  0xbc   : > { %1027 = vrot.lane.b32.xlu1 %v9483_v1, %s8930_s15  ;;  %1025 = vrot.lane.b32.xlu0 %v9486_v61, %s8930_s15  ;;  %15670 = vst [vmem:[#allocation62_spill] sm:$0xff] %v9511_v0  ;;  %15671 = vst [vmem:[#allocation63_spill] sm:$0xff] %v9514_v60 }
  0xbe   : > { %v9502_v55 = vpop.permute.xlu1 %807  ;;  %v9504_v57 = vpop.permute.xlu0 %805 }
  0xbf   : > { %15668 = vst [vmem:[#allocation60_spill] sm:$0xff] %v9502_v55  ;;  %15669 = vst [vmem:[#allocation61_spill] sm:$0xff] %v9504_v57  ;;  %v9525_v55 = vld [vmem:[%s9026_s30 + $0x131] sm:$0xff]  ;;  %v9528_v57 = vld [vmem:[%s9026_s30 + $0x129] sm:$0xff] }
  0xc0   : > { %1031 = vrot.lane.b32.xlu1 %v9497_v3, %s8930_s15  ;;  %1029 = vrot.lane.b32.xlu0 %v9500_v62, %s8930_s15  ;;  %15674 = vst [vmem:[#allocation66_spill] sm:$0xff] %v9525_v55  ;;  %15675 = vst [vmem:[#allocation67_spill] sm:$0xff] %v9528_v57 }
  0xc2   : > { %v9516_v1 = vpop.permute.xlu1 %811  ;;  %v9518_v61 = vpop.permute.xlu0 %809 }
  0xc3   : > { %15672 = vst [vmem:[#allocation64_spill] sm:$0xff] %v9516_v1  ;;  %15673 = vst [vmem:[#allocation65_spill] sm:$0xff] %v9518_v61  ;;  %v9539_v1 = vld [vmem:[%s9026_s30 + $0x141] sm:$0xff]  ;;  %v9542_v61 = vld [vmem:[%s9026_s30 + $0x139] sm:$0xff] }
  0xc4   : > { %1035 = vrot.lane.b32.xlu1 %v9511_v0, %s8930_s15  ;;  %1033 = vrot.lane.b32.xlu0 %v9514_v60, %s8930_s15  ;;  %15678 = vst [vmem:[#allocation70_spill] sm:$0xff] %v9539_v1  ;;  %15679 = vst [vmem:[#allocation71_spill] sm:$0xff] %v9542_v61 }
  0xc6   : > { %v9530_v3 = vpop.permute.xlu1 %815  ;;  %v9532_v62 = vpop.permute.xlu0 %813 }
  0xc7   : > { %15676 = vst [vmem:[#allocation68_spill] sm:$0xff] %v9530_v3  ;;  %15677 = vst [vmem:[#allocation69_spill] sm:$0xff] %v9532_v62  ;;  %v9553_v62 = vld [vmem:[%s9026_s30 + $0x151] sm:$0xff]  ;;  %v9556_v3 = vld [vmem:[%s9026_s30 + $0x149] sm:$0xff] }
  0xc8   : > { %1039 = vrot.lane.b32.xlu1 %v9525_v55, %s8930_s15  ;;  %1037 = vrot.lane.b32.xlu0 %v9528_v57, %s8930_s15  ;;  %15682 = vst [vmem:[#allocation74_spill] sm:$0xff] %v9553_v62  ;;  %15683 = vst [vmem:[#allocation75_spill] sm:$0xff] %v9556_v3 }
  0xca   : > { %v9544_v0 = vpop.permute.xlu1 %819  ;;  %v9546_v60 = vpop.permute.xlu0 %817 }
  0xcb   : > { %15680 = vst [vmem:[#allocation72_spill] sm:$0xff] %v9544_v0  ;;  %15681 = vst [vmem:[#allocation73_spill] sm:$0xff] %v9546_v60  ;;  %v9567_v60 = vld [vmem:[%s9026_s30 + $0x161] sm:$0xff]  ;;  %v9570_v0 = vld [vmem:[%s9026_s30 + $0x159] sm:$0xff] }
  0xcc   : > { %1043 = vrot.lane.b32.xlu1 %v9539_v1, %s8930_s15  ;;  %1041 = vrot.lane.b32.xlu0 %v9542_v61, %s8930_s15  ;;  %15686 = vst [vmem:[#allocation78_spill] sm:$0xff] %v9567_v60  ;;  %15687 = vst [vmem:[#allocation79_spill] sm:$0xff] %v9570_v0 }
  0xce   : > { %v9558_v55 = vpop.permute.xlu1 %823  ;;  %v9560_v57 = vpop.permute.xlu0 %821 }
  0xcf   : > { %15684 = vst [vmem:[#allocation76_spill] sm:$0xff] %v9558_v55  ;;  %15685 = vst [vmem:[#allocation77_spill] sm:$0xff] %v9560_v57  ;;  %v9581_v57 = vld [vmem:[%s9026_s30 + $0x171] sm:$0xff]  ;;  %v9584_v55 = vld [vmem:[%s9026_s30 + $0x169] sm:$0xff] }
  0xd0   : > { %1047 = vrot.lane.b32.xlu1 %v9553_v62, %s8930_s15  ;;  %1045 = vrot.lane.b32.xlu0 %v9556_v3, %s8930_s15  ;;  %15690 = vst [vmem:[#allocation82_spill] sm:$0xff] %v9581_v57  ;;  %15691 = vst [vmem:[#allocation83_spill] sm:$0xff] %v9584_v55 }
  0xd2   : > { %v9572_v1 = vpop.permute.xlu1 %827  ;;  %v9574_v61 = vpop.permute.xlu0 %825 }
  0xd3   : > { %15688 = vst [vmem:[#allocation80_spill] sm:$0xff] %v9572_v1  ;;  %15689 = vst [vmem:[#allocation81_spill] sm:$0xff] %v9574_v61  ;;  %v9595_v61 = vld [vmem:[%s9026_s30 + $0x181] sm:$0xff]  ;;  %v9598_v1 = vld [vmem:[%s9026_s30 + $0x179] sm:$0xff] }
  0xd4   : > { %1051 = vrot.lane.b32.xlu1 %v9567_v60, %s8930_s15  ;;  %1049 = vrot.lane.b32.xlu0 %v9570_v0, %s8930_s15  ;;  %15694 = vst [vmem:[#allocation86_spill] sm:$0xff] %v9595_v61  ;;  %15695 = vst [vmem:[#allocation87_spill] sm:$0xff] %v9598_v1 }
  0xd6   : > { %v9586_v62 = vpop.permute.xlu1 %831  ;;  %v9588_v3 = vpop.permute.xlu0 %829 }
  0xd7   : > { %15692 = vst [vmem:[#allocation84_spill] sm:$0xff] %v9586_v62  ;;  %15693 = vst [vmem:[#allocation85_spill] sm:$0xff] %v9588_v3  ;;  %v9609_v3 = vld [vmem:[%s9026_s30 + $0x191] sm:$0xff]  ;;  %v9612_v62 = vld [vmem:[%s9026_s30 + $0x189] sm:$0xff] }
  0xd8   : > { %1055 = vrot.lane.b32.xlu1 %v9581_v57, %s8930_s15  ;;  %1053 = vrot.lane.b32.xlu0 %v9584_v55, %s8930_s15  ;;  %15698 = vst [vmem:[#allocation90_spill] sm:$0xff] %v9609_v3  ;;  %15699 = vst [vmem:[#allocation91_spill] sm:$0xff] %v9612_v62 }
  0xda   : > { %v9600_v60 = vpop.permute.xlu1 %835  ;;  %v9602_v0 = vpop.permute.xlu0 %833 }
  0xdb   : > { %15696 = vst [vmem:[#allocation88_spill] sm:$0xff] %v9600_v60  ;;  %15697 = vst [vmem:[#allocation89_spill] sm:$0xff] %v9602_v0  ;;  %v9623_v0 = vld [vmem:[%s9026_s30 + $0x1a1] sm:$0xff]  ;;  %v9626_v60 = vld [vmem:[%s9026_s30 + $0x199] sm:$0xff] }
  0xdc   : > { %1059 = vrot.lane.b32.xlu1 %v9595_v61, %s8930_s15  ;;  %1057 = vrot.lane.b32.xlu0 %v9598_v1, %s8930_s15  ;;  %15702 = vst [vmem:[#allocation94_spill] sm:$0xff] %v9623_v0  ;;  %15703 = vst [vmem:[#allocation95_spill] sm:$0xff] %v9626_v60 }
  0xde   : > { %v9614_v57 = vpop.permute.xlu1 %839  ;;  %v9616_v55 = vpop.permute.xlu0 %837 }
  0xdf   : > { %15700 = vst [vmem:[#allocation92_spill] sm:$0xff] %v9614_v57  ;;  %15701 = vst [vmem:[#allocation93_spill] sm:$0xff] %v9616_v55  ;;  %v9637_v55 = vld [vmem:[%s9026_s30 + $0x1b1] sm:$0xff]  ;;  %v9640_v57 = vld [vmem:[%s9026_s30 + $0x1a9] sm:$0xff] }
  0xe0   : > { %1063 = vrot.lane.b32.xlu1 %v9609_v3, %s8930_s15  ;;  %1061 = vrot.lane.b32.xlu0 %v9612_v62, %s8930_s15  ;;  %15706 = vst [vmem:[#allocation98_spill] sm:$0xff] %v9637_v55  ;;  %15707 = vst [vmem:[#allocation99_spill] sm:$0xff] %v9640_v57 }
  0xe2   : > { %v9628_v61 = vpop.permute.xlu1 %843  ;;  %v9630_v1 = vpop.permute.xlu0 %841 }
  0xe3   : > { %15704 = vst [vmem:[#allocation96_spill] sm:$0xff] %v9628_v61  ;;  %15705 = vst [vmem:[#allocation97_spill] sm:$0xff] %v9630_v1 }
  0xe4   : > { %1067 = vrot.lane.b32.xlu1 %v9623_v0, %s8930_s15  ;;  %1065 = vrot.lane.b32.xlu0 %v9626_v60, %s8930_s15  ;;  %v518_v0 = vld [vmem:[%s9026_s30 + $0x1f] sm:$0xff]  ;;  %v519_v60 = vld [vmem:[%s9026_s30 + $0x27] sm:$0xff] }
  0xe6   : > { %v9642_v3 = vpop.permute.xlu1 %847  ;;  %v9644_v62 = vpop.permute.xlu0 %845 }
  0xe7   : > { %15708 = vst [vmem:[#allocation100_spill] sm:$0xff] %v9642_v3  ;;  %15709 = vst [vmem:[#allocation101_spill] sm:$0xff] %v9644_v62 }
  0xe8   : > { %1071 = vrot.lane.b32.xlu1 %v9637_v55, %s8930_s15  ;;  %1069 = vrot.lane.b32.xlu0 %v9640_v57, %s8930_s15  ;;  %v520_v55 = vld [vmem:[%s9026_s30 + $0x2f] sm:$0xff]  ;;  %v9664_v57 = vld [vmem:[%s9026_s30 + $0x37] sm:$0xff]  ;;  %s7380_s15 = sshll.u32 %s16595_s26, 3 }
  0xe9   : > { %15714 = vst [vmem:[#allocation106_spill] sm:$0xff] %v9664_v57 }
  0xea   : > { %v9650_v1 = vpop.permute.xlu1 %851  ;;  %v9652_v61 = vpop.permute.xlu0 %849 }
  0xeb   : > { %15710 = vst [vmem:[#allocation102_spill] sm:$0xff] %v9650_v1  ;;  %15711 = vst [vmem:[#allocation103_spill] sm:$0xff] %v9652_v61  ;;  %v9677_v1 = vld [vmem:[%s9026_s30 + $0x47] sm:$0xff] }
  0xec   : > { %1183 = vrot.lane.b32.xlu1 %v519_v60, %s8931_s16  ;;  %1181 = vrot.lane.b32.xlu0 %v518_v0, %s8931_s16  ;;  %v9674_v0 = vld [vmem:[%s9026_s30 + $0x3f] sm:$0xff]  ;;  %15718 = vst [vmem:[#allocation110_spill] sm:$0xff] %v9677_v1 }
  0xed   : > { %15717 = vst [vmem:[#allocation109_spill] sm:$0xff] %v9674_v0 }
  0xee   : > { %v9658_v62 = vpop.permute.xlu1 %855  ;;  %v9660_v3 = vpop.permute.xlu0 %853 }
  0xef   : > { %15712 = vst [vmem:[#allocation104_spill] sm:$0xff] %v9658_v62  ;;  %15713 = vst [vmem:[#allocation105_spill] sm:$0xff] %v9660_v3  ;;  %v9688_v62 = vld [vmem:[%s9026_s30 + $0x4f] sm:$0xff] }
  0xf0   : > { %1187 = vrot.lane.b32.xlu1 %v9664_v57, %s8931_s16  ;;  %1185 = vrot.lane.b32.xlu0 %v520_v55, %s8931_s16  ;;  %15721 = vst [vmem:[#allocation113_spill] sm:$0xff] %v9688_v62  ;;  %v9702_v57 = vld [vmem:[%s9026_s30 + $0x5f] sm:$0xff] }
  0xf1   : > { %15725 = vst [vmem:[#allocation117_spill] sm:$0xff] %v9702_v57 }
  0xf2   : > { %v9669_v61 = vpop.permute.xlu1 %967  ;;  %v9671_v60 = vpop.permute.xlu0 %965 }
  0xf3   : > { %15715 = vst [vmem:[#allocation107_spill] sm:$0xff] %v9669_v61  ;;  %15716 = vst [vmem:[#allocation108_spill] sm:$0xff] %v9671_v60  ;;  %v9691_v61 = vld [vmem:[%s9026_s30 + $0x57] sm:$0xff] }
  0xf4   : > { %1191 = vrot.lane.b32.xlu1 %v9677_v1, %s8931_s16  ;;  %1189 = vrot.lane.b32.xlu0 %v9674_v0, %s8931_s16  ;;  %15722 = vst [vmem:[#allocation114_spill] sm:$0xff] %v9691_v61  ;;  %v556_v0 = vld [vmem:[%s9026_s30 + $0x14f] sm:$0xff] }
  0xf6   : > { %v9683_v3 = vpop.permute.xlu1 %971  ;;  %v9685_v55 = vpop.permute.xlu0 %969 }
  0xf7   : > { %15719 = vst [vmem:[#allocation111_spill] sm:$0xff] %v9683_v3  ;;  %15720 = vst [vmem:[#allocation112_spill] sm:$0xff] %v9685_v55  ;;  %v9705_v3 = vld [vmem:[%s9026_s30 + $0x67] sm:$0xff] }
  0xf8   : > { %1195 = vrot.lane.b32.xlu1 %v9691_v61, %s8931_s16  ;;  %1193 = vrot.lane.b32.xlu0 %v9688_v62, %s8931_s16  ;;  %15726 = vst [vmem:[#allocation118_spill] sm:$0xff] %v9705_v3  ;;  %v9716_v62 = vld [vmem:[%s9026_s30 + $0x6f] sm:$0xff] }
  0xf9   : > { %15729 = vst [vmem:[#allocation121_spill] sm:$0xff] %v9716_v62 }
  0xfa   : > { %v9697_v60 = vpop.permute.xlu1 %975  ;;  %v9699_v1 = vpop.permute.xlu0 %973 }
  0xfb   : > { %15723 = vst [vmem:[#allocation115_spill] sm:$0xff] %v9697_v60  ;;  %15724 = vst [vmem:[#allocation116_spill] sm:$0xff] %v9699_v1  ;;  %v9719_v60 = vld [vmem:[%s9026_s30 + $0x77] sm:$0xff] }
  0xfc   : > { %1199 = vrot.lane.b32.xlu1 %v9705_v3, %s8931_s16  ;;  %1197 = vrot.lane.b32.xlu0 %v9702_v57, %s8931_s16  ;;  %15730 = vst [vmem:[#allocation122_spill] sm:$0xff] %v9719_v60  ;;  %v9730_v57 = vld [vmem:[%s9026_s30 + $0x7f] sm:$0xff] }
  0xfd   : > { %15733 = vst [vmem:[#allocation125_spill] sm:$0xff] %v9730_v57 }
  0xfe   : > { %v9711_v55 = vpop.permute.xlu1 %979  ;;  %v9713_v61 = vpop.permute.xlu0 %977 }
  0xff   : > { %15727 = vst [vmem:[#allocation119_spill] sm:$0xff] %v9711_v55  ;;  %15728 = vst [vmem:[#allocation120_spill] sm:$0xff] %v9713_v61  ;;  %v9733_v55 = vld [vmem:[%s9026_s30 + $0x87] sm:$0xff] }
 0x100   : > { %1203 = vrot.lane.b32.xlu1 %v9719_v60, %s8931_s16  ;;  %1201 = vrot.lane.b32.xlu0 %v9716_v62, %s8931_s16  ;;  %15734 = vst [vmem:[#allocation126_spill] sm:$0xff] %v9733_v55  ;;  %v9744_v62 = vld [vmem:[%s9026_s30 + $0x8f] sm:$0xff] }
 0x101   : > { %15737 = vst [vmem:[#allocation129_spill] sm:$0xff] %v9744_v62 }
 0x102   : > { %v9725_v1 = vpop.permute.xlu1 %983  ;;  %v9727_v3 = vpop.permute.xlu0 %981 }
 0x103   : > { %15731 = vst [vmem:[#allocation123_spill] sm:$0xff] %v9725_v1  ;;  %15732 = vst [vmem:[#allocation124_spill] sm:$0xff] %v9727_v3  ;;  %v9747_v1 = vld [vmem:[%s9026_s30 + $0x97] sm:$0xff] }
 0x104   : > { %1207 = vrot.lane.b32.xlu1 %v9733_v55, %s8931_s16  ;;  %1205 = vrot.lane.b32.xlu0 %v9730_v57, %s8931_s16  ;;  %15738 = vst [vmem:[#allocation130_spill] sm:$0xff] %v9747_v1  ;;  %v9758_v57 = vld [vmem:[%s9026_s30 + $0x9f] sm:$0xff] }
 0x105   : > { %15741 = vst [vmem:[#allocation133_spill] sm:$0xff] %v9758_v57 }
 0x106   : > { %v9739_v61 = vpop.permute.xlu1 %987  ;;  %v9741_v60 = vpop.permute.xlu0 %985 }
 0x107   : > { %15735 = vst [vmem:[#allocation127_spill] sm:$0xff] %v9739_v61  ;;  %15736 = vst [vmem:[#allocation128_spill] sm:$0xff] %v9741_v60  ;;  %v9761_v61 = vld [vmem:[%s9026_s30 + $0xa7] sm:$0xff] }
 0x108   : > { %1211 = vrot.lane.b32.xlu1 %v9747_v1, %s8931_s16  ;;  %1209 = vrot.lane.b32.xlu0 %v9744_v62, %s8931_s16  ;;  %15742 = vst [vmem:[#allocation134_spill] sm:$0xff] %v9761_v61  ;;  %v9772_v62 = vld [vmem:[%s9026_s30 + $0xaf] sm:$0xff] }
 0x109   : > { %15745 = vst [vmem:[#allocation137_spill] sm:$0xff] %v9772_v62 }
 0x10a   : > { %v9753_v3 = vpop.permute.xlu1 %991  ;;  %v9755_v55 = vpop.permute.xlu0 %989 }
 0x10b   : > { %15739 = vst [vmem:[#allocation131_spill] sm:$0xff] %v9753_v3  ;;  %15740 = vst [vmem:[#allocation132_spill] sm:$0xff] %v9755_v55  ;;  %v9775_v3 = vld [vmem:[%s9026_s30 + $0xb7] sm:$0xff] }
 0x10c   : > { %1215 = vrot.lane.b32.xlu1 %v9761_v61, %s8931_s16  ;;  %1213 = vrot.lane.b32.xlu0 %v9758_v57, %s8931_s16  ;;  %15746 = vst [vmem:[#allocation138_spill] sm:$0xff] %v9775_v3  ;;  %v9786_v57 = vld [vmem:[%s9026_s30 + $0xbf] sm:$0xff] }
 0x10d   : > { %15749 = vst [vmem:[#allocation141_spill] sm:$0xff] %v9786_v57 }
 0x10e   : > { %v9767_v60 = vpop.permute.xlu1 %995  ;;  %v9769_v1 = vpop.permute.xlu0 %993 }
 0x10f   : > { %15743 = vst [vmem:[#allocation135_spill] sm:$0xff] %v9767_v60  ;;  %15744 = vst [vmem:[#allocation136_spill] sm:$0xff] %v9769_v1  ;;  %v9789_v60 = vld [vmem:[%s9026_s30 + $0xc7] sm:$0xff] }
 0x110   : > { %1219 = vrot.lane.b32.xlu1 %v9775_v3, %s8931_s16  ;;  %1217 = vrot.lane.b32.xlu0 %v9772_v62, %s8931_s16  ;;  %15750 = vst [vmem:[#allocation142_spill] sm:$0xff] %v9789_v60  ;;  %v9800_v62 = vld [vmem:[%s9026_s30 + $0xcf] sm:$0xff] }
 0x111   : > { %15753 = vst [vmem:[#allocation145_spill] sm:$0xff] %v9800_v62 }
 0x112   : > { %v9781_v55 = vpop.permute.xlu1 %999  ;;  %v9783_v61 = vpop.permute.xlu0 %997 }
 0x113   : > { %15747 = vst [vmem:[#allocation139_spill] sm:$0xff] %v9781_v55  ;;  %15748 = vst [vmem:[#allocation140_spill] sm:$0xff] %v9783_v61  ;;  %v9803_v55 = vld [vmem:[%s9026_s30 + $0xd7] sm:$0xff] }
 0x114   : > { %1223 = vrot.lane.b32.xlu1 %v9789_v60, %s8931_s16  ;;  %1221 = vrot.lane.b32.xlu0 %v9786_v57, %s8931_s16  ;;  %15754 = vst [vmem:[#allocation146_spill] sm:$0xff] %v9803_v55  ;;  %v9814_v57 = vld [vmem:[%s9026_s30 + $0xdf] sm:$0xff] }
 0x115   : > { %15757 = vst [vmem:[#allocation149_spill] sm:$0xff] %v9814_v57 }
 0x116   : > { %v9795_v1 = vpop.permute.xlu1 %1003  ;;  %v9797_v3 = vpop.permute.xlu0 %1001 }
 0x117   : > { %15751 = vst [vmem:[#allocation143_spill] sm:$0xff] %v9795_v1  ;;  %15752 = vst [vmem:[#allocation144_spill] sm:$0xff] %v9797_v3  ;;  %v9817_v1 = vld [vmem:[%s9026_s30 + $0xe7] sm:$0xff] }
 0x118   : > { %1227 = vrot.lane.b32.xlu1 %v9803_v55, %s8931_s16  ;;  %1225 = vrot.lane.b32.xlu0 %v9800_v62, %s8931_s16  ;;  %15758 = vst [vmem:[#allocation150_spill] sm:$0xff] %v9817_v1  ;;  %v9828_v62 = vld [vmem:[%s9026_s30 + $0xef] sm:$0xff] }
 0x119   : > { %15761 = vst [vmem:[#allocation153_spill] sm:$0xff] %v9828_v62 }
 0x11a   : > { %v9809_v61 = vpop.permute.xlu1 %1007  ;;  %v9811_v60 = vpop.permute.xlu0 %1005 }
 0x11b   : > { %15755 = vst [vmem:[#allocation147_spill] sm:$0xff] %v9809_v61  ;;  %15756 = vst [vmem:[#allocation148_spill] sm:$0xff] %v9811_v60  ;;  %v9831_v61 = vld [vmem:[%s9026_s30 + $0xf7] sm:$0xff] }
 0x11c   : > { %1231 = vrot.lane.b32.xlu1 %v9817_v1, %s8931_s16  ;;  %1229 = vrot.lane.b32.xlu0 %v9814_v57, %s8931_s16  ;;  %15762 = vst [vmem:[#allocation154_spill] sm:$0xff] %v9831_v61  ;;  %v9842_v57 = vld [vmem:[%s9026_s30 + $0xff] sm:$0xff] }
 0x11d   : > { %15765 = vst [vmem:[#allocation157_spill] sm:$0xff] %v9842_v57 }
 0x11e   : > { %v9823_v3 = vpop.permute.xlu1 %1011  ;;  %v9825_v55 = vpop.permute.xlu0 %1009 }
 0x11f   : > { %15759 = vst [vmem:[#allocation151_spill] sm:$0xff] %v9823_v3  ;;  %15760 = vst [vmem:[#allocation152_spill] sm:$0xff] %v9825_v55  ;;  %v9845_v3 = vld [vmem:[%s9026_s30 + $0x107] sm:$0xff] }
 0x120   : > { %1235 = vrot.lane.b32.xlu1 %v9831_v61, %s8931_s16  ;;  %1233 = vrot.lane.b32.xlu0 %v9828_v62, %s8931_s16  ;;  %15766 = vst [vmem:[#allocation158_spill] sm:$0xff] %v9845_v3  ;;  %v9856_v62 = vld [vmem:[%s9026_s30 + $0x10f] sm:$0xff] }
 0x121   : > { %15769 = vst [vmem:[#allocation161_spill] sm:$0xff] %v9856_v62 }
 0x122   : > { %v9837_v60 = vpop.permute.xlu1 %1015  ;;  %v9839_v1 = vpop.permute.xlu0 %1013 }
 0x123   : > { %15763 = vst [vmem:[#allocation155_spill] sm:$0xff] %v9837_v60  ;;  %15764 = vst [vmem:[#allocation156_spill] sm:$0xff] %v9839_v1  ;;  %v9859_v60 = vld [vmem:[%s9026_s30 + $0x117] sm:$0xff] }
 0x124   : > { %1239 = vrot.lane.b32.xlu1 %v9845_v3, %s8931_s16  ;;  %1237 = vrot.lane.b32.xlu0 %v9842_v57, %s8931_s16  ;;  %15770 = vst [vmem:[#allocation162_spill] sm:$0xff] %v9859_v60  ;;  %v9870_v57 = vld [vmem:[%s9026_s30 + $0x11f] sm:$0xff] }
 0x125   : > { %15773 = vst [vmem:[#allocation165_spill] sm:$0xff] %v9870_v57 }
 0x126   : > { %v9851_v55 = vpop.permute.xlu1 %1019  ;;  %v9853_v61 = vpop.permute.xlu0 %1017 }
 0x127   : > { %15767 = vst [vmem:[#allocation159_spill] sm:$0xff] %v9851_v55  ;;  %15768 = vst [vmem:[#allocation160_spill] sm:$0xff] %v9853_v61  ;;  %v9873_v55 = vld [vmem:[%s9026_s30 + $0x127] sm:$0xff] }
 0x128   : > { %1243 = vrot.lane.b32.xlu1 %v9859_v60, %s8931_s16  ;;  %1241 = vrot.lane.b32.xlu0 %v9856_v62, %s8931_s16  ;;  %15774 = vst [vmem:[#allocation166_spill] sm:$0xff] %v9873_v55  ;;  %v9884_v62 = vld [vmem:[%s9026_s30 + $0x12f] sm:$0xff] }
 0x129   : > { %15777 = vst [vmem:[#allocation169_spill] sm:$0xff] %v9884_v62 }
 0x12a   : > { %v9865_v1 = vpop.permute.xlu1 %1023  ;;  %v9867_v3 = vpop.permute.xlu0 %1021 }
 0x12b   : > { %15771 = vst [vmem:[#allocation163_spill] sm:$0xff] %v9865_v1  ;;  %15772 = vst [vmem:[#allocation164_spill] sm:$0xff] %v9867_v3  ;;  %v9887_v1 = vld [vmem:[%s9026_s30 + $0x137] sm:$0xff] }
 0x12c   : > { %1247 = vrot.lane.b32.xlu1 %v9873_v55, %s8931_s16  ;;  %1245 = vrot.lane.b32.xlu0 %v9870_v57, %s8931_s16  ;;  %15778 = vst [vmem:[#allocation170_spill] sm:$0xff] %v9887_v1  ;;  %v554_v57 = vld [vmem:[%s9026_s30 + $0x13f] sm:$0xff] }
 0x12e   : > { %v9879_v61 = vpop.permute.xlu1 %1027  ;;  %v9881_v60 = vpop.permute.xlu0 %1025 }
 0x12f   : > { %15775 = vst [vmem:[#allocation167_spill] sm:$0xff] %v9879_v61  ;;  %15776 = vst [vmem:[#allocation168_spill] sm:$0xff] %v9881_v60  ;;  %v555_v61 = vld [vmem:[%s9026_s30 + $0x147] sm:$0xff] }
 0x130   : > { %1251 = vrot.lane.b32.xlu1 %v9887_v1, %s8931_s16  ;;  %1249 = vrot.lane.b32.xlu0 %v9884_v62, %s8931_s16  ;;  %v559_v62 = vld [vmem:[%s9026_s30 + $0x167] sm:$0xff] }
 0x132   : > { %v9893_v3 = vpop.permute.xlu1 %1031  ;;  %v9895_v55 = vpop.permute.xlu0 %1029 }
 0x133   : > { %15779 = vst [vmem:[#allocation171_spill] sm:$0xff] %v9893_v3  ;;  %15780 = vst [vmem:[#allocation172_spill] sm:$0xff] %v9895_v55 }
 0x134   : > { %1255 = vrot.lane.b32.xlu1 %v555_v61, %s8931_s16  ;;  %1253 = vrot.lane.b32.xlu0 %v554_v57, %s8931_s16  ;;  %v558_v61 = vld [vmem:[%s9026_s30 + $0x15f] sm:$0xff] }
 0x136   : > { %v9901_v60 = vpop.permute.xlu1 %1035  ;;  %v9903_v1 = vpop.permute.xlu0 %1033 }
 0x137   : > { %15781 = vst [vmem:[#allocation173_spill] sm:$0xff] %v9901_v60  ;;  %15782 = vst [vmem:[#allocation174_spill] sm:$0xff] %v9903_v1  ;;  %v561_v60 = vld [vmem:[%s9026_s30 + $0x177] sm:$0xff] }
 0x138   : > { %1259 = vrot.lane.b32.xlu1 %v557_v54, %s8931_s16  ;;  %1257 = vrot.lane.b32.xlu0 %v556_v0, %s8931_s16  ;;  %v560_v54 = vld [vmem:[%s9026_s30 + $0x16f] sm:$0xff] }
 0x13a   : > { %v9909_v55 = vpop.permute.xlu1 %1039  ;;  %v9911_v3 = vpop.permute.xlu0 %1037 }
 0x13b   : > { %15783 = vst [vmem:[#allocation175_spill] sm:$0xff] %v9909_v55  ;;  %15784 = vst [vmem:[#allocation176_spill] sm:$0xff] %v9911_v3  ;;  %v567_v55 = vld [vmem:[%s9026_s30 + $0x1a7] sm:$0xff] }
 0x13c   : > { %1263 = vrot.lane.b32.xlu1 %v559_v62, %s8931_s16  ;;  %1261 = vrot.lane.b32.xlu0 %v558_v61, %s8931_s16  ;;  %v562_v62 = vld [vmem:[%s9026_s30 + $0x17f] sm:$0xff]  ;;  %v563_v61 = vld [vmem:[%s9026_s30 + $0x187] sm:$0xff] }
 0x13e   : > { %v9917_v57 = vpop.permute.xlu1 %1043  ;;  %v9919_v1 = vpop.permute.xlu0 %1041 }
 0x13f   : > { %15785 = vst [vmem:[#allocation177_spill] sm:$0xff] %v9917_v57  ;;  %15786 = vst [vmem:[#allocation178_spill] sm:$0xff] %v9919_v1 }
 0x140   : > { %1267 = vrot.lane.b32.xlu1 %v561_v60, %s8931_s16  ;;  %1265 = vrot.lane.b32.xlu0 %v560_v54, %s8931_s16  ;;  %v564_v60 = vld [vmem:[%s9026_s30 + $0x18f] sm:$0xff]  ;;  %v565_v54 = vld [vmem:[%s9026_s30 + $0x197] sm:$0xff] }
 0x142   : > { %v9925_v0 = vpop.permute.xlu1 %1047  ;;  %v9927_v3 = vpop.permute.xlu0 %1045 }
 0x143   : > { %15787 = vst [vmem:[#allocation179_spill] sm:$0xff] %v9925_v0  ;;  %15788 = vst [vmem:[#allocation180_spill] sm:$0xff] %v9927_v3 }
 0x144   : > { %1271 = vrot.lane.b32.xlu1 %v563_v61, %s8931_s16  ;;  %1269 = vrot.lane.b32.xlu0 %v562_v62, %s8931_s16  ;;  %v566_v61 = vld [vmem:[%s9026_s30 + $0x19f] sm:$0xff]  ;;  %v677_v62 = vld [vmem:[%s9026_s30 + $0x1b7] sm:$0xff] }
 0x146   : > { %v9933_v1 = vpop.permute.xlu1 %1051  ;;  %v9935_v57 = vpop.permute.xlu0 %1049 }
 0x147   : > { %15789 = vst [vmem:[#allocation181_spill] sm:$0xff] %v9933_v1  ;;  %15790 = vst [vmem:[#allocation182_spill] sm:$0xff] %v9935_v57 }
 0x148   : > { %1275 = vrot.lane.b32.xlu1 %v565_v54, %s8931_s16  ;;  %1273 = vrot.lane.b32.xlu0 %v564_v60, %s8931_s16  ;;  %v679_v60 = vld [vmem:[%s9026_s30 + $0x1c7] sm:$0xff]  ;;  %v678_v54 = vld [vmem:[%s9026_s30 + $0x1bf] sm:$0xff] }
 0x14a   : > { %v9941_v3 = vpop.permute.xlu1 %1055  ;;  %v9943_v0 = vpop.permute.xlu0 %1053 }
 0x14b   : > { %15791 = vst [vmem:[#allocation183_spill] sm:$0xff] %v9941_v3  ;;  %15792 = vst [vmem:[#allocation184_spill] sm:$0xff] %v9943_v0 }
 0x14c   : > { %1279 = vrot.lane.b32.xlu1 %v567_v55, %s8931_s16  ;;  %1277 = vrot.lane.b32.xlu0 %v566_v61, %s8931_s16 }
 0x14e   : > { %v9950_v57 = vpop.permute.xlu1 %1059  ;;  %v9952_v1 = vpop.permute.xlu0 %1057 }
 0x14f   : > { %15793 = vst [vmem:[#allocation185_spill] sm:$0xff] %v9950_v57  ;;  %15794 = vst [vmem:[#allocation186_spill] sm:$0xff] %v9952_v1  ;;  %v15853_v1 = vld [vmem:[#allocation31_spill] sm:$0xff] }
 0x150   : > { %1283 = vrot.lane.b32.xlu1 %v677_v62, %s8931_s16  ;;  %1281 = vrot.lane.b32.xlu0 %v568_v58, %s8931_s16 }
 0x152   : > { %v9959_v3 = vpop.permute.xlu1 %1063  ;;  %v9961_v0 = vpop.permute.xlu0 %1061 }
 0x153   : > { %15795 = vst [vmem:[#allocation187_spill] sm:$0xff] %v9959_v3  ;;  %15796 = vst [vmem:[#allocation188_spill] sm:$0xff] %v9961_v0  ;;  %v15849_v0 = vld [vmem:[#allocation23_spill] sm:$0xff] }
 0x154   : > { %1287 = vrot.lane.b32.xlu1 %v679_v60, %s8931_s16  ;;  %1285 = vrot.lane.b32.xlu0 %v678_v54, %s8931_s16  ;;  %s8935_s16 = smov 28  }
 0x156   : > { %v9965_v55 = vpop.permute.xlu1 %1067  ;;  %v9967_v61 = vpop.permute.xlu0 %1065 }
 0x157   : > { %15797 = vst [vmem:[#allocation189_spill] sm:$0xff] %v9965_v55  ;;  %15798 = vst [vmem:[#allocation190_spill] sm:$0xff] %v9967_v61 }
 0x158   : > { %1348 = vrot.lane.b32.xlu1 %v9043_v5, %s8932_s17  ;;  %1346 = vrot.lane.b32.xlu0 %v9033_v2, %s8932_s17 }
 0x15a   : > { %v9973_v58 = vpop.permute.xlu1 %1071  ;;  %v9975_v62 = vpop.permute.xlu0 %1069 }
 0x15b   : > { %15799 = vst [vmem:[#allocation191_spill] sm:$0xff] %v9973_v58  ;;  %15800 = vst [vmem:[#allocation192_spill] sm:$0xff] %v9975_v62 }
 0x15c   : > { %1352 = vrot.lane.b32.xlu1 %v9053_v7, %s8932_s17  ;;  %1350 = vrot.lane.b32.xlu0 %v9040_v4, %s8932_s17 }
 0x15e   : > { %v9981_v60 = vpop.permute.xlu1 %1183  ;;  %v9983_v54 = vpop.permute.xlu0 %1181 }
 0x160   : > { %1356 = vrot.lane.b32.xlu1 %v9063_v9, %s8932_s17  ;;  %1354 = vrot.lane.b32.xlu0 %v9050_v6, %s8932_s17 }
 0x162   : > { %v9989_v2 = vpop.permute.xlu1 %1187  ;;  %v9991_v5 = vpop.permute.xlu0 %1185 }
 0x164   : > { %1360 = vrot.lane.b32.xlu1 %v9073_v11, %s8932_s17  ;;  %1358 = vrot.lane.b32.xlu0 %v9060_v8, %s8932_s17 }
 0x166   : > { %v9997_v4 = vpop.permute.xlu1 %1191  ;;  %v9999_v7 = vpop.permute.xlu0 %1189 }
 0x168   : > { %1364 = vrot.lane.b32.xlu1 %v9083_v13, %s8932_s17  ;;  %1362 = vrot.lane.b32.xlu0 %v9070_v10, %s8932_s17 }
 0x16a   : > { %v10005_v6 = vpop.permute.xlu1 %1195  ;;  %v10007_v9 = vpop.permute.xlu0 %1193 }
 0x16c   : > { %1368 = vrot.lane.b32.xlu1 %v9093_v15, %s8932_s17  ;;  %1366 = vrot.lane.b32.xlu0 %v9080_v12, %s8932_s17 }
 0x16e   : > { %v10013_v8 = vpop.permute.xlu1 %1199  ;;  %v10015_v11 = vpop.permute.xlu0 %1197 }
 0x170   : > { %1372 = vrot.lane.b32.xlu1 %v9103_v17, %s8932_s17  ;;  %1370 = vrot.lane.b32.xlu0 %v9090_v14, %s8932_s17 }
 0x172   : > { %v10021_v10 = vpop.permute.xlu1 %1203  ;;  %v10023_v13 = vpop.permute.xlu0 %1201 }
 0x174   : > { %1376 = vrot.lane.b32.xlu1 %v9113_v19, %s8932_s17  ;;  %1374 = vrot.lane.b32.xlu0 %v9100_v16, %s8932_s17 }
 0x176   : > { %v10029_v12 = vpop.permute.xlu1 %1207  ;;  %v10031_v15 = vpop.permute.xlu0 %1205 }
 0x177   : > { %15801 = vst [vmem:[#allocation193_spill] sm:$0xff] %v10029_v12  ;;  %v8673_v12 = vld [vmem:[%s9026_s30 + $0x119] sm:$0xff] }
 0x178   : > { %1380 = vrot.lane.b32.xlu1 %v9123_v21, %s8932_s17  ;;  %1378 = vrot.lane.b32.xlu0 %v9110_v18, %s8932_s17 }
 0x17a   : > { %v10037_v14 = vpop.permute.xlu1 %1211  ;;  %v10039_v17 = vpop.permute.xlu0 %1209 }
 0x17b   : > { %15802 = vst [vmem:[#allocation194_spill] sm:$0xff] %v10037_v14  ;;  %15803 = vst [vmem:[#allocation195_spill] sm:$0xff] %v10039_v17  ;;  %v8657_v17 = vld [vmem:[%s9026_s30 + $0xd9] sm:$0xff] }
 0x17c   : > { %1384 = vrot.lane.b32.xlu1 %v9133_v23, %s8932_s17  ;;  %1382 = vrot.lane.b32.xlu0 %v9120_v20, %s8932_s17 }
 0x17e   : > { %v10045_v16 = vpop.permute.xlu1 %1215  ;;  %v10047_v19 = vpop.permute.xlu0 %1213 }
 0x17f   : > { %15804 = vst [vmem:[#allocation196_spill] sm:$0xff] %v10045_v16  ;;  %15805 = vst [vmem:[#allocation197_spill] sm:$0xff] %v10047_v19  ;;  %v8651_v19 = vld [vmem:[%s9026_s30 + $0xc8] sm:$0xff] }
 0x180   : > { %1388 = vrot.lane.b32.xlu1 %v9143_v25, %s8932_s17  ;;  %1386 = vrot.lane.b32.xlu0 %v9130_v22, %s8932_s17 }
 0x182   : > { %v10053_v18 = vpop.permute.xlu1 %1219  ;;  %v10055_v21 = vpop.permute.xlu0 %1217 }
 0x183   : > { %15806 = vst [vmem:[#allocation198_spill] sm:$0xff] %v10053_v18  ;;  %15807 = vst [vmem:[#allocation199_spill] sm:$0xff] %v10055_v21  ;;  %v8645_v21 = vld [vmem:[%s9026_s30 + $0xa9] sm:$0xff] }
 0x184   : > { %1392 = vrot.lane.b32.xlu1 %v9153_v27, %s8932_s17  ;;  %1390 = vrot.lane.b32.xlu0 %v9140_v24, %s8932_s17 }
 0x186   : > { %v10061_v20 = vpop.permute.xlu1 %1223  ;;  %v10063_v23 = vpop.permute.xlu0 %1221 }
 0x187   : > { %15808 = vst [vmem:[#allocation200_spill] sm:$0xff] %v10061_v20  ;;  %15809 = vst [vmem:[#allocation201_spill] sm:$0xff] %v10063_v23 }
 0x188   : > { %1396 = vrot.lane.b32.xlu1 %v9163_v29, %s8932_s17  ;;  %1394 = vrot.lane.b32.xlu0 %v9150_v26, %s8932_s17 }
 0x18a   : > { %v10069_v22 = vpop.permute.xlu1 %1227  ;;  %v10071_v25 = vpop.permute.xlu0 %1225 }
 0x18b   : > { %15810 = vst [vmem:[#allocation202_spill] sm:$0xff] %v10069_v22  ;;  %15811 = vst [vmem:[#allocation203_spill] sm:$0xff] %v10071_v25 }
 0x18c   : > { %1400 = vrot.lane.b32.xlu1 %v9173_v31, %s8932_s17  ;;  %1398 = vrot.lane.b32.xlu0 %v9160_v28, %s8932_s17 }
 0x18e   : > { %v10077_v24 = vpop.permute.xlu1 %1231  ;;  %v10079_v27 = vpop.permute.xlu0 %1229 }
 0x18f   : > { %15812 = vst [vmem:[#allocation204_spill] sm:$0xff] %v10077_v24  ;;  %15813 = vst [vmem:[#allocation205_spill] sm:$0xff] %v10079_v27 }
 0x190   : > { %1404 = vrot.lane.b32.xlu1 %v9183_v33, %s8932_s17  ;;  %1402 = vrot.lane.b32.xlu0 %v9170_v30, %s8932_s17 }
 0x192   : > { %v10085_v26 = vpop.permute.xlu1 %1235  ;;  %v10087_v29 = vpop.permute.xlu0 %1233 }
 0x193   : > { %15814 = vst [vmem:[#allocation206_spill] sm:$0xff] %v10085_v26  ;;  %15815 = vst [vmem:[#allocation207_spill] sm:$0xff] %v10087_v29 }
 0x194   : > { %1408 = vrot.lane.b32.xlu1 %v9193_v35, %s8932_s17  ;;  %1406 = vrot.lane.b32.xlu0 %v9180_v32, %s8932_s17 }
 0x196   : > { %v10093_v28 = vpop.permute.xlu1 %1239  ;;  %v10095_v31 = vpop.permute.xlu0 %1237 }
 0x197   : > { %15816 = vst [vmem:[#allocation208_spill] sm:$0xff] %v10093_v28  ;;  %15817 = vst [vmem:[#allocation209_spill] sm:$0xff] %v10095_v31  ;;  %v15888_v28 = vld [vmem:[#allocation67_spill] sm:$0xff] }
 0x198   : > { %1412 = vrot.lane.b32.xlu1 %v9203_v37, %s8932_s17  ;;  %1410 = vrot.lane.b32.xlu0 %v9190_v34, %s8932_s17 }
 0x19a   : > { %v10101_v30 = vpop.permute.xlu1 %1243  ;;  %v10103_v33 = vpop.permute.xlu0 %1241 }
 0x19b   : > { %15818 = vst [vmem:[#allocation210_spill] sm:$0xff] %v10101_v30  ;;  %15819 = vst [vmem:[#allocation211_spill] sm:$0xff] %v10103_v33  ;;  %v15884_v30 = vld [vmem:[#allocation63_spill] sm:$0xff] }
 0x19c   : > { %1416 = vrot.lane.b32.xlu1 %v9213_v39, %s8932_s17  ;;  %1414 = vrot.lane.b32.xlu0 %v9200_v36, %s8932_s17 }
 0x19e   : > { %v10109_v32 = vpop.permute.xlu1 %1247  ;;  %v10111_v35 = vpop.permute.xlu0 %1245 }
 0x19f   : > { %15820 = vst [vmem:[#allocation212_spill] sm:$0xff] %v10109_v32  ;;  %15821 = vst [vmem:[#allocation213_spill] sm:$0xff] %v10111_v35  ;;  %v15880_v35 = vld [vmem:[#allocation59_spill] sm:$0xff] }
 0x1a0   : > { %1420 = vrot.lane.b32.xlu1 %v9223_v41, %s8932_s17  ;;  %1418 = vrot.lane.b32.xlu0 %v9210_v38, %s8932_s17 }
 0x1a2   : > { %v10117_v34 = vpop.permute.xlu1 %1251  ;;  %v10119_v37 = vpop.permute.xlu0 %1249 }
 0x1a3   : > { %15822 = vst [vmem:[#allocation214_spill] sm:$0xff] %v10117_v34  ;;  %15823 = vst [vmem:[#allocation215_spill] sm:$0xff] %v10119_v37  ;;  %v15876_v37 = vld [vmem:[#allocation55_spill] sm:$0xff] }
 0x1a4   : > { %1424 = vrot.lane.b32.xlu1 %v9233_v43, %s8932_s17  ;;  %1422 = vrot.lane.b32.xlu0 %v9220_v40, %s8932_s17 }
 0x1a6   : > { %v10125_v36 = vpop.permute.xlu1 %1255  ;;  %v10127_v39 = vpop.permute.xlu0 %1253 }
 0x1a7   : > { %15824 = vst [vmem:[#allocation216_spill] sm:$0xff] %v10125_v36  ;;  %15825 = vst [vmem:[#allocation217_spill] sm:$0xff] %v10127_v39  ;;  %v15872_v39 = vld [vmem:[#allocation51_spill] sm:$0xff] }
 0x1a8   : > { %1428 = vrot.lane.b32.xlu1 %v9243_v45, %s8932_s17  ;;  %1426 = vrot.lane.b32.xlu0 %v9230_v42, %s8932_s17 }
 0x1aa   : > { %v10133_v38 = vpop.permute.xlu1 %1259  ;;  %v10135_v41 = vpop.permute.xlu0 %1257 }
 0x1ab   : > { %15826 = vst [vmem:[#allocation218_spill] sm:$0xff] %v10133_v38  ;;  %15827 = vst [vmem:[#allocation219_spill] sm:$0xff] %v10135_v41  ;;  %v15868_v41 = vld [vmem:[#allocation47_spill] sm:$0xff] }
 0x1ac   : > { %1432 = vrot.lane.b32.xlu1 %v9253_v47, %s8932_s17  ;;  %1430 = vrot.lane.b32.xlu0 %v9240_v44, %s8932_s17 }
 0x1ae   : > { %v10141_v40 = vpop.permute.xlu1 %1263  ;;  %v10143_v43 = vpop.permute.xlu0 %1261 }
 0x1af   : > { %15828 = vst [vmem:[#allocation220_spill] sm:$0xff] %v10141_v40  ;;  %15829 = vst [vmem:[#allocation221_spill] sm:$0xff] %v10143_v43  ;;  %v15864_v43 = vld [vmem:[#allocation43_spill] sm:$0xff] }
 0x1b0   : > { %1436 = vrot.lane.b32.xlu1 %v9263_v49, %s8932_s17  ;;  %1434 = vrot.lane.b32.xlu0 %v9250_v46, %s8932_s17  ;;  %v680_v46 = vld [vmem:[%s9026_s30 + $0x1b8] sm:$0xff] }
 0x1b2   : > { %v10149_v42 = vpop.permute.xlu1 %1267  ;;  %v10151_v45 = vpop.permute.xlu0 %1265 }
 0x1b3   : > { %15830 = vst [vmem:[#allocation222_spill] sm:$0xff] %v10149_v42  ;;  %15831 = vst [vmem:[#allocation223_spill] sm:$0xff] %v10151_v45  ;;  %v15860_v45 = vld [vmem:[#allocation39_spill] sm:$0xff] }
 0x1b4   : > { %1440 = vrot.lane.b32.xlu1 %v9273_v51, %s8932_s17  ;;  %1438 = vrot.lane.b32.xlu0 %v9260_v48, %s8932_s17  ;;  %v682_v48 = vld [vmem:[%s9026_s30 + $0x1c8] sm:$0xff]  ;;  %v681_v51 = vld [vmem:[%s9026_s30 + $0x1c0] sm:$0xff] }
 0x1b6   : > { %v10157_v44 = vpop.permute.xlu1 %1271  ;;  %v10159_v47 = vpop.permute.xlu0 %1269 }
 0x1b7   : > { %15832 = vst [vmem:[#allocation224_spill] sm:$0xff] %v10157_v44  ;;  %15833 = vst [vmem:[#allocation225_spill] sm:$0xff] %v10159_v47  ;;  %v15856_v47 = vld [vmem:[#allocation35_spill] sm:$0xff] }
 0x1b8   : > { %1444 = vrot.lane.b32.xlu1 %v9283_v53, %s8932_s17  ;;  %1442 = vrot.lane.b32.xlu0 %v9270_v50, %s8932_s17 }
 0x1ba   : > { %v10166_v49 = vpop.permute.xlu1 %1275  ;;  %v10168_v62 = vpop.permute.xlu0 %1273 }
 0x1bb   : > { %15834 = vst [vmem:[#allocation226_spill] sm:$0xff] %v10166_v49  ;;  %15835 = vst [vmem:[#allocation227_spill] sm:$0xff] %v10168_v62  ;;  %v15851_v62 = vld [vmem:[#allocation27_spill] sm:$0xff] }
 0x1bc   : > { %1448 = vrot.lane.b32.xlu1 %v680_v46, %s8932_s17  ;;  %1446 = vrot.lane.b32.xlu0 %v9280_v52, %s8932_s17 }
 0x1be   : > { %v10175_v58 = vpop.permute.xlu1 %1279  ;;  %v10177_v61 = vpop.permute.xlu0 %1277 }
 0x1bf   : > { %15836 = vst [vmem:[#allocation228_spill] sm:$0xff] %v10175_v58  ;;  %15837 = vst [vmem:[#allocation229_spill] sm:$0xff] %v10177_v61  ;;  %v15847_v61 = vld [vmem:[#allocation19_spill] sm:$0xff] }
 0x1c0   : > { %1452 = vrot.lane.b32.xlu1 %v682_v48, %s8932_s17  ;;  %1450 = vrot.lane.b32.xlu0 %v681_v51, %s8932_s17  ;;  %v15842_v48 = vld [vmem:[#allocation4_spill] sm:$0xff]  ;;  %s8936_s17 = smov 32  }
 0x1c2   : > { %v10181_v50 = vpop.permute.xlu1 %1283  ;;  %v10183_v53 = vpop.permute.xlu0 %1281 }
 0x1c3   : > { %15838 = vst [vmem:[#allocation230_spill] sm:$0xff] %v10181_v50  ;;  %15839 = vst [vmem:[#allocation231_spill] sm:$0xff] %v10183_v53  ;;  %v15843_v50 = vld [vmem:[#allocation11_spill] sm:$0xff] }
 0x1c4   : > { %1513 = vrot.lane.b32.xlu1 %v9304_v59, %s8933_s18  ;;  %1511 = vrot.lane.b32.xlu0 %v9294_v56, %s8933_s18  ;;  %v15844_v59 = vld [vmem:[#allocation7_spill] sm:$0xff] }
 0x1c6   : > { %v10189_v52 = vpop.permute.xlu1 %1287  ;;  %v10191_v46 = vpop.permute.xlu0 %1285 }
 0x1c7   : > { %15840 = vst [vmem:[#allocation232_spill] sm:$0xff] %v10189_v52  ;;  %15841 = vst [vmem:[#allocation233_spill] sm:$0xff] %v10191_v46  ;;  %v15845_v46 = vld [vmem:[#allocation15_spill] sm:$0xff] }
 0x1c8   : > { %1517 = vrot.lane.b32.xlu1 %v9318_v63, %s8933_s18  ;;  %1515 = vrot.lane.b32.xlu0 %v15842_v48, %s8933_s18  ;;  %v15846_v63 = vld [vmem:[#allocation10_spill] sm:$0xff] }
 0x1ca   : > { %v10197_v51 = vpop.permute.xlu1 %1348  ;;  %v10199_v53 = vpop.permute.xlu0 %1346 }
 0x1cc   : > { %1521 = vrot.lane.b32.xlu1 %v15843_v50, %s8933_s18  ;;  %1519 = vrot.lane.b32.xlu0 %v15844_v59, %s8933_s18  ;;  %v15848_v50 = vld [vmem:[#allocation14_spill] sm:$0xff] }
 0x1ce   : > { %v10205_v56 = vpop.permute.xlu1 %1352  ;;  %v10207_v52 = vpop.permute.xlu0 %1350 }
 0x1d0   : > { %1525 = vrot.lane.b32.xlu1 %v15845_v46, %s8933_s18  ;;  %1523 = vrot.lane.b32.xlu0 %v15846_v63, %s8933_s18  ;;  %v15850_v46 = vld [vmem:[#allocation18_spill] sm:$0xff] }
 0x1d2   : > { %v10213_v48 = vpop.permute.xlu1 %1356  ;;  %v10215_v55 = vpop.permute.xlu0 %1354 }
 0x1d4   : > { %1529 = vrot.lane.b32.xlu1 %v15847_v61, %s8933_s18  ;;  %1527 = vrot.lane.b32.xlu0 %v15848_v50, %s8933_s18  ;;  %v15852_v61 = vld [vmem:[#allocation22_spill] sm:$0xff] }
 0x1d6   : > { %v10221_v59 = vpop.permute.xlu1 %1360  ;;  %v10223_v58 = vpop.permute.xlu0 %1358 }
 0x1d8   : > { %1533 = vrot.lane.b32.xlu1 %v15849_v0, %s8933_s18  ;;  %1531 = vrot.lane.b32.xlu0 %v15850_v46, %s8933_s18  ;;  %v15854_v0 = vld [vmem:[#allocation26_spill] sm:$0xff] }
 0x1da   : > { %v10229_v63 = vpop.permute.xlu1 %1364  ;;  %v10231_v3 = vpop.permute.xlu0 %1362 }
 0x1dc   : > { %1537 = vrot.lane.b32.xlu1 %v15851_v62, %s8933_s18  ;;  %1535 = vrot.lane.b32.xlu0 %v15852_v61, %s8933_s18  ;;  %v15857_v62 = vld [vmem:[#allocation30_spill] sm:$0xff] }
 0x1de   : > { %v10237_v50 = vpop.permute.xlu1 %1368  ;;  %v10239_v49 = vpop.permute.xlu0 %1366 }
 0x1e0   : > { %1541 = vrot.lane.b32.xlu1 %v15853_v1, %s8933_s18  ;;  %1539 = vrot.lane.b32.xlu0 %v15854_v0, %s8933_s18  ;;  %v15861_v1 = vld [vmem:[#allocation34_spill] sm:$0xff] }
 0x1e2   : > { %v10245_v46 = vpop.permute.xlu1 %1372  ;;  %v10247_v57 = vpop.permute.xlu0 %1370 }
 0x1e3   : > { %15855 = vst [vmem:[#allocation4_spill] sm:$0xff] %v10245_v46 }
 0x1e4   : > { %1545 = vrot.lane.b32.xlu1 %v15856_v47, %s8933_s18  ;;  %1543 = vrot.lane.b32.xlu0 %v15857_v62, %s8933_s18  ;;  %v15865_v47 = vld [vmem:[#allocation38_spill] sm:$0xff] }
 0x1e6   : > { %v10253_v61 = vpop.permute.xlu1 %1376  ;;  %v10255_v44 = vpop.permute.xlu0 %1374 }
 0x1e7   : > { %15858 = vst [vmem:[#allocation11_spill] sm:$0xff] %v10253_v61  ;;  %15859 = vst [vmem:[#allocation7_spill] sm:$0xff] %v10255_v44  ;;  %v8653_v61 = vld [vmem:[%s9026_s30 + $0xc9] sm:$0xff] }
 0x1e8   : > { %1549 = vrot.lane.b32.xlu1 %v15860_v45, %s8933_s18  ;;  %1547 = vrot.lane.b32.xlu0 %v15861_v1, %s8933_s18  ;;  %v15869_v45 = vld [vmem:[#allocation42_spill] sm:$0xff] }
 0x1ea   : > { %v10261_v0 = vpop.permute.xlu1 %1380  ;;  %v10263_v42 = vpop.permute.xlu0 %1378 }
 0x1eb   : > { %15862 = vst [vmem:[#allocation15_spill] sm:$0xff] %v10261_v0  ;;  %15863 = vst [vmem:[#allocation10_spill] sm:$0xff] %v10263_v42  ;;  %v8647_v0 = vld [vmem:[%s9026_s30 + $0xb8] sm:$0xff] }
 0x1ec   : > { %1553 = vrot.lane.b32.xlu1 %v15864_v43, %s8933_s18  ;;  %1551 = vrot.lane.b32.xlu0 %v15865_v47, %s8933_s18  ;;  %v15873_v43 = vld [vmem:[#allocation46_spill] sm:$0xff] }
 0x1ee   : > { %v10269_v62 = vpop.permute.xlu1 %1384  ;;  %v10271_v40 = vpop.permute.xlu0 %1382 }
 0x1ef   : > { %15866 = vst [vmem:[#allocation19_spill] sm:$0xff] %v10269_v62  ;;  %15867 = vst [vmem:[#allocation14_spill] sm:$0xff] %v10271_v40  ;;  %v15960_v62 = vld [vmem:[#allocation153_spill] sm:$0xff] }
 0x1f0   : > { %1557 = vrot.lane.b32.xlu1 %v15868_v41, %s8933_s18  ;;  %1555 = vrot.lane.b32.xlu0 %v15869_v45, %s8933_s18  ;;  %v15877_v41 = vld [vmem:[#allocation50_spill] sm:$0xff]  ;;  %v2611_v40 = vld [vmem:[%s15356_s3 + $0x18] sm:$0xff] }
 0x1f2   : > { %v10277_v1 = vpop.permute.xlu1 %1388  ;;  %v10279_v38 = vpop.permute.xlu0 %1386 }
 0x1f3   : > { %15870 = vst [vmem:[#allocation23_spill] sm:$0xff] %v10277_v1  ;;  %15871 = vst [vmem:[#allocation18_spill] sm:$0xff] %v10279_v38  ;;  %v15952_v1 = vld [vmem:[#allocation145_spill] sm:$0xff] }
 0x1f4   : > { %1561 = vrot.lane.b32.xlu1 %v15872_v39, %s8933_s18  ;;  %1559 = vrot.lane.b32.xlu0 %v15873_v43, %s8933_s18  ;;  %v15881_v39 = vld [vmem:[#allocation54_spill] sm:$0xff]  ;;  %v15956_v38 = vld [vmem:[#allocation149_spill] sm:$0xff] }
 0x1f6   : > { %v10285_v47 = vpop.permute.xlu1 %1392  ;;  %v10287_v36 = vpop.permute.xlu0 %1390 }
 0x1f7   : > { %15874 = vst [vmem:[#allocation27_spill] sm:$0xff] %v10285_v47  ;;  %15875 = vst [vmem:[#allocation22_spill] sm:$0xff] %v10287_v36  ;;  %v15945_v47 = vld [vmem:[#allocation137_spill] sm:$0xff] }
 0x1f8   : > { %1565 = vrot.lane.b32.xlu1 %v15876_v37, %s8933_s18  ;;  %1563 = vrot.lane.b32.xlu0 %v15877_v41, %s8933_s18  ;;  %v15885_v37 = vld [vmem:[#allocation58_spill] sm:$0xff]  ;;  %v15948_v36 = vld [vmem:[#allocation141_spill] sm:$0xff] }
 0x1fa   : > { %v10293_v45 = vpop.permute.xlu1 %1396  ;;  %v10295_v34 = vpop.permute.xlu0 %1394 }
 0x1fb   : > { %15878 = vst [vmem:[#allocation31_spill] sm:$0xff] %v10293_v45  ;;  %15879 = vst [vmem:[#allocation26_spill] sm:$0xff] %v10295_v34  ;;  %v15941_v45 = vld [vmem:[#allocation129_spill] sm:$0xff] }
 0x1fc   : > { %1569 = vrot.lane.b32.xlu1 %v15880_v35, %s8933_s18  ;;  %1567 = vrot.lane.b32.xlu0 %v15881_v39, %s8933_s18  ;;  %v15889_v35 = vld [vmem:[#allocation62_spill] sm:$0xff]  ;;  %v15943_v34 = vld [vmem:[#allocation133_spill] sm:$0xff] }
 0x1fe   : > { %v10301_v43 = vpop.permute.xlu1 %1400  ;;  %v10303_v32 = vpop.permute.xlu0 %1398 }
 0x1ff   : > { %15882 = vst [vmem:[#allocation35_spill] sm:$0xff] %v10301_v43  ;;  %15883 = vst [vmem:[#allocation30_spill] sm:$0xff] %v10303_v32  ;;  %v15892_v43 = vld [vmem:[#allocation71_spill] sm:$0xff]  ;;  %v15939_v32 = vld [vmem:[#allocation125_spill] sm:$0xff] }
 0x200   : > { %1573 = vrot.lane.b32.xlu1 %v15884_v30, %s8933_s18  ;;  %1571 = vrot.lane.b32.xlu0 %v15885_v37, %s8933_s18  ;;  %v15893_v30 = vld [vmem:[#allocation66_spill] sm:$0xff] }
 0x202   : > { %v10309_v41 = vpop.permute.xlu1 %1404  ;;  %v10311_v33 = vpop.permute.xlu0 %1402 }
 0x203   : > { %15886 = vst [vmem:[#allocation39_spill] sm:$0xff] %v10309_v41  ;;  %15887 = vst [vmem:[#allocation34_spill] sm:$0xff] %v10311_v33  ;;  %v15896_v33 = vld [vmem:[#allocation75_spill] sm:$0xff] }
 0x204   : > { %1577 = vrot.lane.b32.xlu1 %v15888_v28, %s8933_s18  ;;  %1575 = vrot.lane.b32.xlu0 %v15889_v35, %s8933_s18  ;;  %v15897_v28 = vld [vmem:[#allocation70_spill] sm:$0xff] }
 0x206   : > { %v10317_v39 = vpop.permute.xlu1 %1408  ;;  %v10319_v31 = vpop.permute.xlu0 %1406 }
 0x207   : > { %15890 = vst [vmem:[#allocation43_spill] sm:$0xff] %v10317_v39  ;;  %15891 = vst [vmem:[#allocation38_spill] sm:$0xff] %v10319_v31  ;;  %v15900_v31 = vld [vmem:[#allocation79_spill] sm:$0xff] }
 0x208   : > { %1581 = vrot.lane.b32.xlu1 %v15892_v43, %s8933_s18  ;;  %1579 = vrot.lane.b32.xlu0 %v15893_v30, %s8933_s18  ;;  %v15901_v43 = vld [vmem:[#allocation74_spill] sm:$0xff] }
 0x20a   : > { %v10325_v37 = vpop.permute.xlu1 %1412  ;;  %v10327_v41 = vpop.permute.xlu0 %1410 }
 0x20b   : > { %15894 = vst [vmem:[#allocation47_spill] sm:$0xff] %v10325_v37  ;;  %15895 = vst [vmem:[#allocation42_spill] sm:$0xff] %v10327_v41  ;;  %v15904_v41 = vld [vmem:[#allocation83_spill] sm:$0xff] }
 0x20c   : > { %1585 = vrot.lane.b32.xlu1 %v15896_v33, %s8933_s18  ;;  %1583 = vrot.lane.b32.xlu0 %v15897_v28, %s8933_s18  ;;  %v15905_v33 = vld [vmem:[#allocation78_spill] sm:$0xff] }
 0x20e   : > { %v10333_v35 = vpop.permute.xlu1 %1416  ;;  %v10335_v39 = vpop.permute.xlu0 %1414 }
 0x20f   : > { %15898 = vst [vmem:[#allocation51_spill] sm:$0xff] %v10333_v35  ;;  %15899 = vst [vmem:[#allocation46_spill] sm:$0xff] %v10335_v39  ;;  %v15921_v35 = vld [vmem:[#allocation94_spill] sm:$0xff] }
 0x210   : > { %1589 = vrot.lane.b32.xlu1 %v15900_v31, %s8933_s18  ;;  %1587 = vrot.lane.b32.xlu0 %v15901_v43, %s8933_s18  ;;  %v15908_v31 = vld [vmem:[#allocation87_spill] sm:$0xff]  ;;  %v15909_v43 = vld [vmem:[#allocation82_spill] sm:$0xff] }
 0x212   : > { %v10341_v30 = vpop.permute.xlu1 %1420  ;;  %v10343_v37 = vpop.permute.xlu0 %1418 }
 0x213   : > { %15902 = vst [vmem:[#allocation55_spill] sm:$0xff] %v10341_v30  ;;  %15903 = vst [vmem:[#allocation50_spill] sm:$0xff] %v10343_v37 }
 0x214   : > { %1593 = vrot.lane.b32.xlu1 %v15904_v41, %s8933_s18  ;;  %1591 = vrot.lane.b32.xlu0 %v15905_v33, %s8933_s18  ;;  %v15912_v41 = vld [vmem:[#allocation91_spill] sm:$0xff]  ;;  %v15913_v33 = vld [vmem:[#allocation86_spill] sm:$0xff] }
 0x216   : > { %v10349_v28 = vpop.permute.xlu1 %1424  ;;  %v10351_v39 = vpop.permute.xlu0 %1422 }
 0x217   : > { %15906 = vst [vmem:[#allocation59_spill] sm:$0xff] %v10349_v28  ;;  %15907 = vst [vmem:[#allocation54_spill] sm:$0xff] %v10351_v39 }
 0x218   : > { %1597 = vrot.lane.b32.xlu1 %v15908_v31, %s8933_s18  ;;  %1595 = vrot.lane.b32.xlu0 %v15909_v43, %s8933_s18  ;;  %v15916_v31 = vld [vmem:[#allocation95_spill] sm:$0xff]  ;;  %v15917_v43 = vld [vmem:[#allocation90_spill] sm:$0xff] }
 0x21a   : > { %v10357_v30 = vpop.permute.xlu1 %1428  ;;  %v10359_v37 = vpop.permute.xlu0 %1426 }
 0x21b   : > { %15910 = vst [vmem:[#allocation63_spill] sm:$0xff] %v10357_v30  ;;  %15911 = vst [vmem:[#allocation58_spill] sm:$0xff] %v10359_v37 }
 0x21c   : > { %1601 = vrot.lane.b32.xlu1 %v15912_v41, %s8933_s18  ;;  %1599 = vrot.lane.b32.xlu0 %v15913_v33, %s8933_s18  ;;  %v15920_v41 = vld [vmem:[#allocation99_spill] sm:$0xff]  ;;  %v683_v33 = vld [vmem:[%s9026_s30 + $0x1b9] sm:$0xff] }
 0x21e   : > { %v10365_v28 = vpop.permute.xlu1 %1432  ;;  %v10367_v39 = vpop.permute.xlu0 %1430 }
 0x21f   : > { %15914 = vst [vmem:[#allocation67_spill] sm:$0xff] %v10365_v28  ;;  %15915 = vst [vmem:[#allocation62_spill] sm:$0xff] %v10367_v39 }
 0x220   : > { %1605 = vrot.lane.b32.xlu1 %v15916_v31, %s8933_s18  ;;  %1603 = vrot.lane.b32.xlu0 %v15917_v43, %s8933_s18  ;;  %v15924_v31 = vld [vmem:[#allocation98_spill] sm:$0xff]  ;;  %v685_v43 = vld [vmem:[%s9026_s30 + $0x1c9] sm:$0xff] }
 0x222   : > { %v10373_v30 = vpop.permute.xlu1 %1436  ;;  %v10375_v37 = vpop.permute.xlu0 %1434 }
 0x223   : > { %15918 = vst [vmem:[#allocation71_spill] sm:$0xff] %v10373_v30  ;;  %15919 = vst [vmem:[#allocation66_spill] sm:$0xff] %v10375_v37  ;;  %v684_v30 = vld [vmem:[%s9026_s30 + $0x1c1] sm:$0xff] }
 0x224   : > { %1609 = vrot.lane.b32.xlu1 %v15920_v41, %s8933_s18  ;;  %1607 = vrot.lane.b32.xlu0 %v15921_v35, %s8933_s18 }
 0x226   : > { %v10382_v28 = vpop.permute.xlu1 %1440  ;;  %v10384_v39 = vpop.permute.xlu0 %1438 }
 0x227   : > { %15922 = vst [vmem:[#allocation75_spill] sm:$0xff] %v10382_v28  ;;  %15923 = vst [vmem:[#allocation70_spill] sm:$0xff] %v10384_v39 }
 0x228   : > { %1613 = vrot.lane.b32.xlu1 %v683_v33, %s8933_s18  ;;  %1611 = vrot.lane.b32.xlu0 %v15924_v31, %s8933_s18  ;;  %v15929_v33 = vld [vmem:[#allocation109_spill] sm:$0xff]  ;;  %v15930_v31 = vld [vmem:[#allocation106_spill] sm:$0xff] }
 0x22a   : > { %v10391_v26 = vpop.permute.xlu1 %1444  ;;  %v10393_v37 = vpop.permute.xlu0 %1442 }
 0x22b   : > { %15925 = vst [vmem:[#allocation79_spill] sm:$0xff] %v10391_v26  ;;  %15926 = vst [vmem:[#allocation74_spill] sm:$0xff] %v10393_v37  ;;  %v15933_v37 = vld [vmem:[#allocation113_spill] sm:$0xff] }
 0x22c   : > { %1617 = vrot.lane.b32.xlu1 %v685_v43, %s8933_s18  ;;  %1615 = vrot.lane.b32.xlu0 %v684_v30, %s8933_s18  ;;  %v15934_v30 = vld [vmem:[#allocation110_spill] sm:$0xff] }
 0x22e   : > { %v10397_v35 = vpop.permute.xlu1 %1448  ;;  %v10399_v41 = vpop.permute.xlu0 %1446 }
 0x22f   : > { %15927 = vst [vmem:[#allocation83_spill] sm:$0xff] %v10397_v35  ;;  %15928 = vst [vmem:[#allocation78_spill] sm:$0xff] %v10399_v41  ;;  %v15935_v35 = vld [vmem:[#allocation117_spill] sm:$0xff] }
 0x230   : > { %1678 = vrot.lane.b32.xlu1 %v15929_v33, %s8934_s19  ;;  %1676 = vrot.lane.b32.xlu0 %v15930_v31, %s8934_s19  ;;  %v15936_v33 = vld [vmem:[#allocation114_spill] sm:$0xff] }
 0x232   : > { %v10405_v39 = vpop.permute.xlu1 %1452  ;;  %v10407_v26 = vpop.permute.xlu0 %1450 }
 0x233   : > { %15931 = vst [vmem:[#allocation87_spill] sm:$0xff] %v10405_v39  ;;  %15932 = vst [vmem:[#allocation82_spill] sm:$0xff] %v10407_v26  ;;  %v15937_v26 = vld [vmem:[#allocation121_spill] sm:$0xff] }
 0x234   : > { %1682 = vrot.lane.b32.xlu1 %v15933_v37, %s8934_s19  ;;  %1680 = vrot.lane.b32.xlu0 %v15934_v30, %s8934_s19  ;;  %v15938_v37 = vld [vmem:[#allocation118_spill] sm:$0xff] }
 0x236   : > { %v10413_v43 = vpop.permute.xlu1 %1513  ;;  %v10415_v41 = vpop.permute.xlu0 %1511 }
 0x238   : > { %1686 = vrot.lane.b32.xlu1 %v15935_v35, %s8934_s19  ;;  %1684 = vrot.lane.b32.xlu0 %v15936_v33, %s8934_s19  ;;  %v15940_v35 = vld [vmem:[#allocation122_spill] sm:$0xff] }
 0x23a   : > { %v10421_v31 = vpop.permute.xlu1 %1517  ;;  %v10423_v39 = vpop.permute.xlu0 %1515 }
 0x23c   : > { %1690 = vrot.lane.b32.xlu1 %v15937_v26, %s8934_s19  ;;  %1688 = vrot.lane.b32.xlu0 %v15938_v37, %s8934_s19  ;;  %v15942_v26 = vld [vmem:[#allocation126_spill] sm:$0xff] }
 0x23e   : > { %v10429_v30 = vpop.permute.xlu1 %1521  ;;  %v10431_v28 = vpop.permute.xlu0 %1519 }
 0x240   : > { %1694 = vrot.lane.b32.xlu1 %v15939_v32, %s8934_s19  ;;  %1692 = vrot.lane.b32.xlu0 %v15940_v35, %s8934_s19  ;;  %v15944_v32 = vld [vmem:[#allocation130_spill] sm:$0xff] }
 0x242   : > { %v10437_v33 = vpop.permute.xlu1 %1525  ;;  %v10439_v29 = vpop.permute.xlu0 %1523 }
 0x244   : > { %1698 = vrot.lane.b32.xlu1 %v15941_v45, %s8934_s19  ;;  %1696 = vrot.lane.b32.xlu0 %v15942_v26, %s8934_s19  ;;  %v15946_v45 = vld [vmem:[#allocation134_spill] sm:$0xff] }
 0x246   : > { %v10445_v37 = vpop.permute.xlu1 %1529  ;;  %v10447_v24 = vpop.permute.xlu0 %1527 }
 0x248   : > { %1702 = vrot.lane.b32.xlu1 %v15943_v34, %s8934_s19  ;;  %1700 = vrot.lane.b32.xlu0 %v15944_v32, %s8934_s19  ;;  %v15949_v34 = vld [vmem:[#allocation138_spill] sm:$0xff] }
 0x24a   : > { %v10453_v35 = vpop.permute.xlu1 %1533  ;;  %v10455_v27 = vpop.permute.xlu0 %1531 }
 0x24c   : > { %1706 = vrot.lane.b32.xlu1 %v15945_v47, %s8934_s19  ;;  %1704 = vrot.lane.b32.xlu0 %v15946_v45, %s8934_s19  ;;  %v15953_v47 = vld [vmem:[#allocation142_spill] sm:$0xff] }
 0x24e   : > { %v10461_v26 = vpop.permute.xlu1 %1537  ;;  %v10463_v22 = vpop.permute.xlu0 %1535 }
 0x24f   : > { %15947 = vst [vmem:[#allocation91_spill] sm:$0xff] %v10461_v26  ;;  %v16026_v26 = vld [vmem:[#allocation9_spill] sm:$0xff] }
 0x250   : > { %1710 = vrot.lane.b32.xlu1 %v15948_v36, %s8934_s19  ;;  %1708 = vrot.lane.b32.xlu0 %v15949_v34, %s8934_s19  ;;  %v15957_v36 = vld [vmem:[#allocation146_spill] sm:$0xff] }
 0x252   : > { %v10469_v32 = vpop.permute.xlu1 %1541  ;;  %v10471_v25 = vpop.permute.xlu0 %1539 }
 0x253   : > { %15950 = vst [vmem:[#allocation86_spill] sm:$0xff] %v10469_v32  ;;  %15951 = vst [vmem:[#allocation95_spill] sm:$0xff] %v10471_v25  ;;  %v8655_v25 = vld [vmem:[%s9026_s30 + $0xd8] sm:$0xff] }
 0x254   : > { %1714 = vrot.lane.b32.xlu1 %v15952_v1, %s8934_s19  ;;  %1712 = vrot.lane.b32.xlu0 %v15953_v47, %s8934_s19  ;;  %v15961_v1 = vld [vmem:[#allocation150_spill] sm:$0xff] }
 0x256   : > { %v10477_v45 = vpop.permute.xlu1 %1545  ;;  %v10479_v20 = vpop.permute.xlu0 %1543 }
 0x257   : > { %15954 = vst [vmem:[#allocation90_spill] sm:$0xff] %v10477_v45  ;;  %15955 = vst [vmem:[#allocation99_spill] sm:$0xff] %v10479_v20  ;;  %v8649_v20 = vld [vmem:[%s9026_s30 + $0xb9] sm:$0xff] }
 0x258   : > { %1718 = vrot.lane.b32.xlu1 %v15956_v38, %s8934_s19  ;;  %1716 = vrot.lane.b32.xlu0 %v15957_v36, %s8934_s19  ;;  %v2608_v38 = vld [vmem:[%s15356_s3] sm:$0xff]  ;;  %v2609_v36 = vld [vmem:[%s15356_s3 + $0x8] sm:$0xff] }
 0x25a   : > { %v10485_v34 = vpop.permute.xlu1 %1549  ;;  %v10487_v23 = vpop.permute.xlu0 %1547 }
 0x25b   : > { %15958 = vst [vmem:[#allocation94_spill] sm:$0xff] %v10485_v34  ;;  %15959 = vst [vmem:[#allocation98_spill] sm:$0xff] %v10487_v23  ;;  %v15964_v34 = vld [vmem:[#allocation157_spill] sm:$0xff]  ;;  %v7679_v23 = vpack.c.bf16 %v2609_v36, %v2608_v38 }
 0x25c   : > { %1722 = vrot.lane.b32.xlu1 %v15960_v62, %s8934_s19  ;;  %1720 = vrot.lane.b32.xlu0 %v15961_v1, %s8934_s19  ;;  %v15965_v62 = vld [vmem:[#allocation154_spill] sm:$0xff] }
 0x25d   : > { %7680 = vmatprep.subr.bf16.mxu0 %v7679_v23 }
 0x25e   : > { %v10493_v47 = vpop.permute.xlu1 %1553  ;;  %v10495_v18 = vpop.permute.xlu0 %1551  ;;  %7682 = vmatpush3.bf16.msra.mxu0 %v7679_v23  ;;  %v15972_v23 = vld [vmem:[#allocation165_spill] sm:$0xff] }
 0x25f   : > { %15962 = vst [vmem:[#allocation109_spill] sm:$0xff] %v10493_v47  ;;  %15963 = vst [vmem:[#allocation106_spill] sm:$0xff] %v10495_v18  ;;  %v2610_v18 = vld [vmem:[%s15356_s3 + $0x10] sm:$0xff] }
 0x260   : > { %1726 = vrot.lane.b32.xlu1 %v15964_v34, %s8934_s19  ;;  %1724 = vrot.lane.b32.xlu0 %v15965_v62, %s8934_s19  ;;  %v15968_v34 = vld [vmem:[#allocation161_spill] sm:$0xff]  ;;  %v15969_v62 = vld [vmem:[#allocation158_spill] sm:$0xff]  ;;  %v7683_v38 = vpack.c.bf16 %v2611_v40, %v2610_v18 }
 0x262   : > { %v10507_v1 = vpop.permute.xlu1 %1557  ;;  %v10509_v47 = vpop.permute.xlu0 %1555  ;;  %7684 = vmatprep.subr.bf16.mxu0 %v7683_v38 }
 0x263   : > { %15966 = vst [vmem:[#allocation113_spill] sm:$0xff] %v10507_v1  ;;  %15967 = vst [vmem:[#allocation110_spill] sm:$0xff] %v10509_v47  ;;  %7686 = vmatpush3.bf16.msra.mxu0 %v7683_v38  ;;  %v15973_v47 = vld [vmem:[#allocation162_spill] sm:$0xff] }
 0x264   : > { %1730 = vrot.lane.b32.xlu1 %v15968_v34, %s8934_s19  ;;  %1728 = vrot.lane.b32.xlu0 %v15969_v62, %s8934_s19  ;;  %v2612_v34 = vld [vmem:[%s15356_s3 + $0x20] sm:$0xf]  ;;  %v15976_v62 = vld [vmem:[#allocation169_spill] sm:$0xff] }
 0x265   : > { %7507 = vmatprep.subr.msk.mxu0 %vm2783_vm0, %v2612_v34 }
 0x266   : > { %v10521_v36 = vpop.permute.xlu1 %1561  ;;  %v10523_v1 = vpop.permute.xlu0 %1559 }
 0x267   : > { %15970 = vst [vmem:[#allocation117_spill] sm:$0xff] %v10521_v36  ;;  %15971 = vst [vmem:[#allocation114_spill] sm:$0xff] %v10523_v1  ;;  %7508 = vmatpush3.msk.msra.mxu0 %vm2783_vm0, %v2612_v34  ;;  %v8621_v36 = vld [vmem:[%s9026_s30 + $0x49] sm:$0xff] }
 0x268   : > { %1734 = vrot.lane.b32.xlu1 %v15972_v23, %s8934_s19  ;;  %1732 = vrot.lane.b32.xlu0 %v15973_v47, %s8934_s19  ;;  %v15977_v47 = vld [vmem:[#allocation166_spill] sm:$0xff] }
 0x26a   : > { %v10532_v18 = vpop.permute.xlu1 %1565  ;;  %v10534_v40 = vpop.permute.xlu0 %1563 }
 0x26b   : > { %15974 = vst [vmem:[#allocation121_spill] sm:$0xff] %v10532_v18  ;;  %15975 = vst [vmem:[#allocation118_spill] sm:$0xff] %v10534_v40  ;;  %v8616_v18 = vld [vmem:[%s9026_s30 + $0x38] sm:$0xff]  ;;  %v15980_v40 = vld [vmem:[#allocation170_spill] sm:$0xff] }
 0x26c   : > { %1738 = vrot.lane.b32.xlu1 %v15976_v62, %s8934_s19  ;;  %1736 = vrot.lane.b32.xlu0 %v15977_v47, %s8934_s19  ;;  %v8617_v47 = vld [vmem:[%s9026_s30 + $0x39] sm:$0xff] }
 0x26e   : > { %v10542_v38 = vpop.permute.xlu1 %1569  ;;  %v10544_v23 = vpop.permute.xlu0 %1567 }
 0x26f   : > { %15978 = vst [vmem:[#allocation125_spill] sm:$0xff] %v10542_v38  ;;  %15979 = vst [vmem:[#allocation122_spill] sm:$0xff] %v10544_v23  ;;  %v8618_v38 = vld [vmem:[%s9026_s30 + $0x40] sm:$0xff] }
 0x270   : > { %1841 = vrot.lane.b32.xlu1 %v8616_v18, %s8935_s16  ;;  %1740 = vrot.lane.b32.xlu0 %v15980_v40, %s8934_s19  ;;  %v8619_v40 = vld [vmem:[%s9026_s30 + $0x48] sm:$0xff] }
 0x272   : > { %v10550_v34 = vpop.permute.xlu1 %1573  ;;  %v10552_v62 = vpop.permute.xlu0 %1571 }
 0x273   : > { %15981 = vst [vmem:[#allocation129_spill] sm:$0xff] %v10550_v34  ;;  %15982 = vst [vmem:[#allocation126_spill] sm:$0xff] %v10552_v62  ;;  %v8620_v34 = vld [vmem:[%s9026_s30 + $0x41] sm:$0xff] }
 0x274   : > { %2006 = vrot.lane.b32.xlu1 %v8617_v47, %s8936_s17  ;;  %1843 = vrot.lane.b32.xlu0 %v8618_v38, %s8935_s16  ;;  %v8622_v38 = vld [vmem:[%s9026_s30 + $0x50] sm:$0xff] }
 0x276   : > { %v10558_v23 = vpop.permute.xlu1 %1577  ;;  %v10560_v18 = vpop.permute.xlu0 %1575 }
 0x277   : > { %15983 = vst [vmem:[#allocation133_spill] sm:$0xff] %v10558_v23  ;;  %15984 = vst [vmem:[#allocation130_spill] sm:$0xff] %v10560_v18  ;;  %v8623_v23 = vld [vmem:[%s9026_s30 + $0x58] sm:$0xff] }
 0x278   : > { %1845 = vrot.lane.b32.xlu1 %v8619_v40, %s8935_s16  ;;  %2008 = vrot.lane.b32.xlu0 %v8620_v34, %s8936_s17  ;;  %v8624_v34 = vld [vmem:[%s9026_s30 + $0x51] sm:$0xff] }
 0x27a   : > { %v10566_v62 = vpop.permute.xlu1 %1581  ;;  %v10568_v47 = vpop.permute.xlu0 %1579 }
 0x27b   : > { %15985 = vst [vmem:[#allocation137_spill] sm:$0xff] %v10566_v62  ;;  %15986 = vst [vmem:[#allocation134_spill] sm:$0xff] %v10568_v47  ;;  %v8625_v62 = vld [vmem:[%s9026_s30 + $0x59] sm:$0xff] }
 0x27c   : > { %2010 = vrot.lane.b32.xlu1 %v8621_v36, %s8936_s17  ;;  %1847 = vrot.lane.b32.xlu0 %v8622_v38, %s8935_s16  ;;  %v8626_v38 = vld [vmem:[%s9026_s30 + $0x60] sm:$0xff] }
 0x27e   : > { %v10574_v18 = vpop.permute.xlu1 %1585  ;;  %v10576_v40 = vpop.permute.xlu0 %1583 }
 0x27f   : > { %15987 = vst [vmem:[#allocation141_spill] sm:$0xff] %v10574_v18  ;;  %15988 = vst [vmem:[#allocation138_spill] sm:$0xff] %v10576_v40  ;;  %v8627_v18 = vld [vmem:[%s9026_s30 + $0x68] sm:$0xff] }
 0x280   : > { %1849 = vrot.lane.b32.xlu1 %v8623_v23, %s8935_s16  ;;  %2012 = vrot.lane.b32.xlu0 %v8624_v34, %s8936_s17  ;;  %v8628_v34 = vld [vmem:[%s9026_s30 + $0x61] sm:$0xff] }
 0x282   : > { %v10582_v47 = vpop.permute.xlu1 %1589  ;;  %v10584_v36 = vpop.permute.xlu0 %1587 }
 0x283   : > { %15989 = vst [vmem:[#allocation145_spill] sm:$0xff] %v10582_v47  ;;  %15990 = vst [vmem:[#allocation142_spill] sm:$0xff] %v10584_v36  ;;  %v8629_v47 = vld [vmem:[%s9026_s30 + $0x69] sm:$0xff] }
 0x284   : > { %2014 = vrot.lane.b32.xlu1 %v8625_v62, %s8936_s17  ;;  %1851 = vrot.lane.b32.xlu0 %v8626_v38, %s8935_s16  ;;  %v8630_v38 = vld [vmem:[%s9026_s30 + $0x70] sm:$0xff] }
 0x286   : > { %v10590_v40 = vpop.permute.xlu1 %1593  ;;  %v10592_v23 = vpop.permute.xlu0 %1591 }
 0x287   : > { %15991 = vst [vmem:[#allocation149_spill] sm:$0xff] %v10590_v40  ;;  %15992 = vst [vmem:[#allocation146_spill] sm:$0xff] %v10592_v23  ;;  %v8631_v40 = vld [vmem:[%s9026_s30 + $0x78] sm:$0xff] }
 0x288   : > { %1853 = vrot.lane.b32.xlu1 %v8627_v18, %s8935_s16  ;;  %2016 = vrot.lane.b32.xlu0 %v8628_v34, %s8936_s17  ;;  %v8632_v34 = vld [vmem:[%s9026_s30 + $0x71] sm:$0xff] }
 0x28a   : > { %v10598_v36 = vpop.permute.xlu1 %1597  ;;  %v10600_v62 = vpop.permute.xlu0 %1595 }
 0x28b   : > { %15993 = vst [vmem:[#allocation153_spill] sm:$0xff] %v10598_v36  ;;  %15994 = vst [vmem:[#allocation150_spill] sm:$0xff] %v10600_v62  ;;  %v8633_v36 = vld [vmem:[%s9026_s30 + $0x79] sm:$0xff] }
 0x28c   : > { %2018 = vrot.lane.b32.xlu1 %v8629_v47, %s8936_s17  ;;  %1855 = vrot.lane.b32.xlu0 %v8630_v38, %s8935_s16  ;;  %v8634_v38 = vld [vmem:[%s9026_s30 + $0x80] sm:$0xff] }
 0x28e   : > { %v10606_v23 = vpop.permute.xlu1 %1601  ;;  %v10608_v18 = vpop.permute.xlu0 %1599 }
 0x28f   : > { %15995 = vst [vmem:[#allocation157_spill] sm:$0xff] %v10606_v23  ;;  %15996 = vst [vmem:[#allocation154_spill] sm:$0xff] %v10608_v18  ;;  %v8635_v23 = vld [vmem:[%s9026_s30 + $0x88] sm:$0xff] }
 0x290   : > { %1857 = vrot.lane.b32.xlu1 %v8631_v40, %s8935_s16  ;;  %2020 = vrot.lane.b32.xlu0 %v8632_v34, %s8936_s17  ;;  %v8636_v34 = vld [vmem:[%s9026_s30 + $0x81] sm:$0xff] }
 0x292   : > { %v10614_v62 = vpop.permute.xlu1 %1605  ;;  %v10616_v47 = vpop.permute.xlu0 %1603 }
 0x293   : > { %15997 = vst [vmem:[#allocation161_spill] sm:$0xff] %v10614_v62  ;;  %15998 = vst [vmem:[#allocation158_spill] sm:$0xff] %v10616_v47  ;;  %v8637_v62 = vld [vmem:[%s9026_s30 + $0x89] sm:$0xff] }
 0x294   : > { %2022 = vrot.lane.b32.xlu1 %v8633_v36, %s8936_s17  ;;  %1859 = vrot.lane.b32.xlu0 %v8634_v38, %s8935_s16  ;;  %v8638_v38 = vld [vmem:[%s9026_s30 + $0x90] sm:$0xff] }
 0x296   : > { %v10622_v18 = vpop.permute.xlu1 %1609  ;;  %v10624_v40 = vpop.permute.xlu0 %1607 }
 0x297   : > { %15999 = vst [vmem:[#allocation165_spill] sm:$0xff] %v10622_v18  ;;  %16000 = vst [vmem:[#allocation162_spill] sm:$0xff] %v10624_v40  ;;  %v8639_v18 = vld [vmem:[%s9026_s30 + $0x98] sm:$0xff] }
 0x298   : > { %1861 = vrot.lane.b32.xlu1 %v8635_v23, %s8935_s16  ;;  %2024 = vrot.lane.b32.xlu0 %v8636_v34, %s8936_s17  ;;  %v8640_v34 = vld [vmem:[%s9026_s30 + $0x91] sm:$0xff] }
 0x29a   : > { %v10630_v47 = vpop.permute.xlu1 %1613  ;;  %v10632_v36 = vpop.permute.xlu0 %1611 }
 0x29b   : > { %16001 = vst [vmem:[#allocation169_spill] sm:$0xff] %v10630_v47  ;;  %16002 = vst [vmem:[#allocation166_spill] sm:$0xff] %v10632_v36  ;;  %v8641_v47 = vld [vmem:[%s9026_s30 + $0x99] sm:$0xff] }
 0x29c   : > { %2026 = vrot.lane.b32.xlu1 %v8637_v62, %s8936_s17  ;;  %1863 = vrot.lane.b32.xlu0 %v8638_v38, %s8935_s16  ;;  %v8642_v38 = vld [vmem:[%s9026_s30 + $0xa0] sm:$0xff] }
 0x29e   : > { %v10638_v40 = vpop.permute.xlu1 %1617  ;;  %v10640_v23 = vpop.permute.xlu0 %1615 }
 0x29f   : > { %16003 = vst [vmem:[#allocation170_spill] sm:$0xff] %v10638_v40  ;;  %16004 = vst [vmem:[#allocation234_spill] sm:$0xff] %v10640_v23  ;;  %v8643_v40 = vld [vmem:[%s9026_s30 + $0xa8] sm:$0xff] }
 0x2a0   : > { %1865 = vrot.lane.b32.xlu1 %v8639_v18, %s8935_s16  ;;  %2028 = vrot.lane.b32.xlu0 %v8640_v34, %s8936_s17  ;;  %v8644_v34 = vld [vmem:[%s9026_s30 + $0xa1] sm:$0xff] }
 0x2a2   : > { %v10646_v36 = vpop.permute.xlu1 %1678  ;;  %v10648_v62 = vpop.permute.xlu0 %1676 }
 0x2a4   : > { %2030 = vrot.lane.b32.xlu1 %v8641_v47, %s8936_s17  ;;  %1867 = vrot.lane.b32.xlu0 %v8642_v38, %s8935_s16  ;;  %v8646_v38 = vld [vmem:[%s9026_s30 + $0xb0] sm:$0xff] }
 0x2a6   : > { %v10654_v23 = vpop.permute.xlu1 %1682  ;;  %v10656_v18 = vpop.permute.xlu0 %1680 }
 0x2a8   : > { %1869 = vrot.lane.b32.xlu1 %v8643_v40, %s8935_s16  ;;  %2032 = vrot.lane.b32.xlu0 %v8644_v34, %s8936_s17  ;;  %v8648_v34 = vld [vmem:[%s9026_s30 + $0xb1] sm:$0xff] }
 0x2aa   : > { %v10662_v1 = vpop.permute.xlu1 %1686  ;;  %v10664_v47 = vpop.permute.xlu0 %1684 }
 0x2ac   : > { %2034 = vrot.lane.b32.xlu1 %v8645_v21, %s8936_s17  ;;  %1871 = vrot.lane.b32.xlu0 %v8646_v38, %s8935_s16  ;;  %v8650_v38 = vld [vmem:[%s9026_s30 + $0xc0] sm:$0xff] }
 0x2ae   : > { %v10670_v45 = vpop.permute.xlu1 %1690  ;;  %v10672_v40 = vpop.permute.xlu0 %1688 }
 0x2b0   : > { %1873 = vrot.lane.b32.xlu1 %v8647_v0, %s8935_s16  ;;  %2036 = vrot.lane.b32.xlu0 %v8648_v34, %s8936_s17  ;;  %v8652_v34 = vld [vmem:[%s9026_s30 + $0xc1] sm:$0xff] }
 0x2b2   : > { %v10678_v16 = vpop.permute.xlu1 %1694  ;;  %v10680_v21 = vpop.permute.xlu0 %1692 }
 0x2b4   : > { %2038 = vrot.lane.b32.xlu1 %v8649_v20, %s8936_s17  ;;  %1875 = vrot.lane.b32.xlu0 %v8650_v38, %s8935_s16  ;;  %v8654_v38 = vld [vmem:[%s9026_s30 + $0xd0] sm:$0xff] }
 0x2b6   : > { %v10686_v42 = vpop.permute.xlu1 %1698  ;;  %v10688_v0 = vpop.permute.xlu0 %1696 }
 0x2b8   : > { %1877 = vrot.lane.b32.xlu1 %v8651_v19, %s8935_s16  ;;  %2040 = vrot.lane.b32.xlu0 %v8652_v34, %s8936_s17  ;;  %v8656_v34 = vld [vmem:[%s9026_s30 + $0xd1] sm:$0xff] }
 0x2ba   : > { %v10694_v32 = vpop.permute.xlu1 %1702  ;;  %v10696_v20 = vpop.permute.xlu0 %1700 }
 0x2bb   : > { %16005 = vst [vmem:[#allocation235_spill] sm:$0xff] %v10694_v32  ;;  %v16025_v32 = vld [vmem:[#allocation108_spill] sm:$0xff] }
 0x2bc   : > { %2042 = vrot.lane.b32.xlu1 %v8653_v61, %s8936_s17  ;;  %1879 = vrot.lane.b32.xlu0 %v8654_v38, %s8935_s16  ;;  %v8658_v38 = vld [vmem:[%s9026_s30 + $0xe0] sm:$0xff] }
 0x2be   : > { %v10702_v14 = vpop.permute.xlu1 %1706  ;;  %v10704_v19 = vpop.permute.xlu0 %1704 }
 0x2bf   : > { %16006 = vst [vmem:[#allocation236_spill] sm:$0xff] %v10702_v14  ;;  %16007 = vst [vmem:[#allocation237_spill] sm:$0xff] %v10704_v19  ;;  %v8659_v19 = vld [vmem:[%s9026_s30 + $0xe8] sm:$0xff] }
 0x2c0   : > { %1881 = vrot.lane.b32.xlu1 %v8655_v25, %s8935_s16  ;;  %2044 = vrot.lane.b32.xlu0 %v8656_v34, %s8936_s17  ;;  %v8660_v34 = vld [vmem:[%s9026_s30 + $0xe1] sm:$0xff] }
 0x2c2   : > { %v10710_v44 = vpop.permute.xlu1 %1710  ;;  %v10712_v61 = vpop.permute.xlu0 %1708 }
 0x2c3   : > { %16008 = vst [vmem:[#allocation238_spill] sm:$0xff] %v10710_v44  ;;  %16009 = vst [vmem:[#allocation239_spill] sm:$0xff] %v10712_v61  ;;  %v8661_v61 = vld [vmem:[%s9026_s30 + $0xe9] sm:$0xff] }
 0x2c4   : > { %2046 = vrot.lane.b32.xlu1 %v8657_v17, %s8936_s17  ;;  %1883 = vrot.lane.b32.xlu0 %v8658_v38, %s8935_s16  ;;  %v8662_v38 = vld [vmem:[%s9026_s30 + $0xf0] sm:$0xff] }
 0x2c6   : > { %v10718_v14 = vpop.permute.xlu1 %1714  ;;  %v10720_v25 = vpop.permute.xlu0 %1712 }
 0x2c7   : > { %16010 = vst [vmem:[#allocation240_spill] sm:$0xff] %v10718_v14  ;;  %16011 = vst [vmem:[#allocation241_spill] sm:$0xff] %v10720_v25  ;;  %v8663_v25 = vld [vmem:[%s9026_s30 + $0xf8] sm:$0xff] }
 0x2c8   : > { %1885 = vrot.lane.b32.xlu1 %v8659_v19, %s8935_s16  ;;  %2048 = vrot.lane.b32.xlu0 %v8660_v34, %s8936_s17  ;;  %v8664_v34 = vld [vmem:[%s9026_s30 + $0xf1] sm:$0xff] }
 0x2ca   : > { %v10726_v44 = vpop.permute.xlu1 %1718  ;;  %v10728_v17 = vpop.permute.xlu0 %1716 }
 0x2cb   : > { %16012 = vst [vmem:[#allocation242_spill] sm:$0xff] %v10726_v44  ;;  %16013 = vst [vmem:[#allocation243_spill] sm:$0xff] %v10728_v17  ;;  %v8665_v17 = vld [vmem:[%s9026_s30 + $0xf9] sm:$0xff] }
 0x2cc   : > { %2050 = vrot.lane.b32.xlu1 %v8661_v61, %s8936_s17  ;;  %1887 = vrot.lane.b32.xlu0 %v8662_v38, %s8935_s16  ;;  %v8666_v38 = vld [vmem:[%s9026_s30 + $0x100] sm:$0xff] }
 0x2ce   : > { %v10734_v14 = vpop.permute.xlu1 %1722  ;;  %v10736_v19 = vpop.permute.xlu0 %1720 }
 0x2cf   : > { %16014 = vst [vmem:[#allocation244_spill] sm:$0xff] %v10734_v14  ;;  %16015 = vst [vmem:[#allocation245_spill] sm:$0xff] %v10736_v19 }
 0x2d0   : > { %1889 = vrot.lane.b32.xlu1 %v8663_v25, %s8935_s16  ;;  %2052 = vrot.lane.b32.xlu0 %v8664_v34, %s8936_s17  ;;  %v8667_v25 = vld [vmem:[%s9026_s30 + $0x108] sm:$0xff] }
 0x2d1   : > { %v8668_v34 = vld [vmem:[%s9026_s30 + $0x101] sm:$0xff] }
 0x2d2   : > { %v10742_v44 = vpop.permute.xlu1 %1726  ;;  %v10744_v61 = vpop.permute.xlu0 %1724 }
 0x2d3   : > { %16016 = vst [vmem:[#allocation246_spill] sm:$0xff] %v10742_v44  ;;  %16017 = vst [vmem:[#allocation247_spill] sm:$0xff] %v10744_v61 }
 0x2d4   : > { %2054 = vrot.lane.b32.xlu1 %v8665_v17, %s8936_s17  ;;  %1891 = vrot.lane.b32.xlu0 %v8666_v38, %s8935_s16  ;;  %v8669_v17 = vld [vmem:[%s9026_s30 + $0x109] sm:$0xff] }
 0x2d5   : > { %v8670_v38 = vld [vmem:[%s9026_s30 + $0x110] sm:$0xff] }
 0x2d6   : > { %v10750_v14 = vpop.permute.xlu1 %1730  ;;  %v10752_v19 = vpop.permute.xlu0 %1728 }
 0x2d7   : > { %16018 = vst [vmem:[#allocation248_spill] sm:$0xff] %v10750_v14  ;;  %16019 = vst [vmem:[#allocation249_spill] sm:$0xff] %v10752_v19  ;;  %v515_v14 = vld [vmem:[%s9026_s30 + $0x7] sm:$0xff] }
 0x2d8   : > { %1893 = vrot.lane.b32.xlu1 %v8667_v25, %s8935_s16  ;;  %2056 = vrot.lane.b32.xlu0 %v8668_v34, %s8936_s17  ;;  %v16024_v34 = vld [vmem:[#allocation6_spill] sm:$0xff] }
 0x2da   : > { %v10758_v44 = vpop.permute.xlu1 %1734  ;;  %v10760_v61 = vpop.permute.xlu0 %1732 }
 0x2db   : > { %16020 = vst [vmem:[#allocation250_spill] sm:$0xff] %v10758_v44  ;;  %16021 = vst [vmem:[#allocation251_spill] sm:$0xff] %v10760_v61  ;;  %v2169_v44 = vsel %vm2168_vm1, %v515_v14, %v16024_v34  ;;  %v8671_v61 = vld [vmem:[%s9026_s30 + $0x118] sm:$0xff] }
 0x2dc   : > { %2058 = vrot.lane.b32.xlu1 %v8669_v17, %s8936_s17  ;;  %1895 = vrot.lane.b32.xlu0 %v8670_v38, %s8935_s16  ;;  %v8672_v17 = vld [vmem:[%s9026_s30 + $0x111] sm:$0xff] }
 0x2dd   : > { %v516_v38 = vld [vmem:[%s9026_s30 + $0xf] sm:$0xff] }
 0x2de   : > { %v10767_v25 = vpop.permute.xlu1 %1738  ;;  %v10769_v19 = vpop.permute.xlu0 %1736 }
 0x2df   : > { %16022 = vst [vmem:[#allocation252_spill] sm:$0xff] %v10767_v25  ;;  %16023 = vst [vmem:[#allocation253_spill] sm:$0xff] %v10769_v19  ;;  %v2224_v25 = vsel %vm2223_vm2, %v2169_v44, %v16025_v32  ;;  %v8674_v44 = vld [vmem:[%s9026_s30 + $0x120] sm:$0xff]  ;;  %v16027_v32 = vld [vmem:[#allocation107_spill] sm:$0xff] }
 0x2e0   : > { %1897 = vrot.lane.b32.xlu1 %v8671_v61, %s8935_s16  ;;  %2060 = vrot.lane.b32.xlu0 %v8672_v17, %s8936_s17  ;;  %v2279_v19 = vsel %vm2278_vm3, %v2224_v25, %v9983_v54  ;;  %v2170_v17 = vsel %vm2168_vm1, %v516_v38, %v16026_v26  ;;  %v517_v54 = vld [vmem:[%s9026_s30 + $0x17] sm:$0xff] }
 0x2e1   : > { %v2334_v61 = vsel %vm2333_vm4, %v2279_v19, %v10199_v53  ;;  %v2225_v53 = vsel %vm2223_vm2, %v2170_v17, %v16027_v32 }
 0x2e2   : > { %v1842_v14 = vpop.permute.xlu1 %1841  ;;  %v10782_v34 = vpop.permute.xlu0 %1740  ;;  %v2389_v46 = vsel %vm2388_vm5, %v2334_v61, %v10415_v41  ;;  %v2280_v26 = vsel %vm2278_vm3, %v2225_v53, %v9981_v60  ;;  %v8676_v60 = vld [vmem:[%s9026_s30 + $0x121] sm:$0xff] }
 0x2e3   : > { %v2444_v19 = vsel %vm2443_vm6, %v2389_v46, %v10648_v62  ;;  %v2335_v38 = vsel %vm2333_vm4, %v2280_v26, %v10197_v51  ;;  %v8675_v62 = vld [vmem:[%s9026_s30 + $0x128] sm:$0xff] }
 0x2e4   : > { %2062 = vrot.lane.b32.xlu1 %v8673_v12, %s8936_s17  ;;  %1899 = vrot.lane.b32.xlu0 %v8674_v44, %s8935_s16  ;;  %v2499_v41 = vsel %vm2498_vm7, %v2444_v19, %v1842_v14  ;;  %v16028_v44 = vld [vmem:[#allocation5_spill] sm:$0xff]  ;;  %v2390_v46 = vsel %vm2388_vm5, %v2335_v38, %v10413_v43  ;;  %v16029_v14 = vld [vmem:[#allocation112_spill] sm:$0xff] }
 0x2e5   : > { %v2171_v17 = vsel %vm2168_vm1, %v517_v54, %v16028_v44  ;;  %v2445_v32 = vsel %vm2443_vm6, %v2390_v46, %v10646_v36  ;;  %v16030_v38 = vld [vmem:[#allocation8_spill] sm:$0xff] }
 0x2e6   : > { %v2007_v25 = vpop.permute.xlu1 %2006  ;;  %v1844_v12 = vpop.permute.xlu0 %1843  ;;  %v2226_v51 = vsel %vm2223_vm2, %v2171_v17, %v16029_v14 }
 0x2e7   : > { %v2554_v61 = vsel %vm2553_vm8, %v2499_v41, %v2007_v25  ;;  %v2281_v54 = vsel %vm2278_vm3, %v2226_v51, %v9991_v5  ;;  %v2500_v43 = vsel %vm2498_vm7, %v2445_v32, %v1844_v12  ;;  %v8677_v25 = vld [vmem:[%s9026_s30 + $0x1f] sm:$0xff]  ;;  %v8679_v5 = vld [vmem:[%s9026_s30 + $0x130] sm:$0xff]  ;;  %v16031_v12 = vld [vmem:[#allocation111_spill] sm:$0xff] }
 0x2e8   : > { %1901 = vrot.lane.b32.xlu1 %v8675_v62, %s8935_s16  ;;  %2064 = vrot.lane.b32.xlu0 %v8676_v60, %s8936_s17  ;;  %v2336_v26 = vsel %vm2333_vm4, %v2281_v54, %v10207_v52  ;;  %v2172_v44 = vsel %vm2168_vm1, %v8677_v25, %v16030_v38  ;;  %v8680_v32 = vld [vmem:[%s9026_s30 + $0x27] sm:$0xff]  ;;  %v16032_v54 = vld [vmem:[#allocation13_spill] sm:$0xff] }
 0x2e9   : > { %7509 = vmatprep.mubr.msk.f32.mxu0 %vm2620_vm9, %v2554_v61  ;;  %v2391_v36 = vsel %vm2388_vm5, %v2336_v26, %v10423_v39  ;;  %v8678_v61 = vld [vmem:[%s9026_s30 + $0x129] sm:$0xff]  ;;  %v2227_v52 = vsel %vm2223_vm2, %v2172_v44, %v16031_v12 }
 0x2ea   : > { %v1846_v53 = vpop.permute.xlu1 %1845  ;;  %v2009_v19 = vpop.permute.xlu0 %2008  ;;  %v2446_v17 = vsel %vm2443_vm6, %v2391_v36, %v10656_v18  ;;  %v2282_v46 = vsel %vm2278_vm3, %v2227_v52, %v9989_v2  ;;  %v8682_v2 = vld [vmem:[%s9026_s30 + $0x131] sm:$0xff]  ;;  %v8684_v52 = vld [vmem:[%s9026_s30 + $0x140] sm:$0xff] }
 0x2eb   : > { %v2555_v41 = vsel %vm2553_vm8, %v2500_v43, %v2009_v19  ;;  %v2501_v39 = vsel %vm2498_vm7, %v2446_v17, %v1846_v53  ;;  %v2337_v14 = vsel %vm2333_vm4, %v2282_v46, %v10205_v56  ;;  %v2173_v43 = vsel %vm2168_vm1, %v8680_v32, %v16032_v54  ;;  %v10850_v19 = vld [vmem:[%s9026_s30 + $0x13f] sm:$0xff]  ;;  %v16033_v56 = vld [vmem:[#allocation116_spill] sm:$0xff]  ;;  %v16035_v17 = vld [vmem:[#allocation115_spill] sm:$0xff] }
 0x2ec   : > { %2066 = vrot.lane.b32.xlu1 %v8678_v61, %s8936_s17  ;;  %1903 = vrot.lane.b32.xlu0 %v8679_v5, %s8935_s16  ;;  %v2392_v18 = vsel %vm2388_vm5, %v2337_v14, %v10421_v31  ;;  %v2228_v53 = vsel %vm2223_vm2, %v2173_v43, %v16033_v56  ;;  %v8683_v61 = vld [vmem:[%s9026_s30 + $0x2f] sm:$0xff]  ;;  %v8686_v54 = vld [vmem:[%s9026_s30 + $0x37] sm:$0xff] }
 0x2ed   : > { %7510 = vmatmul.mubr.msk.f32.vlgmr.msra.gmra.mrb[0].mxu0 %vm2620_vm9, %v2555_v41  ;;  %v2447_v26 = vsel %vm2443_vm6, %v2392_v18, %v10654_v23  ;;  %v2283_v31 = vsel %vm2278_vm3, %v2228_v53, %v9999_v7  ;;  %v16034_v5 = vld [vmem:[#allocation12_spill] sm:$0xff]  ;;  %v8685_v7 = vld [vmem:[%s9026_s30 + $0x138] sm:$0xff] }
 0x2ee   : > { %v2011_v62 = vpop.permute.xlu1 %2010  ;;  %v1848_v60 = vpop.permute.xlu0 %1847  ;;  %v2338_v44 = vsel %vm2333_vm4, %v2283_v31, %v10215_v55  ;;  %v2174_v12 = vsel %vm2168_vm1, %v8683_v61, %v16034_v5  ;;  %v16037_v56 = vld [vmem:[#allocation120_spill] sm:$0xff] }
 0x2ef   : > { %v2556_v51 = vsel %vm2553_vm8, %v2501_v39, %v2011_v62  ;;  %v2502_v41 = vsel %vm2498_vm7, %v2447_v26, %v1848_v60  ;;  %v2393_v23 = vsel %vm2388_vm5, %v2338_v44, %v10431_v28  ;;  %v2229_v55 = vsel %vm2223_vm2, %v2174_v12, %v16035_v17  ;;  %v8689_v44 = vld [vmem:[%s9026_s30 + $0x3f] sm:$0xff]  ;;  %v10913_v5 = vld [vmem:[%s9026_s30 + $0x14f] sm:$0xff] }
 0x2f0   : > { %1742 = vrot.lane.b32.xlu1 %v10850_v19, %s8934_s19  ;;  %2068 = vrot.lane.b32.xlu0 %v8682_v2, %s8936_s17  ;;  %v2448_v46 = vsel %vm2443_vm6, %v2393_v23, %v10664_v47  ;;  %v8937_v39 = vmov 0   ;;  %v2284_v28 = vsel %vm2278_vm3, %v2229_v55, %v9997_v4  ;;  %v16036_v47 = vld [vmem:[#allocation17_spill] sm:$0xff]  ;;  %v8687_v2 = vld [vmem:[%s9026_s30 + $0x141] sm:$0xff] }
 0x2f1   : > { %7512 = vmatprep.mubr.msk.f32.mxu0 %vm2620_vm9, %v2556_v51  ;;  %7800 = vset.pattern.permute.xlu1 %v8937_v39  ;;  %v2339_v51 = vsel %vm2333_vm4, %v2284_v28, %v10213_v48  ;;  %v2175_v43 = vsel %vm2168_vm1, %v8686_v54, %v16036_v47  ;;  %v8688_v4 = vld [vmem:[%s9026_s30 + $0x139] sm:$0xff] }
 0x2f2   : > { %v1850_v25 = vpop.permute.xlu1 %1849  ;;  %v2013_v38 = vpop.permute.xlu0 %2012  ;;  %7799 = vset.pattern.permute.xlu0 %v8937_v39  ;;  %v2394_v18 = vsel %vm2388_vm5, %v2339_v51, %v10429_v30  ;;  %v2230_v48 = vsel %vm2223_vm2, %v2175_v43, %v16037_v56  ;;  %v8692_v39 = vld [vmem:[%s9026_s30 + $0x47] sm:$0xff]  ;;  %v16040_v28 = vld [vmem:[#allocation21_spill] sm:$0xff] }
 0x2f3   : > { %v2557_v36 = vsel %vm2553_vm8, %v2502_v41, %v2013_v38  ;;  %v2503_v62 = vsel %vm2498_vm7, %v2448_v46, %v1850_v25  ;;  %v2449_v53 = vsel %vm2443_vm6, %v2394_v18, %v10662_v1  ;;  %v2285_v26 = vsel %vm2278_vm3, %v2230_v48, %v10007_v9  ;;  %v10918_v9 = vld [vmem:[%s9026_s30 + $0x147] sm:$0xff]  ;;  %v8696_v48 = vld [vmem:[%s9026_s30 + $0x151] sm:$0xff] }
 0x2f4   : > { %1907 = vrot.lane.b32.xlu1 %v8684_v52, %s8935_s16  ;;  %1905 = vrot.lane.b32.xlu0 %v8685_v7, %s8935_s16  ;;  %v2340_v25 = vsel %vm2333_vm4, %v2285_v26, %v10223_v58  ;;  %v16039_v58 = vld [vmem:[#allocation119_spill] sm:$0xff] }
 0x2f5   : > { %7513 = vmatmul.mubr.msk.f32.gmra.mrb[2].mxu0 %vm2620_vm9, %v2557_v36  ;;  %v16038_v36 = vld [vmem:[#allocation16_spill] sm:$0xff]  ;;  %v2395_v1 = vsel %vm2388_vm5, %v2340_v25, %v10439_v29 }
 0x2f6   : > { %v2015_v60 = vpop.permute.xlu1 %2014  ;;  %v1852_v14 = vpop.permute.xlu0 %1851  ;;  %v2176_v61 = vsel %vm2168_vm1, %v8689_v44, %v16038_v36  ;;  %v2450_v23 = vsel %vm2443_vm6, %v2395_v1, %v10672_v40  ;;  %v8698_v44 = vld [vmem:[%s9026_s30 + $0x57] sm:$0xff]  ;;  %v10979_v1 = vld [vmem:[%s9026_s30 + $0x15f] sm:$0xff] }
 0x2f7   : > { %v2558_v32 = vsel %vm2553_vm8, %v2503_v62, %v2015_v60  ;;  %v2504_v30 = vsel %vm2498_vm7, %v2449_v53, %v1852_v14  ;;  %v2231_v12 = vsel %vm2223_vm2, %v2176_v61, %v16039_v58  ;;  %v2177_v62 = vsel %vm2168_vm1, %v8692_v39, %v16040_v28  ;;  %v8693_v60 = vld [vmem:[%s9026_s30 + $0x150] sm:$0xff]  ;;  %v16043_v53 = vld [vmem:[#allocation123_spill] sm:$0xff]  ;;  %v16044_v36 = vld [vmem:[#allocation25_spill] sm:$0xff] }
 0x2f8   : > { %2072 = vrot.lane.b32.xlu1 %v8687_v2, %s8936_s17  ;;  %2070 = vrot.lane.b32.xlu0 %v8688_v4, %s8936_s17  ;;  %v2286_v29 = vsel %vm2278_vm3, %v2231_v12, %v10005_v6  ;;  %v8694_v6 = vld [vmem:[%s9026_s30 + $0x148] sm:$0xff]  ;;  %v16041_v14 = vld [vmem:[#allocation124_spill] sm:$0xff]  ;;  %v2179_v61 = vsel %vm2168_vm1, %v8698_v44, %v16044_v36  ;;  %v8702_v28 = vld [vmem:[%s9026_s30 + $0x160] sm:$0xff] }
 0x2f9   : > { %7515 = vmatprep.mubr.msk.f32.mxu0 %vm2620_vm9, %v2558_v32  ;;  %v2341_v55 = vsel %vm2333_vm4, %v2286_v29, %v10221_v59  ;;  %v2232_v59 = vsel %vm2223_vm2, %v2177_v62, %v16041_v14  ;;  %v8695_v2 = vld [vmem:[%s9026_s30 + $0x4f] sm:$0xff] }
 0x2fa   : > { %v1854_v31 = vpop.permute.xlu1 %1853  ;;  %v2017_v41 = vpop.permute.xlu0 %2016  ;;  %v2396_v40 = vsel %vm2388_vm5, %v2341_v55, %v10437_v33  ;;  %v2287_v32 = vsel %vm2278_vm3, %v2232_v59, %v10015_v11  ;;  %v16042_v4 = vld [vmem:[#allocation20_spill] sm:$0xff]  ;;  %v8701_v55 = vld [vmem:[%s9026_s30 + $0x5f] sm:$0xff]  ;;  %v16047_v62 = vld [vmem:[#allocation127_spill] sm:$0xff] }
 0x2fb   : > { %v2559_v38 = vsel %vm2553_vm8, %v2504_v30, %v2017_v41  ;;  %v2505_v52 = vsel %vm2498_vm7, %v2450_v23, %v1854_v31  ;;  %v2451_v51 = vsel %vm2443_vm6, %v2396_v40, %v10670_v45  ;;  %v2342_v43 = vsel %vm2333_vm4, %v2287_v32, %v10231_v3  ;;  %v8697_v11 = vld [vmem:[%s9026_s30 + $0x149] sm:$0xff] }
 0x2fc   : > { %1746 = vrot.lane.b32.xlu1 %v10913_v5, %s8934_s19  ;;  %1744 = vrot.lane.b32.xlu0 %v10918_v9, %s8934_s19  ;;  %v2178_v56 = vsel %vm2168_vm1, %v8695_v2, %v16042_v4  ;;  %v2397_v45 = vsel %vm2388_vm5, %v2342_v43, %v10447_v24  ;;  %v8704_v32 = vld [vmem:[%s9026_s30 + $0x67] sm:$0xff]  ;;  %v16049_v43 = vld [vmem:[#allocation132_spill] sm:$0xff] }
 0x2fd   : > { %7516 = vmatmul.mubr.msk.f32.gmra.mrb[4].mxu0 %vm2620_vm9, %v2559_v38  ;;  %v2233_v3 = vsel %vm2223_vm2, %v2178_v56, %v16043_v53  ;;  %v2452_v26 = vsel %vm2443_vm6, %v2397_v45, %v10680_v21  ;;  %v16050_v53 = vld [vmem:[#allocation28_spill] sm:$0xff] }
 0x2fe   : > { %v2019_v7 = vpop.permute.xlu1 %2018  ;;  %v1856_v17 = vpop.permute.xlu0 %1855  ;;  %v2288_v30 = vsel %vm2278_vm3, %v2233_v3, %v10013_v8  ;;  %v10984_v8 = vld [vmem:[%s9026_s30 + $0x157] sm:$0xff] }
 0x2ff   : > { %v2560_v46 = vsel %vm2553_vm8, %v2505_v52, %v2019_v7  ;;  %v2506_v33 = vsel %vm2498_vm7, %v2451_v51, %v1856_v17  ;;  %v2343_v25 = vsel %vm2333_vm4, %v2288_v30, %v10229_v63  ;;  %v16045_v63 = vld [vmem:[#allocation128_spill] sm:$0xff] }
 0x300   : > { %1911 = vrot.lane.b32.xlu1 %v8693_v60, %s8935_s16  ;;  %1909 = vrot.lane.b32.xlu0 %v8694_v6, %s8935_s16  ;;  %v2398_v21 = vsel %vm2388_vm5, %v2343_v25, %v10445_v37  ;;  %v2234_v58 = vsel %vm2223_vm2, %v2179_v61, %v16045_v63  ;;  %v16053_v44 = vld [vmem:[#allocation4_spill] sm:$0xff]  ;;  %v16054_v63 = vld [vmem:[#allocation33_spill] sm:$0xff] }
 0x301   : > { %7518 = vmatprep.mubr.msk.f32.mxu0 %vm2620_vm9, %v2560_v46  ;;  %v2453_v12 = vsel %vm2443_vm6, %v2398_v21, %v10678_v16  ;;  %v2289_v37 = vsel %vm2278_vm3, %v2234_v58, %v10023_v13  ;;  %v16046_v46 = vld [vmem:[#allocation24_spill] sm:$0xff]  ;;  %v8703_v13 = vld [vmem:[%s9026_s30 + $0x158] sm:$0xff] }
 0x302   : > { %v1858_v54 = vpop.permute.xlu1 %1857  ;;  %v2021_v47 = vpop.permute.xlu0 %2020  ;;  %v2344_v7 = vsel %vm2333_vm4, %v2289_v37, %v10239_v49  ;;  %v2180_v39 = vsel %vm2168_vm1, %v8701_v55, %v16046_v46  ;;  %v8710_v21 = vld [vmem:[%s9026_s30 + $0x77] sm:$0xff]  ;;  %v16058_v55 = vld [vmem:[#allocation195_spill] sm:$0xff] }
 0x303   : > { %v2561_v18 = vsel %vm2553_vm8, %v2506_v33, %v2021_v47  ;;  %v2507_v24 = vsel %vm2498_vm7, %v2452_v26, %v1858_v54  ;;  %v2399_v16 = vsel %vm2388_vm5, %v2344_v7, %v10455_v27  ;;  %v2235_v49 = vsel %vm2223_vm2, %v2180_v39, %v16047_v62  ;;  %v16048_v33 = vld [vmem:[#allocation29_spill] sm:$0xff]  ;;  %v8705_v47 = vld [vmem:[%s9026_s30 + $0x161] sm:$0xff]  ;;  %v11045_v26 = vld [vmem:[%s9026_s30 + $0x16f] sm:$0xff] }
 0x304   : > { %2076 = vrot.lane.b32.xlu1 %v8696_v48, %s8936_s17  ;;  %2074 = vrot.lane.b32.xlu0 %v8697_v11, %s8936_s17  ;;  %v2454_v40 = vsel %vm2443_vm6, %v2399_v16, %v10688_v0  ;;  %v2290_v60 = vsel %vm2278_vm3, %v2235_v49, %v10021_v10  ;;  %v2181_v54 = vsel %vm2168_vm1, %v8704_v32, %v16048_v33  ;;  %v8706_v10 = vld [vmem:[%s9026_s30 + $0x159] sm:$0xff]  ;;  %v8707_v11 = vld [vmem:[%s9026_s30 + $0x6f] sm:$0xff] }
 0x305   : > { %7519 = vmatmul.mubr.msk.f32.gmra.mrb[6].mxu0 %vm2620_vm9, %v2561_v18  ;;  %v2345_v59 = vsel %vm2333_vm4, %v2290_v60, %v10237_v50  ;;  %v2236_v50 = vsel %vm2223_vm2, %v2181_v54, %v16049_v43  ;;  %v2182_v3 = vsel %vm2168_vm1, %v8707_v11, %v16050_v53  ;;  %v2183_v58 = vsel %vm2168_vm1, %v8710_v21, %v16054_v63  ;;  %v8711_v37 = vld [vmem:[%s9026_s30 + $0x170] sm:$0xff]  ;;  %v16057_v7 = vld [vmem:[#allocation235_spill] sm:$0xff]  ;;  %v16063_v54 = vld [vmem:[#allocation237_spill] sm:$0xff] }
 0x306   : > { %v2023_v31 = vpop.permute.xlu1 %2022  ;;  %v1860_v41 = vpop.permute.xlu0 %1859  ;;  %v2400_v0 = vsel %vm2388_vm5, %v2345_v59, %v10453_v35  ;;  %v2291_v2 = vsel %vm2278_vm3, %v2236_v50, %v10031_v15  ;;  %v11050_v15 = vld [vmem:[%s9026_s30 + $0x167] sm:$0xff]  ;;  %v16060_v60 = vld [vmem:[#allocation32_spill] sm:$0xff] }
 0x307   : > { %v2562_v38 = vsel %vm2553_vm8, %v2507_v24, %v2023_v31  ;;  %v2508_v23 = vsel %vm2498_vm7, %v2453_v12, %v1860_v41  ;;  %v2455_v18 = vsel %vm2443_vm6, %v2400_v0, %v10686_v42  ;;  %v2346_v45 = vsel %vm2333_vm4, %v2291_v2, %v10247_v57  ;;  %v16051_v57 = vld [vmem:[#allocation131_spill] sm:$0xff]  ;;  %v8714_v59 = vld [vmem:[%s9026_s30 + $0x171] sm:$0xff]  ;;  %v16067_v11 = vld [vmem:[#allocation86_spill] sm:$0xff] }
 0x308   : > { %1750 = vrot.lane.b32.xlu1 %v10979_v1, %s8934_s19  ;;  %1748 = vrot.lane.b32.xlu0 %v10984_v8, %s8934_s19  ;;  %v2401_v42 = vsel %vm2388_vm5, %v2346_v45, %v10463_v22  ;;  %v2237_v30 = vsel %vm2223_vm2, %v2182_v3, %v16051_v57  ;;  %v16052_v22 = vld [vmem:[#allocation193_spill] sm:$0xff]  ;;  %v16062_v32 = vld [vmem:[#allocation135_spill] sm:$0xff]  ;;  %v16068_v57 = vld [vmem:[#allocation140_spill] sm:$0xff] }
 0x309   : > { %7521 = vmatprep.mubr.msk.f32.mxu0 %vm2620_vm9, %v2562_v38  ;;  %v2456_v24 = vsel %vm2443_vm6, %v2401_v42, %v10696_v20  ;;  %v2292_v31 = vsel %vm2278_vm3, %v2237_v30, %v16052_v22  ;;  %v16055_v20 = vld [vmem:[#allocation91_spill] sm:$0xff]  ;;  %v16066_v45 = vld [vmem:[#allocation37_spill] sm:$0xff] }
 0x30a   : > { %v1862_v29 = vpop.permute.xlu1 %1861  ;;  %v2025_v52 = vpop.permute.xlu0 %2024  ;;  %v2347_v36 = vsel %vm2333_vm4, %v2292_v31, %v16053_v44  ;;  %v16065_v2 = vld [vmem:[#allocation11_spill] sm:$0xff]  ;;  %v11111_v3 = vld [vmem:[%s9026_s30 + $0x17f] sm:$0xff]  ;;  %v11116_v42 = vld [vmem:[%s9026_s30 + $0x177] sm:$0xff] }
 0x30b   : > { %v2563_v17 = vsel %vm2553_vm8, %v2508_v23, %v2025_v52  ;;  %v2509_v27 = vsel %vm2498_vm7, %v2454_v40, %v1862_v29  ;;  %v2402_v12 = vsel %vm2388_vm5, %v2347_v36, %v16055_v20  ;;  %v8712_v23 = vld [vmem:[%s9026_s30 + $0x168] sm:$0xff]  ;;  %v16056_v29 = vld [vmem:[#allocation136_spill] sm:$0xff]  ;;  %v8713_v40 = vld [vmem:[%s9026_s30 + $0x7f] sm:$0xff] }
 0x30c   : > { %1915 = vrot.lane.b32.xlu1 %v8702_v28, %s8935_s16  ;;  %1913 = vrot.lane.b32.xlu0 %v8703_v13, %s8935_s16  ;;  %v2238_v52 = vsel %vm2223_vm2, %v2183_v58, %v16056_v29  ;;  %v16059_v13 = vld [vmem:[#allocation7_spill] sm:$0xff]  ;;  %v16070_v31 = vld [vmem:[#allocation197_spill] sm:$0xff]  ;;  %v16071_v36 = vld [vmem:[#allocation10_spill] sm:$0xff] }
 0x30d   : > { %7522 = vmatmul.mubr.msk.f32.gmra.mrb[8].mxu0 %vm2620_vm9, %v2563_v17  ;;  %v2457_v17 = vsel %vm2443_vm6, %v2402_v12, %v16057_v7  ;;  %v2293_v46 = vsel %vm2278_vm3, %v2238_v52, %v16058_v55  ;;  %v8719_v63 = vld [vmem:[%s9026_s30 + $0x8f] sm:$0xff]  ;;  %v8721_v29 = vld [vmem:[%s9026_s30 + $0x178] sm:$0xff] }
 0x30e   : > { %v2027_v6 = vpop.permute.xlu1 %2026  ;;  %v1864_v14 = vpop.permute.xlu0 %1863  ;;  %v2348_v62 = vsel %vm2333_vm4, %v2293_v46, %v16059_v13  ;;  %v16072_v58 = vld [vmem:[#allocation36_spill] sm:$0xff]  ;;  %v16073_v12 = vld [vmem:[#allocation99_spill] sm:$0xff] }
 0x30f   : > { %v2564_v51 = vsel %vm2553_vm8, %v2509_v27, %v2027_v6  ;;  %v2510_v35 = vsel %vm2498_vm7, %v2455_v18, %v1864_v14  ;;  %v2184_v27 = vsel %vm2168_vm1, %v8713_v40, %v16060_v60  ;;  %v16061_v6 = vld [vmem:[#allocation95_spill] sm:$0xff]  ;;  %v2186_v20 = vsel %vm2168_vm1, %v8719_v63, %v16072_v58  ;;  %v16076_v46 = vld [vmem:[#allocation196_spill] sm:$0xff] }
 0x310   : > { %2080 = vrot.lane.b32.xlu1 %v8705_v47, %s8936_s17  ;;  %2078 = vrot.lane.b32.xlu0 %v8706_v10, %s8936_s17  ;;  %v2403_v14 = vsel %vm2388_vm5, %v2348_v62, %v16061_v6  ;;  %v2239_v33 = vsel %vm2223_vm2, %v2184_v27, %v16062_v32  ;;  %v16064_v47 = vld [vmem:[#allocation194_spill] sm:$0xff]  ;;  %v16074_v52 = vld [vmem:[#allocation139_spill] sm:$0xff]  ;;  %v8722_v60 = vld [vmem:[%s9026_s30 + $0x97] sm:$0xff] }
 0x311   : > { %7524 = vmatprep.mubr.msk.f32.mxu0 %vm2620_vm9, %v2564_v51  ;;  %v8715_v51 = vld [vmem:[%s9026_s30 + $0x169] sm:$0xff]  ;;  %v2458_v0 = vsel %vm2443_vm6, %v2403_v14, %v16063_v54  ;;  %v2294_v10 = vsel %vm2278_vm3, %v2239_v33, %v16064_v47  ;;  %v2241_v7 = vsel %vm2223_vm2, %v2186_v20, %v16074_v52  ;;  %v16078_v27 = vld [vmem:[#allocation41_spill] sm:$0xff]  ;;  %v16079_v14 = vld [vmem:[#allocation90_spill] sm:$0xff] }
 0x312   : > { %v1866_v4 = vpop.permute.xlu1 %1865  ;;  %v2029_v56 = vpop.permute.xlu0 %2028  ;;  %v16077_v62 = vld [vmem:[#allocation15_spill] sm:$0xff]  ;;  %v2187_v6 = vsel %vm2168_vm1, %v8722_v60, %v16078_v27  ;;  %v8724_v32 = vld [vmem:[%s9026_s30 + $0x179] sm:$0xff]  ;;  %v16080_v33 = vld [vmem:[#allocation144_spill] sm:$0xff] }
 0x313   : > { %v2565_v48 = vsel %vm2553_vm8, %v2510_v35, %v2029_v56  ;;  %v2511_v41 = vsel %vm2498_vm7, %v2456_v24, %v1866_v4  ;;  %v2349_v35 = vsel %vm2333_vm4, %v2294_v10, %v16065_v2  ;;  %v8716_v56 = vld [vmem:[%s9026_s30 + $0x87] sm:$0xff]  ;;  %v16069_v24 = vld [vmem:[#allocation236_spill] sm:$0xff]  ;;  %v2242_v54 = vsel %vm2223_vm2, %v2187_v6, %v16080_v33 }
 0x314   : > { %1754 = vrot.lane.b32.xlu1 %v11045_v26, %s8934_s19  ;;  %1752 = vrot.lane.b32.xlu0 %v11050_v15, %s8934_s19  ;;  %v2404_v53 = vsel %vm2388_vm5, %v2349_v35, %v16067_v11  ;;  %v16082_v10 = vld [vmem:[#allocation199_spill] sm:$0xff]  ;;  %v16083_v35 = vld [vmem:[#allocation14_spill] sm:$0xff] }
 0x315   : > { %7525 = vmatmul.mubr.msk.f32.gmra.mrb[10].mxu0 %vm2620_vm9, %v2565_v48  ;;  %v2185_v48 = vsel %vm2168_vm1, %v8716_v56, %v16066_v45  ;;  %v2459_v22 = vsel %vm2443_vm6, %v2404_v53, %v16069_v24  ;;  %v8725_v45 = vld [vmem:[%s9026_s30 + $0x9f] sm:$0xff]  ;;  %v11182_v24 = vld [vmem:[%s9026_s30 + $0x187] sm:$0xff] }
 0x316   : > { %v2031_v25 = vpop.permute.xlu1 %2030  ;;  %v1868_v38 = vpop.permute.xlu0 %1867  ;;  %v2240_v30 = vsel %vm2223_vm2, %v2185_v48, %v16068_v57  ;;  %v16084_v48 = vld [vmem:[#allocation40_spill] sm:$0xff]  ;;  %v16085_v53 = vld [vmem:[#allocation98_spill] sm:$0xff]  ;;  %v16089_v63 = vld [vmem:[#allocation19_spill] sm:$0xff] }
 0x317   : > { %v2566_v61 = vsel %vm2553_vm8, %v2511_v41, %v2031_v25  ;;  %v2512_v39 = vsel %vm2498_vm7, %v2457_v17, %v1868_v38  ;;  %v2295_v41 = vsel %vm2278_vm3, %v2240_v30, %v16070_v31  ;;  %v16075_v17 = vld [vmem:[#allocation239_spill] sm:$0xff]  ;;  %v2188_v11 = vsel %vm2168_vm1, %v8725_v45, %v16084_v48  ;;  %v16095_v60 = vld [vmem:[#allocation18_spill] sm:$0xff] }
 0x318   : > { %1919 = vrot.lane.b32.xlu1 %v8711_v37, %s8935_s16  ;;  %1917 = vrot.lane.b32.xlu0 %v8712_v23, %s8935_s16  ;;  %v8720_v23 = vld [vmem:[%s9026_s30 + $0x180] sm:$0xff]  ;;  %v11177_v30 = vld [vmem:[%s9026_s30 + $0x18f] sm:$0xff] }
 0x319   : > { %7527 = vmatprep.mubr.msk.f32.mxu0 %vm2620_vm9, %v2566_v61  ;;  %v2350_v61 = vsel %vm2333_vm4, %v2295_v41, %v16071_v36  ;;  %v16087_v41 = vld [vmem:[#allocation241_spill] sm:$0xff]  ;;  %v16101_v45 = vld [vmem:[#allocation23_spill] sm:$0xff] }
 0x31a   : > { %v1870_v16 = vpop.permute.xlu1 %1869  ;;  %v2033_v28 = vpop.permute.xlu0 %2032  ;;  %v2405_v37 = vsel %vm2388_vm5, %v2350_v61, %v16073_v12  ;;  %v8728_v12 = vld [vmem:[%s9026_s30 + $0xa7] sm:$0xff] }
 0x31b   : > { %v2567_v49 = vsel %vm2553_vm8, %v2512_v39, %v2033_v28  ;;  %v2513_v43 = vsel %vm2498_vm7, %v2458_v0, %v1870_v16  ;;  %v2460_v55 = vsel %vm2443_vm6, %v2405_v37, %v16075_v17  ;;  %v2296_v39 = vsel %vm2278_vm3, %v2241_v7, %v16076_v46  ;;  %v16081_v0 = vld [vmem:[#allocation238_spill] sm:$0xff]  ;;  %v16090_v37 = vld [vmem:[#allocation45_spill] sm:$0xff]  ;;  %v8729_v7 = vld [vmem:[%s9026_s30 + $0x190] sm:$0xff] }
 0x31c   : > { %2084 = vrot.lane.b32.xlu1 %v8714_v59, %s8936_s17  ;;  %2082 = vrot.lane.b32.xlu0 %v8715_v51, %s8936_s17  ;;  %v8723_v51 = vld [vmem:[%s9026_s30 + $0x181] sm:$0xff] }
 0x31d   : > { %7528 = vmatmul.mubr.msk.f32.gmra.mrb[12].mxu0 %vm2620_vm9, %v2567_v49  ;;  %v2351_v49 = vsel %vm2333_vm4, %v2296_v39, %v16077_v62  ;;  %v8730_v17 = vld [vmem:[%s9026_s30 + $0x188] sm:$0xff]  ;;  %v16093_v39 = vld [vmem:[#allocation240_spill] sm:$0xff] }
 0x31e   : > { %v2035_v50 = vpop.permute.xlu1 %2034  ;;  %v1872_v18 = vpop.permute.xlu0 %1871  ;;  %v2406_v59 = vsel %vm2388_vm5, %v2351_v49, %v16079_v14  ;;  %v8731_v14 = vld [vmem:[%s9026_s30 + $0xaf] sm:$0xff] }
 0x31f   : > { %v2568_v4 = vsel %vm2553_vm8, %v2513_v43, %v2035_v50  ;;  %v2514_v25 = vsel %vm2498_vm7, %v2459_v22, %v1872_v18  ;;  %v2461_v47 = vsel %vm2443_vm6, %v2406_v59, %v16081_v0  ;;  %v2297_v43 = vsel %vm2278_vm3, %v2242_v54, %v16082_v10  ;;  %v16086_v22 = vld [vmem:[#allocation143_spill] sm:$0xff]  ;;  %v16096_v59 = vld [vmem:[#allocation44_spill] sm:$0xff] }
 0x320   : > { %1758 = vrot.lane.b32.xlu1 %v11111_v3, %s8934_s19  ;;  %1756 = vrot.lane.b32.xlu0 %v11116_v42, %s8934_s19  ;;  %v2243_v31 = vsel %vm2223_vm2, %v2188_v11, %v16086_v22  ;;  %v8732_v54 = vld [vmem:[%s9026_s30 + $0x191] sm:$0xff]  ;;  %v8733_v0 = vld [vmem:[%s9026_s30 + $0x189] sm:$0xff] }
 0x321   : > { %7530 = vmatprep.mubr.msk.f32.mxu0 %vm2620_vm9, %v2568_v4  ;;  %v2352_v4 = vsel %vm2333_vm4, %v2297_v43, %v16083_v35  ;;  %v16099_v43 = vld [vmem:[#allocation243_spill] sm:$0xff] }
 0x322   : > { %v1874_v38 = vpop.permute.xlu1 %1873  ;;  %v2037_v44 = vpop.permute.xlu0 %2036  ;;  %v2407_v57 = vsel %vm2388_vm5, %v2352_v4, %v16085_v53  ;;  %v8734_v53 = vld [vmem:[%s9026_s30 + $0xb7] sm:$0xff] }
 0x323   : > { %v2569_v21 = vsel %vm2553_vm8, %v2514_v25, %v2037_v44  ;;  %v2515_v16 = vsel %vm2498_vm7, %v2460_v55, %v1874_v38  ;;  %v2462_v25 = vsel %vm2443_vm6, %v2407_v57, %v16087_v41  ;;  %v16088_v38 = vld [vmem:[#allocation198_spill] sm:$0xff]  ;;  %v16092_v55 = vld [vmem:[#allocation148_spill] sm:$0xff]  ;;  %v16102_v57 = vld [vmem:[#allocation49_spill] sm:$0xff] }
 0x324   : > { %1923 = vrot.lane.b32.xlu1 %v8720_v23, %s8935_s16  ;;  %1921 = vrot.lane.b32.xlu0 %v8721_v29, %s8935_s16  ;;  %v2298_v44 = vsel %vm2278_vm3, %v2243_v31, %v16088_v38  ;;  %v2189_v23 = vsel %vm2168_vm1, %v8728_v12, %v16090_v37  ;;  %v16091_v29 = vld [vmem:[#allocation94_spill] sm:$0xff]  ;;  %v2191_v22 = vsel %vm2168_vm1, %v8734_v53, %v16102_v57  ;;  %v16103_v31 = vld [vmem:[#allocation109_spill] sm:$0xff] }
 0x325   : > { %7531 = vmatmul.mubr.msk.f32.gmra.mrb[14].mxu0 %vm2620_vm9, %v2569_v21  ;;  %v2353_v58 = vsel %vm2333_vm4, %v2298_v44, %v16089_v63  ;;  %v2244_v46 = vsel %vm2223_vm2, %v2189_v23, %v16092_v55  ;;  %v11248_v38 = vld [vmem:[%s9026_s30 + $0x197] sm:$0xff]  ;;  %v16106_v63 = vld [vmem:[#allocation203_spill] sm:$0xff]  ;;  %v16107_v23 = vld [vmem:[#allocation22_spill] sm:$0xff] }
 0x326   : > { %v2039_v28 = vpop.permute.xlu1 %2038  ;;  %v1876_v13 = vpop.permute.xlu0 %1875  ;;  %v2408_v52 = vsel %vm2388_vm5, %v2353_v58, %v16091_v29  ;;  %v16104_v44 = vld [vmem:[#allocation152_spill] sm:$0xff] }
 0x327   : > { %v2570_v40 = vsel %vm2553_vm8, %v2515_v16, %v2039_v28  ;;  %v2516_v50 = vsel %vm2498_vm7, %v2461_v47, %v1876_v13  ;;  %v2463_v16 = vsel %vm2443_vm6, %v2408_v52, %v16093_v39  ;;  %v16094_v28 = vld [vmem:[#allocation201_spill] sm:$0xff]  ;;  %v16098_v47 = vld [vmem:[#allocation147_spill] sm:$0xff] }
 0x328   : > { %2088 = vrot.lane.b32.xlu1 %v8723_v51, %s8936_s17  ;;  %2086 = vrot.lane.b32.xlu0 %v8724_v32, %s8936_s17  ;;  %v2299_v13 = vsel %vm2278_vm3, %v2244_v46, %v16094_v28  ;;  %v2190_v51 = vsel %vm2168_vm1, %v8731_v14, %v16096_v59  ;;  %v16097_v32 = vld [vmem:[#allocation106_spill] sm:$0xff]  ;;  %v8739_v28 = vld [vmem:[%s9026_s30 + $0x198] sm:$0xff] }
 0x329   : > { %7533 = vmatprep.mubr.msk.f32.mxu0 %vm2620_vm9, %v2570_v40  ;;  %v2354_v27 = vsel %vm2333_vm4, %v2299_v13, %v16095_v60  ;;  %v2245_v10 = vsel %vm2223_vm2, %v2190_v51, %v16098_v47  ;;  %v16109_v46 = vld [vmem:[#allocation110_spill] sm:$0xff]  ;;  %v16110_v13 = vld [vmem:[#allocation151_spill] sm:$0xff] }
 0x32a   : > { %v1878_v18 = vpop.permute.xlu1 %1877  ;;  %v2041_v2 = vpop.permute.xlu0 %2040  ;;  %v2409_v33 = vsel %vm2388_vm5, %v2354_v27, %v16097_v32  ;;  %v16112_v60 = vld [vmem:[#allocation202_spill] sm:$0xff]  ;;  %v16113_v51 = vld [vmem:[#allocation27_spill] sm:$0xff] }
 0x32b   : > { %v2571_v56 = vsel %vm2553_vm8, %v2516_v50, %v2041_v2  ;;  %v2517_v36 = vsel %vm2498_vm7, %v2462_v25, %v1878_v18  ;;  %v2464_v50 = vsel %vm2443_vm6, %v2409_v33, %v16099_v43  ;;  %v16100_v18 = vld [vmem:[#allocation200_spill] sm:$0xff]  ;;  %v11243_v25 = vld [vmem:[%s9026_s30 + $0x19f] sm:$0xff] }
 0x32c   : > { %1762 = vrot.lane.b32.xlu1 %v11177_v30, %s8934_s19  ;;  %1760 = vrot.lane.b32.xlu0 %v11182_v24, %s8934_s19  ;;  %v2300_v2 = vsel %vm2278_vm3, %v2245_v10, %v16100_v18  ;;  %v16115_v10 = vld [vmem:[#allocation113_spill] sm:$0xff] }
 0x32d   : > { %7534 = vmatmul.mubr.msk.f32.gmra.mrb[16].mxu0 %vm2620_vm9, %v2571_v56  ;;  %v2355_v48 = vsel %vm2333_vm4, %v2300_v2, %v16101_v45  ;;  %v8742_v18 = vld [vmem:[%s9026_s30 + $0x199] sm:$0xff]  ;;  %v16116_v2 = vld [vmem:[#allocation156_spill] sm:$0xff] }
 0x32e   : > { %v2043_v61 = vpop.permute.xlu1 %2042  ;;  %v1880_v21 = vpop.permute.xlu0 %1879  ;;  %v2410_v41 = vsel %vm2388_vm5, %v2355_v48, %v16103_v31  ;;  %v16118_v45 = vld [vmem:[#allocation205_spill] sm:$0xff] }
 0x32f   : > { %v2572_v20 = vsel %vm2553_vm8, %v2517_v36, %v2043_v61  ;;  %v2518_v62 = vsel %vm2498_vm7, %v2463_v16, %v1880_v21  ;;  %v2246_v36 = vsel %vm2223_vm2, %v2191_v22, %v16104_v44  ;;  %v16105_v61 = vld [vmem:[#allocation242_spill] sm:$0xff]  ;;  %v8743_v44 = vld [vmem:[%s9026_s30 + $0xcf] sm:$0xff] }
 0x330   : > { %1927 = vrot.lane.b32.xlu1 %v8729_v7, %s8935_s16  ;;  %1925 = vrot.lane.b32.xlu0 %v8730_v17, %s8935_s16  ;;  %v2465_v21 = vsel %vm2443_vm6, %v2410_v41, %v16105_v61  ;;  %v2301_v58 = vsel %vm2278_vm3, %v2246_v36, %v16106_v63  ;;  %v8737_v7 = vld [vmem:[%s9026_s30 + $0xbf] sm:$0xff]  ;;  %v16108_v17 = vld [vmem:[#allocation48_spill] sm:$0xff] }
 0x331   : > { %7536 = vmatprep.mubr.msk.f32.mxu0 %vm2620_vm9, %v2572_v20  ;;  %v2356_v29 = vsel %vm2333_vm4, %v2301_v58, %v16107_v23  ;;  %v2192_v55 = vsel %vm2168_vm1, %v8737_v7, %v16108_v17  ;;  %v8738_v16 = vld [vmem:[%s9026_s30 + $0x1a0] sm:$0xff]  ;;  %v16120_v36 = vld [vmem:[#allocation52_spill] sm:$0xff]  ;;  %v16123_v23 = vld [vmem:[#allocation247_spill] sm:$0xff] }
 0x332   : > { %v1882_v49 = vpop.permute.xlu1 %1881  ;;  %v2045_v40 = vpop.permute.xlu0 %2044  ;;  %v2411_v39 = vsel %vm2388_vm5, %v2356_v29, %v16109_v46  ;;  %v16119_v22 = vld [vmem:[#allocation26_spill] sm:$0xff]  ;;  %v2194_v61 = vsel %vm2168_vm1, %v8743_v44, %v16120_v36  ;;  %v11309_v58 = vld [vmem:[%s9026_s30 + $0x1af] sm:$0xff] }
 0x333   : > { %v2573_v6 = vsel %vm2553_vm8, %v2518_v62, %v2045_v40  ;;  %v2519_v35 = vsel %vm2498_vm7, %v2464_v50, %v1882_v49  ;;  %v2247_v62 = vsel %vm2223_vm2, %v2192_v55, %v16110_v13  ;;  %v16111_v49 = vld [vmem:[#allocation245_spill] sm:$0xff]  ;;  %v8741_v50 = vld [vmem:[%s9026_s30 + $0x1a1] sm:$0xff] }
 0x334   : > { %2092 = vrot.lane.b32.xlu1 %v8732_v54, %s8936_s17  ;;  %2090 = vrot.lane.b32.xlu0 %v8733_v0, %s8936_s17  ;;  %v2466_v40 = vsel %vm2443_vm6, %v2411_v39, %v16111_v49  ;;  %v2302_v27 = vsel %vm2278_vm3, %v2247_v62, %v16112_v60  ;;  %v8740_v54 = vld [vmem:[%s9026_s30 + $0xc7] sm:$0xff]  ;;  %v16114_v0 = vld [vmem:[#allocation53_spill] sm:$0xff] }
 0x335   : > { %7537 = vmatmul.mubr.msk.f32.gmra.mrb[18].mxu0 %vm2620_vm9, %v2573_v6  ;;  %v2357_v32 = vsel %vm2333_vm4, %v2302_v27, %v16113_v51  ;;  %v2193_v47 = vsel %vm2168_vm1, %v8740_v54, %v16114_v0  ;;  %v16125_v39 = vld [vmem:[#allocation31_spill] sm:$0xff]  ;;  %v8746_v13 = vld [vmem:[%s9026_s30 + $0xd7] sm:$0xff]  ;;  %v16129_v51 = vld [vmem:[#allocation246_spill] sm:$0xff] }
 0x336   : > { %v2047_v4 = vpop.permute.xlu1 %2046  ;;  %v1884_v56 = vpop.permute.xlu0 %1883  ;;  %v2412_v43 = vsel %vm2388_vm5, %v2357_v32, %v16115_v10  ;;  %v16126_v62 = vld [vmem:[#allocation57_spill] sm:$0xff]  ;;  %v8747_v27 = vld [vmem:[%s9026_s30 + $0x1b0] sm:$0xff] }
 0x337   : > { %v2574_v11 = vsel %vm2553_vm8, %v2519_v35, %v2047_v4  ;;  %v2520_v20 = vsel %vm2498_vm7, %v2465_v21, %v1884_v56  ;;  %v2248_v35 = vsel %vm2223_vm2, %v2193_v47, %v16116_v2  ;;  %v16117_v4 = vld [vmem:[#allocation244_spill] sm:$0xff]  ;;  %v16121_v21 = vld [vmem:[#allocation114_spill] sm:$0xff]  ;;  %v2195_v49 = vsel %vm2168_vm1, %v8746_v13, %v16126_v62  ;;  %v16142_v62 = vld [vmem:[#allocation209_spill] sm:$0xff] }
 0x338   : > { %1766 = vrot.lane.b32.xlu1 %v11243_v25, %s8934_s19  ;;  %1764 = vrot.lane.b32.xlu0 %v11248_v38, %s8934_s19  ;;  %v2467_v56 = vsel %vm2443_vm6, %v2412_v43, %v16117_v4  ;;  %v2303_v48 = vsel %vm2278_vm3, %v2248_v35, %v16118_v45  ;;  %v16131_v43 = vld [vmem:[#allocation30_spill] sm:$0xff]  ;;  %v16132_v35 = vld [vmem:[#allocation56_spill] sm:$0xff] }
 0x339   : > { %7539 = vmatprep.mubr.msk.f32.mxu0 %vm2620_vm9, %v2574_v11  ;;  %v2358_v31 = vsel %vm2333_vm4, %v2303_v48, %v16119_v22  ;;  %v8749_v2 = vld [vmem:[%s9026_s30 + $0xdf] sm:$0xff]  ;;  %v8750_v48 = vld [vmem:[%s9026_s30 + $0x1b1] sm:$0xff] }
 0x33a   : > { %v1886_v12 = vpop.permute.xlu1 %1885  ;;  %v2049_v37 = vpop.permute.xlu0 %2048  ;;  %v2413_v63 = vsel %vm2388_vm5, %v2358_v31, %v16121_v21  ;;  %v2196_v4 = vsel %vm2168_vm1, %v8749_v2, %v16132_v35  ;;  %v16135_v22 = vld [vmem:[#allocation249_spill] sm:$0xff]  ;;  %v16148_v35 = vld [vmem:[#allocation208_spill] sm:$0xff] }
 0x33b   : > { %v2575_v52 = vsel %vm2553_vm8, %v2520_v20, %v2049_v37  ;;  %v2521_v6 = vsel %vm2498_vm7, %v2466_v40, %v1886_v12  ;;  %v11314_v20 = vld [vmem:[%s9026_s30 + $0x1a7] sm:$0xff]  ;;  %v2468_v29 = vsel %vm2443_vm6, %v2413_v63, %v16123_v23  ;;  %v16127_v40 = vld [vmem:[#allocation117_spill] sm:$0xff] }
 0x33c   : > { %1931 = vrot.lane.b32.xlu1 %v8738_v16, %s8935_s16  ;;  %1929 = vrot.lane.b32.xlu0 %v8739_v28, %s8935_s16  ;;  %v16122_v12 = vld [vmem:[#allocation155_spill] sm:$0xff] }
 0x33d   : > { %7540 = vmatmul.mubr.msk.f32.gmra.mrb[20].mxu0 %vm2620_vm9, %v2575_v52  ;;  %v2249_v37 = vsel %vm2223_vm2, %v2194_v61, %v16122_v12  ;;  %v16124_v52 = vld [vmem:[#allocation204_spill] sm:$0xff]  ;;  %v16137_v63 = vld [vmem:[#allocation35_spill] sm:$0xff] }
 0x33e   : > { %v2051_v14 = vpop.permute.xlu1 %2050  ;;  %v1888_v59 = vpop.permute.xlu0 %1887  ;;  %v2304_v7 = vsel %vm2278_vm3, %v2249_v37, %v16124_v52  ;;  %v8752_v23 = vld [vmem:[%s9026_s30 + $0xe7] sm:$0xff] }
 0x33f   : > { %v2576_v33 = vsel %vm2553_vm8, %v2521_v6, %v2051_v14  ;;  %v2522_v11 = vsel %vm2498_vm7, %v2467_v56, %v1888_v59  ;;  %v2359_v16 = vsel %vm2333_vm4, %v2304_v7, %v16125_v39  ;;  %v8748_v6 = vld [vmem:[%s9026_s30 + $0x1a8] sm:$0xff]  ;;  %v16128_v14 = vld [vmem:[#allocation160_spill] sm:$0xff]  ;;  %v16133_v56 = vld [vmem:[#allocation118_spill] sm:$0xff] }
 0x340   : > { %2096 = vrot.lane.b32.xlu1 %v8741_v50, %s8936_s17  ;;  %2094 = vrot.lane.b32.xlu0 %v8742_v18, %s8936_s17  ;;  %v2414_v60 = vsel %vm2388_vm5, %v2359_v16, %v16127_v40  ;;  %v2250_v59 = vsel %vm2223_vm2, %v2195_v49, %v16128_v14  ;;  %v16139_v7 = vld [vmem:[#allocation121_spill] sm:$0xff]  ;;  %v16140_v39 = vld [vmem:[#allocation164_spill] sm:$0xff] }
 0x341   : > { %7542 = vmatprep.mubr.msk.f32.mxu0 %vm2620_vm9, %v2576_v33  ;;  %v2469_v32 = vsel %vm2443_vm6, %v2414_v60, %v16129_v51  ;;  %v16130_v33 = vld [vmem:[#allocation207_spill] sm:$0xff] }
 0x342   : > { %v1890_v53 = vpop.permute.xlu1 %1889  ;;  %v2053_v57 = vpop.permute.xlu0 %2052  ;;  %v2305_v54 = vsel %vm2278_vm3, %v2250_v59, %v16130_v33  ;;  %v8755_v51 = vld [vmem:[%s9026_s30 + $0xef] sm:$0xff] }
 0x343   : > { %v2577_v41 = vsel %vm2553_vm8, %v2522_v11, %v2053_v57  ;;  %v2523_v17 = vsel %vm2498_vm7, %v2468_v29, %v1890_v53  ;;  %v2360_v50 = vsel %vm2333_vm4, %v2305_v54, %v16131_v43  ;;  %v8751_v11 = vld [vmem:[%s9026_s30 + $0x1a9] sm:$0xff]  ;;  %v16138_v29 = vld [vmem:[#allocation61_spill] sm:$0xff]  ;;  %v16145_v54 = vld [vmem:[#allocation122_spill] sm:$0xff] }
 0x344   : > { %1770 = vrot.lane.b32.xlu1 %v11309_v58, %s8934_s19  ;;  %1768 = vrot.lane.b32.xlu0 %v11314_v20, %s8934_s19  ;;  %v2415_v45 = vsel %vm2388_vm5, %v2360_v50, %v16133_v56  ;;  %v16134_v53 = vld [vmem:[#allocation159_spill] sm:$0xff]  ;;  %v2197_v52 = vsel %vm2168_vm1, %v8752_v23, %v16138_v29 }
 0x345   : > { %7543 = vmatmul.mubr.msk.f32.gmra.mrb[22].mxu0 %vm2620_vm9, %v2577_v41  ;;  %v2251_v57 = vsel %vm2223_vm2, %v2196_v4, %v16134_v53  ;;  %v2470_v31 = vsel %vm2443_vm6, %v2415_v45, %v16135_v22  ;;  %v16136_v41 = vld [vmem:[#allocation206_spill] sm:$0xff]  ;;  %v2252_v16 = vsel %vm2223_vm2, %v2197_v52, %v16140_v39  ;;  %v16146_v43 = vld [vmem:[#allocation163_spill] sm:$0xff]  ;;  %v8758_v22 = vld [vmem:[%s9026_s30 + $0xf7] sm:$0xff] }
 0x346   : > { %v2055_v55 = vpop.permute.xlu1 %2054  ;;  %v1892_v46 = vpop.permute.xlu0 %1891  ;;  %v2306_v44 = vsel %vm2278_vm3, %v2251_v57, %v16136_v41  ;;  %v2307_v49 = vsel %vm2278_vm3, %v2252_v16, %v16142_v62  ;;  %v686_v29 = vld [vmem:[%s9026_s30 + $0x1cf] sm:$0xff]  ;;  %v16155_v39 = vld [vmem:[#allocation38_spill] sm:$0xff] }
 0x347   : > { %v2578_v28 = vsel %vm2553_vm8, %v2523_v17, %v2055_v55  ;;  %v2524_v0 = vsel %vm2498_vm7, %v2469_v32, %v1892_v46  ;;  %v2361_v12 = vsel %vm2333_vm4, %v2306_v44, %v16137_v63  ;;  %v8753_v55 = vld [vmem:[%s9026_s30 + $0x1bf] sm:$0xff]  ;;  %v8754_v46 = vld [vmem:[%s9026_s30 + $0x1b7] sm:$0xff]  ;;  %v16154_v52 = vld [vmem:[#allocation211_spill] sm:$0xff] }
 0x348   : > { %1935 = vrot.lane.b32.xlu1 %v8747_v27, %s8935_s16  ;;  %1933 = vrot.lane.b32.xlu0 %v8748_v6, %s8935_s16  ;;  %v2416_v17 = vsel %vm2388_vm5, %v2361_v12, %v16139_v7  ;;  %v16143_v6 = vld [vmem:[#allocation34_spill] sm:$0xff]  ;;  %v16144_v32 = vld [vmem:[#allocation60_spill] sm:$0xff]  ;;  %v16151_v44 = vld [vmem:[#allocation125_spill] sm:$0xff] }
 0x349   : > { %7545 = vmatprep.mubr.msk.f32.mxu0 %vm2620_vm9, %v2578_v28  ;;  %v16141_v28 = vld [vmem:[#allocation248_spill] sm:$0xff]  ;;  %v2362_v14 = vsel %vm2333_vm4, %v2307_v49, %v16143_v6  ;;  %v2198_v33 = vsel %vm2168_vm1, %v8755_v51, %v16144_v32  ;;  %v16158_v6 = vld [vmem:[#allocation167_spill] sm:$0xff] }
 0x34a   : > { %v1894_v47 = vpop.permute.xlu1 %1893  ;;  %v2057_v10 = vpop.permute.xlu0 %2056  ;;  %v2471_v13 = vsel %vm2443_vm6, %v2416_v17, %v16141_v28  ;;  %v2253_v50 = vsel %vm2223_vm2, %v2198_v33, %v16146_v43  ;;  %v16152_v63 = vld [vmem:[#allocation168_spill] sm:$0xff]  ;;  %v16160_v33 = vld [vmem:[#allocation210_spill] sm:$0xff]  ;;  %v16161_v43 = vld [vmem:[#allocation43_spill] sm:$0xff] }
 0x34b   : > { %v2579_v18 = vsel %vm2553_vm8, %v2524_v0, %v2057_v10  ;;  %v2525_v36 = vsel %vm2498_vm7, %v2470_v31, %v1894_v47  ;;  %v2417_v0 = vsel %vm2388_vm5, %v2362_v14, %v16145_v54  ;;  %v8756_v47 = vld [vmem:[%s9026_s30 + $0x1c0] sm:$0xff]  ;;  %v8757_v10 = vld [vmem:[%s9026_s30 + $0x1b8] sm:$0xff]  ;;  %v2308_v4 = vsel %vm2278_vm3, %v2253_v50, %v16148_v35  ;;  %v16156_v62 = vld [vmem:[#allocation64_spill] sm:$0xff] }
 0x34c   : > { %2100 = vrot.lane.b32.xlu1 %v8750_v48, %s8936_s17  ;;  %2098 = vrot.lane.b32.xlu0 %v8751_v11, %s8936_s17  ;;  %v16149_v11 = vld [vmem:[#allocation39_spill] sm:$0xff]  ;;  %v16150_v31 = vld [vmem:[#allocation65_spill] sm:$0xff]  ;;  %v689_v32 = vld [vmem:[%s9026_s30 + $0x1d0] sm:$0xff] }
 0x34d   : > { %7546 = vmatmul.mubr.msk.f32.gmra.mrb[24].mxu0 %vm2620_vm9, %v2579_v18  ;;  %v16147_v18 = vld [vmem:[#allocation251_spill] sm:$0xff]  ;;  %v2363_v53 = vsel %vm2333_vm4, %v2308_v4, %v16149_v11  ;;  %v2199_v41 = vsel %vm2168_vm1, %v8758_v22, %v16150_v31 }
 0x34e   : > { %v2059_v61 = vpop.permute.xlu1 %2058  ;;  %v1896_v21 = vpop.permute.xlu0 %1895  ;;  %v2472_v2 = vsel %vm2443_vm6, %v2417_v0, %v16147_v18  ;;  %v2254_v12 = vsel %vm2223_vm2, %v2199_v41, %v16152_v63  ;;  %v8763_v4 = vld [vmem:[%s9026_s30 + $0x1c8] sm:$0xff]  ;;  %v16164_v41 = vld [vmem:[#allocation68_spill] sm:$0xff] }
 0x34f   : > { %v2580_v37 = vsel %vm2553_vm8, %v2525_v36, %v2059_v61  ;;  %v2526_v40 = vsel %vm2498_vm7, %v2471_v13, %v1896_v21  ;;  %v2418_v36 = vsel %vm2388_vm5, %v2363_v53, %v16151_v44  ;;  %v8759_v61 = vld [vmem:[%s9026_s30 + $0x1c1] sm:$0xff]  ;;  %v8760_v21 = vld [vmem:[%s9026_s30 + $0x1b9] sm:$0xff]  ;;  %v2309_v7 = vsel %vm2278_vm3, %v2254_v12, %v16154_v52  ;;  %v8764_v31 = vld [vmem:[%s9026_s30 + $0x10f] sm:$0xff] }
 0x350   : > { %1774 = vrot.lane.b32.xlu1 %v8753_v55, %s8934_s19  ;;  %1772 = vrot.lane.b32.xlu0 %v8754_v46, %s8934_s19  ;;  %v2364_v16 = vsel %vm2333_vm4, %v2309_v7, %v16155_v39  ;;  %v8761_v13 = vld [vmem:[%s9026_s30 + $0xff] sm:$0xff]  ;;  %v2202_v44 = vsel %vm2168_vm1, %v8764_v31, %v16164_v41  ;;  %v8766_v63 = vld [vmem:[%s9026_s30 + $0x1c9] sm:$0xff] }
 0x351   : > { %7548 = vmatprep.mubr.msk.f32.mxu0 %vm2620_vm9, %v2580_v37  ;;  %v16153_v37 = vld [vmem:[#allocation250_spill] sm:$0xff]  ;;  %v2200_v49 = vsel %vm2168_vm1, %v8761_v13, %v16156_v62  ;;  %v16166_v12 = vld [vmem:[#allocation171_spill] sm:$0xff]  ;;  %v687_v7 = vld [vmem:[%s9026_s30 + $0x1d7] sm:$0xff] }
 0x352   : > { %v1898_v60 = vpop.permute.xlu1 %1897  ;;  %v2061_v27 = vpop.permute.xlu0 %2060  ;;  %v2473_v23 = vsel %vm2443_vm6, %v2418_v36, %v16153_v37  ;;  %v2255_v14 = vsel %vm2223_vm2, %v2200_v49, %v16158_v6  ;;  %v8765_v36 = vld [vmem:[%s9026_s30 + $0x107] sm:$0xff]  ;;  %v2257_v37 = vsel %vm2223_vm2, %v2202_v44, %v16166_v12  ;;  %v688_v52 = vld [vmem:[%s9026_s30 + $0x1df] sm:$0xff] }
 0x353   : > { %v2581_v59 = vsel %vm2553_vm8, %v2526_v40, %v2061_v27  ;;  %v2527_v56 = vsel %vm2498_vm7, %v2472_v2, %v1898_v60  ;;  %v16157_v40 = vld [vmem:[#allocation126_spill] sm:$0xff]  ;;  %v2310_v54 = vsel %vm2278_vm3, %v2255_v14, %v16160_v33  ;;  %v16162_v2 = vld [vmem:[#allocation129_spill] sm:$0xff]  ;;  %v16170_v13 = vld [vmem:[#allocation47_spill] sm:$0xff] }
 0x354   : > { %1939 = vrot.lane.b32.xlu1 %v8756_v47, %s8935_s16  ;;  %1937 = vrot.lane.b32.xlu0 %v8757_v10, %s8935_s16  ;;  %v2419_v60 = vsel %vm2388_vm5, %v2364_v16, %v16157_v40  ;;  %v8762_v27 = vld [vmem:[%s9026_s30 + $0x1c7] sm:$0xff]  ;;  %v2365_v50 = vsel %vm2333_vm4, %v2310_v54, %v16161_v43  ;;  %v690_v33 = vld [vmem:[%s9026_s30 + $0x1d8] sm:$0xff] }
 0x355   : > { %7549 = vmatmul.mubr.msk.f32.gmra.mrb[26].mxu0 %vm2620_vm9, %v2581_v59  ;;  %v16159_v59 = vld [vmem:[#allocation253_spill] sm:$0xff]  ;;  %v2420_v35 = vsel %vm2388_vm5, %v2365_v50, %v16162_v2  ;;  %v16171_v49 = vld [vmem:[#allocation42_spill] sm:$0xff]  ;;  %v462_v44 = vld [vmem:[%s15355_s2 + $0x8] sm:$0xff] }
 0x356   : > { %v2063_v45 = vpop.permute.xlu1 %2062  ;;  %v1900_v48 = vpop.permute.xlu0 %1899  ;;  %v2474_v51 = vsel %vm2443_vm6, %v2419_v60, %v16159_v59  ;;  %v16172_v60 = vld [vmem:[#allocation133_spill] sm:$0xff]  ;;  %v16173_v6 = vld [vmem:[#allocation130_spill] sm:$0xff] }
 0x357   : > { %v2582_v57 = vsel %vm2553_vm8, %v2527_v56, %v2063_v45  ;;  %v2528_v17 = vsel %vm2498_vm7, %v2473_v23, %v1900_v48  ;;  %v16163_v56 = vld [vmem:[#allocation252_spill] sm:$0xff]  ;;  %v16177_v31 = vld [vmem:[#allocation174_spill] sm:$0xff] }
 0x358   : > { %2104 = vrot.lane.b32.xlu1 %v8759_v61, %s8936_s17  ;;  %2102 = vrot.lane.b32.xlu0 %v8760_v21, %s8936_s17  ;;  %v2475_v45 = vsel %vm2443_vm6, %v2420_v35, %v16163_v56  ;;  %v692_v48 = vld [vmem:[%s9026_s30 + $0x1d1] sm:$0xff] }
 0x359   : > { %7551 = vmatprep.mubr.msk.f32.mxu0 %vm2620_vm9, %v2582_v57  ;;  %v16165_v61 = vld [vmem:[#allocation69_spill] sm:$0xff]  ;;  %v16167_v23 = vld [vmem:[#allocation172_spill] sm:$0xff] }
 0x35a   : > { %v1902_v55 = vpop.permute.xlu1 %1901  ;;  %v2065_v46 = vpop.permute.xlu0 %2064  ;;  %v2201_v21 = vsel %vm2168_vm1, %v8765_v36, %v16165_v61  ;;  %v16174_v56 = vld [vmem:[#allocation72_spill] sm:$0xff]  ;;  %v461_v36 = vld [vmem:[%s15355_s2] sm:$0xff] }
 0x35b   : > { %v2583_v28 = vsel %vm2553_vm8, %v2528_v17, %v2065_v46  ;;  %v2529_v0 = vsel %vm2498_vm7, %v2474_v51, %v1902_v55  ;;  %v16168_v17 = vld [vmem:[#allocation212_spill] sm:$0xff]  ;;  %v16169_v46 = vld [vmem:[#allocation213_spill] sm:$0xff]  ;;  %v16178_v61 = vld [vmem:[#allocation214_spill] sm:$0xff] }
 0x35c   : > { %1778 = vrot.lane.b32.xlu1 %v686_v29, %s8934_s19  ;;  %1776 = vrot.lane.b32.xlu0 %v8762_v27, %s8934_s19  ;;  %v2256_v29 = vsel %vm2223_vm2, %v2201_v21, %v16167_v23  ;;  %v2312_v55 = vsel %vm2278_vm3, %v2257_v37, %v16168_v17 }
 0x35d   : > { %7552 = vmatmul.mubr.msk.f32.gmra.mrb[28].mxu0 %vm2620_vm9, %v2583_v28  ;;  %v2311_v39 = vsel %vm2278_vm3, %v2256_v29, %v16169_v46  ;;  %v2367_v62 = vsel %vm2333_vm4, %v2312_v55, %v16170_v13  ;;  %v16180_v29 = vld [vmem:[#allocation51_spill] sm:$0xff]  ;;  %v16182_v55 = vld [vmem:[#allocation137_spill] sm:$0xff] }
 0x35e   : > { %v2067_v47 = vpop.permute.xlu1 %2066  ;;  %v1904_v10 = vpop.permute.xlu0 %1903  ;;  %v2366_v40 = vsel %vm2333_vm4, %v2311_v39, %v16171_v49  ;;  %v2422_v27 = vsel %vm2388_vm5, %v2367_v62, %v16172_v60  ;;  %v16183_v39 = vld [vmem:[#allocation134_spill] sm:$0xff]  ;;  %v463_v62 = vld [vmem:[%s15355_s2 + $0x10] sm:$0xff]  ;;  %v464_v49 = vld [vmem:[%s15355_s2 + $0x18] sm:$0xff] }
 0x35f   : > { %v2584_v18 = vsel %vm2553_vm8, %v2529_v0, %v2067_v47  ;;  %v2530_v11 = vsel %vm2498_vm7, %v2475_v45, %v1904_v10  ;;  %v2421_v14 = vsel %vm2388_vm5, %v2366_v40, %v16173_v6 }
 0x360   : > { %1943 = vrot.lane.b32.xlu1 %v689_v32, %s8935_s16  ;;  %1941 = vrot.lane.b32.xlu0 %v8763_v4, %s8935_s16  ;;  %v2476_v59 = vsel %vm2443_vm6, %v2421_v14, %v10782_v34  ;;  %v691_v32 = vld [vmem:[%s9026_s30 + $0x1e0] sm:$0xff] }
 0x361   : > { %7554 = vmatprep.mubr.msk.f32.mxu0 %vm2620_vm9, %v2584_v18  ;;  %v694_v34 = vld [vmem:[%s9026_s30 + $0x1e1] sm:$0xff]  ;;  %v693_v18 = vld [vmem:[%s9026_s30 + $0x1d9] sm:$0xff] }
 0x362   : > { %v1743_v53 = vpop.permute.xlu1 %1742  ;;  %v2069_v57 = vpop.permute.xlu0 %2068  ;;  %v8767_v4 = vld [vmem:[%s9026_s30 + $0x11f] sm:$0xff] }
 0x363   : > { %v2585_v22 = vsel %vm2553_vm8, %v2530_v11, %v2069_v57  ;;  %v2477_v51 = vsel %vm2443_vm6, %v2422_v27, %v1743_v53  ;;  %v2204_v45 = vsel %vm2168_vm1, %v8767_v4, %v16174_v56  ;;  %v16175_v11 = vld [vmem:[#allocation73_spill] sm:$0xff]  ;;  %v467_v56 = vld [vmem:[%s15355_s2 + $0x30] sm:$0xff] }
 0x364   : > { %2108 = vrot.lane.b32.xlu1 %v692_v48, %s8936_s17  ;;  %2106 = vrot.lane.b32.xlu0 %v8766_v63, %s8936_s17  ;;  %v8768_v48 = vld [vmem:[%s9026_s30 + $0x117] sm:$0xff]  ;;  %v16179_v63 = vld [vmem:[#allocation215_spill] sm:$0xff] }
 0x365   : > { %7555 = vmatmul.mubr.msk.f32.gmra.mrb[30].mxu0 %vm2620_vm9, %v2585_v22  ;;  %v2203_v53 = vsel %vm2168_vm1, %v8768_v48, %v16175_v11  ;;  %v16176_v57 = vld [vmem:[#allocation173_spill] sm:$0xff]  ;;  %v16188_v48 = vld [vmem:[#allocation216_spill] sm:$0xff] }
 0x366   : > { %v1908_v16 = vpop.permute.xlu1 %1907  ;;  %v1906_v28 = vpop.permute.xlu0 %1905  ;;  %v2259_v22 = vsel %vm2223_vm2, %v2204_v45, %v16176_v57  ;;  %v2258_v41 = vsel %vm2223_vm2, %v2203_v53, %v16177_v31  ;;  %v468_v45 = vld [vmem:[%s15355_s2 + $0x38] sm:$0xff] }
 0x367   : > { %v2532_v54 = vsel %vm2498_vm7, %v2477_v51, %v1908_v16  ;;  %v2531_v0 = vsel %vm2498_vm7, %v2476_v59, %v1906_v28  ;;  %v2314_v21 = vsel %vm2278_vm3, %v2259_v22, %v16178_v61  ;;  %v2313_v12 = vsel %vm2278_vm3, %v2258_v41, %v16179_v63  ;;  %v465_v51 = vld [vmem:[%s15355_s2 + $0x20] sm:$0xff]  ;;  %v16189_v53 = vld [vmem:[#allocation217_spill] sm:$0xff]  ;;  %v16190_v41 = vld [vmem:[#allocation55_spill] sm:$0xff] }
 0x368   : > { %1782 = vrot.lane.b32.xlu1 %v688_v52, %s8934_s19  ;;  %1780 = vrot.lane.b32.xlu0 %v687_v7, %s8934_s19  ;;  %v2369_v52 = vsel %vm2333_vm4, %v2314_v21, %v16180_v29  ;;  %v16181_v7 = vld [vmem:[#allocation46_spill] sm:$0xff]  ;;  %v16192_v21 = vld [vmem:[#allocation141_spill] sm:$0xff]  ;;  %s455_s19 = scalar_lea.vmem %s15354_s1, %s7380_s15 }
 0x369   : > { %v2368_v17 = vsel %vm2333_vm4, %v2313_v12, %v16181_v7  ;;  %v2424_v46 = vsel %vm2388_vm5, %v2369_v52, %v16182_v55  ;;  %v16193_v12 = vld [vmem:[#allocation138_spill] sm:$0xff]  ;;  %v470_v7 = vld [vmem:[%s15355_s2 + $0x48] sm:$0xff] }
 0x36a   : > { %v2073_v47 = vpop.permute.xlu1 %2072  ;;  %v2071_v10 = vpop.permute.xlu0 %2070  ;;  %v2423_v16 = vsel %vm2388_vm5, %v2368_v17, %v16183_v39  ;;  %v469_v52 = vld [vmem:[%s15355_s2 + $0x40] sm:$0xff] }
 0x36b   : > { %v2587_v43 = vsel %vm2553_vm8, %v2532_v54, %v2073_v47  ;;  %v2586_v50 = vsel %vm2553_vm8, %v2531_v0, %v2071_v10  ;;  %v8769_v0 = vld [vmem:[%s9026_s30 + $0x12f] sm:$0xff] }
 0x36c   : > { %1947 = vrot.lane.b32.xlu1 %v691_v32, %s8935_s16  ;;  %1945 = vrot.lane.b32.xlu0 %v690_v33, %s8935_s16  ;;  %v466_v32 = vld [vmem:[%s15355_s2 + $0x28] sm:$0xff]  ;;  %v16184_v47 = vld [vmem:[#allocation76_spill] sm:$0xff] }
 0x36d   : > { %7557 = vmatprep.mubr.msk.f32.mxu0 %vm2620_vm9, %v2586_v50  ;;  %v2206_v10 = vsel %vm2168_vm1, %v8769_v0, %v16184_v47  ;;  %v16185_v50 = vld [vmem:[#allocation77_spill] sm:$0xff]  ;;  %v473_v0 = vld [vmem:[%s15355_s2 + $0x60] sm:$0xff] }
 0x36e   : > { %7558 = vmatmul.mubr.msk.f32.gmra.mrb[32].mxu0 %vm2620_vm9, %v2587_v43  ;;  %v1747_v2 = vpop.permute.xlu1 %1746  ;;  %v1745_v35 = vpop.permute.xlu0 %1744  ;;  %v8770_v43 = vld [vmem:[%s9026_s30 + $0x127] sm:$0xff] }
 0x36f   : > { %v2479_v28 = vsel %vm2443_vm6, %v2424_v46, %v1747_v2  ;;  %v2478_v13 = vsel %vm2443_vm6, %v2423_v16, %v1745_v35  ;;  %v16187_v35 = vld [vmem:[#allocation176_spill] sm:$0xff]  ;;  %v16198_v47 = vld [vmem:[#allocation218_spill] sm:$0xff] }
 0x370   : > { %2112 = vrot.lane.b32.xlu1 %v694_v34, %s8936_s17  ;;  %2110 = vrot.lane.b32.xlu0 %v693_v18, %s8936_s17  ;;  %v2205_v34 = vsel %vm2168_vm1, %v8770_v43, %v16185_v50  ;;  %v16186_v18 = vld [vmem:[#allocation175_spill] sm:$0xff] }
 0x371   : > { %v2261_v2 = vsel %vm2223_vm2, %v2206_v10, %v16186_v18  ;;  %v2260_v4 = vsel %vm2223_vm2, %v2205_v34, %v16187_v35  ;;  %v16199_v43 = vld [vmem:[#allocation219_spill] sm:$0xff] }
 0x372   : > { %v1912_v37 = vpop.permute.xlu1 %1911  ;;  %v1910_v23 = vpop.permute.xlu0 %1909  ;;  %v2316_v11 = vsel %vm2278_vm3, %v2261_v2, %v16188_v48  ;;  %v2315_v57 = vsel %vm2278_vm3, %v2260_v4, %v16189_v53  ;;  %v16200_v2 = vld [vmem:[#allocation59_spill] sm:$0xff]  ;;  %v16201_v4 = vld [vmem:[#allocation54_spill] sm:$0xff] }
 0x373   : > { %v2534_v40 = vsel %vm2498_vm7, %v2479_v28, %v1912_v37  ;;  %v2533_v60 = vsel %vm2498_vm7, %v2478_v13, %v1910_v23  ;;  %v471_v13 = vld [vmem:[%s15355_s2 + $0x50] sm:$0xff] }
 0x374   : > { %3131 = vperm.xlu1 %7800, %v462_v44   ;;  %3126 = vperm.xlu0 %7799, %v461_v36   ;;  %v2371_v44 = vsel %vm2333_vm4, %v2316_v11, %v16190_v41  ;;  %v16191_v36 = vld [vmem:[#allocation50_spill] sm:$0xff]  ;;  %v476_v41 = vld [vmem:[%s15355_s2 + $0x78] sm:$0xff] }
 0x375   : > { %v2370_v61 = vsel %vm2333_vm4, %v2315_v57, %v16191_v36  ;;  %v2426_v63 = vsel %vm2388_vm5, %v2371_v44, %v16192_v21  ;;  %v16203_v11 = vld [vmem:[#allocation142_spill] sm:$0xff] }
 0x376   : > { %v2077_v27 = vpop.permute.xlu1 %2076  ;;  %v2075_v6 = vpop.permute.xlu0 %2074  ;;  %v2425_v37 = vsel %vm2388_vm5, %v2370_v61, %v16193_v12 }
 0x377   : > { %v2589_v14 = vsel %vm2553_vm8, %v2534_v40, %v2077_v27  ;;  %v2588_v59 = vsel %vm2553_vm8, %v2533_v60, %v2075_v6  ;;  %v16194_v60 = vld [vmem:[#allocation80_spill] sm:$0xff] }
 0x378   : > { %3136 = vperm.xlu1 %7800, %v463_v62   ;;  %3141 = vperm.xlu0 %7799, %v464_v49   ;;  %v472_v62 = vld [vmem:[%s15355_s2 + $0x58] sm:$0xff]  ;;  %v2208_v27 = vsel %vm2168_vm1, %v10850_v19, %v16194_v60  ;;  %v474_v19 = vld [vmem:[%s15355_s2 + $0x68] sm:$0xff] }
 0x379   : > { %7560 = vmatprep.mubr.msk.f32.mxu0 %vm2620_vm9, %v2588_v59  ;;  %v8771_v6 = vld [vmem:[%s9026_s30 + $0x137] sm:$0xff] }
 0x37a   : > { %7561 = vmatmul.mubr.msk.f32.gmra.mrb[34].mxu0 %vm2620_vm9, %v2589_v14  ;;  %v1751_v33 = vpop.permute.xlu1 %1750  ;;  %v1749_v54 = vpop.permute.xlu0 %1748  ;;  %v16195_v14 = vld [vmem:[#allocation81_spill] sm:$0xff] }
 0x37b   : > { %v2481_v23 = vsel %vm2443_vm6, %v2426_v63, %v1751_v33  ;;  %v2480_v29 = vsel %vm2443_vm6, %v2425_v37, %v1749_v54  ;;  %v2207_v59 = vsel %vm2168_vm1, %v8771_v6, %v16195_v14  ;;  %v16197_v33 = vld [vmem:[#allocation178_spill] sm:$0xff]  ;;  %v16210_v14 = vld [vmem:[#allocation63_spill] sm:$0xff] }
 0x37c   : > { %3146 = vperm.xlu1 %7800, %v465_v51   ;;  %3151 = vperm.xlu0 %7799, %v466_v32   ;;  %v16196_v51 = vld [vmem:[#allocation177_spill] sm:$0xff]  ;;  %v2262_v54 = vsel %vm2223_vm2, %v2207_v59, %v16197_v33  ;;  %v477_v37 = vld [vmem:[%s15355_s2 + $0x80] sm:$0xff] }
 0x37d   : > { %v2263_v32 = vsel %vm2223_vm2, %v2208_v27, %v16196_v51  ;;  %v2317_v50 = vsel %vm2278_vm3, %v2262_v54, %v16199_v43  ;;  %v16211_v51 = vld [vmem:[#allocation58_spill] sm:$0xff]  ;;  %v16212_v33 = vld [vmem:[#allocation149_spill] sm:$0xff] }
 0x37e   : > { %v1916_v22 = vpop.permute.xlu1 %1915  ;;  %v1914_v31 = vpop.permute.xlu0 %1913  ;;  %v2318_v10 = vsel %vm2278_vm3, %v2263_v32, %v16198_v47  ;;  %v481_v43 = vld [vmem:[%s15355_s2 + $0xa0] sm:$0xff] }
 0x37f   : > { %v2536_v17 = vsel %vm2498_vm7, %v2481_v23, %v1916_v22  ;;  %v2535_v55 = vsel %vm2498_vm7, %v2480_v29, %v1914_v31  ;;  %v2373_v35 = vsel %vm2333_vm4, %v2318_v10, %v16200_v2  ;;  %v475_v31 = vld [vmem:[%s15355_s2 + $0x70] sm:$0xff]  ;;  %v478_v23 = vld [vmem:[%s15355_s2 + $0x88] sm:$0xff] }
 0x380   : > { %3156 = vperm.xlu1 %7800, %v467_v56   ;;  %3161 = vperm.xlu0 %7799, %v468_v45   ;;  %v2372_v56 = vsel %vm2333_vm4, %v2317_v50, %v16201_v4  ;;  %v16202_v45 = vld [vmem:[#allocation145_spill] sm:$0xff]  ;;  %v482_v50 = vld [vmem:[%s15355_s2 + $0xa8] sm:$0xff] }
 0x381   : > { %v2428_v48 = vsel %vm2388_vm5, %v2373_v35, %v16202_v45  ;;  %v2427_v53 = vsel %vm2388_vm5, %v2372_v56, %v16203_v11  ;;  %v483_v45 = vld [vmem:[%s15355_s2 + $0xb0] sm:$0xff] }
 0x382   : > { %v2081_v46 = vpop.permute.xlu1 %2080  ;;  %v2079_v39 = vpop.permute.xlu0 %2078 }
 0x383   : > { %v2591_v16 = vsel %vm2553_vm8, %v2536_v17, %v2081_v46  ;;  %v2590_v28 = vsel %vm2553_vm8, %v2535_v55, %v2079_v39  ;;  %v16205_v55 = vld [vmem:[#allocation85_spill] sm:$0xff]  ;;  %v16206_v39 = vld [vmem:[#allocation179_spill] sm:$0xff] }
 0x384   : > { %3166 = vperm.xlu1 %7800, %v469_v52   ;;  %3171 = vperm.xlu0 %7799, %v470_v7   ;;  %v16204_v7 = vld [vmem:[#allocation84_spill] sm:$0xff]  ;;  %v2209_v46 = vsel %vm2168_vm1, %v10918_v9, %v16205_v55  ;;  %v16209_v9 = vld [vmem:[#allocation221_spill] sm:$0xff]  ;;  %v16221_v55 = vld [vmem:[#allocation62_spill] sm:$0xff] }
 0x385   : > { %7563 = vmatprep.mubr.msk.f32.mxu0 %vm2620_vm9, %v2590_v28  ;;  %v2210_v17 = vsel %vm2168_vm1, %v10913_v5, %v16204_v7  ;;  %v16207_v28 = vld [vmem:[#allocation180_spill] sm:$0xff]  ;;  %v480_v5 = vld [vmem:[%s15355_s2 + $0x98] sm:$0xff]  ;;  %v16220_v7 = vld [vmem:[#allocation67_spill] sm:$0xff] }
 0x386   : > { %7564 = vmatmul.mubr.msk.f32.gmra.mrb[36].mxu0 %vm2620_vm9, %v2591_v16  ;;  %v1755_v49 = vpop.permute.xlu1 %1754  ;;  %v1753_v40 = vpop.permute.xlu0 %1752  ;;  %v2265_v16 = vsel %vm2223_vm2, %v2210_v17, %v16206_v39  ;;  %v16222_v39 = vld [vmem:[#allocation153_spill] sm:$0xff] }
 0x387   : > { %v2483_v57 = vsel %vm2443_vm6, %v2428_v48, %v1755_v49  ;;  %v2482_v22 = vsel %vm2443_vm6, %v2427_v53, %v1753_v40  ;;  %v16208_v49 = vld [vmem:[#allocation220_spill] sm:$0xff]  ;;  %v484_v48 = vld [vmem:[%s15355_s2 + $0xb8] sm:$0xff] }
 0x388   : > { %3176 = vperm.xlu1 %7800, %v471_v13   ;;  %3181 = vperm.xlu0 %7799, %v472_v62   ;;  %v2264_v13 = vsel %vm2223_vm2, %v2209_v46, %v16207_v28  ;;  %v479_v62 = vld [vmem:[%s15355_s2 + $0x90] sm:$0xff]  ;;  %v2320_v40 = vsel %vm2278_vm3, %v2265_v16, %v16208_v49  ;;  %v16223_v28 = vld [vmem:[#allocation150_spill] sm:$0xff] }
 0x389   : > { %v2319_v60 = vsel %vm2278_vm3, %v2264_v13, %v16209_v9  ;;  %v2375_v59 = vsel %vm2333_vm4, %v2320_v40, %v16210_v14  ;;  %v487_v49 = vld [vmem:[%s15355_s2 + $0xd0] sm:$0xff]  ;;  %v488_v40 = vld [vmem:[%s15355_s2 + $0xd8] sm:$0xff] }
 0x38a   : > { %v1920_v34 = vpop.permute.xlu1 %1919  ;;  %v1918_v18 = vpop.permute.xlu0 %1917  ;;  %v2374_v32 = vsel %vm2333_vm4, %v2319_v60, %v16211_v51  ;;  %v2430_v54 = vsel %vm2388_vm5, %v2375_v59, %v16212_v33  ;;  %v489_v51 = vld [vmem:[%s15355_s2 + $0xe0] sm:$0xff] }
 0x38b   : > { %v2538_v44 = vsel %vm2498_vm7, %v2483_v57, %v1920_v34  ;;  %v2537_v36 = vsel %vm2498_vm7, %v2482_v22, %v1918_v18  ;;  %v16214_v57 = vld [vmem:[#allocation88_spill] sm:$0xff] }
 0x38c   : > { %3186 = vperm.xlu1 %7800, %v473_v0   ;;  %3191 = vperm.xlu0 %7799, %v474_v19   ;;  %v16213_v0 = vld [vmem:[#allocation146_spill] sm:$0xff]  ;;  %v2212_v22 = vsel %vm2168_vm1, %v10979_v1, %v16214_v57  ;;  %v486_v1 = vld [vmem:[%s15355_s2 + $0xc8] sm:$0xff] }
 0x38d   : > { %v2429_v19 = vsel %vm2388_vm5, %v2374_v32, %v16213_v0  ;;  %v490_v32 = vld [vmem:[%s15355_s2 + $0xe8] sm:$0xff]  ;;  %v16224_v0 = vld [vmem:[#allocation92_spill] sm:$0xff]  ;;  %v16231_v57 = vld [vmem:[#allocation66_spill] sm:$0xff] }
 0x38e   : > { %v2085_v61 = vpop.permute.xlu1 %2084  ;;  %v2083_v21 = vpop.permute.xlu0 %2082 }
 0x38f   : > { %v2593_v63 = vsel %vm2553_vm8, %v2538_v44, %v2085_v61  ;;  %v2592_v12 = vsel %vm2553_vm8, %v2537_v36, %v2083_v21  ;;  %v16216_v44 = vld [vmem:[#allocation181_spill] sm:$0xff]  ;;  %v16217_v61 = vld [vmem:[#allocation182_spill] sm:$0xff] }
 0x390   : > { %3196 = vperm.xlu1 %7800, %v475_v31   ;;  %3201 = vperm.xlu0 %7799, %v476_v41   ;;  %v16215_v31 = vld [vmem:[#allocation89_spill] sm:$0xff]  ;;  %v2267_v36 = vsel %vm2223_vm2, %v2212_v22, %v16216_v44  ;;  %v16233_v44 = vld [vmem:[#allocation154_spill] sm:$0xff] }
 0x391   : > { %7566 = vmatprep.mubr.msk.f32.mxu0 %vm2620_vm9, %v2592_v12  ;;  %v2211_v41 = vsel %vm2168_vm1, %v10984_v8, %v16215_v31  ;;  %v16218_v12 = vld [vmem:[#allocation222_spill] sm:$0xff]  ;;  %v16219_v8 = vld [vmem:[#allocation223_spill] sm:$0xff]  ;;  %v16232_v31 = vld [vmem:[#allocation157_spill] sm:$0xff] }
 0x392   : > { %7567 = vmatmul.mubr.msk.f32.gmra.mrb[38].mxu0 %vm2620_vm9, %v2593_v63  ;;  %v1759_v29 = vpop.permute.xlu1 %1758  ;;  %v1757_v52 = vpop.permute.xlu0 %1756  ;;  %v2266_v21 = vsel %vm2223_vm2, %v2211_v41, %v16217_v61  ;;  %v485_v63 = vld [vmem:[%s15355_s2 + $0xc0] sm:$0xff] }
 0x393   : > { %v2485_v47 = vsel %vm2443_vm6, %v2430_v54, %v1759_v29  ;;  %v2484_v10 = vsel %vm2443_vm6, %v2429_v19, %v1757_v52  ;;  %v2214_v19 = vsel %vm2168_vm1, %v11045_v26, %v16224_v0  ;;  %v492_v26 = vld [vmem:[%s15355_s2 + $0xf8] sm:$0xff] }
 0x394   : > { %3206 = vperm.xlu1 %7800, %v477_v37   ;;  %3211 = vperm.xlu0 %7799, %v478_v23   ;;  %v2322_v37 = vsel %vm2278_vm3, %v2267_v36, %v16218_v12  ;;  %v2321_v23 = vsel %vm2278_vm3, %v2266_v21, %v16219_v8  ;;  %v16242_v0 = vld [vmem:[#allocation161_spill] sm:$0xff] }
 0x395   : > { %v2377_v17 = vsel %vm2333_vm4, %v2322_v37, %v16220_v7  ;;  %v2376_v46 = vsel %vm2333_vm4, %v2321_v23, %v16221_v55  ;;  %v495_v7 = vld [vmem:[%s15355_s2 + $0x110] sm:$0xff] }
 0x396   : > { %v1924_v27 = vpop.permute.xlu1 %1923  ;;  %v1922_v6 = vpop.permute.xlu0 %1921  ;;  %v2432_v16 = vsel %vm2388_vm5, %v2377_v17, %v16222_v39  ;;  %v2431_v13 = vsel %vm2388_vm5, %v2376_v46, %v16223_v28  ;;  %v496_v17 = vld [vmem:[%s15355_s2 + $0x118] sm:$0xff]  ;;  %v16234_v39 = vld [vmem:[#allocation96_spill] sm:$0xff] }
 0x397   : > { %v2540_v34 = vsel %vm2498_vm7, %v2485_v47, %v1924_v27  ;;  %v2539_v18 = vsel %vm2498_vm7, %v2484_v10, %v1922_v6  ;;  %v16225_v47 = vld [vmem:[#allocation93_spill] sm:$0xff] }
 0x398   : > { %3216 = vperm.xlu1 %7800, %v479_v62   ;;  %3221 = vperm.xlu0 %7799, %v480_v5   ;;  %v2213_v10 = vsel %vm2168_vm1, %v11050_v15, %v16225_v47  ;;  %v16229_v15 = vld [vmem:[#allocation225_spill] sm:$0xff]  ;;  %v16243_v47 = vld [vmem:[#allocation158_spill] sm:$0xff] }
 0x399   : > { %v16235_v28 = vld [vmem:[#allocation97_spill] sm:$0xff] }
 0x39a   : > { %v2089_v2 = vpop.permute.xlu1 %2088  ;;  %v2087_v35 = vpop.permute.xlu0 %2086 }
 0x39b   : > { %v2595_v4 = vsel %vm2553_vm8, %v2540_v34, %v2089_v2  ;;  %v2594_v56 = vsel %vm2553_vm8, %v2539_v18, %v2087_v35  ;;  %v16227_v34 = vld [vmem:[#allocation184_spill] sm:$0xff] }
 0x39c   : > { %3226 = vperm.xlu1 %7800, %v481_v43   ;;  %3231 = vperm.xlu0 %7799, %v482_v50   ;;  %v16226_v43 = vld [vmem:[#allocation183_spill] sm:$0xff]  ;;  %v2268_v18 = vsel %vm2223_vm2, %v2213_v10, %v16227_v34  ;;  %v491_v2 = vld [vmem:[%s15355_s2 + $0xf0] sm:$0xff] }
 0x39d   : > { %7569 = vmatprep.mubr.msk.f32.mxu0 %vm2620_vm9, %v2594_v56  ;;  %v2269_v50 = vsel %vm2223_vm2, %v2214_v19, %v16226_v43  ;;  %v16228_v35 = vld [vmem:[#allocation224_spill] sm:$0xff]  ;;  %v2323_v56 = vsel %vm2278_vm3, %v2268_v18, %v16229_v15  ;;  %v500_v18 = vld [vmem:[%s15355_s2 + $0x138] sm:$0xff] }
 0x39e   : > { %7570 = vmatmul.mubr.msk.f32.gmra.mrb[40].mxu0 %vm2620_vm9, %v2595_v4  ;;  %v1763_v11 = vpop.permute.xlu1 %1762  ;;  %v1761_v53 = vpop.permute.xlu0 %1760  ;;  %v2324_v4 = vsel %vm2278_vm3, %v2269_v50, %v16228_v35  ;;  %v2378_v22 = vsel %vm2333_vm4, %v2323_v56, %v16231_v57  ;;  %v499_v34 = vld [vmem:[%s15355_s2 + $0x130] sm:$0xff] }
 0x39f   : > { %v2487_v62 = vsel %vm2443_vm6, %v2432_v16, %v1763_v11  ;;  %v2486_v5 = vsel %vm2443_vm6, %v2431_v13, %v1761_v53  ;;  %v16230_v11 = vld [vmem:[#allocation71_spill] sm:$0xff]  ;;  %v2433_v36 = vsel %vm2388_vm5, %v2378_v22, %v16233_v44  ;;  %v2216_v16 = vsel %vm2168_vm1, %v11111_v3, %v16234_v39  ;;  %v16245_v44 = vld [vmem:[#allocation101_spill] sm:$0xff] }
 0x3a0   : > { %3236 = vperm.xlu1 %7800, %v483_v45   ;;  %3241 = vperm.xlu0 %7799, %v484_v48   ;;  %v2379_v53 = vsel %vm2333_vm4, %v2324_v4, %v16230_v11  ;;  %v2215_v13 = vsel %vm2168_vm1, %v11116_v42, %v16235_v28  ;;  %v498_v3 = vld [vmem:[%s15355_s2 + $0x128] sm:$0xff]  ;;  %v501_v11 = vld [vmem:[%s15355_s2 + $0x140] sm:$0xff]  ;;  %v16252_v39 = vld [vmem:[#allocation165_spill] sm:$0xff] }
 0x3a1   : > { %v2434_v41 = vsel %vm2388_vm5, %v2379_v53, %v16232_v31  ;;  %v16239_v42 = vld [vmem:[#allocation227_spill] sm:$0xff]  ;;  %v16244_v31 = vld [vmem:[#allocation100_spill] sm:$0xff]  ;;  %v16253_v28 = vld [vmem:[#allocation162_spill] sm:$0xff] }
 0x3a2   : > { %v1928_v29 = vpop.permute.xlu1 %1927  ;;  %v1926_v52 = vpop.permute.xlu0 %1925  ;;  %v502_v53 = vld [vmem:[%s15355_s2 + $0x148] sm:$0xff] }
 0x3a3   : > { %v2542_v9 = vsel %vm2498_vm7, %v2487_v62, %v1928_v29  ;;  %v2541_v60 = vsel %vm2498_vm7, %v2486_v5, %v1926_v52  ;;  %v16236_v62 = vld [vmem:[#allocation185_spill] sm:$0xff] }
 0x3a4   : > { %3246 = vperm.xlu1 %7800, %v485_v63   ;;  %3251 = vperm.xlu0 %7799, %v486_v1   ;;  %v493_v63 = vld [vmem:[%s15355_s2 + $0x100] sm:$0xff]  ;;  %v494_v1 = vld [vmem:[%s15355_s2 + $0x108] sm:$0xff]  ;;  %v2271_v5 = vsel %vm2223_vm2, %v2216_v16, %v16236_v62 }
 0x3a6   : > { %v2093_v27 = vpop.permute.xlu1 %2092  ;;  %v2091_v6 = vpop.permute.xlu0 %2090 }
 0x3a7   : > { %v2597_v14 = vsel %vm2553_vm8, %v2542_v9, %v2093_v27  ;;  %v2596_v59 = vsel %vm2553_vm8, %v2541_v60, %v2091_v6  ;;  %v497_v9 = vld [vmem:[%s15355_s2 + $0x120] sm:$0xff] }
 0x3a8   : > { %3256 = vperm.xlu1 %7800, %v487_v49   ;;  %3261 = vperm.xlu0 %7799, %v488_v40   ;;  %v16237_v49 = vld [vmem:[#allocation186_spill] sm:$0xff] }
 0x3a9   : > { %7572 = vmatprep.mubr.msk.f32.mxu0 %vm2620_vm9, %v2596_v59  ;;  %v2270_v40 = vsel %vm2223_vm2, %v2215_v13, %v16237_v49  ;;  %v16238_v60 = vld [vmem:[#allocation226_spill] sm:$0xff] }
 0x3aa   : > { %7573 = vmatmul.mubr.msk.f32.gmra.mrb[42].mxu0 %vm2620_vm9, %v2597_v14  ;;  %v1767_v33 = vpop.permute.xlu1 %1766  ;;  %v1765_v54 = vpop.permute.xlu0 %1764  ;;  %v2326_v27 = vsel %vm2278_vm3, %v2271_v5, %v16238_v60  ;;  %v2325_v6 = vsel %vm2278_vm3, %v2270_v40, %v16239_v42 }
 0x3ab   : > { %v2489_v61 = vsel %vm2443_vm6, %v2434_v41, %v1767_v33  ;;  %v2488_v21 = vsel %vm2443_vm6, %v2433_v36, %v1765_v54  ;;  %v16241_v33 = vld [vmem:[#allocation70_spill] sm:$0xff]  ;;  %v2218_v41 = vsel %vm2168_vm1, %v11177_v30, %v16244_v31  ;;  %v2217_v36 = vsel %vm2168_vm1, %v11182_v24, %v16245_v44  ;;  %v504_v30 = vld [vmem:[%s15355_s2 + $0x158] sm:$0xff] }
 0x3ac   : > { %3266 = vperm.xlu1 %7800, %v489_v51   ;;  %3271 = vperm.xlu0 %7799, %v490_v32   ;;  %v16240_v51 = vld [vmem:[#allocation75_spill] sm:$0xff]  ;;  %v2380_v54 = vsel %vm2333_vm4, %v2325_v6, %v16241_v33  ;;  %v16249_v24 = vld [vmem:[#allocation229_spill] sm:$0xff]  ;;  %v16261_v31 = vld [vmem:[#allocation78_spill] sm:$0xff] }
 0x3ad   : > { %v2381_v32 = vsel %vm2333_vm4, %v2326_v27, %v16240_v51  ;;  %v2435_v10 = vsel %vm2388_vm5, %v2380_v54, %v16243_v47  ;;  %v507_v51 = vld [vmem:[%s15355_s2 + $0x170] sm:$0xff]  ;;  %v16255_v47 = vld [vmem:[#allocation103_spill] sm:$0xff]  ;;  %v16262_v44 = vld [vmem:[#allocation169_spill] sm:$0xff] }
 0x3ae   : > { %v1932_v45 = vpop.permute.xlu1 %1931  ;;  %v1930_v48 = vpop.permute.xlu0 %1929  ;;  %v2436_v19 = vsel %vm2388_vm5, %v2381_v32, %v16242_v0  ;;  %v508_v32 = vld [vmem:[%s15355_s2 + $0x178] sm:$0xff]  ;;  %v16254_v0 = vld [vmem:[#allocation102_spill] sm:$0xff] }
 0x3af   : > { %v2544_v12 = vsel %vm2498_vm7, %v2489_v61, %v1932_v45  ;;  %v2543_v37 = vsel %vm2498_vm7, %v2488_v21, %v1930_v48  ;;  %v16246_v61 = vld [vmem:[#allocation187_spill] sm:$0xff] }
 0x3b0   : > { %3276 = vperm.xlu1 %7800, %v491_v2   ;;  %3281 = vperm.xlu0 %7799, %v492_v26   ;;  %v2273_v21 = vsel %vm2223_vm2, %v2218_v41, %v16246_v61  ;;  %v16263_v61 = vld [vmem:[#allocation166_spill] sm:$0xff] }
 0x3b2   : > { %v2097_v8 = vpop.permute.xlu1 %2096  ;;  %v2095_v23 = vpop.permute.xlu0 %2094 }
 0x3b3   : > { %v2599_v29 = vsel %vm2553_vm8, %v2544_v12, %v2097_v8  ;;  %v2598_v52 = vsel %vm2553_vm8, %v2543_v37, %v2095_v23  ;;  %v503_v12 = vld [vmem:[%s15355_s2 + $0x150] sm:$0xff] }
 0x3b4   : > { %3286 = vperm.xlu1 %7800, %v493_v63   ;;  %3291 = vperm.xlu0 %7799, %v494_v1   ;;  %v16247_v63 = vld [vmem:[#allocation188_spill] sm:$0xff] }
 0x3b5   : > { %7575 = vmatprep.mubr.msk.f32.mxu0 %vm2620_vm9, %v2598_v52  ;;  %v2272_v1 = vsel %vm2223_vm2, %v2217_v36, %v16247_v63  ;;  %v16248_v37 = vld [vmem:[#allocation228_spill] sm:$0xff] }
 0x3b6   : > { %7576 = vmatmul.mubr.msk.f32.gmra.mrb[44].mxu0 %vm2620_vm9, %v2599_v29  ;;  %v1771_v55 = vpop.permute.xlu1 %1770  ;;  %v1769_v46 = vpop.permute.xlu0 %1768  ;;  %v2328_v8 = vsel %vm2278_vm3, %v2273_v21, %v16248_v37  ;;  %v2327_v23 = vsel %vm2278_vm3, %v2272_v1, %v16249_v24 }
 0x3b7   : > { %v2491_v43 = vsel %vm2443_vm6, %v2436_v19, %v1771_v55  ;;  %v2490_v50 = vsel %vm2443_vm6, %v2435_v10, %v1769_v46  ;;  %v16251_v55 = vld [vmem:[#allocation74_spill] sm:$0xff]  ;;  %v2220_v19 = vsel %vm2168_vm1, %v11243_v25, %v16254_v0  ;;  %v2219_v10 = vsel %vm2168_vm1, %v11248_v38, %v16255_v47  ;;  %v510_v38 = vld [vmem:[%s15355_s2 + $0x188] sm:$0xff] }
 0x3b8   : > { %3296 = vperm.xlu1 %7800, %v495_v7   ;;  %3301 = vperm.xlu0 %7799, %v496_v17   ;;  %v16250_v7 = vld [vmem:[#allocation79_spill] sm:$0xff]  ;;  %v2382_v46 = vsel %vm2333_vm4, %v2327_v23, %v16251_v55  ;;  %v509_v25 = vld [vmem:[%s15355_s2 + $0x180] sm:$0xff] }
 0x3b9   : > { %v2383_v17 = vsel %vm2333_vm4, %v2328_v8, %v16250_v7  ;;  %v2437_v13 = vsel %vm2388_vm5, %v2382_v46, %v16253_v28  ;;  %v513_v55 = vld [vmem:[%s15355_s2 + $0x1a0] sm:$0xff]  ;;  %v514_v46 = vld [vmem:[%s15355_s2 + $0x1a8] sm:$0xff]  ;;  %v16264_v28 = vld [vmem:[#allocation104_spill] sm:$0xff] }
 0x3ba   : > { %v1936_v14 = vpop.permute.xlu1 %1935  ;;  %v1934_v59 = vpop.permute.xlu0 %1933  ;;  %v2438_v16 = vsel %vm2388_vm5, %v2383_v17, %v16252_v39  ;;  %v16272_v0 = vld [vmem:[#allocation170_spill] sm:$0xff] }
 0x3bb   : > { %v2546_v2 = vsel %vm2498_vm7, %v2491_v43, %v1936_v14  ;;  %v2545_v26 = vsel %vm2498_vm7, %v2490_v50, %v1934_v59  ;;  %v16256_v50 = vld [vmem:[#allocation189_spill] sm:$0xff]  ;;  %v16273_v47 = vld [vmem:[#allocation234_spill] sm:$0xff] }
 0x3bc   : > { %3306 = vperm.xlu1 %7800, %v497_v9   ;;  %3311 = vperm.xlu0 %7799, %v498_v3   ;;  %v505_v9 = vld [vmem:[%s15355_s2 + $0x160] sm:$0xff]  ;;  %v506_v3 = vld [vmem:[%s15355_s2 + $0x168] sm:$0xff] }
 0x3be   : > { %v2101_v35 = vpop.permute.xlu1 %2100  ;;  %v2099_v4 = vpop.permute.xlu0 %2098 }
 0x3bf   : > { %v2601_v15 = vsel %vm2553_vm8, %v2546_v2, %v2101_v35  ;;  %v2600_v56 = vsel %vm2553_vm8, %v2545_v26, %v2099_v4  ;;  %v16258_v35 = vld [vmem:[#allocation230_spill] sm:$0xff] }
 0x3c0   : > { %v11836_v45 = vpop.f32.mrb[0].mxu0  ;;  %3316 = vperm.xlu1 %7800, %v499_v34   ;;  %3321 = vperm.xlu0 %7799, %v500_v18   ;;  %v2275_v34 = vsel %vm2223_vm2, %v2220_v19, %v16256_v50  ;;  %v16257_v18 = vld [vmem:[#allocation190_spill] sm:$0xff] }
 0x3c1   : > { %v11838_v48 = vpop.f32.mrb[1].mxu0  ;;  %7578 = vmatprep.mubr.msk.f32.mxu0 %vm2620_vm9, %v2600_v56  ;;  %v2274_v2 = vsel %vm2223_vm2, %v2219_v10, %v16257_v18  ;;  %v2330_v4 = vsel %vm2278_vm3, %v2275_v34, %v16258_v35 }
 0x3c2   : > { %7579 = vmatmul.mubr.msk.f32.gmra.mrb[46].mxu0 %vm2620_vm9, %v2601_v15  ;;  %v1775_v57 = vpop.permute.xlu1 %1774  ;;  %v1773_v22 = vpop.permute.xlu0 %1772  ;;  %v16259_v15 = vld [vmem:[#allocation231_spill] sm:$0xff] }
 0x3c3   : > { %v2493_v5 = vsel %vm2443_vm6, %v2438_v16, %v1775_v57  ;;  %v2492_v49 = vsel %vm2443_vm6, %v2437_v13, %v1773_v22  ;;  %v2329_v56 = vsel %vm2278_vm3, %v2274_v2, %v16259_v15  ;;  %v16260_v57 = vld [vmem:[#allocation83_spill] sm:$0xff]  ;;  %v2222_v13 = vsel %vm2168_vm1, %v11309_v58, %v16264_v28 }
 0x3c4   : > { %3326 = vperm.xlu1 %7800, %v501_v11   ;;  %3331 = vperm.xlu0 %7799, %v502_v53   ;;  %v2385_v22 = vsel %vm2333_vm4, %v2330_v4, %v16260_v57  ;;  %v2384_v41 = vsel %vm2333_vm4, %v2329_v56, %v16261_v31 }
 0x3c5   : > { %v2440_v36 = vsel %vm2388_vm5, %v2385_v22, %v16262_v44  ;;  %v2439_v21 = vsel %vm2388_vm5, %v2384_v41, %v16263_v61 }
 0x3c6   : > { %v1940_v29 = vpop.permute.xlu1 %1939  ;;  %v1938_v52 = vpop.permute.xlu0 %1937 }
 0x3c7   : > { %v2548_v60 = vsel %vm2498_vm7, %v2493_v5, %v1940_v29  ;;  %v2547_v27 = vsel %vm2498_vm7, %v2492_v49, %v1938_v52  ;;  %v16265_v5 = vld [vmem:[#allocation105_spill] sm:$0xff] }
 0x3c8   : > { %v11876_v62 = vpop.f32.mrb[2].mxu0  ;;  %3336 = vperm.xlu1 %7800, %v503_v12   ;;  %3341 = vperm.xlu0 %7799, %v504_v30   ;;  %v511_v12 = vld [vmem:[%s15355_s2 + $0x190] sm:$0xff]  ;;  %v512_v30 = vld [vmem:[%s15355_s2 + $0x198] sm:$0xff]  ;;  %v2221_v49 = vsel %vm2168_vm1, %v11314_v20, %v16265_v5  ;;  %v16271_v20 = vld [vmem:[#allocation82_spill] sm:$0xff] }
 0x3c9   : > { %v11880_v40 = vpop.f32.mrb[3].mxu0 }
 0x3ca   : > { %v2105_v42 = vpop.permute.xlu1 %2104  ;;  %v2103_v6 = vpop.permute.xlu0 %2102 }
 0x3cb   : > { %v2603_v14 = vsel %vm2553_vm8, %v2548_v60, %v2105_v42  ;;  %v2602_v59 = vsel %vm2553_vm8, %v2547_v27, %v2103_v6  ;;  %v16267_v60 = vld [vmem:[#allocation192_spill] sm:$0xff] }
 0x3cc   : > { %3346 = vperm.xlu1 %7800, %v505_v9   ;;  %3351 = vperm.xlu0 %7799, %v506_v3   ;;  %v16266_v9 = vld [vmem:[#allocation191_spill] sm:$0xff]  ;;  %v2276_v27 = vsel %vm2223_vm2, %v2221_v49, %v16267_v60  ;;  %v16268_v42 = vld [vmem:[#allocation232_spill] sm:$0xff] }
 0x3cd   : > { %7581 = vmatprep.mubr.msk.f32.mxu0 %vm2620_vm9, %v2602_v59  ;;  %v2277_v3 = vsel %vm2223_vm2, %v2222_v13, %v16266_v9 }
 0x3ce   : > { %7582 = vmatmul.mubr.msk.f32.gmra.mrb[48].mxu0 %vm2620_vm9, %v2603_v14  ;;  %v1779_v33 = vpop.permute.xlu1 %1778  ;;  %v1777_v54 = vpop.permute.xlu0 %1776  ;;  %v2332_v6 = vsel %vm2278_vm3, %v2277_v3, %v16268_v42  ;;  %v16269_v14 = vld [vmem:[#allocation233_spill] sm:$0xff] }
 0x3cf   : > { %v2495_v63 = vsel %vm2443_vm6, %v2440_v36, %v1779_v33  ;;  %v2494_v1 = vsel %vm2443_vm6, %v2439_v21, %v1777_v54  ;;  %v2331_v59 = vsel %vm2278_vm3, %v2276_v27, %v16269_v14  ;;  %v12003_v36 = vld [vmem:[%s15357_s4] ss:$0 sm:$0xff] }
 0x3d0   : > { %v11906_v43 = vpop.f32.mrb[4].mxu0  ;;  %3356 = vperm.xlu1 %7800, %v507_v51   ;;  %3361 = vperm.xlu0 %7799, %v508_v32   ;;  %v16270_v32 = vld [vmem:[#allocation87_spill] sm:$0xff]  ;;  %v2386_v54 = vsel %vm2333_vm4, %v2331_v59, %v16271_v20  ;;  %v12009_v21 = vadd.f32 %v11836_v45, %v12003_v36 }
 0x3d1   : > { %v11912_v26 = vpop.f32.mrb[5].mxu0  ;;  %v2387_v33 = vsel %vm2333_vm4, %v2332_v6, %v16270_v32  ;;  %v2441_v10 = vsel %vm2388_vm5, %v2386_v54, %v16273_v47 }
 0x3d2   : > { %v1944_v11 = vpop.permute.xlu1 %1943  ;;  %v1942_v53 = vpop.permute.xlu0 %1941  ;;  %v2442_v19 = vsel %vm2388_vm5, %v2387_v33, %v16272_v0 }
 0x3d3   : > { %v2550_v37 = vsel %vm2498_vm7, %v2495_v63, %v1944_v11  ;;  %v2549_v8 = vsel %vm2498_vm7, %v2494_v1, %v1942_v53  ;;  %v12013_v63 = vadd.f32 %v12003_v36, %v11838_v48 }
 0x3d4   : > { %3366 = vperm.xlu1 %7800, %v509_v25   ;;  %3371 = vperm.xlu0 %7799, %v510_v38  }
 0x3d6   : > { %v2109_v24 = vpop.permute.xlu1 %2108  ;;  %v2107_v23 = vpop.permute.xlu0 %2106 }
 0x3d7   : > { %v2605_v29 = vsel %vm2553_vm8, %v2550_v37, %v2109_v24  ;;  %v2604_v52 = vsel %vm2553_vm8, %v2549_v8, %v2107_v23 }
 0x3d8   : > { %v11944_v7 = vpop.f32.mrb[6].mxu0  ;;  %3376 = vperm.xlu1 %7800, %v511_v12   ;;  %3381 = vperm.xlu0 %7799, %v512_v30   ;;  %v12019_v12 = vadd.f32 %v12003_v36, %v11880_v40  ;;  %v12037_v40 = vadd.f32 %v11876_v62, %v12003_v36 }
 0x3d9   : > { %v11946_v17 = vpop.f32.mrb[7].mxu0  ;;  %7584 = vmatprep.mubr.msk.f32.mxu0 %vm2620_vm9, %v2604_v52 }
 0x3da   : > { %7585 = vmatmul.mubr.msk.f32.gmra.mrb[50].mxu0 %vm2620_vm9, %v2605_v29  ;;  %v1783_v39 = vpop.permute.xlu1 %1782  ;;  %v1781_v16 = vpop.permute.xlu0 %1780  ;;  %v12066_v42 = vadd.f32 %v12003_v36, %v11946_v17  ;;  %v12081_v17 = vadd.f32 %v11944_v7, %v12003_v36 }
 0x3db   : > { %v2497_v34 = vsel %vm2443_vm6, %v2442_v19, %v1783_v39  ;;  %v2496_v18 = vsel %vm2443_vm6, %v2441_v10, %v1781_v16  ;;  %v12044_v39 = vadd.f32 %v12003_v36, %v11912_v26  ;;  %v12059_v26 = vadd.f32 %v11906_v43, %v12003_v36 }
 0x3dc   : > { %3386 = vperm.xlu1 %7800, %v513_v55   ;;  %3391 = vperm.xlu0 %7799, %v514_v46  }
 0x3de   : > { %v1948_v51 = vpop.permute.xlu1 %1947  ;;  %v1946_v58 = vpop.permute.xlu0 %1945 }
 0x3df   : > { %v2552_v25 = vsel %vm2498_vm7, %v2497_v34, %v1948_v51  ;;  %v2551_v38 = vsel %vm2498_vm7, %v2496_v18, %v1946_v58 }
 0x3e0   : > { %v11978_v50 = vpop.f32.mrb[8].mxu0 }
 0x3e1   : > { %v2893_v2 = vpop.f32.mrb[9].mxu0 }
 0x3e2   : > { %v2113_v35 = vpop.permute.xlu1 %2112  ;;  %v2111_v4 = vpop.permute.xlu0 %2110  ;;  %v12087_v0 = vadd.f32 %v12003_v36, %v2893_v2  ;;  %v12102_v2 = vadd.f32 %v11978_v50, %v12003_v36 }
 0x3e3   : > { %v2607_v15 = vsel %vm2553_vm8, %v2552_v25, %v2113_v35  ;;  %v2606_v56 = vsel %vm2553_vm8, %v2551_v38, %v2111_v4 }
 0x3e4   : > { %7587 = vmatprep.mubr.msk.f32.mxu0 %vm2620_vm9, %v2606_v56 }
 0x3e5   : > { %7588 = vmatmul.mubr.msk.f32.gmra.mrb[52].mxu0 %vm2620_vm9, %v2607_v15 }
 0x3e8   : > { %v11988_v11 = vpop.f32.mrb[10].mxu0 }
 0x3e9   : > { %v2903_v53 = vpop.f32.mrb[11].mxu0 }
 0x3ea   : > { %v12108_v15 = vadd.f32 %v12003_v36, %v2903_v53  ;;  %v12123_v53 = vadd.f32 %v11988_v11, %v12003_v36 }
 0x3f0   : > { %v11990_v57 = vpop.f32.mrb[12].mxu0 }
 0x3f1   : > { %v11992_v22 = vpop.f32.mrb[13].mxu0 }
 0x3f3   : > { %v11994_v31 = vpop.permute.xlu1 %3131  ;;  %v12005_v61 = vpop.permute.xlu0 %3126 }
 0x3f4   : > { %16274 = vst [vmem:[#allocation6_spill] sm:$0xff] %v11994_v31  ;;  %16275 = vst [vmem:[#allocation108_spill] sm:$0xff] %v12005_v61  ;;  %v3395_v30 = vmul.f32 %v11994_v31, %v12009_v21  ;;  %v3394_v37 = vmul.f32 %v12005_v61, %v12013_v63 }
 0x3f6   : > { %v3449_v48 = vsel %vm2553_vm8, %v3395_v30, 0.0  ;;  %v3448_v23 = vsel %vm2553_vm8, %v3394_v37, 0.0 }
 0x3f7   : > { %v12015_v1 = vpop.permute.xlu1 %3136  ;;  %v12033_v29 = vpop.permute.xlu0 %3141  ;;  %v3450_v55 = vadd.f32 %v3449_v48, %v3448_v23 }
 0x3f8   : > { %v11996_v41 = vpop.f32.mrb[14].mxu0  ;;  %16276 = vst [vmem:[#allocation9_spill] sm:$0xff] %v12015_v1  ;;  %v3396_v45 = vmul.f32 %v12015_v1, %v12019_v12  ;;  %16277 = vst [vmem:[#allocation107_spill] sm:$0xff] %v12033_v29  ;;  %v3397_v16 = vmul.f32 %v12033_v29, %v12037_v40 }
 0x3f9   : > { %v11998_v44 = vpop.f32.mrb[15].mxu0 }
 0x3fa   : > { %v3451_v52 = vsel %vm2553_vm8, %v3396_v45, 0.0  ;;  %v3453_v49 = vsel %vm2553_vm8, %v3397_v16, 0.0 }
 0x3fb   : > { %v12040_v46 = vpop.permute.xlu1 %3146  ;;  %v3452_v28 = vadd.f32 %v3451_v52, %v3450_v55  ;;  %v12055_v3 = vpop.permute.xlu0 %3151 }
 0x3fc   : > { %16278 = vst [vmem:[#allocation5_spill] sm:$0xff] %v12040_v46  ;;  %v3398_v5 = vmul.f32 %v12040_v46, %v12044_v39  ;;  %16279 = vst [vmem:[#allocation112_spill] sm:$0xff] %v12055_v3  ;;  %v3399_v6 = vmul.f32 %v12055_v3, %v12059_v26 }
 0x3fd   : > { %v3454_v9 = vadd.f32 %v3453_v49, %v3452_v28  ;;  %v12130_v28 = vadd.f32 %v12003_v36, %v11992_v22  ;;  %v12145_v22 = vadd.f32 %v11990_v57, %v12003_v36 }
 0x3fe   : > { %v3455_v60 = vsel %vm2553_vm8, %v3398_v5, 0.0  ;;  %v3457_v43 = vsel %vm2553_vm8, %v3399_v6, 0.0 }
 0x3ff   : > { %v12062_v27 = vpop.permute.xlu1 %3156  ;;  %v3456_v14 = vadd.f32 %v3455_v60, %v3454_v9  ;;  %v12077_v33 = vpop.permute.xlu0 %3161 }
 0x400   : > { %v12025_v8 = vpop.f32.mrb[16].mxu0  ;;  %16280 = vst [vmem:[#allocation8_spill] sm:$0xff] %v12062_v27  ;;  %v3400_v51 = vmul.f32 %v12062_v27, %v12066_v42  ;;  %16281 = vst [vmem:[#allocation111_spill] sm:$0xff] %v12077_v33  ;;  %v3401_v19 = vmul.f32 %v12077_v33, %v12081_v17 }
 0x401   : > { %v12029_v24 = vpop.f32.mrb[17].mxu0  ;;  %v3458_v32 = vadd.f32 %v3457_v43, %v3456_v14 }
 0x402   : > { %v3459_v20 = vsel %vm2553_vm8, %v3400_v51, 0.0  ;;  %v3461_v7 = vsel %vm2553_vm8, %v3401_v19, 0.0 }
 0x403   : > { %v12084_v54 = vpop.permute.xlu1 %3166  ;;  %v3460_v47 = vadd.f32 %v3459_v20, %v3458_v32  ;;  %v12098_v38 = vpop.permute.xlu0 %3171  ;;  %v12152_v20 = vadd.f32 %v12003_v36, %v11998_v44  ;;  %v12167_v44 = vadd.f32 %v11996_v41, %v12003_v36 }
 0x404   : > { %16282 = vst [vmem:[#allocation13_spill] sm:$0xff] %v12084_v54  ;;  %v3402_v34 = vmul.f32 %v12084_v54, %v12087_v0  ;;  %16283 = vst [vmem:[#allocation116_spill] sm:$0xff] %v12098_v38  ;;  %v3403_v56 = vmul.f32 %v12098_v38, %v12102_v2 }
 0x405   : > { %v3462_v25 = vadd.f32 %v3461_v7, %v3460_v47 }
 0x406   : > { %v3463_v35 = vsel %vm2553_vm8, %v3402_v34, 0.0  ;;  %v3465_v50 = vsel %vm2553_vm8, %v3403_v56, 0.0 }
 0x407   : > { %v12105_v4 = vpop.permute.xlu1 %3176  ;;  %v3464_v30 = vadd.f32 %v3463_v35, %v3462_v25  ;;  %v12119_v52 = vpop.permute.xlu0 %3181 }
 0x408   : > { %v12048_v13 = vpop.f32.mrb[18].mxu0  ;;  %16284 = vst [vmem:[#allocation12_spill] sm:$0xff] %v12105_v4  ;;  %v3404_v45 = vmul.f32 %v12105_v4, %v12108_v15  ;;  %16285 = vst [vmem:[#allocation115_spill] sm:$0xff] %v12119_v52  ;;  %v3405_v5 = vmul.f32 %v12119_v52, %v12123_v53 }
 0x409   : > { %v12052_v62 = vpop.f32.mrb[19].mxu0  ;;  %v3466_v23 = vadd.f32 %v3465_v50, %v3464_v30  ;;  %v12174_v50 = vadd.f32 %v12003_v36, %v12029_v24  ;;  %v12189_v24 = vadd.f32 %v12025_v8, %v12003_v36 }
 0x40a   : > { %v3467_v55 = vsel %vm2553_vm8, %v3404_v45, 0.0  ;;  %v3469_v11 = vsel %vm2553_vm8, %v3405_v5, 0.0 }
 0x40b   : > { %v12126_v16 = vpop.permute.xlu1 %3186  ;;  %v3468_v49 = vadd.f32 %v3467_v55, %v3466_v23  ;;  %v12141_v51 = vpop.permute.xlu0 %3191 }
 0x40c   : > { %16286 = vst [vmem:[#allocation17_spill] sm:$0xff] %v12126_v16  ;;  %v3406_v60 = vmul.f32 %v12126_v16, %v12130_v28  ;;  %16287 = vst [vmem:[#allocation120_spill] sm:$0xff] %v12141_v51  ;;  %v3407_v19 = vmul.f32 %v12141_v51, %v12145_v22 }
 0x40d   : > { %v3470_v14 = vadd.f32 %v3469_v11, %v3468_v49 }
 0x40e   : > { %v3471_v43 = vsel %vm2553_vm8, %v3406_v60, 0.0  ;;  %v3473_v57 = vsel %vm2553_vm8, %v3407_v19, 0.0 }
 0x40f   : > { %v12148_v32 = vpop.permute.xlu1 %3196  ;;  %v3472_v47 = vadd.f32 %v3471_v43, %v3470_v14  ;;  %v12163_v56 = vpop.permute.xlu0 %3201 }
 0x410   : > { %v12070_v59 = vpop.f32.mrb[20].mxu0  ;;  %16288 = vst [vmem:[#allocation16_spill] sm:$0xff] %v12148_v32  ;;  %v3408_v7 = vmul.f32 %v12148_v32, %v12152_v20  ;;  %16289 = vst [vmem:[#allocation119_spill] sm:$0xff] %v12163_v56  ;;  %v3409_v23 = vmul.f32 %v12163_v56, %v12167_v44 }
 0x411   : > { %v12074_v58 = vpop.f32.mrb[21].mxu0  ;;  %v3474_v35 = vadd.f32 %v3473_v57, %v3472_v47  ;;  %v12196_v47 = vadd.f32 %v12003_v36, %v12052_v62  ;;  %v12211_v62 = vadd.f32 %v12048_v13, %v12003_v36 }
 0x412   : > { %v3475_v30 = vsel %vm2553_vm8, %v3408_v7, 0.0  ;;  %v3477_v41 = vsel %vm2553_vm8, %v3409_v23, 0.0 }
 0x413   : > { %v12170_v45 = vpop.permute.xlu1 %3206  ;;  %v3476_v55 = vadd.f32 %v3475_v30, %v3474_v35  ;;  %v12185_v14 = vpop.permute.xlu0 %3211  ;;  %16293 = vst [vmem:[#allocation123_spill] sm:$0xff] %v12196_v47 }
 0x414   : > { %16290 = vst [vmem:[#allocation21_spill] sm:$0xff] %v12170_v45  ;;  %v3410_v49 = vmul.f32 %v12170_v45, %v12174_v50  ;;  %16291 = vst [vmem:[#allocation124_spill] sm:$0xff] %v12185_v14  ;;  %v3411_v7 = vmul.f32 %v12185_v14, %v12189_v24 }
 0x415   : > { %v3478_v11 = vadd.f32 %v3477_v41, %v3476_v55 }
 0x416   : > { %v3479_v43 = vsel %vm2553_vm8, %v3410_v49, 0.0  ;;  %v3481_v8 = vsel %vm2553_vm8, %v3411_v7, 0.0 }
 0x417   : > { %v12192_v19 = vpop.permute.xlu1 %3216  ;;  %v3480_v57 = vadd.f32 %v3479_v43, %v3478_v11  ;;  %v12207_v49 = vpop.permute.xlu0 %3221  ;;  %v12218_v11 = vadd.f32 %v12003_v36, %v12074_v58 }
 0x418   : > { %v12091_v10 = vpop.f32.mrb[22].mxu0  ;;  %16292 = vst [vmem:[#allocation20_spill] sm:$0xff] %v12192_v19  ;;  %v3412_v35 = vmul.f32 %v12192_v19, %v12196_v47  ;;  %16294 = vst [vmem:[#allocation25_spill] sm:$0xff] %v12207_v49  ;;  %v3413_v43 = vmul.f32 %v12207_v49, %v12211_v62 }
 0x419   : > { %v12095_v18 = vpop.f32.mrb[23].mxu0  ;;  %v3482_v55 = vadd.f32 %v3481_v8, %v3480_v57  ;;  %16296 = vst [vmem:[#allocation24_spill] sm:$0xff] %v12218_v11 }
 0x41a   : > { %v3483_v41 = vsel %vm2553_vm8, %v3412_v35, 0.0  ;;  %v3485_v57 = vsel %vm2553_vm8, %v3413_v43, 0.0  ;;  %v12229_v35 = vadd.f32 %v12070_v59, %v12003_v36 }
 0x41b   : > { %v12214_v14 = vpop.permute.xlu1 %3226  ;;  %v3484_v19 = vadd.f32 %v3483_v41, %v3482_v55  ;;  %v12225_v13 = vpop.permute.xlu0 %3231  ;;  %v12238_v55 = vadd.f32 %v12003_v36, %v12095_v18 }
 0x41c   : > { %16295 = vst [vmem:[#allocation128_spill] sm:$0xff] %v12214_v14  ;;  %v3414_v7 = vmul.f32 %v12214_v14, %v12218_v11  ;;  %16297 = vst [vmem:[#allocation127_spill] sm:$0xff] %v12225_v13  ;;  %v12249_v14 = vadd.f32 %v12091_v10, %v12003_v36 }
 0x41d   : > { %v3486_v8 = vadd.f32 %v3485_v57, %v3484_v19  ;;  %16299 = vst [vmem:[#allocation132_spill] sm:$0xff] %v12238_v55  ;;  %v3415_v19 = vmul.f32 %v12225_v13, %v12229_v35 }
 0x41e   : > { %v3487_v45 = vsel %vm2553_vm8, %v3414_v7, 0.0 }
 0x41f   : > { %v12234_v47 = vpop.permute.xlu1 %3236  ;;  %v3488_v41 = vadd.f32 %v3487_v45, %v3486_v8  ;;  %v3489_v59 = vsel %vm2553_vm8, %v3415_v19, 0.0  ;;  %v12245_v7 = vpop.permute.xlu0 %3241 }
 0x420   : > { %v12112_v37 = vpop.f32.mrb[24].mxu0  ;;  %16298 = vst [vmem:[#allocation29_spill] sm:$0xff] %v12234_v47  ;;  %v3416_v43 = vmul.f32 %v12234_v47, %v12238_v55  ;;  %16300 = vst [vmem:[#allocation28_spill] sm:$0xff] %v12245_v7  ;;  %v3417_v45 = vmul.f32 %v12245_v7, %v12249_v14 }
 0x421   : > { %v12116_v48 = vpop.f32.mrb[25].mxu0  ;;  %v3490_v57 = vadd.f32 %v3489_v59, %v3488_v41  ;;  %v12273_v55 = vadd.f32 %v12112_v37, %v12003_v36 }
 0x422   : > { %v3491_v11 = vsel %vm2553_vm8, %v3416_v43, 0.0  ;;  %v12254_v18 = vadd.f32 %v12003_v36, %v12116_v48  ;;  %v3493_v10 = vsel %vm2553_vm8, %v3417_v45, 0.0 }
 0x423   : > { %v12256_v13 = vpop.permute.xlu1 %3246  ;;  %v3492_v8 = vadd.f32 %v3491_v11, %v3490_v57  ;;  %v12269_v47 = vpop.permute.xlu0 %3251 }
 0x424   : > { %16301 = vst [vmem:[#allocation131_spill] sm:$0xff] %v12254_v18  ;;  %16302 = vst [vmem:[#allocation193_spill] sm:$0xff] %v12256_v13  ;;  %v3418_v19 = vmul.f32 %v12256_v13, %v12254_v18  ;;  %v3419_v13 = vmul.f32 %v12269_v47, %v12273_v55 }
 0x425   : > { %v3494_v48 = vadd.f32 %v3493_v10, %v3492_v8  ;;  %16304 = vst [vmem:[#allocation33_spill] sm:$0xff] %v12269_v47 }
 0x426   : > { %v3495_v11 = vsel %vm2553_vm8, %v3418_v19, 0.0  ;;  %v3497_v19 = vsel %vm2553_vm8, %v3419_v13, 0.0 }
 0x427   : > { %v12276_v57 = vpop.permute.xlu1 %3256  ;;  %v3496_v7 = vadd.f32 %v3495_v11, %v3494_v48  ;;  %v12290_v37 = vpop.permute.xlu0 %3261 }
 0x428   : > { %v12134_v9 = vpop.f32.mrb[26].mxu0  ;;  %16305 = vst [vmem:[#allocation91_spill] sm:$0xff] %v12276_v57  ;;  %16307 = vst [vmem:[#allocation235_spill] sm:$0xff] %v12290_v37 }
 0x429   : > { %v12138_v6 = vpop.f32.mrb[27].mxu0  ;;  %v3498_v18 = vadd.f32 %v3497_v19, %v3496_v7 }
 0x42a   : > { %v12267_v43 = vadd.f32 %v12003_v36, %v12138_v6  ;;  %v12284_v6 = vadd.f32 %v12134_v9, %v12003_v36 }
 0x42b   : > { %v12294_v47 = vpop.permute.xlu1 %3266  ;;  %v12308_v7 = vpop.permute.xlu0 %3271 }
 0x42c   : > { %16303 = vst [vmem:[#allocation4_spill] sm:$0xff] %v12267_v43  ;;  %v3420_v45 = vmul.f32 %v12276_v57, %v12267_v43  ;;  %16308 = vst [vmem:[#allocation195_spill] sm:$0xff] %v12294_v47  ;;  %v3421_v48 = vmul.f32 %v12290_v37, %v12284_v6 }
 0x42d   : > { %16310 = vst [vmem:[#allocation32_spill] sm:$0xff] %v12308_v7 }
 0x42e   : > { %v3499_v10 = vsel %vm2553_vm8, %v3420_v45, 0.0  ;;  %v3501_v45 = vsel %vm2553_vm8, %v3421_v48, 0.0 }
 0x42f   : > { %v3500_v57 = vadd.f32 %v3499_v10, %v3498_v18  ;;  %v12312_v37 = vpop.permute.xlu1 %3276  ;;  %v12326_v48 = vpop.permute.xlu0 %3281 }
 0x430   : > { %v12156_v34 = vpop.f32.mrb[28].mxu0  ;;  %16311 = vst [vmem:[#allocation95_spill] sm:$0xff] %v12312_v37  ;;  %16313 = vst [vmem:[#allocation237_spill] sm:$0xff] %v12326_v48 }
 0x431   : > { %v12160_v25 = vpop.f32.mrb[29].mxu0 }
 0x432   : > { %v12288_v8 = vadd.f32 %v12003_v36, %v12160_v25  ;;  %v12302_v25 = vadd.f32 %v12156_v34, %v12003_v36 }
 0x434   : > { %16306 = vst [vmem:[#allocation136_spill] sm:$0xff] %v12288_v8  ;;  %v3422_v9 = vmul.f32 %v12294_v47, %v12288_v8  ;;  %v3502_v47 = vadd.f32 %v3501_v45, %v3500_v57  ;;  %v3423_v18 = vmul.f32 %v12308_v7, %v12302_v25  ;;  %v12330_v45 = vpop.permute.xlu1 %3286 }
 0x435   : > { %16314 = vst [vmem:[#allocation194_spill] sm:$0xff] %v12330_v45 }
 0x436   : > { %v3503_v19 = vsel %vm2553_vm8, %v3422_v9, 0.0  ;;  %v3505_v9 = vsel %vm2553_vm8, %v3423_v18, 0.0 }
 0x437   : > { %v3504_v10 = vadd.f32 %v3503_v19, %v3502_v47 }
 0x438   : > { %v12178_v5 = vpop.f32.mrb[30].mxu0 }
 0x439   : > { %v12182_v60 = vpop.f32.mrb[31].mxu0  ;;  %v3506_v7 = vadd.f32 %v3505_v9, %v3504_v10 }
 0x43a   : > { %v12306_v13 = vadd.f32 %v12003_v36, %v12182_v60  ;;  %v12320_v60 = vadd.f32 %v12178_v5, %v12003_v36 }
 0x43c   : > { %16309 = vst [vmem:[#allocation7_spill] sm:$0xff] %v12306_v13  ;;  %v3424_v34 = vmul.f32 %v12312_v37, %v12306_v13  ;;  %16312 = vst [vmem:[#allocation135_spill] sm:$0xff] %v12320_v60  ;;  %v3425_v47 = vmul.f32 %v12326_v48, %v12320_v60  ;;  %v12347_v48 = vpop.permute.xlu1 %3296 }
 0x43d   : > { %16318 = vst [vmem:[#allocation140_spill] sm:$0xff] %v12347_v48 }
 0x43e   : > { %v3507_v57 = vsel %vm2553_vm8, %v3424_v34, 0.0  ;;  %v12343_v34 = vpop.permute.xlu0 %3291  ;;  %v3509_v10 = vsel %vm2553_vm8, %v3425_v47, 0.0 }
 0x43f   : > { %v3508_v37 = vadd.f32 %v3507_v57, %v3506_v7  ;;  %16317 = vst [vmem:[#allocation86_spill] sm:$0xff] %v12343_v34 }
 0x441   : > { %v12202_v30 = vpop.f32.mrb[32].mxu0  ;;  %v3510_v60 = vadd.f32 %v3509_v10, %v3508_v37  ;;  %v12364_v10 = vpop.permute.xlu1 %3306 }
 0x442   : > { %v12204_v23 = vpop.f32.mrb[33].mxu0  ;;  %v12360_v47 = vpop.permute.xlu0 %3301  ;;  %16322 = vst [vmem:[#allocation36_spill] sm:$0xff] %v12364_v10 }
 0x443   : > { %v12324_v8 = vadd.f32 %v12003_v36, %v12204_v23  ;;  %v12338_v23 = vadd.f32 %v12202_v30, %v12003_v36  ;;  %16321 = vst [vmem:[#allocation10_spill] sm:$0xff] %v12360_v47 }
 0x445   : > { %v3426_v5 = vmul.f32 %v12330_v45, %v12324_v8  ;;  %16315 = vst [vmem:[#allocation11_spill] sm:$0xff] %v12338_v23  ;;  %v3427_v7 = vmul.f32 %v12343_v34, %v12338_v23 }
 0x447   : > { %v3511_v9 = vsel %vm2553_vm8, %v3426_v5, 0.0  ;;  %v3513_v5 = vsel %vm2553_vm8, %v3427_v7, 0.0 }
 0x448   : > { %v3512_v30 = vadd.f32 %v3511_v9, %v3510_v60 }
 0x44a   : > { %v3514_v34 = vadd.f32 %v3513_v5, %v3512_v30 }
 0x44d   : > { %v12232_v58 = vpop.f32.mrb[34].mxu0 }
 0x44e   : > { %v3023_v49 = vpop.f32.mrb[35].mxu0 }
 0x44f   : > { %v12341_v18 = vadd.f32 %v12003_v36, %v3023_v49  ;;  %v12355_v49 = vadd.f32 %v12232_v58, %v12003_v36 }
 0x451   : > { %16316 = vst [vmem:[#allocation37_spill] sm:$0xff] %v12341_v18  ;;  %v3428_v57 = vmul.f32 %v12347_v48, %v12341_v18  ;;  %16319 = vst [vmem:[#allocation236_spill] sm:$0xff] %v12355_v49  ;;  %v3429_v48 = vmul.f32 %v12360_v47, %v12355_v49  ;;  %v12381_v47 = vpop.permute.xlu1 %3316 }
 0x452   : > { %16326 = vst [vmem:[#allocation196_spill] sm:$0xff] %v12381_v47 }
 0x453   : > { %v3515_v37 = vsel %vm2553_vm8, %v3428_v57, 0.0  ;;  %v12377_v57 = vpop.permute.xlu0 %3311  ;;  %v3517_v30 = vsel %vm2553_vm8, %v3429_v48, 0.0 }
 0x454   : > { %v3516_v9 = vadd.f32 %v3515_v37, %v3514_v34  ;;  %16325 = vst [vmem:[#allocation239_spill] sm:$0xff] %v12377_v57 }
 0x456   : > { %v3518_v49 = vadd.f32 %v3517_v30, %v3516_v9  ;;  %v12397_v9 = vpop.permute.xlu1 %3326 }
 0x457   : > { %16330 = vst [vmem:[#allocation144_spill] sm:$0xff] %v12397_v9 }
 0x459   : > { %v12262_v41 = vpop.f32.mrb[36].mxu0 }
 0x45a   : > { %v3033_v59 = vpop.f32.mrb[37].mxu0 }
 0x45b   : > { %v12358_v45 = vadd.f32 %v12003_v36, %v3033_v59  ;;  %v12372_v59 = vadd.f32 %v12262_v41, %v12003_v36 }
 0x45d   : > { %16320 = vst [vmem:[#allocation197_spill] sm:$0xff] %v12358_v45  ;;  %v3430_v60 = vmul.f32 %v12364_v10, %v12358_v45  ;;  %16323 = vst [vmem:[#allocation99_spill] sm:$0xff] %v12372_v59  ;;  %v3431_v34 = vmul.f32 %v12377_v57, %v12372_v59  ;;  %v12393_v45 = vpop.permute.xlu0 %3321 }
 0x45e   : > { %16329 = vst [vmem:[#allocation90_spill] sm:$0xff] %v12393_v45 }
 0x45f   : > { %v3519_v5 = vsel %vm2553_vm8, %v3430_v60, 0.0  ;;  %v3521_v48 = vsel %vm2553_vm8, %v3431_v34, 0.0 }
 0x460   : > { %v3520_v41 = vadd.f32 %v3519_v5, %v3518_v49 }
 0x461   : > { %v12409_v34 = vpop.permute.xlu0 %3331 }
 0x462   : > { %v3522_v30 = vadd.f32 %v3521_v48, %v3520_v41  ;;  %16333 = vst [vmem:[#allocation14_spill] sm:$0xff] %v12409_v34  ;;  %v12413_v48 = vpop.permute.xlu1 %3336 }
 0x463   : > { %16334 = vst [vmem:[#allocation40_spill] sm:$0xff] %v12413_v48 }
 0x465   : > { %v7568_v11 = vpop.f32.mrb[38].mxu0 }
 0x466   : > { %v3043_v43 = vpop.f32.mrb[39].mxu0  ;;  %v12388_v10 = vadd.f32 %v7568_v11, %v12003_v36 }
 0x467   : > { %v12375_v7 = vadd.f32 %v12003_v36, %v3043_v43 }
 0x468   : > { %16327 = vst [vmem:[#allocation15_spill] sm:$0xff] %v12388_v10  ;;  %v3433_v57 = vmul.f32 %v12393_v45, %v12388_v10 }
 0x469   : > { %16324 = vst [vmem:[#allocation139_spill] sm:$0xff] %v12375_v7  ;;  %v3432_v37 = vmul.f32 %v12381_v47, %v12375_v7 }
 0x46b   : > { %v3523_v60 = vsel %vm2553_vm8, %v3432_v37, 0.0  ;;  %v3525_v37 = vsel %vm2553_vm8, %v3433_v57, 0.0 }
 0x46c   : > { %v3524_v5 = vadd.f32 %v3523_v60, %v3522_v30 }
 0x46e   : > { %v3526_v45 = vadd.f32 %v3525_v37, %v3524_v5  ;;  %v12429_v5 = vpop.permute.xlu1 %3346 }
 0x46f   : > { %16338 = vst [vmem:[#allocation198_spill] sm:$0xff] %v12429_v5 }
 0x471   : > { %v7571_v19 = vpop.f32.mrb[40].mxu0 }
 0x472   : > { %v3053_v13 = vpop.f32.mrb[41].mxu0 }
 0x473   : > { %v12391_v43 = vadd.f32 %v12003_v36, %v3053_v13  ;;  %v12404_v13 = vadd.f32 %v7571_v19, %v12003_v36 }
 0x475   : > { %16328 = vst [vmem:[#allocation41_spill] sm:$0xff] %v12391_v43  ;;  %v3434_v49 = vmul.f32 %v12397_v9, %v12391_v43  ;;  %16331 = vst [vmem:[#allocation238_spill] sm:$0xff] %v12404_v13  ;;  %v3435_v9 = vmul.f32 %v12409_v34, %v12404_v13  ;;  %v12425_v43 = vpop.permute.xlu0 %3341 }
 0x476   : > { %16337 = vst [vmem:[#allocation241_spill] sm:$0xff] %v12425_v43 }
 0x477   : > { %v3527_v41 = vsel %vm2553_vm8, %v3434_v49, 0.0  ;;  %v3529_v57 = vsel %vm2553_vm8, %v3435_v9, 0.0 }
 0x478   : > { %v3528_v19 = vadd.f32 %v3527_v41, %v3526_v45 }
 0x479   : > { %v12441_v9 = vpop.permute.xlu0 %3351 }
 0x47a   : > { %v3530_v37 = vadd.f32 %v3529_v57, %v3528_v19  ;;  %16341 = vst [vmem:[#allocation94_spill] sm:$0xff] %v12441_v9  ;;  %v12445_v57 = vpop.permute.xlu1 %3356 }
 0x47b   : > { %16342 = vst [vmem:[#allocation148_spill] sm:$0xff] %v12445_v57 }
 0x47d   : > { %v7574_v58 = vpop.f32.mrb[42].mxu0 }
 0x47e   : > { %v3063_v18 = vpop.f32.mrb[43].mxu0  ;;  %v12420_v30 = vadd.f32 %v7574_v58, %v12003_v36 }
 0x47f   : > { %v12407_v7 = vadd.f32 %v12003_v36, %v3063_v18 }
 0x480   : > { %16335 = vst [vmem:[#allocation98_spill] sm:$0xff] %v12420_v30  ;;  %v3437_v34 = vmul.f32 %v12425_v43, %v12420_v30 }
 0x481   : > { %16332 = vst [vmem:[#allocation199_spill] sm:$0xff] %v12407_v7  ;;  %v3436_v60 = vmul.f32 %v12413_v48, %v12407_v7 }
 0x483   : > { %v3531_v49 = vsel %vm2553_vm8, %v3436_v60, 0.0  ;;  %v3533_v60 = vsel %vm2553_vm8, %v3437_v34, 0.0 }
 0x484   : > { %v3532_v41 = vadd.f32 %v3531_v49, %v3530_v37 }
 0x486   : > { %v3534_v43 = vadd.f32 %v3533_v60, %v3532_v41 }
 0x489   : > { %v7577_v11 = vpop.f32.mrb[44].mxu0 }
 0x48a   : > { %v3073_v47 = vpop.f32.mrb[45].mxu0 }
 0x48b   : > { %v12423_v18 = vadd.f32 %v12003_v36, %v3073_v47  ;;  %v12436_v47 = vadd.f32 %v7577_v11, %v12003_v36 }
 0x48d   : > { %16336 = vst [vmem:[#allocation143_spill] sm:$0xff] %v12423_v18  ;;  %v3438_v45 = vmul.f32 %v12429_v5, %v12423_v18  ;;  %16339 = vst [vmem:[#allocation19_spill] sm:$0xff] %v12436_v47  ;;  %v3439_v5 = vmul.f32 %v12441_v9, %v12436_v47 }
 0x48f   : > { %v3535_v19 = vsel %vm2553_vm8, %v3438_v45, 0.0  ;;  %v3537_v18 = vsel %vm2553_vm8, %v3439_v5, 0.0 }
 0x490   : > { %v3536_v11 = vadd.f32 %v3535_v19, %v3534_v43  ;;  %v12462_v19 = vpop.permute.xlu1 %3366 }
 0x491   : > { %16345 = vst [vmem:[#allocation18_spill] sm:$0xff] %v12462_v19 }
 0x492   : > { %v3538_v45 = vadd.f32 %v3537_v18, %v3536_v11 }
 0x494   : > { %v12473_v13 = vpop.permute.xlu1 %3376 }
 0x495   : > { %v7580_v58 = vpop.f32.mrb[46].mxu0  ;;  %16347 = vst [vmem:[#allocation106_spill] sm:$0xff] %v12473_v13 }
 0x496   : > { %v3083_v48 = vpop.f32.mrb[47].mxu0  ;;  %v12452_v37 = vadd.f32 %v7580_v58, %v12003_v36 }
 0x497   : > { %v12439_v7 = vadd.f32 %v12003_v36, %v3083_v48  ;;  %v12454_v48 = vpop.permute.xlu0 %3361 }
 0x498   : > { %16343 = vst [vmem:[#allocation240_spill] sm:$0xff] %v12452_v37  ;;  %16344 = vst [vmem:[#allocation201_spill] sm:$0xff] %v12454_v48  ;;  %v3441_v41 = vmul.f32 %v12454_v48, %v12452_v37 }
 0x499   : > { %16340 = vst [vmem:[#allocation45_spill] sm:$0xff] %v12439_v7  ;;  %v3440_v49 = vmul.f32 %v12445_v57, %v12439_v7 }
 0x49a   : > { %v3541_v57 = vsel %vm2553_vm8, %v3441_v41, 0.0 }
 0x49b   : > { %v3539_v34 = vsel %vm2553_vm8, %v3440_v49, 0.0  ;;  %v12464_v58 = vpop.permute.xlu0 %3371 }
 0x49c   : > { %v3540_v30 = vadd.f32 %v3539_v34, %v3538_v45  ;;  %16346 = vst [vmem:[#allocation44_spill] sm:$0xff] %v12464_v58 }
 0x49e   : > { %v3542_v49 = vadd.f32 %v3541_v57, %v3540_v30 }
 0x49f   : > { %v12475_v41 = vpop.permute.xlu0 %3381 }
 0x4a0   : > { %16348 = vst [vmem:[#allocation147_spill] sm:$0xff] %v12475_v41 }
 0x4a1   : > { %v7583_v60 = vpop.f32.mrb[48].mxu0 }
 0x4a2   : > { %v3099_v9 = vadd.f32 %v7583_v60, %v12003_v36  ;;  %v3093_v47 = vpop.f32.mrb[49].mxu0 }
 0x4a3   : > { %v3094_v43 = vadd.f32 %v12003_v36, %v3093_v47 }
 0x4a4   : > { %v3443_v5 = vmul.f32 %v12464_v58, %v3099_v9 }
 0x4a5   : > { %v3442_v18 = vmul.f32 %v12462_v19, %v3094_v43  ;;  %v12485_v19 = vpop.permute.xlu0 %3391 }
 0x4a6   : > { %v3545_v34 = vsel %vm2553_vm8, %v3443_v5, 0.0  ;;  %16349 = vst [vmem:[#allocation243_spill] sm:$0xff] %v12485_v19 }
 0x4a7   : > { %v3543_v11 = vsel %vm2553_vm8, %v3442_v18, 0.0 }
 0x4a8   : > { %v3544_v48 = vadd.f32 %v3543_v11, %v3542_v49 }
 0x4aa   : > { %v3546_v45 = vadd.f32 %v3545_v34, %v3544_v48 }
 0x4ad   : > { %v7586_v60 = vpop.f32.mrb[50].mxu0 }
 0x4ae   : > { %v3109_v47 = vadd.f32 %v7586_v60, %v12003_v36  ;;  %v3103_v37 = vpop.f32.mrb[51].mxu0  ;;  %v12483_v60 = vpop.permute.xlu1 %3386 }
 0x4af   : > { %v3104_v7 = vadd.f32 %v12003_v36, %v3103_v37 }
 0x4b0   : > { %v3445_v58 = vmul.f32 %v12475_v41, %v3109_v47 }
 0x4b1   : > { %v3444_v30 = vmul.f32 %v12473_v13, %v3104_v7 }
 0x4b2   : > { %v3549_v5 = vsel %vm2553_vm8, %v3445_v58, 0.0 }
 0x4b3   : > { %v3547_v57 = vsel %vm2553_vm8, %v3444_v30, 0.0 }
 0x4b4   : > { %v3548_v18 = vadd.f32 %v3547_v57, %v3546_v45 }
 0x4b6   : > { %v3550_v48 = vadd.f32 %v3549_v5, %v3548_v18 }
 0x4b8   : > { %v7589_v49 = vpop.f32.mrb[52].mxu0 }
 0x4b9   : > { %v3119_v11 = vadd.f32 %v7589_v49, %v12003_v36  ;;  %v3113_v34 = vpop.f32.mrb[53].mxu0 }
 0x4ba   : > { %v3114_v37 = vadd.f32 %v12003_v36, %v3113_v34 }
 0x4bb   : > { %v3447_v41 = vmul.f32 %v12485_v19, %v3119_v11 }
 0x4bc   : > { %v3446_v13 = vmul.f32 %v12483_v60, %v3114_v37 }
 0x4bd   : > { %v3553_v58 = vsel %vm2553_vm8, %v3447_v41, 0.0 }
 0x4be   : > { %v3551_v30 = vsel %vm2553_vm8, %v3446_v13, 0.0 }
 0x4bf   : > { %v3552_v45 = vadd.f32 %v3551_v30, %v3550_v48 }
 0x4c1   : > { %v3554_v57 = vadd.f32 %v3553_v58, %v3552_v45 }
 0x4c3   : > { %v3555_v18 = vrot.slane %v3554_v57, 4 }
 0x4c5   : > { %v3556_v5 = vadd.f32 %v3555_v18, %v3554_v57 }
 0x4c7   : > { %v3557_v49 = vrot.slane %v3556_v5, 2 }
 0x4c9   : > { %v3558_v10 = vadd.f32 %v3557_v49, %v3556_v5 }
 0x4cb   : > { %v3559_v59 = vrot.slane %v3558_v10, 1 }
 0x4cd   : > { %v3560_v36 = vadd.f32 %v3559_v59, %v3558_v10 }
 0x4cf   : > { %v12491_v34 = vmul.f32 0.00390625, %v3560_v36 }
 0x4d1   : > { %v12494_v23 = vsub.f32 %v3094_v43, %v12491_v34  ;;  %v12497_v19 = vsub.f32 %v3099_v9, %v12491_v34  ;;  %v12500_v13 = vsub.f32 %v3104_v7, %v12491_v34  ;;  %v12503_v41 = vsub.f32 %v3109_v47, %v12491_v34 }
 0x4d2   : > { %v12506_v48 = vsub.f32 %v3114_v37, %v12491_v34  ;;  %v12509_v30 = vsub.f32 %v3119_v11, %v12491_v34  ;;  %v12513_v10 = vsub.f32 %v12013_v63, %v12491_v34  ;;  %v12517_v59 = vsub.f32 %v12009_v21, %v12491_v34 }
 0x4d3   : > { %v12521_v7 = vsub.f32 %v12019_v12, %v12491_v34  ;;  %v12525_v9 = vsub.f32 %v12037_v40, %v12491_v34  ;;  %v12533_v63 = vsub.f32 %v12044_v39, %v12491_v34  ;;  %v12539_v12 = vsub.f32 %v12059_v26, %v12491_v34 }
 0x4d4   : > { %16350 = vst [vmem:[#allocation200_spill] sm:$0xff] %v12509_v30  ;;  %v3616_v43 = vmul.f32 %v12513_v10, %v12005_v61  ;;  %v3617_v47 = vmul.f32 %v12517_v59, %v11994_v31  ;;  %v12545_v45 = vsub.f32 %v12066_v42, %v12491_v34  ;;  %v12551_v57 = vsub.f32 %v12081_v17, %v12491_v34 }
 0x4d5   : > { %v3618_v21 = vmul.f32 %v12521_v7, %v12015_v1  ;;  %v3619_v40 = vmul.f32 %v12525_v9, %v12033_v29  ;;  %v3620_v39 = vmul.f32 %v12533_v63, %v12040_v46  ;;  %v3621_v26 = vmul.f32 %v12539_v12, %v12055_v3 }
 0x4d6   : > { %v3670_v11 = vmul.f32 %v3616_v43, %v3616_v43  ;;  %v3671_v37 = vmul.f32 %v3617_v47, %v3617_v47  ;;  %v12559_v42 = vsub.f32 %v12087_v0, %v12491_v34  ;;  %v3622_v43 = vmul.f32 %v12545_v45, %v12062_v27 }
 0x4d7   : > { %v3672_v58 = vmul.f32 %v3618_v21, %v3618_v21  ;;  %v3673_v18 = vmul.f32 %v3619_v40, %v3619_v40  ;;  %v3674_v47 = vmul.f32 %v3620_v39, %v3620_v39  ;;  %v12566_v3 = vsub.f32 %v12102_v2, %v12491_v34 }
 0x4d8   : > { %v3724_v5 = vsel %vm2553_vm8, %v3670_v11, 0.0  ;;  %v3725_v49 = vsel %vm2553_vm8, %v3671_v37, 0.0  ;;  %v3623_v40 = vmul.f32 %v12551_v57, %v12077_v33  ;;  %v3675_v11 = vmul.f32 %v3621_v26, %v3621_v26 }
 0x4d9   : > { %v3726_v36 = vadd.f32 %v3725_v49, %v3724_v5  ;;  %v3727_v17 = vsel %vm2553_vm8, %v3672_v58, 0.0  ;;  %v3729_v37 = vsel %vm2553_vm8, %v3673_v18, 0.0  ;;  %v12573_v0 = vsub.f32 %v12108_v15, %v12491_v34 }
 0x4da   : > { %v3624_v39 = vmul.f32 %v12559_v42, %v12084_v54  ;;  %v3676_v58 = vmul.f32 %v3622_v43, %v3622_v43  ;;  %v3731_v49 = vsel %vm2553_vm8, %v3674_v47, 0.0  ;;  %v12580_v2 = vsub.f32 %v12123_v53, %v12491_v34 }
 0x4db   : > { %v3728_v21 = vadd.f32 %v3727_v17, %v3726_v36  ;;  %v3625_v26 = vmul.f32 %v12566_v3, %v12098_v38  ;;  %v3677_v18 = vmul.f32 %v3623_v40, %v3623_v40  ;;  %v3733_v17 = vsel %vm2553_vm8, %v3675_v11, 0.0 }
 0x4dc   : > { %v12587_v15 = vsub.f32 %v12130_v28, %v12491_v34  ;;  %v3626_v43 = vmul.f32 %v12573_v0, %v12105_v4  ;;  %v3678_v47 = vmul.f32 %v3624_v39, %v3624_v39  ;;  %v12594_v53 = vsub.f32 %v12145_v22, %v12491_v34 }
 0x4dd   : > { %v3730_v5 = vadd.f32 %v3729_v37, %v3728_v21  ;;  %v3735_v37 = vsel %vm2553_vm8, %v3676_v58, 0.0  ;;  %v3627_v40 = vmul.f32 %v12580_v2, %v12119_v52  ;;  %v3679_v11 = vmul.f32 %v3625_v26, %v3625_v26 }
 0x4de   : > { %v12601_v28 = vsub.f32 %v12152_v20, %v12491_v34  ;;  %v3628_v39 = vmul.f32 %v12587_v15, %v12126_v16  ;;  %v3680_v58 = vmul.f32 %v3626_v43, %v3626_v43  ;;  %v12608_v22 = vsub.f32 %v12167_v44, %v12491_v34 }
 0x4df   : > { %v3732_v36 = vadd.f32 %v3731_v49, %v3730_v5  ;;  %v3737_v49 = vsel %vm2553_vm8, %v3677_v18, 0.0  ;;  %v3629_v26 = vmul.f32 %v12594_v53, %v12141_v51  ;;  %v3681_v18 = vmul.f32 %v3627_v40, %v3627_v40 }
 0x4e0   : > { %v12615_v20 = vsub.f32 %v12174_v50, %v12491_v34  ;;  %v3630_v43 = vmul.f32 %v12601_v28, %v12148_v32  ;;  %v12622_v44 = vsub.f32 %v12189_v24, %v12491_v34  ;;  %v3631_v40 = vmul.f32 %v12608_v22, %v12163_v56  ;;  %v16351_v50 = vld [vmem:[#allocation123_spill] sm:$0xff]  ;;  %v16352_v32 = vld [vmem:[#allocation21_spill] sm:$0xff]  ;;  %v16353_v56 = vld [vmem:[#allocation124_spill] sm:$0xff] }
 0x4e1   : > { %v3734_v21 = vadd.f32 %v3733_v17, %v3732_v36  ;;  %v3739_v17 = vsel %vm2553_vm8, %v3678_v47, 0.0  ;;  %v3682_v47 = vmul.f32 %v3628_v39, %v3628_v39  ;;  %v12636_v24 = vsub.f32 %v12211_v62, %v12491_v34  ;;  %v16354_v62 = vld [vmem:[#allocation24_spill] sm:$0xff] }
 0x4e2   : > { %v3632_v39 = vmul.f32 %v12615_v20, %v16352_v32 }
 0x4e3   : > { %v3736_v5 = vadd.f32 %v3735_v37, %v3734_v21  ;;  %v3741_v37 = vsel %vm2553_vm8, %v3679_v11, 0.0  ;;  %v3683_v11 = vmul.f32 %v3629_v26, %v3629_v26  ;;  %v3633_v26 = vmul.f32 %v12622_v44, %v16353_v56 }
 0x4e5   : > { %v3738_v36 = vadd.f32 %v3737_v49, %v3736_v5  ;;  %v3743_v49 = vsel %vm2553_vm8, %v3680_v58, 0.0  ;;  %v3684_v58 = vmul.f32 %v3630_v43, %v3630_v43  ;;  %v12659_v43 = vsub.f32 %v16354_v62, %v12491_v34  ;;  %v16357_v62 = vld [vmem:[#allocation132_spill] sm:$0xff] }
 0x4e6   : > { %v3687_v32 = vmul.f32 %v3633_v26, %v3633_v26  ;;  %v12673_v16 = vsub.f32 %v16357_v62, %v12491_v34 }
 0x4e7   : > { %v3740_v21 = vadd.f32 %v3739_v17, %v3738_v36  ;;  %v3745_v17 = vsel %vm2553_vm8, %v3681_v18, 0.0  ;;  %v3685_v18 = vmul.f32 %v3631_v40, %v3631_v40 }
 0x4e9   : > { %v3742_v5 = vadd.f32 %v3741_v37, %v3740_v21  ;;  %v12629_v37 = vsub.f32 %v16351_v50, %v12491_v34  ;;  %v15548_v50 = vmov 0.0  }
 0x4ea   : > { %4068 = vst.msk [vmem:[#allocation2 + $0x8] sm:$0xff] %vm2553_vm8, %v15548_v50  ;;  %4069 = vst.msk [vmem:[#allocation2 + $0x10] sm:$0xff] %vm2553_vm8, %v15548_v50 }
 0x4eb   : > { %v3744_v36 = vadd.f32 %v3743_v49, %v3742_v5  ;;  %v3747_v5 = vsel %vm2553_vm8, %v3682_v47, 0.0  ;;  %4067 = vst.msk [vmem:[#allocation2] sm:$0xff] %vm2553_vm8, %v15548_v50  ;;  %4070 = vst.msk [vmem:[#allocation2 + $0x18] sm:$0xff] %vm2553_vm8, %v15548_v50  ;;  %v16355_v47 = vld [vmem:[#allocation20_spill] sm:$0xff] }
 0x4ec   : > { %4071 = vst.msk [vmem:[#allocation2 + $0x1d0] sm:$0xff] %vm2553_vm8, %v15548_v50  ;;  %4072 = vst.msk [vmem:[#allocation2 + $0x1d8] sm:$0xff] %vm2553_vm8, %v15548_v50  ;;  %v3634_v40 = vmul.f32 %v12629_v37, %v16355_v47  ;;  %v16358_v47 = vld [vmem:[#allocation128_spill] sm:$0xff] }
 0x4ed   : > { %v3746_v21 = vadd.f32 %v3745_v17, %v3744_v36  ;;  %v3749_v36 = vsel %vm2553_vm8, %v3683_v11, 0.0  ;;  %4073 = vst.msk [vmem:[#allocation2 + $0x1e0] sm:$0xff] %vm2553_vm8, %v15548_v50  ;;  %4074 = vst.msk [vmem:[#allocation2 + $0x1e8] sm:$0xff] %vm2553_vm8, %v15548_v50  ;;  %v3686_v11 = vmul.f32 %v3632_v39, %v3632_v39  ;;  %v3753_v50 = vsel %vm2553_vm8, %v3685_v18, 0.0 }
 0x4ee   : > { %v3636_v39 = vmul.f32 %v12659_v43, %v16358_v47  ;;  %v16360_v47 = vld [vmem:[#allocation131_spill] sm:$0xff] }
 0x4ef   : > { %v3748_v49 = vadd.f32 %v3747_v5, %v3746_v21  ;;  %v3751_v21 = vsel %vm2553_vm8, %v3684_v58, 0.0  ;;  %v3688_v58 = vmul.f32 %v3634_v40, %v3634_v40  ;;  %v12687_v40 = vsub.f32 %v16360_v47, %v12491_v34 }
 0x4f1   : > { %v3750_v17 = vadd.f32 %v3749_v36, %v3748_v49  ;;  %v12666_v49 = vsub.f32 %v12229_v35, %v12491_v34  ;;  %v16356_v36 = vld [vmem:[#allocation25_spill] sm:$0xff]  ;;  %v12680_v35 = vsub.f32 %v12249_v14, %v12491_v34  ;;  %v4184_v62 = vld [vmem:[#allocation2 + $0x10] sm:$0xff]  ;;  %v3759_v14 = vsel %vm2553_vm8, %v3688_v58, 0.0 }
 0x4f2   : > { %v3635_v56 = vmul.f32 %v12636_v24, %v16356_v36  ;;  %v16359_v36 = vld [vmem:[#allocation127_spill] sm:$0xff] }
 0x4f3   : > { %v3752_v5 = vadd.f32 %v3751_v21, %v3750_v17  ;;  %v3755_v17 = vsel %vm2553_vm8, %v3686_v11, 0.0  ;;  %v3637_v26 = vmul.f32 %v12666_v49, %v16359_v36  ;;  %v16361_v11 = vld [vmem:[#allocation29_spill] sm:$0xff] }
 0x4f4   : > { %v3689_v18 = vmul.f32 %v3635_v56, %v3635_v56  ;;  %v16362_v56 = vld [vmem:[#allocation28_spill] sm:$0xff] }
 0x4f5   : > { %v3754_v51 = vadd.f32 %v3753_v50, %v3752_v5  ;;  %v3757_v50 = vsel %vm2553_vm8, %v3687_v32, 0.0  ;;  %v4183_v5 = vld [vmem:[#allocation2 + $0x8] sm:$0xff]  ;;  %v12695_v32 = vsub.f32 %v12273_v55, %v12491_v34  ;;  %v12709_v55 = vsub.f32 %v12284_v6, %v12491_v34 }
 0x4f6   : > { %v7801_v4 = vpack.i.bf16 %v4184_v62, %v4183_v5  ;;  %v3761_v47 = vsel %vm2553_vm8, %v3689_v18, 0.0  ;;  %v16363_v62 = vld [vmem:[#allocation4_spill] sm:$0xff]  ;;  %v12723_v6 = vsub.f32 %v12302_v25, %v12491_v34  ;;  %v16371_v25 = vld [vmem:[#allocation135_spill] sm:$0xff] }
 0x4f7   : > { %v3756_v21 = vadd.f32 %v3755_v17, %v3754_v51  ;;  %v3638_v51 = vmul.f32 %v12673_v16, %v16361_v11  ;;  %v3690_v17 = vmul.f32 %v3636_v39, %v3636_v39  ;;  %v12702_v11 = vsub.f32 %v16363_v62, %v12491_v34  ;;  %v16364_v39 = vld [vmem:[#allocation193_spill] sm:$0xff]  ;;  %v16366_v62 = vld [vmem:[#allocation136_spill] sm:$0xff] }
 0x4f8   : > { %7802 = vrot.lane.b32.xlu1 %v7801_v4, %s8936_s17  ;;  %v12716_v36 = vsub.f32 %v16366_v62, %v12491_v34  ;;  %v16369_v62 = vld [vmem:[#allocation7_spill] sm:$0xff]  ;;  %v12737_v33 = vsub.f32 %v16371_v25, %v12491_v34 }
 0x4f9   : > { %v3758_v52 = vadd.f32 %v3757_v50, %v3756_v21  ;;  %v3639_v21 = vmul.f32 %v12680_v35, %v16362_v56  ;;  %v3691_v50 = vmul.f32 %v3637_v26, %v3637_v26  ;;  %v3692_v58 = vmul.f32 %v3638_v51, %v3638_v51  ;;  %v16365_v56 = vld [vmem:[#allocation33_spill] sm:$0xff]  ;;  %v16374_v25 = vld [vmem:[#allocation11_spill] sm:$0xff] }
 0x4fa   : > { %v3763_v4 = vsel %vm2553_vm8, %v3690_v17, 0.0  ;;  %v3641_v26 = vmul.f32 %v12695_v32, %v16365_v56  ;;  %v16368_v56 = vld [vmem:[#allocation235_spill] sm:$0xff]  ;;  %v12730_v54 = vsub.f32 %v16369_v62, %v12491_v34  ;;  %v12744_v62 = vsub.f32 %v12324_v8, %v12491_v34  ;;  %v16377_v8 = vld [vmem:[#allocation37_spill] sm:$0xff] }
 0x4fb   : > { %v3760_v38 = vadd.f32 %v3759_v14, %v3758_v52  ;;  %v3640_v52 = vmul.f32 %v12687_v40, %v16364_v39  ;;  %v3693_v18 = vmul.f32 %v3639_v21, %v3639_v21  ;;  %v16367_v39 = vld [vmem:[#allocation91_spill] sm:$0xff]  ;;  %v3643_v21 = vmul.f32 %v12709_v55, %v16368_v56  ;;  %v16372_v56 = vld [vmem:[#allocation32_spill] sm:$0xff] }
 0x4fc   : > { %v3642_v51 = vmul.f32 %v12702_v11, %v16367_v39  ;;  %v16370_v39 = vld [vmem:[#allocation195_spill] sm:$0xff]  ;;  %v12751_v27 = vsub.f32 %v16374_v25, %v12491_v34  ;;  %v12758_v46 = vsub.f32 %v16377_v8, %v12491_v34  ;;  %v16380_v25 = vld [vmem:[#allocation236_spill] sm:$0xff]  ;;  %v16383_v8 = vld [vmem:[#allocation197_spill] sm:$0xff] }
 0x4fd   : > { %v3762_v5 = vadd.f32 %v3761_v47, %v3760_v38  ;;  %v3765_v38 = vsel %vm2553_vm8, %v3691_v50, 0.0  ;;  %v3694_v17 = vmul.f32 %v3640_v52, %v3640_v52  ;;  %v3695_v50 = vmul.f32 %v3641_v26, %v3641_v26 }
 0x4fe   : > { %v3644_v52 = vmul.f32 %v12716_v36, %v16370_v39  ;;  %v3645_v26 = vmul.f32 %v12723_v6, %v16372_v56  ;;  %v16373_v39 = vld [vmem:[#allocation95_spill] sm:$0xff]  ;;  %16375 = vst [vmem:[#allocation23_spill] sm:$0xff] %v12751_v27  ;;  %v16376_v56 = vld [vmem:[#allocation237_spill] sm:$0xff]  ;;  %16378 = vst [vmem:[#allocation49_spill] sm:$0xff] %v12758_v46  ;;  %v12765_v29 = vsub.f32 %v16380_v25, %v12491_v34 }
 0x4ff   : > { %v3764_v14 = vadd.f32 %v3763_v4, %v3762_v5  ;;  %v3767_v5 = vsel %vm2553_vm8, %v3692_v58, 0.0  ;;  %v3696_v58 = vmul.f32 %v3642_v51, %v3642_v51  ;;  %v3646_v51 = vmul.f32 %v12730_v54, %v16373_v39  ;;  %v16379_v39 = vld [vmem:[#allocation194_spill] sm:$0xff]  ;;  %v16386_v25 = vld [vmem:[#allocation99_spill] sm:$0xff] }
 0x500   : > { %16381 = vst [vmem:[#allocation109_spill] sm:$0xff] %v12765_v29  ;;  %v12772_v61 = vsub.f32 %v16383_v8, %v12491_v34  ;;  %v12779_v1 = vsub.f32 %v16386_v25, %v12491_v34  ;;  %v16389_v8 = vld [vmem:[#allocation139_spill] sm:$0xff] }
 0x501   : > { %v3766_v47 = vadd.f32 %v3765_v38, %v3764_v14  ;;  %v3769_v14 = vsel %vm2553_vm8, %v3693_v18, 0.0  ;;  %v3697_v18 = vmul.f32 %v3643_v21, %v3643_v21  ;;  %v3647_v21 = vmul.f32 %v12737_v33, %v16376_v56  ;;  %v16382_v56 = vld [vmem:[#allocation86_spill] sm:$0xff]  ;;  %v16392_v25 = vld [vmem:[#allocation15_spill] sm:$0xff] }
 0x502   : > { %16384 = vst [vmem:[#allocation152_spill] sm:$0xff] %v12772_v61  ;;  %16387 = vst [vmem:[#allocation242_spill] sm:$0xff] %v12779_v1  ;;  %v12786_v31 = vsub.f32 %v16389_v8, %v12491_v34  ;;  %v16395_v8 = vld [vmem:[#allocation41_spill] sm:$0xff] }
 0x503   : > { %v3768_v4 = vadd.f32 %v3767_v5, %v3766_v47  ;;  %v3771_v47 = vsel %vm2553_vm8, %v3694_v17, 0.0  ;;  %v3698_v17 = vmul.f32 %v3644_v52, %v3644_v52  ;;  %v3648_v52 = vmul.f32 %v12744_v62, %v16379_v39  ;;  %v16385_v39 = vld [vmem:[#allocation140_spill] sm:$0xff] }
 0x504   : > { %16390 = vst [vmem:[#allocation203_spill] sm:$0xff] %v12786_v31 }
 0x505   : > { %v3770_v38 = vadd.f32 %v3769_v14, %v3768_v4  ;;  %v3773_v4 = vsel %vm2553_vm8, %v3695_v50, 0.0  ;;  %v3699_v50 = vmul.f32 %v3645_v26, %v3645_v26  ;;  %v3649_v26 = vmul.f32 %v12751_v27, %v16382_v56  ;;  %v16388_v56 = vld [vmem:[#allocation10_spill] sm:$0xff] }
 0x507   : > { %v3772_v5 = vadd.f32 %v3771_v47, %v3770_v38  ;;  %v3775_v38 = vsel %vm2553_vm8, %v3696_v58, 0.0  ;;  %v3700_v58 = vmul.f32 %v3646_v51, %v3646_v51  ;;  %v3650_v51 = vmul.f32 %v12758_v46, %v16385_v39  ;;  %v16391_v39 = vld [vmem:[#allocation36_spill] sm:$0xff] }
 0x508   : > { %v12793_v46 = vsub.f32 %v16392_v25, %v12491_v34  ;;  %v16398_v25 = vld [vmem:[#allocation238_spill] sm:$0xff] }
 0x509   : > { %v3774_v14 = vadd.f32 %v3773_v4, %v3772_v5  ;;  %v3777_v5 = vsel %vm2553_vm8, %v3697_v18, 0.0  ;;  %v3701_v18 = vmul.f32 %v3647_v21, %v3647_v21  ;;  %v3651_v21 = vmul.f32 %v12765_v29, %v16388_v56  ;;  %v16394_v56 = vld [vmem:[#allocation239_spill] sm:$0xff] }
 0x50a   : > { %16393 = vst [vmem:[#allocation22_spill] sm:$0xff] %v12793_v46  ;;  %v12800_v29 = vsub.f32 %v16395_v8, %v12491_v34  ;;  %v16401_v8 = vld [vmem:[#allocation199_spill] sm:$0xff] }
 0x50b   : > { %v3776_v47 = vadd.f32 %v3775_v38, %v3774_v14  ;;  %v3779_v14 = vsel %vm2553_vm8, %v3698_v17, 0.0  ;;  %v3702_v17 = vmul.f32 %v3648_v52, %v3648_v52  ;;  %v3652_v52 = vmul.f32 %v12772_v61, %v16391_v39  ;;  %v16397_v39 = vld [vmem:[#allocation196_spill] sm:$0xff] }
 0x50c   : > { %16396 = vst [vmem:[#allocation48_spill] sm:$0xff] %v12800_v29  ;;  %v12807_v61 = vsub.f32 %v16398_v25, %v12491_v34  ;;  %v16404_v25 = vld [vmem:[#allocation98_spill] sm:$0xff] }
 0x50d   : > { %v3778_v4 = vadd.f32 %v3777_v5, %v3776_v47  ;;  %v3781_v47 = vsel %vm2553_vm8, %v3699_v50, 0.0  ;;  %v3703_v50 = vmul.f32 %v3649_v26, %v3649_v26  ;;  %v3653_v26 = vmul.f32 %v12779_v1, %v16394_v56  ;;  %v16400_v56 = vld [vmem:[#allocation90_spill] sm:$0xff] }
 0x50e   : > { %16399 = vst [vmem:[#allocation110_spill] sm:$0xff] %v12807_v61  ;;  %v12814_v1 = vsub.f32 %v16401_v8, %v12491_v34  ;;  %v16407_v8 = vld [vmem:[#allocation143_spill] sm:$0xff] }
 0x50f   : > { %v3780_v38 = vadd.f32 %v3779_v14, %v3778_v4  ;;  %v3783_v4 = vsel %vm2553_vm8, %v3700_v58, 0.0  ;;  %v3704_v58 = vmul.f32 %v3650_v51, %v3650_v51  ;;  %v3654_v51 = vmul.f32 %v12786_v31, %v16397_v39  ;;  %v16403_v39 = vld [vmem:[#allocation144_spill] sm:$0xff] }
 0x510   : > { %16402 = vst [vmem:[#allocation151_spill] sm:$0xff] %v12814_v1  ;;  %v12821_v31 = vsub.f32 %v16404_v25, %v12491_v34  ;;  %v16410_v25 = vld [vmem:[#allocation19_spill] sm:$0xff] }
 0x511   : > { %v3782_v5 = vadd.f32 %v3781_v47, %v3780_v38  ;;  %v3785_v38 = vsel %vm2553_vm8, %v3701_v18, 0.0  ;;  %v3705_v18 = vmul.f32 %v3651_v21, %v3651_v21  ;;  %v3655_v21 = vmul.f32 %v12793_v46, %v16400_v56  ;;  %v16406_v56 = vld [vmem:[#allocation14_spill] sm:$0xff] }
 0x512   : > { %16405 = vst [vmem:[#allocation245_spill] sm:$0xff] %v12821_v31  ;;  %v12828_v46 = vsub.f32 %v16407_v8, %v12491_v34  ;;  %v16412_v8 = vld [vmem:[#allocation45_spill] sm:$0xff] }
 0x513   : > { %v3784_v14 = vadd.f32 %v3783_v4, %v3782_v5  ;;  %v3787_v5 = vsel %vm2553_vm8, %v3702_v17, 0.0  ;;  %v3706_v17 = vmul.f32 %v3652_v52, %v3652_v52  ;;  %v3656_v52 = vmul.f32 %v12800_v29, %v16403_v39  ;;  %v16409_v39 = vld [vmem:[#allocation40_spill] sm:$0xff] }
 0x514   : > { %16408 = vst [vmem:[#allocation202_spill] sm:$0xff] %v12828_v46  ;;  %v12835_v29 = vsub.f32 %v16410_v25, %v12491_v34  ;;  %v16414_v25 = vld [vmem:[#allocation240_spill] sm:$0xff] }
 0x515   : > { %v3786_v47 = vadd.f32 %v3785_v38, %v3784_v14  ;;  %v3789_v14 = vsel %vm2553_vm8, %v3703_v50, 0.0  ;;  %v3707_v50 = vmul.f32 %v3653_v26, %v3653_v26  ;;  %v3657_v26 = vmul.f32 %v12807_v61, %v16406_v56  ;;  %v16411_v56 = vld [vmem:[#allocation241_spill] sm:$0xff] }
 0x516   : > { %v12842_v61 = vsub.f32 %v16412_v8, %v12491_v34  ;;  %v16416_v8 = vld [vmem:[#allocation148_spill] sm:$0xff] }
 0x517   : > { %v3788_v4 = vadd.f32 %v3787_v5, %v3786_v47  ;;  %v3791_v47 = vsel %vm2553_vm8, %v3704_v58, 0.0  ;;  %v3708_v58 = vmul.f32 %v3654_v51, %v3654_v51  ;;  %v3658_v51 = vmul.f32 %v12814_v1, %v16409_v39  ;;  %v16413_v39 = vld [vmem:[#allocation198_spill] sm:$0xff] }
 0x518   : > { %v12849_v1 = vsub.f32 %v16414_v25, %v12491_v34 }
 0x519   : > { %v3790_v38 = vadd.f32 %v3789_v14, %v3788_v4  ;;  %v3793_v4 = vsel %vm2553_vm8, %v3705_v18, 0.0  ;;  %v3709_v18 = vmul.f32 %v3655_v21, %v3655_v21  ;;  %v3659_v21 = vmul.f32 %v12821_v31, %v16411_v56  ;;  %v16415_v56 = vld [vmem:[#allocation94_spill] sm:$0xff] }
 0x51a   : > { %v3662_v31 = vmul.f32 %v12842_v61, %v16416_v8 }
 0x51b   : > { %v3792_v5 = vadd.f32 %v3791_v47, %v3790_v38  ;;  %v3795_v38 = vsel %vm2553_vm8, %v3706_v17, 0.0  ;;  %v3710_v17 = vmul.f32 %v3656_v52, %v3656_v52  ;;  %v3660_v52 = vmul.f32 %v12828_v46, %v16413_v39  ;;  %v16418_v46 = vld [vmem:[#allocation18_spill] sm:$0xff] }
 0x51d   : > { %v3794_v14 = vadd.f32 %v3793_v4, %v3792_v5  ;;  %v3797_v5 = vsel %vm2553_vm8, %v3707_v50, 0.0  ;;  %v3711_v50 = vmul.f32 %v3657_v26, %v3657_v26  ;;  %v3661_v26 = vmul.f32 %v12835_v29, %v16415_v56 }
 0x51e   : > { %v3714_v27 = vmul.f32 %v3660_v52, %v3660_v52  ;;  %v3716_v56 = vmul.f32 %v3662_v31, %v3662_v31 }
 0x51f   : > { %v3796_v47 = vadd.f32 %v3795_v38, %v3794_v14  ;;  %v3799_v14 = vsel %vm2553_vm8, %v3708_v58, 0.0  ;;  %v3712_v58 = vmul.f32 %v3658_v51, %v3658_v51 }
 0x521   : > { %v3798_v4 = vadd.f32 %v3797_v5, %v3796_v47  ;;  %v3801_v47 = vsel %vm2553_vm8, %v3709_v18, 0.0  ;;  %v3713_v18 = vmul.f32 %v3659_v21, %v3659_v21  ;;  %v3807_v51 = vsel %vm2553_vm8, %v3712_v58, 0.0 }
 0x522   : > { %v3664_v21 = vmul.f32 %v12494_v23, %v16418_v46 }
 0x523   : > { %v3800_v38 = vadd.f32 %v3799_v14, %v3798_v4  ;;  %v3803_v4 = vsel %vm2553_vm8, %v3710_v17, 0.0  ;;  %v16417_v17 = vld [vmem:[#allocation201_spill] sm:$0xff]  ;;  %v3809_v34 = vsel %vm2553_vm8, %v3713_v18, 0.0 }
 0x525   : > { %v3802_v5 = vadd.f32 %v3801_v47, %v3800_v38  ;;  %v3805_v38 = vsel %vm2553_vm8, %v3711_v50, 0.0  ;;  %v3811_v50 = vsel %vm2553_vm8, %v3714_v27, 0.0 }
 0x527   : > { %v3804_v14 = vadd.f32 %v3803_v4, %v3802_v5  ;;  %v3663_v5 = vmul.f32 %v12849_v1, %v16417_v17  ;;  %v3715_v4 = vmul.f32 %v3661_v26, %v3661_v26  ;;  %v3718_v17 = vmul.f32 %v3664_v21, %v3664_v21 }
 0x529   : > { %v3806_v47 = vadd.f32 %v3805_v38, %v3804_v14  ;;  %v16419_v38 = vld [vmem:[#allocation44_spill] sm:$0xff]  ;;  %v3717_v8 = vmul.f32 %v3663_v5, %v3663_v5  ;;  %v3813_v58 = vsel %vm2553_vm8, %v3715_v4, 0.0  ;;  %v3668_v5 = vmul.f32 %v12506_v48, %v12483_v60 }
 0x52a   : > { %v3665_v52 = vmul.f32 %v12497_v19, %v16419_v38  ;;  %v3819_v4 = vsel %vm2553_vm8, %v3718_v17, 0.0 }
 0x52b   : > { %v3808_v39 = vadd.f32 %v3807_v51, %v3806_v47  ;;  %v16420_v51 = vld [vmem:[#allocation106_spill] sm:$0xff]  ;;  %v3817_v27 = vsel %vm2553_vm8, %v3717_v8, 0.0 }
 0x52c   : > { %v3666_v26 = vmul.f32 %v12500_v13, %v16420_v51  ;;  %v3719_v46 = vmul.f32 %v3665_v52, %v3665_v52 }
 0x52d   : > { %v3810_v25 = vadd.f32 %v3809_v34, %v3808_v39  ;;  %v3815_v39 = vsel %vm2553_vm8, %v3716_v56, 0.0  ;;  %v16421_v34 = vld [vmem:[#allocation147_spill] sm:$0xff] }
 0x52e   : > { %v3667_v31 = vmul.f32 %v12503_v41, %v16421_v34  ;;  %v3821_v56 = vsel %vm2553_vm8, %v3719_v46, 0.0 }
 0x52f   : > { %v3812_v14 = vadd.f32 %v3811_v50, %v3810_v25  ;;  %v3720_v50 = vmul.f32 %v3666_v26, %v3666_v26 }
 0x530   : > { %v3721_v51 = vmul.f32 %v3667_v31, %v3667_v31 }
 0x531   : > { %v3814_v47 = vadd.f32 %v3813_v58, %v3812_v14  ;;  %v16422_v58 = vld [vmem:[#allocation243_spill] sm:$0xff]  ;;  %v3823_v52 = vsel %vm2553_vm8, %v3720_v50, 0.0  ;;  %v3841_v50 = vlaneseq }
 0x532   : > { %v3669_v21 = vmul.f32 %v12509_v30, %v16422_v58 }
 0x533   : > { %v3816_v18 = vadd.f32 %v3815_v39, %v3814_v47  ;;  %v3722_v39 = vmul.f32 %v3668_v5, %v3668_v5 }
 0x534   : > { %v3723_v8 = vmul.f32 %v3669_v21, %v3669_v21  ;;  %v12882_v21 = vshrl.u32 %v3841_v50, 7  ;;  %v16428_v50 = vld [vmem:[#allocation152_spill] sm:$0xff] }
 0x535   : > { %v3818_v25 = vadd.f32 %v3817_v27, %v3816_v18  ;;  %v3825_v18 = vsel %vm2553_vm8, %v3721_v51, 0.0  ;;  %v3827_v26 = vsel %vm2553_vm8, %v3722_v39, 0.0  ;;  %v3122_v51 = vld [vmem:[%s15358_s5] sm:$0x1] }
 0x536   : > { %v3829_v17 = vsel %vm2553_vm8, %v3723_v8, 0.0  ;;  %16423 = vst [vmem:[#allocation27_spill] sm:$0xff] %v12882_v21 }
 0x537   : > { %v3820_v14 = vadd.f32 %v3819_v4, %v3818_v25 }
 0x539   : > { %v3822_v47 = vadd.f32 %v3821_v56, %v3820_v14 }
 0x53b   : > { %v3824_v34 = vadd.f32 %v3823_v52, %v3822_v47 }
 0x53d   : > { %v3826_v27 = vadd.f32 %v3825_v18, %v3824_v34  ;;  %v15576_v34 = vsub.s32 0, %v12882_v21  ;;  %v16436_v21 = vld [vmem:[#allocation202_spill] sm:$0xff] }
 0x53f   : > { %v3828_v38 = vadd.f32 %v3827_v26, %v3826_v27 }
 0x541   : > { %v3830_v25 = vadd.f32 %v3829_v17, %v3828_v38 }
 0x543   : > { %v3831_v4 = vrot.slane %v3830_v25, 4 }
 0x545   : > { %v3832_v58 = vadd.f32 %v3831_v4, %v3830_v25 }
 0x547   : > { %v3833_v31 = vrot.slane %v3832_v58, 2 }
 0x549   : > { %v3834_v30 = vadd.f32 %v3833_v31, %v3832_v58 }
 0x54b   : > { %v3835_v46 = vrot.slane %v3834_v30, 1 }
 0x54d   : > { %v3836_v14 = vadd.f32 %v3835_v46, %v3834_v30  ;;  %v12893_v30 = vld [vmem:[%s15359_s6] ss:$0 sm:$0xff] }
 0x54e   : > { %16424 = vst [vmem:[#allocation53_spill] sm:$0xff] %v12893_v30 }
 0x54f   : > { %v3837_v5 = vmul.f32 0.00390625, %v3836_v14 }
 0x551   : > { %v3838_v56 = vadd.f32 1e-05, %v3837_v5  ;;  %v16426_v5 = vld [vmem:[#allocation49_spill] sm:$0xff] }
 0x553   : > { %8612 = vrsqrt.f32 %v3838_v56  ;;  %v16427_v56 = vld [vmem:[#allocation109_spill] sm:$0xff] }
 0x55d   : > { %v8613_v47 = vpop.eup %8612 }
 0x55e   : > { %v3840_v38 = vmul.f32 %v8613_v47, %v3122_v51  ;;  %v16429_v51 = vld [vmem:[#allocation242_spill] sm:$0xff] }
 0x560   : > { %v3844_v39 = vrot.slane %v3840_v38, %v15576_v34  ;;  %v16430_v38 = vld [vmem:[#allocation203_spill] sm:$0xff]  ;;  %v16435_v34 = vld [vmem:[#allocation245_spill] sm:$0xff] }
 0x562   : > { %v3897_v58 = vmul.f32 %v3844_v39, %v12506_v48  ;;  %v3845_v52 = vmul.f32 %v3844_v39, %v12513_v10  ;;  %v3846_v8 = vmul.f32 %v3844_v39, %v12517_v59  ;;  %v3847_v18 = vmul.f32 %v3844_v39, %v12521_v7 }
 0x563   : > { %v3848_v27 = vmul.f32 %v3844_v39, %v12525_v9  ;;  %v3849_v26 = vmul.f32 %v3844_v39, %v12533_v63  ;;  %v3850_v17 = vmul.f32 %v3844_v39, %v12539_v12  ;;  %v3851_v25 = vmul.f32 %v3844_v39, %v12545_v45 }
 0x564   : > { %v3957_v4 = vadd.f32 %v12893_v30, %v3897_v58  ;;  %v3852_v31 = vmul.f32 %v3844_v39, %v12551_v57  ;;  %v3853_v48 = vmul.f32 %v3844_v39, %v12559_v42  ;;  %v3854_v10 = vmul.f32 %v3844_v39, %v12566_v3  ;;  %v16431_v58 = vld [vmem:[#allocation22_spill] sm:$0xff]  ;;  %v16437_v30 = vld [vmem:[#allocation200_spill] sm:$0xff] }
 0x565   : > { %v3855_v59 = vmul.f32 %v3844_v39, %v12573_v0  ;;  %v3856_v7 = vmul.f32 %v3844_v39, %v12580_v2  ;;  %v3857_v9 = vmul.f32 %v3844_v39, %v12587_v15  ;;  %v3858_v63 = vmul.f32 %v3844_v39, %v12594_v53 }
 0x566   : > { %v4011_v46 = vmax.f32 %v3957_v4, 0.0  ;;  %v3859_v12 = vmul.f32 %v3844_v39, %v12601_v28  ;;  %v3860_v45 = vmul.f32 %v3844_v39, %v12608_v22  ;;  %v3861_v14 = vmul.f32 %v3844_v39, %v12615_v20  ;;  %v16432_v4 = vld [vmem:[#allocation48_spill] sm:$0xff] }
 0x567   : > { %v3862_v57 = vmul.f32 %v3844_v39, %v12622_v44  ;;  %v3863_v42 = vmul.f32 %v3844_v39, %v12629_v37  ;;  %v3864_v3 = vmul.f32 %v3844_v39, %v12636_v24  ;;  %v3865_v0 = vmul.f32 %v3844_v39, %v12659_v43 }
 0x568   : > { %v4065_v2 = vmul.f32 %v4011_v46, %v12483_v60  ;;  %v3866_v15 = vmul.f32 %v3844_v39, %v12666_v49  ;;  %v3867_v53 = vmul.f32 %v3844_v39, %v12673_v16  ;;  %v3868_v28 = vmul.f32 %v3844_v39, %v12680_v35  ;;  %v16425_v35 = vld [vmem:[#allocation23_spill] sm:$0xff]  ;;  %v16433_v46 = vld [vmem:[#allocation110_spill] sm:$0xff] }
 0x569   : > { %v3869_v22 = vmul.f32 %v3844_v39, %v12687_v40  ;;  %v3870_v20 = vmul.f32 %v3844_v39, %v12695_v32  ;;  %v3871_v44 = vmul.f32 %v3844_v39, %v12702_v11  ;;  %v3872_v37 = vmul.f32 %v3844_v39, %v12709_v55 }
 0x56a   : > { %4127 = vst.msk [vmem:[#allocation2 + $0x1c0] sm:$0xff] %vm2553_vm8, %v4065_v2  ;;  %v3873_v24 = vmul.f32 %v3844_v39, %v12716_v36  ;;  %v3874_v60 = vmul.f32 %v3844_v39, %v12723_v6  ;;  %v3875_v43 = vmul.f32 %v3844_v39, %v12730_v54  ;;  %v3876_v16 = vmul.f32 %v3844_v39, %v12737_v33  ;;  %v16434_v2 = vld [vmem:[#allocation151_spill] sm:$0xff] }
 0x56b   : > { %v3877_v49 = vmul.f32 %v3844_v39, %v12744_v62  ;;  %v3878_v40 = vmul.f32 %v3844_v39, %v16425_v35  ;;  %v3879_v32 = vmul.f32 %v3844_v39, %v16426_v5  ;;  %v3880_v11 = vmul.f32 %v3844_v39, %v16427_v56 }
 0x56c   : > { %v3881_v55 = vmul.f32 %v3844_v39, %v16428_v50  ;;  %v3882_v47 = vmul.f32 %v3844_v39, %v16429_v51  ;;  %v3883_v36 = vmul.f32 %v3844_v39, %v16430_v38  ;;  %v3884_v6 = vmul.f32 %v3844_v39, %v16431_v58 }
 0x56d   : > { %v3885_v54 = vmul.f32 %v3844_v39, %v16432_v4  ;;  %v3886_v33 = vmul.f32 %v3844_v39, %v16433_v46  ;;  %v3887_v62 = vmul.f32 %v3844_v39, %v16434_v2  ;;  %v3888_v35 = vmul.f32 %v3844_v39, %v16435_v34  ;;  %v16438_v34 = vld [vmem:[#allocation53_spill] sm:$0xff] }
 0x56e   : > { %v3889_v5 = vmul.f32 %v3844_v39, %v16436_v21  ;;  %v3890_v56 = vmul.f32 %v3844_v39, %v12835_v29  ;;  %v3891_v50 = vmul.f32 %v3844_v39, %v12842_v61  ;;  %v3892_v51 = vmul.f32 %v3844_v39, %v12849_v1 }
 0x56f   : > { %v3893_v38 = vmul.f32 %v3844_v39, %v12494_v23  ;;  %v3894_v58 = vmul.f32 %v3844_v39, %v12497_v19  ;;  %v3895_v4 = vmul.f32 %v3844_v39, %v12500_v13  ;;  %v3896_v46 = vmul.f32 %v3844_v39, %v12503_v41 }
 0x570   : > { %v3898_v2 = vmul.f32 %v3844_v39, %v16437_v30  ;;  %v12953_v21 = vadd.f32 %v16438_v34, %v3845_v52  ;;  %v3906_v29 = vadd.f32 %v16438_v34, %v3846_v8  ;;  %v3907_v61 = vadd.f32 %v16438_v34, %v3847_v18 }
 0x571   : > { %v12958_v1 = vadd.f32 %v16438_v34, %v3848_v27  ;;  %v12961_v23 = vadd.f32 %v16438_v34, %v3849_v26  ;;  %v12964_v19 = vadd.f32 %v16438_v34, %v3850_v17  ;;  %v12967_v13 = vadd.f32 %v16438_v34, %v3851_v25 }
 0x572   : > { %v12970_v41 = vadd.f32 %v16438_v34, %v3852_v31  ;;  %v12973_v39 = vadd.f32 %v16438_v34, %v3853_v48  ;;  %v12976_v30 = vadd.f32 %v16438_v34, %v3854_v10  ;;  %v12979_v52 = vadd.f32 %v16438_v34, %v3855_v59 }
 0x573   : > { %v12982_v8 = vadd.f32 %v16438_v34, %v3856_v7  ;;  %v12985_v18 = vadd.f32 %v16438_v34, %v3857_v9  ;;  %v12988_v27 = vadd.f32 %v16438_v34, %v3858_v63  ;;  %v12991_v26 = vadd.f32 %v16438_v34, %v3859_v12 }
 0x574   : > { %v12994_v17 = vadd.f32 %v16438_v34, %v3860_v45  ;;  %v12997_v25 = vadd.f32 %v16438_v34, %v3861_v14  ;;  %v13000_v31 = vadd.f32 %v16438_v34, %v3862_v57  ;;  %v13003_v48 = vadd.f32 %v16438_v34, %v3863_v42 }
 0x575   : > { %v13006_v10 = vadd.f32 %v16438_v34, %v3864_v3  ;;  %v13009_v59 = vadd.f32 %v16438_v34, %v3865_v0  ;;  %v13012_v7 = vadd.f32 %v16438_v34, %v3866_v15  ;;  %v13015_v9 = vadd.f32 %v16438_v34, %v3867_v53 }
 0x576   : > { %v13018_v63 = vadd.f32 %v16438_v34, %v3868_v28  ;;  %v13021_v12 = vadd.f32 %v16438_v34, %v3869_v22  ;;  %v13024_v45 = vadd.f32 %v16438_v34, %v3870_v20  ;;  %v13027_v14 = vadd.f32 %v16438_v34, %v3871_v44 }
 0x577   : > { %v13030_v57 = vadd.f32 %v16438_v34, %v3872_v37  ;;  %v13033_v42 = vadd.f32 %v16438_v34, %v3873_v24  ;;  %v13036_v3 = vadd.f32 %v16438_v34, %v3874_v60  ;;  %v13039_v0 = vadd.f32 %v16438_v34, %v3875_v43 }
 0x578   : > { %v13042_v15 = vadd.f32 %v16438_v34, %v3876_v16  ;;  %v13045_v53 = vadd.f32 %v16438_v34, %v3877_v49  ;;  %v13048_v28 = vadd.f32 %v16438_v34, %v3878_v40  ;;  %v13051_v22 = vadd.f32 %v16438_v34, %v3879_v32 }
 0x579   : > { %v13054_v20 = vadd.f32 %v16438_v34, %v3880_v11  ;;  %v13057_v44 = vadd.f32 %v16438_v34, %v3881_v55  ;;  %v13060_v37 = vadd.f32 %v16438_v34, %v3882_v47  ;;  %v13063_v24 = vadd.f32 %v16438_v34, %v3883_v36 }
 0x57a   : > { %v13066_v60 = vadd.f32 %v16438_v34, %v3884_v6  ;;  %v13069_v43 = vadd.f32 %v16438_v34, %v3885_v54  ;;  %v13072_v16 = vadd.f32 %v16438_v34, %v3886_v33  ;;  %v13075_v49 = vadd.f32 %v16438_v34, %v3887_v62 }
 0x57b   : > { %v13078_v40 = vadd.f32 %v16438_v34, %v3888_v35  ;;  %v13081_v32 = vadd.f32 %v16438_v34, %v3889_v5  ;;  %v13084_v11 = vadd.f32 %v16438_v34, %v3890_v56  ;;  %v13087_v55 = vadd.f32 %v16438_v34, %v3891_v50 }
 0x57c   : > { %v13090_v47 = vadd.f32 %v16438_v34, %v3892_v51  ;;  %v13093_v36 = vadd.f32 %v16438_v34, %v3893_v38  ;;  %v13096_v6 = vadd.f32 %v16438_v34, %v3894_v58  ;;  %v13099_v54 = vadd.f32 %v16438_v34, %v3895_v4  ;;  %v16446_v58 = vld [vmem:[#allocation6_spill] sm:$0xff]  ;;  %v16447_v4 = vld [vmem:[#allocation9_spill] sm:$0xff] }
 0x57d   : > { %16439 = vst [vmem:[#allocation113_spill] sm:$0xff] %v13087_v55  ;;  %v13102_v33 = vadd.f32 %v16438_v34, %v3896_v46  ;;  %v13105_v62 = vadd.f32 %v16438_v34, %v3898_v2  ;;  %v3960_v35 = vmax.f32 %v3906_v29, 0.0  ;;  %v3961_v5 = vmax.f32 %v3907_v61, 0.0  ;;  %v16454_v55 = vld [vmem:[#allocation112_spill] sm:$0xff] }
 0x57e   : > { %16440 = vst [vmem:[#allocation156_spill] sm:$0xff] %v13090_v47  ;;  %16441 = vst [vmem:[#allocation244_spill] sm:$0xff] %v13093_v36  ;;  %v3959_v56 = vmax.f32 %v12953_v21, 0.0  ;;  %v3962_v50 = vmax.f32 %v12958_v1, 0.0  ;;  %v3963_v51 = vmax.f32 %v12961_v23, 0.0  ;;  %v3964_v38 = vmax.f32 %v12964_v19, 0.0 }
 0x57f   : > { %16442 = vst [vmem:[#allocation205_spill] sm:$0xff] %v13096_v6  ;;  %16443 = vst [vmem:[#allocation26_spill] sm:$0xff] %v13099_v54  ;;  %v4014_v6 = vmul.f32 %v3960_v35, %v16446_v58  ;;  %v4015_v54 = vmul.f32 %v3961_v5, %v16447_v4  ;;  %v3965_v46 = vmax.f32 %v12967_v13, 0.0  ;;  %v3967_v2 = vmax.f32 %v12973_v39, 0.0  ;;  %v16452_v58 = vld [vmem:[#allocation107_spill] sm:$0xff]  ;;  %v16455_v47 = vld [vmem:[#allocation8_spill] sm:$0xff] }
 0x580   : > { %16444 = vst [vmem:[#allocation52_spill] sm:$0xff] %v13102_v33  ;;  %16445 = vst [vmem:[#allocation114_spill] sm:$0xff] %v13105_v62  ;;  %v3966_v33 = vmax.f32 %v12970_v41, 0.0  ;;  %v3968_v34 = vmax.f32 %v12976_v30, 0.0  ;;  %v3969_v21 = vmax.f32 %v12979_v52, 0.0  ;;  %v3970_v29 = vmax.f32 %v12982_v8, 0.0 }
 0x581   : > { %4076 = vst.msk [vmem:[#allocation2 + $0x28] sm:$0xff] %vm2553_vm8, %v4014_v6  ;;  %4077 = vst.msk [vmem:[#allocation2 + $0x30] sm:$0xff] %vm2553_vm8, %v4015_v54  ;;  %v3971_v61 = vmax.f32 %v12985_v18, 0.0  ;;  %v3972_v1 = vmax.f32 %v12988_v27, 0.0  ;;  %v3973_v23 = vmax.f32 %v12991_v26, 0.0  ;;  %v3974_v19 = vmax.f32 %v12994_v17, 0.0 }
 0x582   : > { %v3975_v13 = vmax.f32 %v12997_v25, 0.0  ;;  %v3976_v41 = vmax.f32 %v13000_v31, 0.0  ;;  %v3977_v39 = vmax.f32 %v13003_v48, 0.0  ;;  %v3978_v30 = vmax.f32 %v13006_v10, 0.0  ;;  %v16453_v52 = vld [vmem:[#allocation5_spill] sm:$0xff]  ;;  %v16456_v36 = vld [vmem:[#allocation111_spill] sm:$0xff] }
 0x583   : > { %v4016_v25 = vmul.f32 %v3962_v50, %v16452_v58  ;;  %v4017_v31 = vmul.f32 %v3963_v51, %v16453_v52  ;;  %v4018_v48 = vmul.f32 %v3964_v38, %v16454_v55  ;;  %v4019_v10 = vmul.f32 %v3965_v46, %v16455_v47  ;;  %v16457_v8 = vld [vmem:[#allocation13_spill] sm:$0xff]  ;;  %v16458_v54 = vld [vmem:[#allocation116_spill] sm:$0xff]  ;;  %v16460_v62 = vld [vmem:[#allocation115_spill] sm:$0xff] }
 0x584   : > { %v4020_v18 = vmul.f32 %v3966_v33, %v16456_v36  ;;  %v4022_v35 = vmul.f32 %v3968_v34, %v16458_v54  ;;  %v16459_v5 = vld [vmem:[#allocation12_spill] sm:$0xff]  ;;  %v16461_v50 = vld [vmem:[#allocation17_spill] sm:$0xff]  ;;  %v16464_v46 = vld [vmem:[#allocation119_spill] sm:$0xff] }
 0x585   : > { %4078 = vst.msk [vmem:[#allocation2 + $0x38] sm:$0xff] %vm2553_vm8, %v4016_v25  ;;  %v4025_v51 = vmul.f32 %v3971_v61, %v16461_v50  ;;  %v16462_v52 = vld [vmem:[#allocation120_spill] sm:$0xff]  ;;  %v4028_v36 = vmul.f32 %v3974_v19, %v16464_v46  ;;  %4080 = vst.msk [vmem:[#allocation2 + $0x48] sm:$0xff] %vm2553_vm8, %v4018_v48  ;;  %v16465_v33 = vld [vmem:[#allocation21_spill] sm:$0xff]  ;;  %v16470_v19 = vmax.f32 %v13009_v59, 0.0  ;;  %v16476_v48 = vmax.f32 %v13018_v63, 0.0 }
 0x586   : > { %v16448_v27 = vld [vmem:[#allocation205_spill] sm:$0xff]  ;;  %v4026_v55 = vmul.f32 %v3972_v1, %v16462_v52  ;;  %v16463_v38 = vld [vmem:[#allocation16_spill] sm:$0xff]  ;;  %4081 = vst.msk [vmem:[#allocation2 + $0x50] sm:$0xff] %vm2553_vm8, %v4019_v10  ;;  %4079 = vst.msk [vmem:[#allocation2 + $0x40] sm:$0xff] %vm2553_vm8, %v4017_v31  ;;  %v16482_v63 = vmax.f32 %v13027_v14, 0.0  ;;  %v16488_v14 = vmax.f32 %v13036_v3, 0.0 }
 0x587   : > { %v4027_v47 = vmul.f32 %v3973_v23, %v16463_v38  ;;  %4082 = vst.msk [vmem:[#allocation2 + $0x58] sm:$0xff] %vm2553_vm8, %v4020_v18  ;;  %v16468_v61 = vld [vmem:[#allocation25_spill] sm:$0xff]  ;;  %4084 = vst.msk [vmem:[#allocation2 + $0x68] sm:$0xff] %vm2553_vm8, %v4022_v35  ;;  %v16469_v23 = vld [vmem:[#allocation128_spill] sm:$0xff]  ;;  %v16492_v46 = vmax.f32 %v13042_v15, 0.0  ;;  %v16494_v3 = vmax.f32 %v13045_v53, 0.0 }
 0x588   : > { %v4187_v17 = vld [vmem:[#allocation2 + $0x28] sm:$0xff]  ;;  %v4188_v6 = vld [vmem:[#allocation2 + $0x30] sm:$0xff]  ;;  %v4032_v1 = vmul.f32 %v3978_v30, %v16468_v61  ;;  %v16473_v25 = vld [vmem:[#allocation29_spill] sm:$0xff]  ;;  %4087 = vst.msk [vmem:[#allocation2 + $0x80] sm:$0xff] %vm2553_vm8, %v4025_v51  ;;  %v16498_v15 = vmax.f32 %v13051_v22, 0.0  ;;  %v16500_v61 = vmax.f32 %v13054_v20, 0.0 }
 0x589   : > { %v7811_v26 = vpack.i.bf16 %v4188_v6, %v4187_v17  ;;  %v16451_v6 = vld [vmem:[#allocation108_spill] sm:$0xff]  ;;  %v4023_v17 = vmul.f32 %v3969_v21, %v16459_v5  ;;  %v16471_v18 = vld [vmem:[#allocation127_spill] sm:$0xff]  ;;  %4088 = vst.msk [vmem:[#allocation2 + $0x88] sm:$0xff] %vm2553_vm8, %v4026_v55  ;;  %4089 = vst.msk [vmem:[#allocation2 + $0x90] sm:$0xff] %vm2553_vm8, %v4027_v47  ;;  %v16504_v22 = vmax.f32 %v13060_v37, 0.0  ;;  %v16506_v20 = vmax.f32 %v13063_v24, 0.0 }
 0x58a   : > { %v4013_v4 = vmul.f32 %v3959_v56, %v16451_v6  ;;  %v4024_v56 = vmul.f32 %v3970_v29, %v16460_v62  ;;  %v4029_v62 = vmul.f32 %v3975_v13, %v16465_v33  ;;  %v16467_v21 = vld [vmem:[#allocation20_spill] sm:$0xff]  ;;  %v16472_v13 = vmax.f32 %v13012_v7, 0.0  ;;  %4090 = vst.msk [vmem:[#allocation2 + $0x98] sm:$0xff] %vm2553_vm8, %v4028_v36  ;;  %v16477_v59 = vld [vmem:[#allocation193_spill] sm:$0xff]  ;;  %v16481_v58 = vld [vmem:[#allocation91_spill] sm:$0xff] }
 0x58b   : > { %7812 = vrot.lane.b32.xlu1 %v7811_v26, %s8936_s17  ;;  %v4021_v26 = vmul.f32 %v3967_v2, %v16457_v8  ;;  %v16466_v2 = vld [vmem:[#allocation124_spill] sm:$0xff]  ;;  %v4031_v29 = vmul.f32 %v3977_v39, %v16467_v21  ;;  %4085 = vst.msk [vmem:[#allocation2 + $0x70] sm:$0xff] %vm2553_vm8, %v4023_v17  ;;  %v4033_v8 = vmul.f32 %v16470_v19, %v16469_v23  ;;  %v16474_v39 = vmax.f32 %v13015_v9, 0.0  ;;  %v16479_v35 = vld [vmem:[#allocation33_spill] sm:$0xff]  ;;  %v16483_v17 = vld [vmem:[#allocation235_spill] sm:$0xff] }
 0x58c   : > { %4075 = vst.msk [vmem:[#allocation2 + $0x20] sm:$0xff] %vm2553_vm8, %v4013_v4  ;;  %v4030_v34 = vmul.f32 %v3976_v41, %v16466_v2  ;;  %4086 = vst.msk [vmem:[#allocation2 + $0x78] sm:$0xff] %vm2553_vm8, %v4024_v56  ;;  %v4034_v41 = vmul.f32 %v16472_v13, %v16471_v18  ;;  %v16475_v31 = vld [vmem:[#allocation28_spill] sm:$0xff]  ;;  %v16478_v7 = vmax.f32 %v13021_v12, 0.0  ;;  %v16480_v9 = vmax.f32 %v13024_v45, 0.0  ;;  %v4185_v12 = vld [vmem:[#allocation2 + $0x18] sm:$0xff] }
 0x58d   : > { %4083 = vst.msk [vmem:[#allocation2 + $0x60] sm:$0xff] %vm2553_vm8, %v4021_v26  ;;  %v4035_v30 = vmul.f32 %v16474_v39, %v16473_v25  ;;  %v4036_v10 = vmul.f32 %v16476_v48, %v16475_v31  ;;  %v4039_v4 = vmul.f32 %v16482_v63, %v16481_v58  ;;  %v16484_v6 = vmax.f32 %v13030_v57, 0.0  ;;  %4091 = vst.msk [vmem:[#allocation2 + $0xa0] sm:$0xff] %vm2553_vm8, %v4029_v62  ;;  %v16485_v56 = vld [vmem:[#allocation195_spill] sm:$0xff]  ;;  %v16487_v51 = vld [vmem:[#allocation32_spill] sm:$0xff] }
 0x58e   : > { %v4037_v54 = vmul.f32 %v16478_v7, %v16477_v59  ;;  %v4038_v5 = vmul.f32 %v16480_v9, %v16479_v35  ;;  %4092 = vst.msk [vmem:[#allocation2 + $0xa8] sm:$0xff] %vm2553_vm8, %v4030_v34  ;;  %4093 = vst.msk [vmem:[#allocation2 + $0xb0] sm:$0xff] %vm2553_vm8, %v4031_v29  ;;  %v16486_v45 = vmax.f32 %v13033_v42, 0.0  ;;  %v4042_v52 = vmul.f32 %v16488_v14, %v16487_v51  ;;  %v16489_v55 = vld [vmem:[#allocation95_spill] sm:$0xff]  ;;  %v16491_v47 = vld [vmem:[#allocation237_spill] sm:$0xff] }
 0x58f   : > { %v4040_v26 = vmul.f32 %v16484_v6, %v16483_v17  ;;  %4094 = vst.msk [vmem:[#allocation2 + $0xb8] sm:$0xff] %vm2553_vm8, %v4032_v1  ;;  %v16490_v57 = vmax.f32 %v13039_v0, 0.0  ;;  %v4044_v36 = vmul.f32 %v16492_v46, %v16491_v47  ;;  %4095 = vst.msk [vmem:[#allocation2 + $0xc0] sm:$0xff] %vm2553_vm8, %v4033_v8  ;;  %v16493_v42 = vld [vmem:[#allocation194_spill] sm:$0xff]  ;;  %v16496_v0 = vmax.f32 %v13048_v28, 0.0  ;;  %v16497_v34 = vld [vmem:[#allocation140_spill] sm:$0xff] }
 0x590   : > { %v4041_v50 = vmul.f32 %v16486_v45, %v16485_v56  ;;  %4096 = vst.msk [vmem:[#allocation2 + $0xc8] sm:$0xff] %vm2553_vm8, %v4034_v41  ;;  %4097 = vst.msk [vmem:[#allocation2 + $0xd0] sm:$0xff] %vm2553_vm8, %v4035_v30  ;;  %v4045_v33 = vmul.f32 %v16494_v3, %v16493_v42  ;;  %v16495_v62 = vld [vmem:[#allocation86_spill] sm:$0xff]  ;;  %v4047_v21 = vmul.f32 %v16498_v15, %v16497_v34  ;;  %v16501_v23 = vld [vmem:[#allocation36_spill] sm:$0xff]  ;;  %v16502_v28 = vmax.f32 %v13057_v44, 0.0 }
 0x591   : > { %v4043_v38 = vmul.f32 %v16490_v57, %v16489_v55  ;;  %4098 = vst.msk [vmem:[#allocation2 + $0xd8] sm:$0xff] %vm2553_vm8, %v4036_v10  ;;  %v4046_v2 = vmul.f32 %v16496_v0, %v16495_v62  ;;  %v16499_v29 = vld [vmem:[#allocation10_spill] sm:$0xff]  ;;  %4099 = vst.msk [vmem:[#allocation2 + $0xe0] sm:$0xff] %vm2553_vm8, %v4037_v54  ;;  %v16503_v8 = vld [vmem:[#allocation239_spill] sm:$0xff]  ;;  %v16508_v39 = vmax.f32 %v13066_v60, 0.0  ;;  %v16510_v37 = vmax.f32 %v13069_v43, 0.0 }
 0x592   : > { %v4048_v1 = vmul.f32 %v16500_v61, %v16499_v29  ;;  %4100 = vst.msk [vmem:[#allocation2 + $0xe8] sm:$0xff] %vm2553_vm8, %v4038_v5  ;;  %4101 = vst.msk [vmem:[#allocation2 + $0xf0] sm:$0xff] %vm2553_vm8, %v4039_v4  ;;  %v4049_v19 = vmul.f32 %v16502_v28, %v16501_v23  ;;  %v4050_v18 = vmul.f32 %v16504_v22, %v16503_v8  ;;  %v16505_v13 = vld [vmem:[#allocation196_spill] sm:$0xff]  ;;  %v16507_v25 = vld [vmem:[#allocation90_spill] sm:$0xff]  ;;  %v16512_v24 = vmax.f32 %v13072_v16, 0.0 }
 0x593   : > { %4102 = vst.msk [vmem:[#allocation2 + $0xf8] sm:$0xff] %vm2553_vm8, %v4040_v26  ;;  %v4186_v53 = vld [vmem:[#allocation2 + $0x20] sm:$0xff]  ;;  %v4051_v41 = vmul.f32 %v16506_v20, %v16505_v13  ;;  %v4052_v30 = vmul.f32 %v16508_v39, %v16507_v25  ;;  %4103 = vst.msk [vmem:[#allocation2 + $0x100] sm:$0xff] %vm2553_vm8, %v4041_v50  ;;  %v16509_v31 = vld [vmem:[#allocation144_spill] sm:$0xff]  ;;  %v16514_v60 = vmax.f32 %v13075_v49, 0.0  ;;  %v16516_v16 = vmax.f32 %v13078_v40, 0.0 }
 0x594   : > { %4104 = vst.msk [vmem:[#allocation2 + $0x108] sm:$0xff] %vm2553_vm8, %v4042_v52  ;;  %4105 = vst.msk [vmem:[#allocation2 + $0x110] sm:$0xff] %vm2553_vm8, %v4043_v38  ;;  %v7806_v44 = vpack.i.bf16 %v4186_v53, %v4185_v12  ;;  %v4053_v48 = vmul.f32 %v16510_v37, %v16509_v31  ;;  %v16511_v10 = vld [vmem:[#allocation14_spill] sm:$0xff]  ;;  %v16513_v7 = vld [vmem:[#allocation40_spill] sm:$0xff]  ;;  %v16518_v49 = vmax.f32 %v13081_v32, 0.0  ;;  %v16520_v17 = vmax.f32 %v13084_v11, 0.0 }
 0x595   : > { %4106 = vst.msk [vmem:[#allocation2 + $0x118] sm:$0xff] %vm2553_vm8, %v4044_v36  ;;  %v4054_v59 = vmul.f32 %v16512_v24, %v16511_v10  ;;  %v4055_v54 = vmul.f32 %v16514_v60, %v16513_v7  ;;  %v13280_v35 = vld [vmem:[#allocation2 + $0x48] sm:$0xff]  ;;  %v13282_v9 = vld [vmem:[#allocation2 + $0x50] sm:$0xff]  ;;  %4107 = vst.msk [vmem:[#allocation2 + $0x120] sm:$0xff] %vm2553_vm8, %v4045_v33  ;;  %v16531_v46 = vmax.f32 %v16448_v27, 0.0  ;;  %v8939_v25 = vmov 0.0|0.0  }
 0x596   : > { %4108 = vst.msk [vmem:[#allocation2 + $0x128] sm:$0xff] %vm2553_vm8, %v4046_v2  ;;  %4109 = vst.msk [vmem:[#allocation2 + $0x130] sm:$0xff] %vm2553_vm8, %v4047_v21  ;;  %v16515_v43 = vld [vmem:[#allocation241_spill] sm:$0xff]  ;;  %v16517_v58 = vld [vmem:[#allocation198_spill] sm:$0xff]  ;;  %7807 = vrot.lane.b32.xlu0 %v7806_v44, %s8936_s17  ;;  %v7821_v23 = vpack.i.bf16 %v13282_v9, %v13280_v35  ;;  %7743 = vmatprep.subr.bf16.mxu1 %v8939_v25 }
 0x597   : > { %4110 = vst.msk [vmem:[#allocation2 + $0x138] sm:$0xff] %vm2553_vm8, %v4048_v1  ;;  %v4056_v5 = vmul.f32 %v16516_v16, %v16515_v43  ;;  %v4057_v63 = vmul.f32 %v16518_v49, %v16517_v58  ;;  %v16519_v4 = vld [vmem:[#allocation94_spill] sm:$0xff]  ;;  %v16521_v26 = vld [vmem:[#allocation148_spill] sm:$0xff]  ;;  %v16522_v12 = vld [vmem:[#allocation113_spill] sm:$0xff]  ;;  %7687 = vmatprep.subr.bf16.mxu0 %v8939_v25 }
 0x598   : > { %v4058_v6 = vmul.f32 %v16520_v17, %v16519_v4  ;;  %v16523_v56 = vmax.f32 %v16522_v12, 0.0  ;;  %4111 = vst.msk [vmem:[#allocation2 + $0x140] sm:$0xff] %vm2553_vm8, %v4049_v19  ;;  %4112 = vst.msk [vmem:[#allocation2 + $0x148] sm:$0xff] %vm2553_vm8, %v4050_v18  ;;  %v13304_v40 = vld [vmem:[#allocation2 + $0x38] sm:$0xff]  ;;  %v13306_v32 = vld [vmem:[#allocation2 + $0x40] sm:$0xff]  ;;  %7822 = vrot.lane.b32.xlu1 %v7821_v23, %s8936_s17 }
 0x599   : > { %4113 = vst.msk [vmem:[#allocation2 + $0x150] sm:$0xff] %vm2553_vm8, %v4051_v41  ;;  %4114 = vst.msk [vmem:[#allocation2 + $0x158] sm:$0xff] %vm2553_vm8, %v4052_v30  ;;  %v16524_v11 = vld [vmem:[#allocation201_spill] sm:$0xff]  ;;  %v16525_v50 = vld [vmem:[#allocation156_spill] sm:$0xff]  ;;  %v7816_v19 = vpack.i.bf16 %v13306_v32, %v13304_v40 }
 0x59a   : > { %v4059_v45 = vmul.f32 %v16523_v56, %v16521_v26  ;;  %v16526_v51 = vmax.f32 %v16525_v50, 0.0  ;;  %v16527_v52 = vld [vmem:[#allocation18_spill] sm:$0xff]  ;;  %v16528_v55 = vld [vmem:[#allocation244_spill] sm:$0xff]  ;;  %4115 = vst.msk [vmem:[#allocation2 + $0x160] sm:$0xff] %vm2553_vm8, %v4053_v48  ;;  %4116 = vst.msk [vmem:[#allocation2 + $0x168] sm:$0xff] %vm2553_vm8, %v4054_v59 }
 0x59b   : > { %v16529_v57 = vmax.f32 %v16528_v55, 0.0  ;;  %v16530_v47 = vld [vmem:[#allocation44_spill] sm:$0xff]  ;;  %v16532_v42 = vld [vmem:[#allocation106_spill] sm:$0xff]  ;;  %4117 = vst.msk [vmem:[#allocation2 + $0x170] sm:$0xff] %vm2553_vm8, %v4055_v54  ;;  %v5782_v2 = vld [vmem:[%s15360_s7 + $0x8] sm:$0xff]  ;;  %7817 = vrot.lane.b32.xlu0 %v7816_v19, %s8936_s17 }
 0x59c   : > { %v4060_v14 = vmul.f32 %v16526_v51, %v16524_v11  ;;  %v4062_v36 = vmul.f32 %v16531_v46, %v16530_v47  ;;  %v16533_v3 = vld [vmem:[#allocation26_spill] sm:$0xff]  ;;  %v16535_v27 = vld [vmem:[#allocation147_spill] sm:$0xff]  ;;  %v16536_v34 = vld [vmem:[#allocation52_spill] sm:$0xff]  ;;  %4118 = vst.msk [vmem:[#allocation2 + $0x178] sm:$0xff] %vm2553_vm8, %v4056_v5 }
 0x59d   : > { %v4061_v38 = vmul.f32 %v16529_v57, %v16527_v52  ;;  %v16534_v33 = vmax.f32 %v16533_v3, 0.0  ;;  %v5781_v0 = vld [vmem:[%s15360_s7] sm:$0xff]  ;;  %v16537_v15 = vmax.f32 %v16536_v34, 0.0  ;;  %v16538_v29 = vld [vmem:[#allocation243_spill] sm:$0xff]  ;;  %4119 = vst.msk [vmem:[#allocation2 + $0x180] sm:$0xff] %vm2553_vm8, %v4057_v63  ;;  %4120 = vst.msk [vmem:[#allocation2 + $0x188] sm:$0xff] %vm2553_vm8, %v4058_v6 }
 0x59e   : > { %v16539_v61 = vld [vmem:[#allocation114_spill] sm:$0xff]  ;;  %4121 = vst.msk [vmem:[#allocation2 + $0x190] sm:$0xff] %vm2553_vm8, %v4059_v45  ;;  %v5783_v28 = vld [vmem:[%s15360_s7 + $0x10] sm:$0xff]  ;;  %4122 = vst.msk [vmem:[#allocation2 + $0x198] sm:$0xff] %vm2553_vm8, %v4060_v14  ;;  %v7688_v41 = vpack.c.bf16 %v5782_v2, %v5781_v0 }
 0x59f   : > { %v4063_v62 = vmul.f32 %v16534_v33, %v16532_v42  ;;  %v4064_v21 = vmul.f32 %v16537_v15, %v16535_v27  ;;  %v16540_v1 = vmax.f32 %v16539_v61, 0.0  ;;  %4123 = vst.msk [vmem:[#allocation2 + $0x1a0] sm:$0xff] %vm2553_vm8, %v4061_v38  ;;  %4124 = vst.msk [vmem:[#allocation2 + $0x1a8] sm:$0xff] %vm2553_vm8, %v4062_v36  ;;  %v13351_v8 = vld [vmem:[#allocation2 + $0x68] sm:$0xff]  ;;  %v13353_v22 = vld [vmem:[#allocation2 + $0x70] sm:$0xff] }
 0x5a0   : > { %v5784_v18 = vld [vmem:[%s15360_s7 + $0x18] sm:$0xff]  ;;  %v13363_v20 = vld [vmem:[#allocation2 + $0x60] sm:$0xff]  ;;  %v7831_v39 = vpack.i.bf16 %v13353_v22, %v13351_v8  ;;  %7759 = vmatpush1.bf16.msra.mxu1 %v7688_v41  ;;  %v4199_v37 = vld [vmem:[#allocation2 + $0x88] sm:$0xff]  ;;  %7689 = vmatpush1.bf16.msra.mxu0 %v7688_v41 }
 0x5a1   : > { %v4066_v53 = vmul.f32 %v16540_v1, %v16538_v29  ;;  %4125 = vst.msk [vmem:[#allocation2 + $0x1b0] sm:$0xff] %vm2553_vm8, %v4063_v62  ;;  %4126 = vst.msk [vmem:[#allocation2 + $0x1b8] sm:$0xff] %vm2553_vm8, %v4064_v21  ;;  %v13361_v13 = vld [vmem:[#allocation2 + $0x58] sm:$0xff]  ;;  %v7691_v30 = vpack.c.bf16 %v5784_v18, %v5783_v28  ;;  %v5785_v44 = vld [vmem:[%s15360_s7 + $0x20] sm:$0xff]  ;;  %7744 = vmatprep.subr.bf16.mxu1 %v8939_v25  ;;  %7690 = vmatprep.subr.bf16.mxu0 %v8939_v25 }
 0x5a2   : > { %v7826_v31 = vpack.i.bf16 %v13363_v20, %v13361_v13  ;;  %v4200_v48 = vld [vmem:[#allocation2 + $0x90] sm:$0xff]  ;;  %v5786_v10 = vld [vmem:[%s15360_s7 + $0x28] sm:$0xff]  ;;  %7832 = vrot.lane.b32.xlu1 %v7831_v39, %s8936_s17  ;;  %v4197_v24 = vld [vmem:[#allocation2 + $0x78] sm:$0xff] }
 0x5a3   : > { %4128 = vst.msk [vmem:[#allocation2 + $0x1c8] sm:$0xff] %vm2553_vm8, %v4066_v53  ;;  %v4198_v59 = vld [vmem:[#allocation2 + $0x80] sm:$0xff]  ;;  %v7841_v7 = vpack.i.bf16 %v4200_v48, %v4199_v37  ;;  %v7694_v60 = vpack.c.bf16 %v5786_v10, %v5785_v44  ;;  %v5787_v54 = vld [vmem:[%s15360_s7 + $0x30] sm:$0xff]  ;;  %v4203_v16 = vld [vmem:[#allocation2 + $0xa8] sm:$0xff] }
 0x5a4   : > { %7827 = vrot.lane.b32.xlu0 %v7826_v31, %s8936_s17  ;;  %7760 = vmatpush1.bf16.msra.mxu1 %v7691_v30  ;;  %v7836_v43 = vpack.i.bf16 %v4198_v59, %v4197_v24  ;;  %v4204_v5 = vld [vmem:[#allocation2 + $0xb0] sm:$0xff]  ;;  %v5788_v58 = vld [vmem:[%s15360_s7 + $0x38] sm:$0xff]  ;;  %v4202_v63 = vld [vmem:[#allocation2 + $0xa0] sm:$0xff] }
 0x5a5   : > { %7745 = vmatprep.subr.bf16.mxu1 %v8939_v25  ;;  %v4201_v49 = vld [vmem:[#allocation2 + $0x98] sm:$0xff]  ;;  %7692 = vmatpush1.bf16.msra.mxu0 %v7691_v30  ;;  %v7851_v4 = vpack.i.bf16 %v4204_v5, %v4203_v16  ;;  %v7697_v17 = vpack.c.bf16 %v5788_v58, %v5787_v54  ;;  %v5789_v6 = vld [vmem:[%s15360_s7 + $0x40] sm:$0xff]  ;;  %v4207_v12 = vld [vmem:[#allocation2 + $0xc8] sm:$0xff] }
 0x5a6   : > { %7842 = vrot.lane.b32.xlu1 %v7841_v7, %s8936_s17  ;;  %7693 = vmatprep.subr.bf16.mxu0 %v8939_v25  ;;  %v7846_v26 = vpack.i.bf16 %v4202_v63, %v4201_v49  ;;  %v4208_v56 = vld [vmem:[#allocation2 + $0xd0] sm:$0xff]  ;;  %v5790_v45 = vld [vmem:[%s15360_s7 + $0x48] sm:$0xff]  ;;  %v4205_v11 = vld [vmem:[#allocation2 + $0xb8] sm:$0xff] }
 0x5a7   : > { %v4206_v50 = vld [vmem:[#allocation2 + $0xc0] sm:$0xff]  ;;  %v7861_v51 = vpack.i.bf16 %v4208_v56, %v4207_v12  ;;  %v7700_v14 = vpack.c.bf16 %v5790_v45, %v5789_v6  ;;  %v5791_v52 = vld [vmem:[%s15360_s7 + $0x50] sm:$0xff]  ;;  %v4211_v57 = vld [vmem:[#allocation2 + $0xe8] sm:$0xff] }
 0x5a8   : > { %7837 = vrot.lane.b32.xlu0 %v7836_v43, %s8936_s17  ;;  %7761 = vmatpush1.bf16.msra.mxu1 %v7694_v60  ;;  %v7856_v55 = vpack.i.bf16 %v4206_v50, %v4205_v11  ;;  %v4212_v38 = vld [vmem:[#allocation2 + $0xf0] sm:$0xff]  ;;  %v5792_v47 = vld [vmem:[%s15360_s7 + $0x58] sm:$0xff]  ;;  %v4210_v36 = vld [vmem:[#allocation2 + $0xe0] sm:$0xff] }
 0x5a9   : > { %7746 = vmatprep.subr.bf16.mxu1 %v8939_v25  ;;  %7695 = vmatpush1.bf16.msra.mxu0 %v7694_v60  ;;  %v4209_v46 = vld [vmem:[#allocation2 + $0xd8] sm:$0xff]  ;;  %v7871_v42 = vpack.i.bf16 %v4212_v38, %v4211_v57  ;;  %v7703_v3 = vpack.c.bf16 %v5792_v47, %v5791_v52  ;;  %v5793_v33 = vld [vmem:[%s15360_s7 + $0x60] sm:$0xff]  ;;  %v4215_v0 = vld [vmem:[#allocation2 + $0x108] sm:$0xff] }
 0x5aa   : > { %7852 = vrot.lane.b32.xlu1 %v7851_v4, %s8936_s17  ;;  %7696 = vmatprep.subr.bf16.mxu0 %v8939_v25  ;;  %v7866_v62 = vpack.i.bf16 %v4210_v36, %v4209_v46  ;;  %v4216_v2 = vld [vmem:[#allocation2 + $0x110] sm:$0xff]  ;;  %v5794_v27 = vld [vmem:[%s15360_s7 + $0x68] sm:$0xff]  ;;  %v4213_v34 = vld [vmem:[#allocation2 + $0xf8] sm:$0xff] }
 0x5ab   : > { %v4214_v15 = vld [vmem:[#allocation2 + $0x100] sm:$0xff]  ;;  %v7881_v21 = vpack.i.bf16 %v4216_v2, %v4215_v0  ;;  %v7706_v29 = vpack.c.bf16 %v5794_v27, %v5793_v33  ;;  %v13421_v1 = vld [vmem:[#allocation2 + $0x128] sm:$0xff]  ;;  %v13423_v53 = vld [vmem:[#allocation2 + $0x130] sm:$0xff] }
 0x5ac   : > { %7847 = vrot.lane.b32.xlu0 %v7846_v26, %s8936_s17  ;;  %7762 = vmatpush1.bf16.msra.mxu1 %v7697_v17  ;;  %v7876_v61 = vpack.i.bf16 %v4214_v15, %v4213_v34  ;;  %v13425_v23 = vld [vmem:[#allocation2 + $0x118] sm:$0xff]  ;;  %v13430_v28 = vld [vmem:[#allocation2 + $0x120] sm:$0xff]  ;;  %v5795_v19 = vld [vmem:[%s15360_s7 + $0x70] sm:$0xff]  ;;  %v7891_v41 = vpack.i.bf16 %v13423_v53, %v13421_v1 }
 0x5ad   : > { %7747 = vmatprep.subr.bf16.mxu1 %v8939_v25  ;;  %7698 = vmatpush1.bf16.msra.mxu0 %v7697_v17  ;;  %v5796_v18 = vld [vmem:[%s15360_s7 + $0x78] sm:$0xff]  ;;  %v13441_v39 = vld [vmem:[#allocation2 + $0x148] sm:$0xff]  ;;  %v7886_v44 = vpack.i.bf16 %v13430_v28, %v13425_v23  ;;  %v13445_v31 = vld [vmem:[#allocation2 + $0x150] sm:$0xff] }
 0x5ae   : > { %7862 = vrot.lane.b32.xlu1 %v7861_v51, %s8936_s17  ;;  %7699 = vmatprep.subr.bf16.mxu0 %v8939_v25  ;;  %v7709_v30 = vpack.c.bf16 %v5796_v18, %v5795_v19  ;;  %v5797_v37 = vld [vmem:[%s15360_s7 + $0x80] sm:$0xff]  ;;  %v5798_v48 = vld [vmem:[%s15360_s7 + $0x88] sm:$0xff]  ;;  %v13456_v10 = vld [vmem:[#allocation2 + $0x138] sm:$0xff]  ;;  %v7901_v59 = vpack.i.bf16 %v13445_v31, %v13441_v39 }
 0x5af   : > { %v13458_v24 = vld [vmem:[#allocation2 + $0x140] sm:$0xff]  ;;  %v7712_v60 = vpack.c.bf16 %v5798_v48, %v5797_v37  ;;  %v5799_v16 = vld [vmem:[%s15360_s7 + $0x90] sm:$0xff]  ;;  %v5800_v5 = vld [vmem:[%s15360_s7 + $0x98] sm:$0xff] }
 0x5b0   : > { %7857 = vrot.lane.b32.xlu0 %v7856_v55, %s8936_s17  ;;  %7763 = vmatpush1.bf16.msra.mxu1 %v7700_v14  ;;  %v13463_v7 = vld [vmem:[#allocation2 + $0x119] sm:$0xff]  ;;  %v7896_v54 = vpack.i.bf16 %v13458_v24, %v13456_v10  ;;  %v13467_v43 = vld [vmem:[#allocation2 + $0x121] sm:$0xff]  ;;  %v7715_v4 = vpack.c.bf16 %v5800_v5, %v5799_v16  ;;  %v13498_v56 = vld [vmem:[#allocation2 + $0x12f] sm:$0xff] }
 0x5b1   : > { %7748 = vmatprep.subr.bf16.mxu1 %v8939_v25  ;;  %7701 = vmatpush1.bf16.msra.mxu0 %v7700_v14  ;;  %v13478_v58 = vld [vmem:[#allocation2 + $0x158] sm:$0xff]  ;;  %v13480_v49 = vld [vmem:[#allocation2 + $0x160] sm:$0xff]  ;;  %v7911_v63 = vpack.i.bf16 %v13467_v43, %v13463_v7  ;;  %v5802_v12 = vld [vmem:[%s15360_s7 + $0xa8] sm:$0xff] }
 0x5b2   : > { %7872 = vrot.lane.b32.xlu1 %v7871_v42, %s8936_s17  ;;  %7702 = vmatprep.subr.bf16.mxu0 %v8939_v25  ;;  %v7906_v17 = vpack.i.bf16 %v13480_v49, %v13478_v58  ;;  %v13487_v6 = vld [vmem:[#allocation2 + $0x117] sm:$0xff]  ;;  %v5801_v26 = vld [vmem:[%s15360_s7 + $0xa0] sm:$0xff]  ;;  %v4269_v38 = vld [vmem:[#allocation2 + $0x109] sm:$0xff] }
 0x5b3   : > { %v4268_v45 = vld [vmem:[#allocation2 + $0x101] sm:$0xff]  ;;  %v7921_v11 = vpack.i.bf16 %v13487_v6, %v13423_v53  ;;  %v7718_v50 = vpack.c.bf16 %v5802_v12, %v5801_v26  ;;  %v5803_v52 = vld [vmem:[%s15360_s7 + $0xb0] sm:$0xff]  ;;  %v5804_v55 = vld [vmem:[%s15360_s7 + $0xb8] sm:$0xff] }
 0x5b4   : > { %7867 = vrot.lane.b32.xlu0 %v7866_v62, %s8936_s17  ;;  %7764 = vmatpush1.bf16.msra.mxu1 %v7703_v3  ;;  %v7916_v51 = vpack.i.bf16 %v4268_v45, %v13498_v56  ;;  %v13504_v14 = vld [vmem:[#allocation2 + $0x11f] sm:$0xff]  ;;  %v13515_v57 = vld [vmem:[#allocation2 + $0x137] sm:$0xff]  ;;  %v7721_v36 = vpack.c.bf16 %v5804_v55, %v5803_v52  ;;  %v5806_v62 = vld [vmem:[%s15360_s7 + $0xc8] sm:$0xff] }
 0x5b5   : > { %7749 = vmatprep.subr.bf16.mxu1 %v8939_v25  ;;  %7704 = vmatpush1.bf16.msra.mxu0 %v7703_v3  ;;  %v7931_v47 = vpack.i.bf16 %v13504_v14, %v13456_v10  ;;  %v13520_v46 = vld [vmem:[#allocation2 + $0x13f] sm:$0xff]  ;;  %v7926_v42 = vpack.i.bf16 %v4269_v38, %v13515_v57  ;;  %v4270_v3 = vld [vmem:[#allocation2 + $0x111] sm:$0xff]  ;;  %v4273_v0 = vld [vmem:[#allocation2 + $0x129] sm:$0xff] }
 0x5b6   : > { %7882 = vrot.lane.b32.xlu1 %v7881_v21, %s8936_s17  ;;  %7705 = vmatprep.subr.bf16.mxu0 %v8939_v25  ;;  %v5805_v33 = vld [vmem:[%s15360_s7 + $0xc0] sm:$0xff]  ;;  %v13532_v2 = vld [vmem:[#allocation2 + $0x131] sm:$0xff]  ;;  %v7941_v27 = vpack.i.bf16 %v4270_v3, %v13520_v46  ;;  %v7981_v45 = vpack.i.bf16 %v13520_v46, %v13478_v58  ;;  %v13607_v3 = vld [vmem:[#allocation2 + $0x168] sm:$0xff] }
 0x5b7   : > { %v7724_v34 = vpack.c.bf16 %v5806_v62, %v5805_v33  ;;  %v7936_v15 = vpack.i.bf16 %v13532_v2, %v4273_v0  ;;  %v13537_v21 = vld [vmem:[#allocation2 + $0x147] sm:$0xff]  ;;  %v5811_v16 = vld [vmem:[%s15360_s7 + $0xf0] sm:$0xff]  ;;  %v5812_v5 = vld [vmem:[%s15360_s7 + $0xf8] sm:$0xff]  ;;  %16545 = vst [vmem:[#allocation57_spill] sm:$0xff] %v13607_v3 }
 0x5b8   : > { %7877 = vrot.lane.b32.xlu0 %v7876_v61, %s8936_s17  ;;  %7765 = vmatpush1.bf16.msra.mxu1 %v7706_v29  ;;  %16541 = vst [vmem:[#allocation155_spill] sm:$0xff] %v13537_v21  ;;  %v5808_v61 = vld [vmem:[%s15360_s7 + $0xd8] sm:$0xff]  ;;  %v13548_v19 = vld [vmem:[#allocation2 + $0x127] sm:$0xff]  ;;  %v7951_v18 = vpack.i.bf16 %v13463_v7, %v13537_v21 }
 0x5b9   : > { %7750 = vmatprep.subr.bf16.mxu1 %v8939_v25  ;;  %7707 = vmatpush1.bf16.msra.mxu0 %v7706_v29  ;;  %v5807_v29 = vld [vmem:[%s15360_s7 + $0xd0] sm:$0xff]  ;;  %v13555_v37 = vld [vmem:[#allocation2 + $0x141] sm:$0xff] }
 0x5ba   : > { %7892 = vrot.lane.b32.xlu1 %v7891_v41, %s8936_s17  ;;  %7708 = vmatprep.subr.bf16.mxu0 %v8939_v25  ;;  %v4275_v41 = vld [vmem:[#allocation2 + $0x139] sm:$0xff]  ;;  %v4173_v38 = vld [vmem:[#allocation2 + $0x167] sm:$0xff] }
 0x5bb   : > { %v5809_v48 = vld [vmem:[%s15360_s7 + $0xe0] sm:$0xff]  ;;  %v7961_v7 = vpack.i.bf16 %v13555_v37, %v4275_v41  ;;  %v13589_v12 = vld [vmem:[#allocation2 + $0x157] sm:$0xff] }
 0x5bc   : > { %7887 = vrot.lane.b32.xlu0 %v7886_v44, %s8936_s17  ;;  %7766 = vmatpush1.bf16.msra.mxu1 %v7709_v30  ;;  %v7946_v44 = vpack.i.bf16 %v13548_v19, %v13458_v24  ;;  %16543 = vst [vmem:[#allocation204_spill] sm:$0xff] %v13589_v12 }
 0x5bd   : > { %7751 = vmatprep.subr.bf16.mxu1 %v8939_v25  ;;  %7710 = vmatpush1.bf16.msra.mxu0 %v7709_v30  ;;  %v7727_v30 = vpack.c.bf16 %v5808_v61, %v5807_v29  ;;  %v4175_v29 = vld [vmem:[#allocation2 + $0x177] sm:$0xff] }
 0x5be   : > { %7902 = vrot.lane.b32.xlu1 %v7901_v59, %s8936_s17  ;;  %7711 = vmatprep.subr.bf16.mxu0 %v8939_v25  ;;  %v5810_v59 = vld [vmem:[%s15360_s7 + $0xe8] sm:$0xff] }
 0x5c0   : > { %7897 = vrot.lane.b32.xlu0 %v7896_v54, %s8936_s17  ;;  %7767 = vmatpush1.bf16.msra.mxu1 %v7712_v60  ;;  %v7956_v54 = vpack.i.bf16 %v13498_v56, %v13441_v39 }
 0x5c1   : > { %7752 = vmatprep.subr.bf16.mxu1 %v8939_v25  ;;  %7713 = vmatpush1.bf16.msra.mxu0 %v7712_v60  ;;  %v7730_v60 = vpack.c.bf16 %v5810_v59, %v5809_v48  ;;  %v13633_v59 = vld [vmem:[#allocation2 + $0x21] sm:$0xff] }
 0x5c2   : > { %7912 = vrot.lane.b32.xlu1 %v7911_v63, %s8936_s17  ;;  %7714 = vmatprep.subr.bf16.mxu0 %v8939_v25  ;;  %v13579_v63 = vld [vmem:[#allocation2 + $0x14f] sm:$0xff] }
 0x5c3   : > { %16542 = vst [vmem:[#allocation247_spill] sm:$0xff] %v13579_v63  ;;  %v7966_v26 = vpack.i.bf16 %v13467_v43, %v13579_v63  ;;  %v4277_v43 = vld [vmem:[#allocation2 + $0x149] sm:$0xff]  ;;  %v8006_v62 = vpack.i.bf16 %v13579_v63, %v13607_v3 }
 0x5c4   : > { %7907 = vrot.lane.b32.xlu0 %v7906_v17, %s8936_s17  ;;  %7768 = vmatpush1.bf16.msra.mxu1 %v7715_v4  ;;  %v7733_v17 = vpack.c.bf16 %v5812_v5, %v5811_v16  ;;  %v13644_v5 = vld [vmem:[#allocation2 + $0x37] sm:$0xff] }
 0x5c5   : > { %7753 = vmatprep.subr.bf16.mxu1 %v8939_v25  ;;  %7716 = vmatpush1.bf16.msra.mxu0 %v7715_v4  ;;  %v7971_v4 = vpack.i.bf16 %v13515_v57, %v13445_v31 }
 0x5c6   : > { %7922 = vrot.lane.b32.xlu1 %v7921_v11, %s8940_s29  ;;  %7717 = vmatprep.subr.bf16.mxu0 %v8939_v25  ;;  %v7976_v11 = vpack.i.bf16 %v4273_v0, %v13589_v12  ;;  %v13612_v0 = vld [vmem:[#allocation2 + $0x170] sm:$0xff] }
 0x5c7   : > { %16546 = vst [vmem:[#allocation117_spill] sm:$0xff] %v13612_v0 }
 0x5c8   : > { %7917 = vrot.lane.b32.xlu0 %v7916_v51, %s8941_s14  ;;  %7769 = vmatpush1.bf16.msra.mxu1 %v7718_v50  ;;  %v4278_v51 = vld [vmem:[#allocation2 + $0x151] sm:$0xff] }
 0x5c9   : > { %7754 = vmatprep.subr.bf16.mxu1 %v8939_v25  ;;  %7719 = vmatpush1.bf16.msra.mxu0 %v7718_v50  ;;  %v13595_v50 = vld [vmem:[#allocation2 + $0x15f] sm:$0xff]  ;;  %v7986_v55 = vpack.i.bf16 %v4278_v51, %v4277_v43 }
 0x5ca   : > { %7932 = vrot.lane.b32.xlu1 %v7931_v47, %s8940_s29  ;;  %7720 = vmatprep.subr.bf16.mxu0 %v8939_v25  ;;  %16544 = vst [vmem:[#allocation31_spill] sm:$0xff] %v13595_v50  ;;  %v7991_v52 = vpack.i.bf16 %v13532_v2, %v13595_v50  ;;  %v8001_v47 = vpack.i.bf16 %v4275_v41, %v4173_v38  ;;  %v4174_v2 = vld [vmem:[#allocation2 + $0x16f] sm:$0xff]  ;;  %v13625_v41 = vld [vmem:[#allocation2 + $0x17f] sm:$0xff] }
 0x5cc   : > { %7927 = vrot.lane.b32.xlu0 %v7926_v42, %s8941_s14  ;;  %7770 = vmatpush1.bf16.msra.mxu1 %v7721_v36  ;;  %v4280_v42 = vld [vmem:[#allocation2 + $0x161] sm:$0xff] }
 0x5cd   : > { %7755 = vmatprep.subr.bf16.mxu1 %v8939_v25  ;;  %7722 = vmatpush1.bf16.msra.mxu0 %v7721_v36  ;;  %v4279_v36 = vld [vmem:[#allocation2 + $0x159] sm:$0xff] }
 0x5ce   : > { %7942 = vrot.lane.b32.xlu1 %v7941_v27, %s8941_s14  ;;  %7723 = vmatprep.subr.bf16.mxu0 %v8939_v25  ;;  %v8011_v33 = vpack.i.bf16 %v4280_v42, %v4279_v36  ;;  %v8021_v27 = vpack.i.bf16 %v13589_v12, %v13612_v0 }
 0x5d0   : > { %7937 = vrot.lane.b32.xlu0 %v7936_v15, %s8936_s17  ;;  %7771 = vmatpush1.bf16.msra.mxu1 %v7724_v34  ;;  %v13619_v15 = vld [vmem:[#allocation2 + $0x178] sm:$0xff] }
 0x5d1   : > { %7756 = vmatprep.subr.bf16.mxu1 %v8939_v25  ;;  %7725 = vmatpush1.bf16.msra.mxu0 %v7724_v34  ;;  %v8016_v34 = vpack.i.bf16 %v13555_v37, %v4174_v2  ;;  %16547 = vst [vmem:[#allocation160_spill] sm:$0xff] %v13619_v15  ;;  %v8031_v61 = vpack.i.bf16 %v13595_v50, %v13619_v15 }
 0x5d2   : > { %7952 = vrot.lane.b32.xlu1 %v7951_v18, %s8941_s14  ;;  %7726 = vmatprep.subr.bf16.mxu0 %v8939_v25  ;;  %v8026_v18 = vpack.i.bf16 %v4277_v43, %v4175_v29  ;;  %v8041_v37 = vpack.i.bf16 %v4278_v51, %v13625_v41  ;;  %v13653_v43 = vld [vmem:[#allocation2 + $0x188] sm:$0xff] }
 0x5d4   : > { %7947 = vrot.lane.b32.xlu0 %v7946_v44, %s8940_s29  ;;  %7772 = vmatpush1.bf16.msra.mxu1 %v7727_v30  ;;  %v13628_v44 = vld [vmem:[#allocation2 + $0x171] sm:$0xff] }
 0x5d5   : > { %7757 = vmatprep.subr.bf16.mxu1 %v8939_v25  ;;  %7728 = vmatpush1.bf16.msra.mxu0 %v7727_v30  ;;  %v4281_v30 = vld [vmem:[#allocation2 + $0x169] sm:$0xff] }
 0x5d6   : > { %7962 = vrot.lane.b32.xlu1 %v7961_v7, %s8936_s17  ;;  %7729 = vmatprep.subr.bf16.mxu0 %v8939_v25  ;;  %v8036_v48 = vpack.i.bf16 %v13628_v44, %v4281_v30  ;;  %v13635_v7 = vld [vmem:[#allocation2 + $0x179] sm:$0xff] }
 0x5d8   : > { %7957 = vrot.lane.b32.xlu0 %v7956_v54, %s8940_s29  ;;  %7773 = vmatpush1.bf16.msra.mxu1 %v7730_v60  ;;  %v8051_v54 = vpack.i.bf16 %v13635_v7, %v13633_v59 }
 0x5d9   : > { %7758 = vmatprep.subr.bf16.mxu1 %v8939_v25  ;;  %7731 = vmatpush1.bf16.msra.mxu0 %v7730_v60  ;;  %v13638_v60 = vld [vmem:[#allocation2 + $0x180] sm:$0xff] }
 0x5da   : > { %7972 = vrot.lane.b32.xlu1 %v7971_v4, %s8940_s29  ;;  %7732 = vmatprep.subr.bf16.mxu0 %v8939_v25  ;;  %v7996_v25 = vpack.i.bf16 %v13537_v21, %v13480_v49  ;;  %v8046_v16 = vpack.i.bf16 %v4173_v38, %v13638_v60  ;;  %v4237_v4 = vld [vmem:[#allocation2 + $0x9] sm:$0xff] }
 0x5db   : > { %v13661_v38 = vld [vmem:[#allocation2 + $0x29] sm:$0xff] }
 0x5dc   : > { %7967 = vrot.lane.b32.xlu0 %v7966_v26, %s8941_s14  ;;  %7774 = vmatpush1.bf16.msra.mxu1 %v7733_v17  ;;  %v8061_v26 = vpack.i.bf16 %v4237_v4, %v13644_v5  ;;  %v13693_v4 = vld [vmem:[#allocation2 + $0x197] sm:$0xff] }
 0x5dd   : > { %7734 = vmatpush1.bf16.msra.mxu0 %v7733_v17  ;;  %v13647_v17 = vld [vmem:[#allocation2 + $0x187] sm:$0xff] }
 0x5de   : > { %7982 = vrot.lane.b32.xlu1 %v7981_v45, %s8940_s29  ;;  %v8056_v45 = vpack.i.bf16 %v4279_v36, %v13647_v17  ;;  %v13667_v36 = vpop.permute.xlu1 %7802 }
 0x5df   : > { %16548 = vst [vmem:[#allocation246_spill] sm:$0xff] %v13667_v36 }
 0x5e0   : > { %7977 = vrot.lane.b32.xlu0 %v7976_v11, %s8941_s14  ;;  %v4132_v11 = vld [vmem:[#allocation2 + $0x1f] sm:$0xff] }
 0x5e1   : > { %v8071_v51 = vpack.i.bf16 %v4132_v11, %v13304_v40  ;;  %v13671_v40 = vld [vmem:[#allocation2 + $0x190] sm:$0xff] }
 0x5e2   : > { %7992 = vrot.lane.b32.xlu1 %v7991_v52, %s8941_s14  ;;  %v8066_v52 = vpack.i.bf16 %v4174_v2, %v13653_v43  ;;  %v4238_v2 = vld [vmem:[#allocation2 + $0x11] sm:$0xff] }
 0x5e4   : > { %7987 = vrot.lane.b32.xlu0 %v7986_v55, %s8936_s17  ;;  %v13658_v55 = vld [vmem:[#allocation2 + $0x18f] sm:$0xff] }
 0x5e6   : > { %8002 = vrot.lane.b32.xlu1 %v8001_v47, %s8941_s14  ;;  %v13663_v47 = vld [vmem:[#allocation2 + $0x181] sm:$0xff] }
 0x5e8   : > { %7997 = vrot.lane.b32.xlu0 %v7996_v25, %s8940_s29  ;;  %v8081_v25 = vpack.i.bf16 %v4280_v42, %v13658_v55 }
 0x5ea   : > { %8012 = vrot.lane.b32.xlu1 %v8011_v33, %s8936_s17  ;;  %v8076_v33 = vpack.i.bf16 %v13663_v47, %v13661_v38 }
 0x5ec   : > { %8007 = vrot.lane.b32.xlu0 %v8006_v62, %s8940_s29  ;;  %v13674_v62 = vld [vmem:[#allocation2 + $0x3f] sm:$0xff] }
 0x5ee   : > { %8022 = vrot.lane.b32.xlu1 %v8021_v27, %s8940_s29  ;;  %v8091_v27 = vpack.i.bf16 %v4175_v29, %v13671_v40  ;;  %v4239_v29 = vld [vmem:[#allocation2 + $0x19] sm:$0xff] }
 0x5f0   : > { %8017 = vrot.lane.b32.xlu0 %v8016_v34, %s8941_s14  ;;  %v8086_v34 = vpack.i.bf16 %v4238_v2, %v13674_v62 }
 0x5f2   : > { %8032 = vrot.lane.b32.xlu1 %v8031_v61, %s8940_s29  ;;  %v13679_v61 = vld [vmem:[#allocation2 + $0x31] sm:$0xff] }
 0x5f4   : > { %8027 = vrot.lane.b32.xlu0 %v8026_v18, %s8941_s14  ;;  %v4133_v18 = vld [vmem:[#allocation2 + $0x27] sm:$0xff] }
 0x5f6   : > { %8042 = vrot.lane.b32.xlu1 %v8041_v37, %s8941_s14  ;;  %v8101_v37 = vpack.i.bf16 %v13679_v61, %v13607_v3 }
 0x5f8   : > { %8037 = vrot.lane.b32.xlu0 %v8036_v48, %s8936_s17 }
 0x5fa   : > { %8052 = vrot.lane.b32.xlu1 %v8051_v54, %s8936_s17  ;;  %v8096_v54 = vpack.i.bf16 %v4133_v18, %v13306_v32  ;;  %v13703_v32 = vld [vmem:[#allocation2 + $0x198] sm:$0xff] }
 0x5fb   : > { %v13715_v18 = vld [vmem:[#allocation2 + $0x191] sm:$0xff] }
 0x5fc   : > { %8047 = vrot.lane.b32.xlu0 %v8046_v16, %s8940_s29  ;;  %v13690_v16 = vld [vmem:[#allocation2 + $0x47] sm:$0xff] }
 0x5fd   : > { %v13682_v42 = vpop.permute.xlu1 %7812  ;;  %v8206_v12 = vpack.i.bf16 %v13690_v16, %v13363_v20 }
 0x5fe   : > { %8062 = vrot.lane.b32.xlu1 %v8061_v26, %s8941_s14  ;;  %16549 = vst [vmem:[#allocation207_spill] sm:$0xff] %v13682_v42  ;;  %v13832_v42 = vld [vmem:[#allocation2 + $0x51] sm:$0xff] }
 0x600   : > { %8057 = vrot.lane.b32.xlu0 %v8056_v45, %s8941_s14  ;;  %v8111_v45 = vpack.i.bf16 %v4239_v29, %v13690_v16  ;;  %v13729_v29 = vld [vmem:[#allocation2 + $0x4f] sm:$0xff] }
 0x602   : > { %8072 = vrot.lane.b32.xlu1 %v8071_v51, %s8940_s29  ;;  %v8106_v51 = vpack.i.bf16 %v4281_v30, %v13693_v4  ;;  %v13718_v30 = vld [vmem:[#allocation2 + $0x189] sm:$0xff] }
 0x604   : > { %8067 = vrot.lane.b32.xlu0 %v8066_v52, %s8940_s29  ;;  %v4134_v52 = vld [vmem:[#allocation2 + $0x2f] sm:$0xff] }
 0x606   : > { %8082 = vrot.lane.b32.xlu1 %v8081_v25, %s8941_s14 }
 0x608   : > { %8077 = vrot.lane.b32.xlu0 %v8076_v33, %s8936_s17  ;;  %v13687_v48 = vpop.permute.xlu0 %7807  ;;  %v8121_v33 = vpack.i.bf16 %v4134_v52, %v13280_v35  ;;  %v8141_v52 = vpack.i.bf16 %v13633_v59, %v13729_v29 }
 0x609   : > { %16550 = vst [vmem:[#allocation30_spill] sm:$0xff] %v13687_v48 }
 0x60a   : > { %8092 = vrot.lane.b32.xlu1 %v8091_v27, %s8940_s29  ;;  %v13696_v26 = vpop.permute.xlu1 %7822  ;;  %v8116_v27 = vpack.i.bf16 %v13625_v41, %v13703_v32  ;;  %v8126_v41 = vpack.i.bf16 %v13612_v0, %v13718_v30 }
 0x60b   : > { %16551 = vst [vmem:[#allocation56_spill] sm:$0xff] %v13696_v26 }
 0x60c   : > { %8087 = vrot.lane.b32.xlu0 %v8086_v34, %s8941_s14  ;;  %v13713_v34 = vld [vmem:[#allocation2 + $0x39] sm:$0xff] }
 0x60d   : > { %v13699_v11 = vpop.permute.xlu0 %7817  ;;  %v8131_v35 = vpack.i.bf16 %v13715_v18, %v13713_v34 }
 0x60e   : > { %8102 = vrot.lane.b32.xlu1 %v8101_v37, %s8936_s17  ;;  %16552 = vst [vmem:[#allocation118_spill] sm:$0xff] %v13699_v11 }
 0x610   : > { %8097 = vrot.lane.b32.xlu0 %v8096_v54, %s8940_s29 }
 0x612   : > { %8112 = vrot.lane.b32.xlu1 %v8111_v45, %s8941_s14  ;;  %v13732_v45 = vld [vmem:[#allocation2 + $0x19f] sm:$0xff] }
 0x614   : > { %8107 = vrot.lane.b32.xlu0 %v8106_v51, %s8941_s14  ;;  %v13706_v25 = vpop.permute.xlu1 %7832 }
 0x615   : > { %16553 = vst [vmem:[#allocation159_spill] sm:$0xff] %v13706_v25  ;;  %v13806_v25 = vld [vmem:[#allocation2 + $0x49] sm:$0xff] }
 0x616   : > { %v13709_v2 = vpop.permute.xlu0 %7827  ;;  %8122 = vrot.lane.b32.xlu1 %v8121_v33, %s8940_s29 }
 0x617   : > { %16554 = vst [vmem:[#allocation249_spill] sm:$0xff] %v13709_v2  ;;  %v13808_v2 = vld [vmem:[#allocation2 + $0x1a1] sm:$0xff] }
 0x618   : > { %8117 = vrot.lane.b32.xlu0 %v8116_v27, %s8940_s29  ;;  %v13721_v37 = vpop.permute.xlu1 %7842  ;;  %v8136_v27 = vpack.i.bf16 %v13628_v44, %v13732_v45  ;;  %v13758_v44 = vld [vmem:[#allocation2 + $0x41] sm:$0xff] }
 0x619   : > { %16555 = vst [vmem:[#allocation206_spill] sm:$0xff] %v13721_v37  ;;  %v13744_v37 = vld [vmem:[#allocation2 + $0x1a0] sm:$0xff] }
 0x61a   : > { %v13725_v54 = vpop.permute.xlu0 %7837  ;;  %8132 = vrot.lane.b32.xlu1 %v8131_v35, %s8936_s17  ;;  %v8146_v59 = vpack.i.bf16 %v13647_v17, %v13744_v37  ;;  %v13772_v17 = vld [vmem:[#allocation2 + $0x57] sm:$0xff] }
 0x61b   : > { %16556 = vst [vmem:[#allocation35_spill] sm:$0xff] %v13725_v54 }
 0x61c   : > { %8127 = vrot.lane.b32.xlu0 %v8126_v41, %s8936_s17  ;;  %v13735_v51 = vpop.permute.xlu1 %7852  ;;  %v8151_v41 = vpack.i.bf16 %v13644_v5, %v13282_v9  ;;  %v8156_v9 = vpack.i.bf16 %v13758_v44, %v13619_v15  ;;  %v13769_v5 = vld [vmem:[#allocation2 + $0x1a8] sm:$0xff] }
 0x61d   : > { %16557 = vst [vmem:[#allocation61_spill] sm:$0xff] %v13735_v51 }
 0x61e   : > { %v13739_v33 = vpop.permute.xlu0 %7847  ;;  %8142 = vrot.lane.b32.xlu1 %v8141_v52, %s8941_s14 }
 0x61f   : > { %16558 = vst [vmem:[#allocation121_spill] sm:$0xff] %v13739_v33  ;;  %v13755_v33 = vld [vmem:[#allocation2 + $0x1a7] sm:$0xff] }
 0x620   : > { %8137 = vrot.lane.b32.xlu0 %v8136_v27, %s8941_s14  ;;  %v13747_v35 = vpop.permute.xlu1 %7862  ;;  %v8161_v27 = vpack.i.bf16 %v13635_v7, %v13755_v33  ;;  %v8166_v7 = vpack.i.bf16 %v13661_v38, %v13772_v17 }
 0x621   : > { %16559 = vst [vmem:[#allocation164_spill] sm:$0xff] %v13747_v35 }
 0x622   : > { %v13751_v51 = vpop.permute.xlu0 %7857  ;;  %8152 = vrot.lane.b32.xlu1 %v8151_v41, %s8940_s29 }
 0x623   : > { %16560 = vst [vmem:[#allocation248_spill] sm:$0xff] %v13751_v51 }
 0x624   : > { %8147 = vrot.lane.b32.xlu0 %v8146_v59, %s8940_s29  ;;  %v13761_v52 = vpop.permute.xlu1 %7872  ;;  %v8171_v59 = vpack.i.bf16 %v13658_v55, %v13769_v5 }
 0x625   : > { %16561 = vst [vmem:[#allocation209_spill] sm:$0xff] %v13761_v52 }
 0x626   : > { %v13765_v35 = vpop.permute.xlu0 %7867  ;;  %8162 = vrot.lane.b32.xlu1 %v8161_v27, %s8941_s14  ;;  %v5813_v27 = vld [vmem:[%s15360_s7 + $0x100] sm:$0xff] }
 0x627   : > { %16562 = vst [vmem:[#allocation34_spill] sm:$0xff] %v13765_v35  ;;  %v13783_v35 = vld [vmem:[#allocation2 + $0x199] sm:$0xff] }
 0x628   : > { %8157 = vrot.lane.b32.xlu0 %v8156_v9, %s8936_s17  ;;  %v13775_v41 = vpop.permute.xlu1 %7882  ;;  %v5814_v9 = vld [vmem:[%s15360_s7 + $0x108] sm:$0xff]  ;;  %v8181_v51 = vpack.i.bf16 %v13638_v60, %v13783_v35 }
 0x629   : > { %v13797_v38 = vpack.c.bf16 %v5814_v9, %v5813_v27 }
 0x62a   : > { %v13779_v52 = vpop.permute.xlu0 %7877  ;;  %8172 = vrot.lane.b32.xlu1 %v8171_v59, %s8940_s29  ;;  %v8176_v59 = vpack.i.bf16 %v13674_v62, %v13361_v13  ;;  %v8186_v13 = vpack.i.bf16 %v13808_v2, %v13806_v25  ;;  %v13820_v62 = vld [vmem:[#allocation2 + $0x1b0] sm:$0xff] }
 0x62b   : > { %16563 = vst [vmem:[#allocation60_spill] sm:$0xff] %v13779_v52  ;;  %7736 = vmatprep.subr.bf16.mxu1 %v13797_v38  ;;  %16564 = vst [vmem:[#allocation122_spill] sm:$0xff] %v13820_v62  ;;  %v7880_v48 = vunpack.i.h.bf16 %v13779_v52 }
 0x62c   : > { %8167 = vrot.lane.b32.xlu0 %v8166_v7, %s8941_s14  ;;  %v13793_v55 = vpop.permute.xlu1 %7892  ;;  %v13803_v7 = vld [vmem:[#allocation2 + $0x1af] sm:$0xff] }
 0x62d   : > { %v8191_v27 = vpack.i.bf16 %v13663_v47, %v13803_v7 }
 0x62e   : > { %v13799_v54 = vpop.permute.xlu0 %7887  ;;  %8182 = vrot.lane.b32.xlu1 %v8181_v51, %s8936_s17  ;;  %v13823_v51 = vld [vmem:[#allocation2 + $0x5f] sm:$0xff] }
 0x62f   : > { %v8196_v47 = vpack.i.bf16 %v13679_v61, %v13823_v51  ;;  %v13841_v61 = vld [vmem:[#allocation2 + $0x1b7] sm:$0xff] }
 0x630   : > { %8177 = vrot.lane.b32.xlu0 %v8176_v59, %s8940_s29  ;;  %v13812_v60 = vpop.permute.xlu1 %7902  ;;  %v8201_v59 = vpack.i.bf16 %v13693_v4, %v13820_v62  ;;  %v13843_v62 = vld [vmem:[#allocation2 + $0x67] sm:$0xff] }
 0x632   : > { %v13816_v9 = vpop.permute.xlu0 %7897  ;;  %8192 = vrot.lane.b32.xlu1 %v8191_v27, %s8941_s14 }
 0x634   : > { %8187 = vrot.lane.b32.xlu0 %v8186_v13, %s8936_s17  ;;  %v7913_v26 = vpop.permute.xlu1 %7912  ;;  %v8211_v13 = vpack.i.bf16 %v13832_v42, %v13653_v43 }
 0x635   : > { %v7914_v27 = vunpack.i.l.bf16 %v7913_v26  ;;  %v7915_v43 = vunpack.i.h.bf16 %v7913_v26 }
 0x636   : > { %v13828_v11 = vpop.permute.xlu0 %7907  ;;  %8202 = vrot.lane.b32.xlu1 %v8201_v59, %s8940_s29 }
 0x637   : > { %16565 = vst [vmem:[#allocation163_spill] sm:$0xff] %v13828_v11  ;;  %v7884_v11 = vunpack.i.l.bf16 %v13775_v41 }
 0x638   : > { %8197 = vrot.lane.b32.xlu0 %v8196_v47, %s8941_s14  ;;  %v7923_v50 = vpop.permute.xlu1 %7922  ;;  %v4160_v47 = vld [vmem:[#allocation2 + $0xff] sm:$0xff] }
 0x639   : > { %v7925_v15 = vunpack.i.h.bf16 %v7923_v50  ;;  %v7924_v4 = vunpack.i.l.bf16 %v7923_v50  ;;  %v5650_v50 = vsel %vm2553_vm8, %v13425_v23, %v7914_v27  ;;  %v5486_v20 = vsel %vm2553_vm8, %v4160_v47, %v7880_v48 }
 0x63a   : > { %v7918_v0 = vpop.permute.xlu0 %7917  ;;  %8212 = vrot.lane.b32.xlu1 %v8211_v13, %s8936_s17  ;;  %v8221_v13 = vpack.i.bf16 %v13713_v34, %v13843_v62  ;;  %v5651_v34 = vsel %vm2553_vm8, %v13430_v28, %v7915_v43  ;;  %v13875_v43 = vld [vmem:[#allocation2 + $0x1b1] sm:$0xff] }
 0x63b   : > { %v7920_v59 = vunpack.i.h.bf16 %v7918_v0  ;;  %v7919_v52 = vunpack.i.l.bf16 %v7918_v0  ;;  %v8216_v0 = vpack.i.bf16 %v13718_v30, %v13841_v61 }
 0x63c   : > { %8207 = vrot.lane.b32.xlu0 %v8206_v12, %s8940_s29  ;;  %v7933_v16 = vpop.permute.xlu1 %7932 }
 0x63d   : > { %v5704_v36 = vsel %vm5509_vm10, %v5650_v50, %v7919_v52  ;;  %v5541_v63 = vsel %vm5509_vm10, %v5486_v20, %v7920_v59  ;;  %v7935_v3 = vunpack.i.h.bf16 %v7933_v16  ;;  %v7934_v26 = vunpack.i.l.bf16 %v7933_v16  ;;  %v4161_v52 = vld [vmem:[#allocation2 + $0x107] sm:$0xff]  ;;  %v4294_v59 = vld [vmem:[#allocation2 + $0x1b8] sm:$0xff] }
 0x63e   : > { %v7928_v21 = vpop.permute.xlu0 %7927  ;;  %v5758_v12 = vsel %vm5564_vm11, %v5704_v36, %v7924_v4  ;;  %v5596_v23 = vsel %vm5564_vm11, %v5541_v63, %v7925_v15  ;;  %8222 = vrot.lane.b32.xlu1 %v8221_v13, %s8941_s14  ;;  %v5487_v30 = vsel %vm2553_vm8, %v4161_v52, %v7884_v11  ;;  %v7885_v15 = vunpack.i.h.bf16 %v13775_v41  ;;  %v13873_v11 = vld [vmem:[#allocation2 + $0x59] sm:$0xff] }
 0x63f   : > { %v7930_v27 = vunpack.i.h.bf16 %v7928_v21  ;;  %v7929_v48 = vunpack.i.l.bf16 %v7928_v21  ;;  %6151 = vmatprep.mubr.f32.mxu1 %v5758_v12  ;;  %v8231_v21 = vpack.i.bf16 %v13729_v29, %v13351_v8  ;;  %v8226_v28 = vpack.i.bf16 %v13732_v45, %v4294_v59  ;;  %v13878_v8 = vld [vmem:[#allocation2 + $0x1a9] sm:$0xff] }
 0x640   : > { %6152 = vmatmul.mubr.f32.vlgmr.msra.gmra.mrb[0].mxu1 %v5596_v23  ;;  %8217 = vrot.lane.b32.xlu0 %v8216_v0, %s8941_s14  ;;  %v7943_v47 = vpop.permute.xlu1 %7942  ;;  %v4162_v0 = vld [vmem:[#allocation2 + $0x10f] sm:$0xff] }
 0x641   : > { %v5705_v36 = vsel %vm5509_vm10, %v5651_v34, %v7929_v48  ;;  %v5542_v63 = vsel %vm5509_vm10, %v5487_v30, %v7930_v27  ;;  %7738 = vmatpush3.bf16.msra.mxu1 %v13797_v38  ;;  %v7945_v29 = vunpack.i.h.bf16 %v7943_v47  ;;  %v7944_v38 = vunpack.i.l.bf16 %v7943_v47  ;;  %v13888_v23 = vld [vmem:[#allocation2 + $0x6f] sm:$0xff]  ;;  %v13892_v34 = vld [vmem:[#allocation2 + $0x1bf] sm:$0xff] }
 0x642   : > { %v7938_v4 = vpop.permute.xlu0 %7937  ;;  %v5759_v50 = vsel %vm5564_vm11, %v5705_v36, %v7934_v26  ;;  %v5597_v20 = vsel %vm5564_vm11, %v5542_v63, %v7935_v3  ;;  %8232 = vrot.lane.b32.xlu1 %v8231_v21, %s8940_s29  ;;  %v8241_v3 = vpack.i.bf16 %v13875_v43, %v13873_v11  ;;  %v8236_v26 = vpack.i.bf16 %v13671_v40, %v13878_v8 }
 0x643   : > { %v7939_v16 = vunpack.i.l.bf16 %v7938_v4  ;;  %6156 = vmatprep.mubr.f32.mxu1 %v5759_v50  ;;  %v5488_v12 = vsel %vm2553_vm8, %v4162_v0, %v7885_v15  ;;  %v7889_v27 = vunpack.i.l.bf16 %v13799_v54  ;;  %v7940_v48 = vunpack.i.h.bf16 %v7938_v4 }
 0x644   : > { %6157 = vmatmul.mubr.f32.gmra.mrb[2].mxu1 %v5597_v20  ;;  %8227 = vrot.lane.b32.xlu0 %v8226_v28, %s8940_s29  ;;  %v7953_v41 = vpop.permute.xlu1 %7952  ;;  %v5543_v40 = vsel %vm5509_vm10, %v5488_v12, %v7945_v29  ;;  %v8251_v15 = vpack.i.bf16 %v13758_v44, %v13888_v23  ;;  %v8246_v50 = vpack.i.bf16 %v13715_v18, %v13892_v34 }
 0x645   : > { %v5652_v45 = vsel %vm2553_vm8, %v13421_v1, %v7939_v16  ;;  %v7955_v30 = vunpack.i.h.bf16 %v7953_v41  ;;  %v7954_v1 = vunpack.i.l.bf16 %v7953_v41  ;;  %v5653_v16 = vsel %vm2553_vm8, %v13423_v53, %v7940_v48  ;;  %v13919_v48 = vld [vmem:[#allocation2 + $0x1c7] sm:$0xff] }
 0x646   : > { %v7948_v13 = vpop.permute.xlu0 %7947  ;;  %8242 = vrot.lane.b32.xlu1 %v8241_v3, %s8936_s17  ;;  %v5706_v47 = vsel %vm5509_vm10, %v5652_v45, %v7944_v38  ;;  %v5489_v29 = vsel %vm2553_vm8, %v13487_v6, %v7889_v27  ;;  %v4295_v38 = vld [vmem:[#allocation2 + $0x1c0] sm:$0xff]  ;;  %v7890_v41 = vunpack.i.h.bf16 %v13799_v54  ;;  %v8261_v53 = vpack.i.bf16 %v13772_v17, %v13353_v22 }
 0x647   : > { %v7950_v52 = vunpack.i.h.bf16 %v7948_v13  ;;  %v7949_v59 = vunpack.i.l.bf16 %v7948_v13  ;;  %v5707_v3 = vsel %vm5509_vm10, %v5653_v16, %v7954_v1  ;;  %v5544_v18 = vsel %vm5509_vm10, %v5489_v29, %v7955_v30  ;;  %v13917_v27 = vld [vmem:[#allocation2 + $0x61] sm:$0xff]  ;;  %v13937_v16 = vld [vmem:[#allocation2 + $0x77] sm:$0xff] }
 0x648   : > { %8237 = vrot.lane.b32.xlu0 %v8236_v26, %s8936_s17  ;;  %v7963_v36 = vpop.permute.xlu1 %7962  ;;  %v8256_v54 = vpack.i.bf16 %v13755_v33, %v4295_v38  ;;  %v7894_v30 = vunpack.i.l.bf16 %v13793_v55  ;;  %v5490_v33 = vsel %vm2553_vm8, %v13504_v14, %v7890_v41 }
 0x649   : > { %v5760_v63 = vsel %vm5564_vm11, %v5706_v47, %v7949_v59  ;;  %v5598_v21 = vsel %vm5564_vm11, %v5543_v40, %v7950_v52  ;;  %v7964_v44 = vunpack.i.l.bf16 %v7963_v36  ;;  %v7965_v1 = vunpack.i.h.bf16 %v7963_v36 }
 0x64a   : > { %v7958_v4 = vpop.permute.xlu0 %7957  ;;  %6161 = vmatprep.mubr.f32.mxu1 %v5760_v63  ;;  %8252 = vrot.lane.b32.xlu1 %v8251_v15, %s8941_s14  ;;  %v8266_v63 = vpack.i.bf16 %v13917_v27, %v13703_v32 }
 0x64b   : > { %v7960_v20 = vunpack.i.h.bf16 %v7958_v4  ;;  %v7959_v28 = vunpack.i.l.bf16 %v7958_v4  ;;  %6162 = vmatmul.mubr.f32.gmra.mrb[4].mxu1 %v5598_v21  ;;  %v5654_v22 = vsel %vm2553_vm8, %v13456_v10, %v7964_v44  ;;  %v8271_v21 = vpack.i.bf16 %v13783_v35, %v13919_v48 }
 0x64c   : > { %8247 = vrot.lane.b32.xlu0 %v8246_v50, %s8941_s14  ;;  %v7973_v45 = vpop.permute.xlu1 %7972  ;;  %v5655_v32 = vsel %vm2553_vm8, %v13458_v24, %v7965_v1  ;;  %v5491_v35 = vsel %vm2553_vm8, %v13548_v19, %v7894_v30  ;;  %v8276_v24 = vpack.i.bf16 %v13806_v25, %v13937_v16  ;;  %v8772_v25 = vld [vmem:[#allocation2 + $0x78] sm:$0xff]  ;;  %v13961_v30 = vld [vmem:[#allocation2 + $0x69] sm:$0xff] }
 0x64d   : > { %v5761_v0 = vsel %vm5564_vm11, %v5707_v3, %v7959_v28  ;;  %v5599_v13 = vsel %vm5564_vm11, %v5544_v18, %v7960_v20  ;;  %v7975_v26 = vunpack.i.h.bf16 %v7973_v45  ;;  %v7974_v6 = vunpack.i.l.bf16 %v7973_v45  ;;  %v4296_v20 = vld [vmem:[#allocation2 + $0x1c8] sm:$0xff] }
 0x64e   : > { %v7968_v12 = vpop.permute.xlu0 %7967  ;;  %6166 = vmatprep.mubr.f32.mxu1 %v5761_v0  ;;  %8262 = vrot.lane.b32.xlu1 %v8261_v53, %s8940_s29  ;;  %v8281_v44 = vpack.i.bf16 %v13803_v7, %v4296_v20  ;;  %v7895_v3 = vunpack.i.h.bf16 %v13793_v55  ;;  %v4300_v1 = vld [vmem:[#allocation2 + $0x1cf] sm:$0xff] }
 0x64f   : > { %v7970_v52 = vunpack.i.h.bf16 %v7968_v12  ;;  %v7969_v59 = vunpack.i.l.bf16 %v7968_v12  ;;  %6167 = vmatmul.mubr.f32.gmra.mrb[6].mxu1 %v5599_v13  ;;  %v4297_v13 = vld [vmem:[#allocation2 + $0x1b9] sm:$0xff]  ;;  %v7899_v12 = vunpack.i.l.bf16 %v13816_v9 }
 0x650   : > { %8257 = vrot.lane.b32.xlu0 %v8256_v54, %s8940_s29  ;;  %v7983_v17 = vpop.permute.xlu1 %7982  ;;  %v8291_v55 = vpack.i.bf16 %v13744_v37, %v4297_v13 }
 0x651   : > { %v5708_v47 = vsel %vm5509_vm10, %v5654_v22, %v7969_v59  ;;  %v5545_v40 = vsel %vm5509_vm10, %v5490_v33, %v7970_v52  ;;  %v7985_v36 = vunpack.i.h.bf16 %v7983_v17  ;;  %v7984_v15 = vunpack.i.l.bf16 %v7983_v17 }
 0x652   : > { %v7978_v4 = vpop.permute.xlu0 %7977  ;;  %v5762_v50 = vsel %vm5564_vm11, %v5708_v47, %v7974_v6  ;;  %v5600_v10 = vsel %vm5564_vm11, %v5545_v40, %v7975_v26  ;;  %8272 = vrot.lane.b32.xlu1 %v8271_v21, %s8941_s14  ;;  %v8286_v52 = vpack.i.bf16 %v13823_v51, %v8772_v25  ;;  %v5492_v59 = vsel %vm2553_vm8, %v13498_v56, %v7895_v3  ;;  %v5815_v47 = vld [vmem:[%s15360_s7 + $0x110] sm:$0xff]  ;;  %v5816_v51 = vld [vmem:[%s15360_s7 + $0x118] sm:$0xff]  ;;  %v8773_v25 = vld [vmem:[#allocation2 + $0x80] sm:$0xff] }
 0x653   : > { %v7980_v14 = vunpack.i.h.bf16 %v7978_v4  ;;  %v7979_v28 = vunpack.i.l.bf16 %v7978_v4  ;;  %6171 = vmatprep.mubr.f32.mxu1 %v5762_v50  ;;  %v7739_v21 = vpack.c.bf16 %v5816_v51, %v5815_v47  ;;  %v8301_v50 = vpack.i.bf16 %v13808_v2, %v4300_v1  ;;  %v4301_v47 = vld [vmem:[#allocation2 + $0x1d7] sm:$0xff] }
 0x654   : > { %6172 = vmatmul.mubr.f32.gmra.mrb[8].mxu1 %v5600_v10  ;;  %8267 = vrot.lane.b32.xlu0 %v8266_v63, %s8936_s17  ;;  %v7993_v29 = vpop.permute.xlu1 %7992  ;;  %v7900_v2 = vunpack.i.h.bf16 %v13816_v9 }
 0x655   : > { %v5709_v38 = vsel %vm5509_vm10, %v5655_v32, %v7979_v28  ;;  %v5546_v41 = vsel %vm5509_vm10, %v5491_v35, %v7980_v14  ;;  %v7995_v53 = vunpack.i.h.bf16 %v7993_v29  ;;  %v7994_v26 = vunpack.i.l.bf16 %v7993_v29  ;;  %v4303_v14 = vld [vmem:[#allocation2 + $0x1d0] sm:$0xff]  ;;  %7740 = vmatprep.subr.bf16.mxu1 %v7739_v21 }
 0x656   : > { %v7988_v18 = vpop.permute.xlu0 %7987  ;;  %v5763_v45 = vsel %vm5564_vm11, %v5709_v38, %v7984_v15  ;;  %v5601_v0 = vsel %vm5564_vm11, %v5546_v41, %v7985_v36  ;;  %8282 = vrot.lane.b32.xlu1 %v8281_v44, %s8940_s29  ;;  %v5493_v29 = vsel %vm2553_vm8, %v13515_v57, %v7899_v12  ;;  %v13982_v38 = vld [vmem:[#allocation2 + $0x7f] sm:$0xff]  ;;  %7742 = vmatpush3.bf16.msra.mxu1 %v7739_v21 }
 0x657   : > { %v7989_v19 = vunpack.i.l.bf16 %v7988_v18  ;;  %6176 = vmatprep.mubr.f32.mxu1 %v5763_v45  ;;  %v7990_v22 = vunpack.i.h.bf16 %v7988_v18  ;;  %v5547_v37 = vsel %vm5509_vm10, %v5492_v59, %v7995_v53  ;;  %v8306_v9 = vpack.i.bf16 %v13832_v42, %v13982_v38  ;;  %v13993_v53 = vld [vmem:[#allocation2 + $0x71] sm:$0xff] }
 0x658   : > { %6177 = vmatmul.mubr.f32.gmra.mrb[10].mxu1 %v5601_v0  ;;  %8277 = vrot.lane.b32.xlu0 %v8276_v24, %s8941_s14  ;;  %v8003_v7 = vpop.permute.xlu1 %8002  ;;  %v8311_v0 = vpack.i.bf16 %v13841_v61, %v4303_v14  ;;  %v8321_v59 = vpack.i.bf16 %v13993_v53, %v13769_v5 }
 0x659   : > { %v5656_v6 = vsel %vm2553_vm8, %v13441_v39, %v7989_v19  ;;  %v4298_v39 = vld [vmem:[#allocation2 + $0x1c1] sm:$0xff]  ;;  %v8005_v56 = vunpack.i.h.bf16 %v8003_v7  ;;  %v8004_v40 = vunpack.i.l.bf16 %v8003_v7  ;;  %v5657_v35 = vsel %vm2553_vm8, %v13445_v31, %v7990_v22 }
 0x65a   : > { %v7998_v54 = vpop.permute.xlu0 %7997  ;;  %8292 = vrot.lane.b32.xlu1 %v8291_v55, %s8936_s17  ;;  %v5710_v63 = vsel %vm5509_vm10, %v5656_v6, %v7994_v26  ;;  %v8296_v20 = vpack.i.bf16 %v4298_v39, %v13961_v30  ;;  %v7904_v7 = vunpack.i.l.bf16 %v13812_v60  ;;  %v5494_v6 = vsel %vm2553_vm8, %v13520_v46, %v7900_v2 }
 0x65b   : > { %v8000_v33 = vunpack.i.h.bf16 %v7998_v54  ;;  %v7999_v17 = vunpack.i.l.bf16 %v7998_v54  ;;  %v5711_v44 = vsel %vm5509_vm10, %v5657_v35, %v8004_v40  ;;  %v5548_v3 = vsel %vm5509_vm10, %v5493_v29, %v8005_v56  ;;  %v16567_v29 = vld [vmem:[#allocation57_spill] sm:$0xff] }
 0x65c   : > { %8287 = vrot.lane.b32.xlu0 %v8286_v52, %s8940_s29  ;;  %v8013_v36 = vpop.permute.xlu1 %8012  ;;  %v8316_v52 = vpack.i.bf16 %v13843_v62, %v8773_v25  ;;  %v16566_v62 = vld [vmem:[#allocation155_spill] sm:$0xff] }
 0x65d   : > { %v5764_v15 = vsel %vm5564_vm11, %v5710_v63, %v7999_v17  ;;  %v5602_v4 = vsel %vm5564_vm11, %v5547_v37, %v8000_v33  ;;  %v8014_v41 = vunpack.i.l.bf16 %v8013_v36  ;;  %v8015_v55 = vunpack.i.h.bf16 %v8013_v36  ;;  %v14009_v37 = vld [vmem:[#allocation2 + $0x87] sm:$0xff] }
 0x65e   : > { %v8008_v10 = vpop.permute.xlu0 %8007  ;;  %6181 = vmatprep.mubr.f32.mxu1 %v5764_v15  ;;  %8302 = vrot.lane.b32.xlu1 %v8301_v50, %s8941_s14  ;;  %v5495_v51 = vsel %vm2553_vm8, %v16566_v62, %v7904_v7  ;;  %v8331_v21 = vpack.i.bf16 %v13873_v11, %v14009_v37  ;;  %v8326_v50 = vpack.i.bf16 %v13878_v8, %v4301_v47 }
 0x65f   : > { %v8010_v28 = vunpack.i.h.bf16 %v8008_v10  ;;  %v8009_v32 = vunpack.i.l.bf16 %v8008_v10  ;;  %6182 = vmatmul.mubr.f32.gmra.mrb[12].mxu1 %v5602_v4  ;;  %v5658_v61 = vsel %vm2553_vm8, %v13478_v58, %v8014_v41  ;;  %v5659_v5 = vsel %vm2553_vm8, %v13480_v49, %v8015_v55  ;;  %v14033_v41 = vld [vmem:[#allocation2 + $0x79] sm:$0xff] }
 0x660   : > { %8297 = vrot.lane.b32.xlu0 %v8296_v20, %s8936_s17  ;;  %v8023_v18 = vpop.permute.xlu1 %8022  ;;  %v7905_v49 = vunpack.i.h.bf16 %v13812_v60  ;;  %v4304_v20 = vld [vmem:[#allocation2 + $0x1d8] sm:$0xff] }
 0x661   : > { %v5765_v45 = vsel %vm5564_vm11, %v5711_v44, %v8009_v32  ;;  %v5603_v31 = vsel %vm5564_vm11, %v5548_v3, %v8010_v28  ;;  %v8025_v57 = vunpack.i.h.bf16 %v8023_v18  ;;  %v8024_v24 = vunpack.i.l.bf16 %v8023_v18  ;;  %v8774_v32 = vld [vmem:[#allocation2 + $0x88] sm:$0xff] }
 0x662   : > { %v8018_v13 = vpop.permute.xlu0 %8017  ;;  %6186 = vmatprep.mubr.f32.mxu1 %v5765_v45  ;;  %8312 = vrot.lane.b32.xlu1 %v8311_v0, %s8940_s29  ;;  %v8341_v35 = vpack.i.bf16 %v13888_v23, %v8774_v32  ;;  %v8336_v60 = vpack.i.bf16 %v13892_v34, %v4304_v20  ;;  %v14035_v44 = vld [vmem:[#allocation2 + $0x81] sm:$0xff]  ;;  %v4299_v0 = vld [vmem:[#allocation2 + $0x1c9] sm:$0xff] }
 0x663   : > { %v8020_v19 = vunpack.i.h.bf16 %v8018_v13  ;;  %v8019_v26 = vunpack.i.l.bf16 %v8018_v13  ;;  %6187 = vmatmul.mubr.f32.gmra.mrb[14].mxu1 %v5603_v31  ;;  %v16568_v45 = vld [vmem:[#allocation247_spill] sm:$0xff]  ;;  %v8351_v55 = vpack.i.bf16 %v14035_v44, %v14033_v41 }
 0x664   : > { %8307 = vrot.lane.b32.xlu0 %v8306_v9, %s8941_s14  ;;  %v8033_v12 = vpop.permute.xlu1 %8032  ;;  %v5496_v31 = vsel %vm2553_vm8, %v16568_v45, %v7905_v49  ;;  %v16570_v13 = vld [vmem:[#allocation163_spill] sm:$0xff]  ;;  %v4305_v49 = vld [vmem:[#allocation2 + $0x1e0] sm:$0xff] }
 0x665   : > { %v5712_v42 = vsel %vm5509_vm10, %v5658_v61, %v8019_v26  ;;  %v5549_v54 = vsel %vm5509_vm10, %v5494_v6, %v8020_v19  ;;  %v8035_v1 = vunpack.i.h.bf16 %v8033_v12  ;;  %v8034_v22 = vunpack.i.l.bf16 %v8033_v12  ;;  %v4129_v61 = vld [vmem:[#allocation2 + $0x7] sm:$0xff] }
 0x666   : > { %v8028_v33 = vpop.permute.xlu0 %8027  ;;  %v5766_v17 = vsel %vm5564_vm11, %v5712_v42, %v8024_v24  ;;  %v5604_v58 = vsel %vm5564_vm11, %v5549_v54, %v8025_v57  ;;  %8322 = vrot.lane.b32.xlu1 %v8321_v59, %s8936_s17  ;;  %v16569_v57 = vld [vmem:[#allocation246_spill] sm:$0xff]  ;;  %v7909_v9 = vunpack.i.l.bf16 %v16570_v13  ;;  %v14051_v59 = vld [vmem:[#allocation2 + $0x8f] sm:$0xff]  ;;  %v8366_v45 = vpack.i.bf16 %v13919_v48, %v4305_v49 }
 0x667   : > { %v8030_v46 = vunpack.i.h.bf16 %v8028_v33  ;;  %v8029_v39 = vunpack.i.l.bf16 %v8028_v33  ;;  %6191 = vmatprep.mubr.f32.mxu1 %v5766_v17  ;;  %v7804_v23 = vunpack.i.l.bf16 %v16569_v57  ;;  %v16571_v54 = vld [vmem:[#allocation122_spill] sm:$0xff]  ;;  %v8361_v47 = vpack.i.bf16 %v13917_v27, %v14051_v59  ;;  %v16574_v48 = vld [vmem:[#allocation160_spill] sm:$0xff] }
 0x668   : > { %6192 = vmatmul.mubr.f32.gmra.mrb[16].mxu1 %v5604_v58  ;;  %8317 = vrot.lane.b32.xlu0 %v8316_v52, %s8940_s29  ;;  %v8043_v56 = vpop.permute.xlu1 %8042  ;;  %v8346_v25 = vpack.i.bf16 %v16571_v54, %v4299_v0  ;;  %v4302_v52 = vld [vmem:[#allocation2 + $0x1df] sm:$0xff]  ;;  %v14100_v54 = vld [vmem:[#allocation2 + $0x91] sm:$0xff] }
 0x669   : > { %v5713_v40 = vsel %vm5509_vm10, %v5659_v5, %v8029_v39  ;;  %v5550_v63 = vsel %vm5509_vm10, %v5495_v51, %v8030_v46  ;;  %v8045_v14 = vunpack.i.h.bf16 %v8043_v56  ;;  %v8044_v28 = vunpack.i.l.bf16 %v8043_v56  ;;  %v16572_v5 = vld [vmem:[#allocation204_spill] sm:$0xff] }
 0x66a   : > { %v8038_v36 = vpop.permute.xlu0 %8037  ;;  %v5767_v15 = vsel %vm5564_vm11, %v5713_v40, %v8034_v22  ;;  %v5605_v4 = vsel %vm5564_vm11, %v5550_v63, %v8035_v1  ;;  %8332 = vrot.lane.b32.xlu1 %v8331_v21, %s8941_s14  ;;  %v5455_v58 = vsel %vm2553_vm8, %v4129_v61, %v7804_v23  ;;  %v8356_v39 = vpack.i.bf16 %v13875_v43, %v4302_v52  ;;  %v16573_v63 = vld [vmem:[#allocation117_spill] sm:$0xff] }
 0x66b   : > { %v8039_v10 = vunpack.i.l.bf16 %v8038_v36  ;;  %6196 = vmatprep.mubr.f32.mxu1 %v5767_v15  ;;  %v5551_v34 = vsel %vm5509_vm10, %v5496_v31, %v8045_v14  ;;  %v8040_v6 = vunpack.i.h.bf16 %v8038_v36  ;;  %v5497_v62 = vsel %vm2553_vm8, %v16572_v5, %v7909_v9  ;;  %v8775_v36 = vld [vmem:[#allocation2 + $0x20] sm:$0xff]  ;;  %v14080_v31 = vld [vmem:[#allocation2 + $0x97] sm:$0xff] }
 0x66c   : > { %6197 = vmatmul.mubr.f32.gmra.mrb[18].mxu1 %v5605_v4  ;;  %8327 = vrot.lane.b32.xlu0 %v8326_v50, %s8941_s14  ;;  %v14027_v11 = vpop.permute.xlu1 %8052  ;;  %v14091_v61 = vld [vmem:[#allocation2 + $0x9f] sm:$0xff] }
 0x66d   : > { %v5660_v8 = vsel %vm2553_vm8, %v16567_v29, %v8039_v10  ;;  %v8054_v12 = vunpack.i.l.bf16 %v14027_v11  ;;  %v5661_v21 = vsel %vm2553_vm8, %v16573_v63, %v8040_v6  ;;  %v7805_v6 = vunpack.i.h.bf16 %v16569_v57 }
 0x66e   : > { %v8048_v2 = vpop.permute.xlu0 %8047  ;;  %8342 = vrot.lane.b32.xlu1 %v8341_v35, %s8940_s29  ;;  %v5714_v24 = vsel %vm5509_vm10, %v5660_v8, %v8044_v28  ;;  %v8776_v8 = vld [vmem:[#allocation2 + $0x90] sm:$0xff] }
 0x66f   : > { %v8050_v3 = vunpack.i.h.bf16 %v8048_v2  ;;  %v8049_v18 = vunpack.i.l.bf16 %v8048_v2  ;;  %v5619_v15 = vsel %vm2553_vm8, %v8775_v36, %v8054_v12  ;;  %v8371_v2 = vpack.i.bf16 %v13937_v16, %v8776_v8 }
 0x670   : > { %8337 = vrot.lane.b32.xlu0 %v8336_v60, %s8940_s29  ;;  %v8063_v19 = vpop.permute.xlu1 %8062  ;;  %v7910_v60 = vunpack.i.h.bf16 %v16570_v13 }
 0x671   : > { %v5768_v26 = vsel %vm5564_vm11, %v5714_v24, %v8049_v18  ;;  %v5606_v7 = vsel %vm5564_vm11, %v5551_v34, %v8050_v3  ;;  %v8065_v1 = vunpack.i.h.bf16 %v8063_v19  ;;  %v8064_v22 = vunpack.i.l.bf16 %v8063_v19 }
 0x672   : > { %v8058_v42 = vpop.permute.xlu0 %8057  ;;  %6201 = vmatprep.mubr.f32.mxu1 %v5768_v26  ;;  %8352 = vrot.lane.b32.xlu1 %v8351_v55, %s8936_s17  ;;  %v8055_v3 = vunpack.i.h.bf16 %v14027_v11  ;;  %v8376_v24 = vpack.i.bf16 %v13961_v30, %v14080_v31  ;;  %v8777_v11 = vld [vmem:[#allocation2 + $0x98] sm:$0xff] }
 0x673   : > { %6202 = vmatmul.mubr.f32.gmra.mrb[20].mxu1 %v5606_v7  ;;  %v8060_v33 = vunpack.i.h.bf16 %v8058_v42  ;;  %v8059_v17 = vunpack.i.l.bf16 %v8058_v42  ;;  %v5673_v43 = vsel %vm5509_vm10, %v5619_v15, %v8064_v22  ;;  %v5510_v27 = vsel %vm5509_vm10, %v5455_v58, %v8065_v1  ;;  %v16575_v7 = vld [vmem:[#allocation31_spill] sm:$0xff] }
 0x674   : > { %8347 = vrot.lane.b32.xlu0 %v8346_v25, %s8936_s17  ;;  %v8073_v46 = vpop.permute.xlu1 %8072  ;;  %v8381_v34 = vpack.i.bf16 %v13982_v38, %v8777_v11  ;;  %v5662_v26 = vsel %vm2553_vm8, %v16574_v48, %v8055_v3  ;;  %v5498_v55 = vsel %vm2553_vm8, %v16575_v7, %v7910_v60  ;;  %v14098_v42 = vld [vmem:[#allocation2 + $0x89] sm:$0xff] }
 0x675   : > { %v8075_v56 = vunpack.i.h.bf16 %v8073_v46  ;;  %v8074_v40 = vunpack.i.l.bf16 %v8073_v46  ;;  %v5715_v10 = vsel %vm5509_vm10, %v5661_v21, %v8059_v17  ;;  %v5552_v28 = vsel %vm5509_vm10, %v5497_v62, %v8060_v33  ;;  %v4130_v22 = vld [vmem:[#allocation2 + $0xf] sm:$0xff]  ;;  %v14107_v58 = vld [vmem:[#allocation2 + $0xa7] sm:$0xff] }
 0x676   : > { %v8068_v51 = vpop.permute.xlu0 %8067  ;;  %8362 = vrot.lane.b32.xlu1 %v8361_v47, %s8941_s14  ;;  %v8391_v17 = vpack.i.bf16 %v13993_v53, %v14091_v61  ;;  %v8778_v62 = vld [vmem:[#allocation2 + $0x28] sm:$0xff]  ;;  %v8401_v63 = vpack.i.bf16 %v14033_v41, %v14107_v58  ;;  %v16576_v21 = vld [vmem:[#allocation30_spill] sm:$0xff]  ;;  %v4131_v41 = vld [vmem:[#allocation2 + $0x17] sm:$0xff] }
 0x677   : > { %v8070_v4 = vunpack.i.h.bf16 %v8068_v51  ;;  %v8069_v50 = vunpack.i.l.bf16 %v8068_v51  ;;  %v5727_v20 = vsel %vm5564_vm11, %v5673_v43, %v8074_v40  ;;  %v5565_v14 = vsel %vm5564_vm11, %v5510_v27, %v8075_v56  ;;  %v8780_v3 = vld [vmem:[#allocation2 + $0xa8] sm:$0xff] }
 0x678   : > { %8357 = vrot.lane.b32.xlu0 %v8356_v39, %s8941_s14  ;;  %v8083_v35 = vpop.permute.xlu1 %8082  ;;  %5999 = vmatprep.mubr.f32.mxu0 %v5727_v20  ;;  %v8386_v39 = vpack.i.bf16 %v14100_v54, %v14098_v42  ;;  %v5456_v56 = vsel %vm2553_vm8, %v4130_v22, %v7805_v6  ;;  %v7809_v36 = vunpack.i.l.bf16 %v16576_v21  ;;  %v8779_v20 = vld [vmem:[#allocation2 + $0xa0] sm:$0xff] }
 0x679   : > { %v5769_v32 = vsel %vm5564_vm11, %v5715_v10, %v8069_v50  ;;  %v5607_v29 = vsel %vm5564_vm11, %v5552_v28, %v8070_v4  ;;  %6000 = vmatmul.mubr.f32.vlgmr.msra.gmra.mrb[54].mxu0 %v5565_v14  ;;  %v8085_v0 = vunpack.i.h.bf16 %v8083_v35  ;;  %v8084_v23 = vunpack.i.l.bf16 %v8083_v35  ;;  %v14124_v28 = vld [vmem:[#allocation2 + $0x99] sm:$0xff] }
 0x67a   : > { %v14077_v18 = vpop.permute.xlu0 %8077  ;;  %6206 = vmatprep.mubr.f32.mxu1 %v5769_v32  ;;  %8372 = vrot.lane.b32.xlu1 %v8371_v2, %s8940_s29  ;;  %v8396_v14 = vpack.i.bf16 %v14009_v37, %v8779_v20  ;;  %v14126_v32 = vld [vmem:[#allocation2 + $0xa1] sm:$0xff] }
 0x67b   : > { %6207 = vmatmul.mubr.f32.gmra.mrb[22].mxu1 %v5607_v29  ;;  %v8079_v12 = vunpack.i.l.bf16 %v14077_v18  ;;  %v5716_v30 = vsel %vm5509_vm10, %v5662_v26, %v8084_v23  ;;  %v5553_v38 = vsel %vm5509_vm10, %v5498_v55, %v8085_v0  ;;  %v8080_v15 = vunpack.i.h.bf16 %v14077_v18  ;;  %v14140_v55 = vld [vmem:[#allocation2 + $0xaf] sm:$0xff] }
 0x67c   : > { %8367 = vrot.lane.b32.xlu0 %v8366_v45, %s8940_s29  ;;  %v8093_v16 = vpop.permute.xlu1 %8092  ;;  %v8406_v18 = vpack.i.bf16 %v14051_v59, %v8780_v3  ;;  %v8411_v37 = vpack.i.bf16 %v14126_v32, %v14124_v28  ;;  %v8781_v45 = vld [vmem:[#allocation2 + $0x180] sm:$0xff]  ;;  %v5457_v23 = vsel %vm2553_vm8, %v4131_v41, %v7809_v36 }
 0x67d   : > { %v8095_v9 = vunpack.i.h.bf16 %v8093_v16  ;;  %v8094_v19 = vunpack.i.l.bf16 %v8093_v16  ;;  %v5620_v51 = vsel %vm2553_vm8, %v8778_v62, %v8079_v12  ;;  %v5663_v0 = vsel %vm2553_vm8, %v8781_v45, %v8080_v15  ;;  %v8785_v62 = vld [vmem:[#allocation2 + $0xb8] sm:$0xff]  ;;  %v14179_v3 = vld [vmem:[#allocation2 + $0xc7] sm:$0xff] }
 0x67e   : > { %v8088_v13 = vpop.permute.xlu0 %8087  ;;  %8382 = vrot.lane.b32.xlu1 %v8381_v34, %s8940_s29  ;;  %v8782_v34 = vld [vmem:[#allocation2 + $0x30] sm:$0xff]  ;;  %v14167_v36 = vld [vmem:[#allocation2 + $0xbf] sm:$0xff] }
 0x67f   : > { %v8090_v25 = vunpack.i.h.bf16 %v8088_v13  ;;  %v8089_v52 = vunpack.i.l.bf16 %v8088_v13  ;;  %v5770_v1 = vsel %vm5564_vm11, %v5716_v30, %v8094_v19  ;;  %v5608_v57 = vsel %vm5564_vm11, %v5553_v38, %v8095_v9  ;;  %v8783_v9 = vld [vmem:[#allocation2 + $0x167] sm:$0xff] }
 0x680   : > { %8377 = vrot.lane.b32.xlu0 %v8376_v24, %s8941_s14  ;;  %v8103_v33 = vpop.permute.xlu1 %8102  ;;  %6211 = vmatprep.mubr.f32.mxu1 %v5770_v1 }
 0x681   : > { %6212 = vmatmul.mubr.f32.gmra.mrb[24].mxu1 %v5608_v57  ;;  %v5674_v53 = vsel %vm5509_vm10, %v5620_v51, %v8089_v52  ;;  %v5511_v40 = vsel %vm5509_vm10, %v5456_v56, %v8090_v25  ;;  %v8105_v27 = vunpack.i.h.bf16 %v8103_v33  ;;  %v8104_v49 = vunpack.i.l.bf16 %v8103_v33  ;;  %v8784_v57 = vld [vmem:[#allocation2 + $0xb0] sm:$0xff] }
 0x682   : > { %v8098_v46 = vpop.permute.xlu0 %8097  ;;  %8392 = vrot.lane.b32.xlu1 %v8391_v17, %s8941_s14  ;;  %v8421_v22 = vpack.i.bf16 %v14080_v31, %v8784_v57  ;;  %v8416_v17 = vpack.i.bf16 %v14035_v44, %v14140_v55  ;;  %v8431_v31 = vpack.i.bf16 %v14091_v61, %v8785_v62 }
 0x683   : > { %v8100_v47 = vunpack.i.h.bf16 %v8098_v46  ;;  %v8099_v5 = vunpack.i.l.bf16 %v8098_v46  ;;  %v5621_v13 = vsel %vm2553_vm8, %v8782_v34, %v8105_v27  ;;  %v5499_v19 = vsel %vm2553_vm8, %v8783_v9, %v8104_v49  ;;  %v14155_v46 = vld [vmem:[#allocation2 + $0xb7] sm:$0xff] }
 0x684   : > { %8387 = vrot.lane.b32.xlu0 %v8386_v39, %s8936_s17  ;;  %v8113_v4 = vpop.permute.xlu1 %8112  ;;  %v7810_v39 = vunpack.i.h.bf16 %v16576_v21  ;;  %v8426_v44 = vpack.i.bf16 %v14098_v42, %v14155_v46  ;;  %v8441_v42 = vpack.i.bf16 %v14100_v54, %v14167_v36  ;;  %v8786_v27 = vld [vmem:[#allocation2 + $0x38] sm:$0xff]  ;;  %v8451_v9 = vpack.i.bf16 %v14124_v28, %v14179_v3 }
 0x685   : > { %v5728_v50 = vsel %vm5564_vm11, %v5674_v53, %v8099_v5  ;;  %v5566_v43 = vsel %vm5564_vm11, %v5511_v40, %v8100_v47  ;;  %v8115_v35 = vunpack.i.h.bf16 %v8113_v4  ;;  %v8114_v29 = vunpack.i.l.bf16 %v8113_v4  ;;  %v14163_v40 = vld [vmem:[#allocation2 + $0xa9] sm:$0xff] }
 0x686   : > { %v8108_v10 = vpop.permute.xlu0 %8107  ;;  %6003 = vmatprep.mubr.f32.mxu0 %v5728_v50  ;;  %8402 = vrot.lane.b32.xlu1 %v8401_v63, %s8941_s14  ;;  %v14165_v63 = vld [vmem:[#allocation2 + $0xb1] sm:$0xff] }
 0x687   : > { %6004 = vmatmul.mubr.f32.gmra.mrb[56].mxu0 %v5566_v43  ;;  %v8110_v8 = vunpack.i.h.bf16 %v8108_v10  ;;  %v8109_v2 = vunpack.i.l.bf16 %v8108_v10  ;;  %v5675_v59 = vsel %vm5509_vm10, %v5621_v13, %v8114_v29  ;;  %v5512_v7 = vsel %vm5509_vm10, %v5457_v23, %v8115_v35  ;;  %v8787_v10 = vld [vmem:[#allocation2 + $0x1f] sm:$0xff]  ;;  %v8788_v29 = vld [vmem:[#allocation2 + $0x188] sm:$0xff] }
 0x688   : > { %8397 = vrot.lane.b32.xlu0 %v8396_v14, %s8940_s29  ;;  %v8123_v60 = vpop.permute.xlu1 %8122  ;;  %v8436_v43 = vpack.i.bf16 %v14165_v63, %v14163_v40  ;;  %v5458_v20 = vsel %vm2553_vm8, %v8787_v10, %v7810_v39  ;;  %v8793_v39 = vld [vmem:[#allocation2 + $0x190] sm:$0xff]  ;;  %v8795_v10 = vld [vmem:[#allocation2 + $0x40] sm:$0xff] }
 0x689   : > { %v8125_v24 = vunpack.i.h.bf16 %v8123_v60  ;;  %v8124_v11 = vunpack.i.l.bf16 %v8123_v60  ;;  %v5717_v12 = vsel %vm5509_vm10, %v5663_v0, %v8109_v2  ;;  %v5554_v38 = vsel %vm5509_vm10, %v5499_v19, %v8110_v8  ;;  %v8789_v2 = vld [vmem:[#allocation2 + $0x16f] sm:$0xff] }
 0x68a   : > { %v8118_v16 = vpop.permute.xlu0 %8117  ;;  %8412 = vrot.lane.b32.xlu1 %v8411_v37, %s8936_s17 }
 0x68b   : > { %v8120_v48 = vunpack.i.h.bf16 %v8118_v16  ;;  %v8119_v26 = vunpack.i.l.bf16 %v8118_v16  ;;  %v5729_v6 = vsel %vm5564_vm11, %v5675_v59, %v8124_v11  ;;  %v5567_v30 = vsel %vm5564_vm11, %v5512_v7, %v8125_v24  ;;  %v14195_v7 = vld [vmem:[#allocation2 + $0xb9] sm:$0xff] }
 0x68c   : > { %8407 = vrot.lane.b32.xlu0 %v8406_v18, %s8940_s29  ;;  %v14147_v25 = vpop.permute.xlu1 %8132  ;;  %6007 = vmatprep.mubr.f32.mxu0 %v5729_v6  ;;  %v14197_v6 = vld [vmem:[#allocation2 + $0xc1] sm:$0xff] }
 0x68d   : > { %v5771_v52 = vsel %vm5564_vm11, %v5717_v12, %v8119_v26  ;;  %v5609_v1 = vsel %vm5564_vm11, %v5554_v38, %v8120_v48  ;;  %6008 = vmatmul.mubr.f32.gmra.mrb[58].mxu0 %v5567_v30  ;;  %v8134_v47 = vunpack.i.l.bf16 %v14147_v25  ;;  %v8135_v19 = vunpack.i.h.bf16 %v14147_v25  ;;  %v8790_v26 = vld [vmem:[#allocation2 + $0xc0] sm:$0xff] }
 0x68e   : > { %v8128_v33 = vpop.permute.xlu0 %8127  ;;  %6216 = vmatprep.mubr.f32.mxu1 %v5771_v52  ;;  %8422 = vrot.lane.b32.xlu1 %v8421_v22, %s8940_s29  ;;  %v8446_v59 = vpack.i.bf16 %v14107_v58, %v8790_v26  ;;  %v8461_v25 = vpack.i.bf16 %v14197_v6, %v14195_v7  ;;  %v8791_v52 = vld [vmem:[#allocation2 + $0x177] sm:$0xff] }
 0x68f   : > { %6217 = vmatmul.mubr.f32.gmra.mrb[26].mxu1 %v5609_v1  ;;  %v8130_v51 = vunpack.i.h.bf16 %v8128_v33  ;;  %v8129_v56 = vunpack.i.l.bf16 %v8128_v33  ;;  %v5622_v49 = vsel %vm2553_vm8, %v8786_v27, %v8134_v47  ;;  %v8792_v33 = vld [vmem:[#allocation2 + $0xc8] sm:$0xff]  ;;  %v5665_v47 = vsel %vm2553_vm8, %v8793_v39, %v8135_v19 }
 0x690   : > { %8417 = vrot.lane.b32.xlu0 %v8416_v17, %s8941_s14  ;;  %v8143_v5 = vpop.permute.xlu1 %8142  ;;  %v8456_v17 = vpack.i.bf16 %v14140_v55, %v8792_v33 }
 0x691   : > { %v8145_v15 = vunpack.i.h.bf16 %v8143_v5  ;;  %v8144_v21 = vunpack.i.l.bf16 %v8143_v5  ;;  %v5664_v8 = vsel %vm2553_vm8, %v8788_v29, %v8129_v56  ;;  %v5500_v60 = vsel %vm2553_vm8, %v8789_v2, %v8130_v51  ;;  %v16577_v5 = vld [vmem:[#allocation207_spill] sm:$0xff] }
 0x692   : > { %v8138_v53 = vpop.permute.xlu0 %8137  ;;  %8432 = vrot.lane.b32.xlu1 %v8431_v31, %s8940_s29  ;;  %v7814_v62 = vunpack.i.l.bf16 %v16577_v5 }
 0x693   : > { %v8140_v4 = vunpack.i.h.bf16 %v8138_v53  ;;  %v8139_v50 = vunpack.i.l.bf16 %v8138_v53  ;;  %v5676_v54 = vsel %vm5509_vm10, %v5622_v49, %v8144_v21  ;;  %v5513_v45 = vsel %vm5509_vm10, %v5458_v20, %v8145_v15  ;;  %v14210_v53 = vld [vmem:[#allocation2 + $0xcf] sm:$0xff] }
 0x694   : > { %8427 = vrot.lane.b32.xlu0 %v8426_v44, %s8941_s14  ;;  %v8153_v61 = vpop.permute.xlu1 %8152 }
 0x695   : > { %v8155_v41 = vunpack.i.h.bf16 %v8153_v61  ;;  %v8154_v35 = vunpack.i.l.bf16 %v8153_v61  ;;  %v5718_v23 = vsel %vm5509_vm10, %v5664_v8, %v8139_v50  ;;  %v5555_v24 = vsel %vm5509_vm10, %v5500_v60, %v8140_v4  ;;  %v8794_v50 = vld [vmem:[#allocation2 + $0xd0] sm:$0xff]  ;;  %v8797_v60 = vld [vmem:[#allocation2 + $0xd8] sm:$0xff] }
 0x696   : > { %v8148_v14 = vpop.permute.xlu0 %8147  ;;  %8442 = vrot.lane.b32.xlu1 %v8441_v42, %s8941_s14  ;;  %v8471_v61 = vpack.i.bf16 %v14155_v46, %v8794_v50  ;;  %v8466_v42 = vpack.i.bf16 %v14126_v32, %v14210_v53 }
 0x697   : > { %v8150_v18 = vunpack.i.h.bf16 %v8148_v14  ;;  %v8149_v37 = vunpack.i.l.bf16 %v8148_v14  ;;  %v5730_v0 = vsel %vm5564_vm11, %v5676_v54, %v8154_v35  ;;  %v5568_v16 = vsel %vm5564_vm11, %v5513_v45, %v8155_v41  ;;  %v8796_v14 = vld [vmem:[#allocation2 + $0x27] sm:$0xff]  ;;  %v14221_v35 = vld [vmem:[#allocation2 + $0xd7] sm:$0xff] }
 0x698   : > { %8437 = vrot.lane.b32.xlu0 %v8436_v43, %s8936_s17  ;;  %v8163_v11 = vpop.permute.xlu1 %8162  ;;  %6011 = vmatprep.mubr.f32.mxu0 %v5730_v0  ;;  %v5459_v41 = vsel %vm2553_vm8, %v8796_v14, %v7814_v62  ;;  %v8476_v0 = vpack.i.bf16 %v14163_v40, %v14221_v35 }
 0x699   : > { %v5772_v34 = vsel %vm5564_vm11, %v5718_v23, %v8149_v37  ;;  %v5610_v13 = vsel %vm5564_vm11, %v5555_v24, %v8150_v18  ;;  %6012 = vmatmul.mubr.f32.gmra.mrb[60].mxu0 %v5568_v16  ;;  %v8165_v30 = vunpack.i.h.bf16 %v8163_v11  ;;  %v8164_v38 = vunpack.i.l.bf16 %v8163_v11  ;;  %v14233_v23 = vld [vmem:[#allocation2 + $0xc9] sm:$0xff]  ;;  %v14235_v16 = vld [vmem:[#allocation2 + $0xd1] sm:$0xff]  ;;  %v14237_v24 = vld [vmem:[#allocation2 + $0xdf] sm:$0xff] }
 0x69a   : > { %v8158_v48 = vpop.permute.xlu0 %8157  ;;  %6221 = vmatprep.mubr.f32.mxu1 %v5772_v34  ;;  %8452 = vrot.lane.b32.xlu1 %v8451_v9, %s8941_s14  ;;  %v8481_v18 = vpack.i.bf16 %v14167_v36, %v8797_v60  ;;  %v8491_v9 = vpack.i.bf16 %v14165_v63, %v14237_v24 }
 0x69b   : > { %v8159_v12 = vunpack.i.l.bf16 %v8158_v48  ;;  %6222 = vmatmul.mubr.f32.gmra.mrb[28].mxu1 %v5610_v13  ;;  %v8160_v31 = vunpack.i.h.bf16 %v8158_v48  ;;  %v5719_v51 = vsel %vm5509_vm10, %v5665_v47, %v8164_v38  ;;  %v8486_v13 = vpack.i.bf16 %v14235_v16, %v14233_v23  ;;  %v14259_v47 = vld [vmem:[#allocation2 + $0xd9] sm:$0xff] }
 0x69c   : > { %8447 = vrot.lane.b32.xlu0 %v8446_v59, %s8940_s29  ;;  %v8173_v28 = vpop.permute.xlu1 %8172  ;;  %v8798_v59 = vld [vmem:[#allocation2 + $0x198] sm:$0xff] }
 0x69d   : > { %v5501_v1 = vsel %vm2553_vm8, %v8791_v52, %v8159_v12  ;;  %v8175_v57 = vunpack.i.h.bf16 %v8173_v28  ;;  %v8174_v22 = vunpack.i.l.bf16 %v8173_v28  ;;  %v5623_v20 = vsel %vm2553_vm8, %v8795_v10, %v8160_v31  ;;  %v14247_v28 = vld [vmem:[#allocation2 + $0xe7] sm:$0xff] }
 0x69e   : > { %v8168_v58 = vpop.permute.xlu0 %8167  ;;  %8462 = vrot.lane.b32.xlu1 %v8461_v25, %s8936_s17  ;;  %v5556_v56 = vsel %vm5509_vm10, %v5501_v1, %v8165_v30  ;;  %v8799_v30 = vld [vmem:[#allocation2 + $0x17f] sm:$0xff]  ;;  %v7815_v25 = vunpack.i.h.bf16 %v16577_v5  ;;  %v8501_v39 = vpack.i.bf16 %v14195_v7, %v14247_v28 }
 0x69f   : > { %v8170_v44 = vunpack.i.h.bf16 %v8168_v58  ;;  %v8169_v15 = vunpack.i.l.bf16 %v8168_v58  ;;  %v5773_v55 = vsel %vm5564_vm11, %v5719_v51, %v8174_v22  ;;  %v5611_v21 = vsel %vm5564_vm11, %v5556_v56, %v8175_v57  ;;  %v14261_v5 = vld [vmem:[#allocation2 + $0xe1] sm:$0xff] }
 0x6a0   : > { %8457 = vrot.lane.b32.xlu0 %v8456_v17, %s8940_s29  ;;  %v8183_v4 = vpop.permute.xlu1 %8182  ;;  %6226 = vmatprep.mubr.f32.mxu1 %v5773_v55  ;;  %v8800_v31 = vld [vmem:[#allocation2 + $0xe0] sm:$0xff] }
 0x6a1   : > { %6227 = vmatmul.mubr.f32.gmra.mrb[30].mxu1 %v5611_v21  ;;  %v5677_v46 = vsel %vm5509_vm10, %v5623_v20, %v8169_v15  ;;  %v5514_v29 = vsel %vm5509_vm10, %v5459_v41, %v8170_v44  ;;  %v8185_v37 = vunpack.i.h.bf16 %v8183_v4  ;;  %v8184_v54 = vunpack.i.l.bf16 %v8183_v4  ;;  %v8801_v15 = vld [vmem:[#allocation2 + $0x48] sm:$0xff] }
 0x6a2   : > { %v8178_v43 = vpop.permute.xlu0 %8177  ;;  %8472 = vrot.lane.b32.xlu1 %v8471_v61, %s8940_s29  ;;  %v8496_v51 = vpack.i.bf16 %v14179_v3, %v8800_v31  ;;  %v8802_v21 = vld [vmem:[#allocation2 + $0x2f] sm:$0xff]  ;;  %v16578_v3 = vld [vmem:[#allocation118_spill] sm:$0xff] }
 0x6a3   : > { %v8180_v27 = vunpack.i.h.bf16 %v8178_v43  ;;  %v8179_v49 = vunpack.i.l.bf16 %v8178_v43  ;;  %v5666_v12 = vsel %vm2553_vm8, %v8798_v59, %v8184_v54  ;;  %v5502_v38 = vsel %vm2553_vm8, %v8799_v30, %v8185_v37 }
 0x6a4   : > { %8467 = vrot.lane.b32.xlu0 %v8466_v42, %s8941_s14  ;;  %v8193_v8 = vpop.permute.xlu1 %8192  ;;  %v5460_v4 = vsel %vm2553_vm8, %v8802_v21, %v7815_v25  ;;  %v8511_v43 = vpack.i.bf16 %v14261_v5, %v14259_v47  ;;  %v7819_v42 = vunpack.i.l.bf16 %v16578_v3 }
 0x6a5   : > { %v5731_v32 = vsel %vm5564_vm11, %v5677_v46, %v8179_v49  ;;  %v5569_v2 = vsel %vm5564_vm11, %v5514_v29, %v8180_v27  ;;  %v8195_v11 = vunpack.i.h.bf16 %v8193_v8  ;;  %v8194_v34 = vunpack.i.l.bf16 %v8193_v8  ;;  %v8803_v29 = vld [vmem:[#allocation2 + $0xe8] sm:$0xff] }
 0x6a6   : > { %v14229_v45 = vpop.permute.xlu0 %8187  ;;  %6016 = vmatprep.mubr.f32.mxu0 %v5731_v32  ;;  %8482 = vrot.lane.b32.xlu1 %v8481_v18, %s8940_s29  ;;  %v8506_v8 = vpack.i.bf16 %v14210_v53, %v8803_v29  ;;  %v14277_v32 = vld [vmem:[#allocation2 + $0xef] sm:$0xff]  ;;  %v14322_v29 = vld [vmem:[#allocation2 + $0x107] sm:$0xff] }
 0x6a7   : > { %6017 = vmatmul.mubr.f32.gmra.mrb[62].mxu0 %v5569_v2  ;;  %v8189_v52 = vunpack.i.l.bf16 %v14229_v45  ;;  %v5720_v1 = vsel %vm5509_vm10, %v5666_v12, %v8194_v34  ;;  %v5557_v63 = vsel %vm5509_vm10, %v5502_v38, %v8195_v11  ;;  %v8190_v27 = vunpack.i.h.bf16 %v14229_v45  ;;  %v8805_v34 = vld [vmem:[#allocation2 + $0x1a0] sm:$0xff] }
 0x6a8   : > { %8477 = vrot.lane.b32.xlu0 %v8476_v0, %s8941_s14  ;;  %v8203_v36 = vpop.permute.xlu1 %8202  ;;  %v8516_v45 = vpack.i.bf16 %v14197_v6, %v14277_v32  ;;  %v8804_v0 = vld [vmem:[#allocation2 + $0xf0] sm:$0xff]  ;;  %v8808_v12 = vld [vmem:[#allocation2 + $0x187] sm:$0xff] }
 0x6a9   : > { %v8205_v48 = vunpack.i.h.bf16 %v8203_v36  ;;  %v8204_v26 = vunpack.i.l.bf16 %v8203_v36  ;;  %v5624_v55 = vsel %vm2553_vm8, %v8801_v15, %v8189_v52  ;;  %v8521_v11 = vpack.i.bf16 %v14221_v35, %v8804_v0  ;;  %v8806_v36 = vld [vmem:[#allocation2 + $0x37] sm:$0xff] }
 0x6aa   : > { %v8198_v19 = vpop.permute.xlu0 %8197  ;;  %8492 = vrot.lane.b32.xlu1 %v8491_v9, %s8941_s14  ;;  %v5667_v53 = vsel %vm2553_vm8, %v8805_v34, %v8190_v27  ;;  %v14308_v15 = vld [vmem:[#allocation2 + $0xf1] sm:$0xff] }
 0x6ab   : > { %v8200_v58 = vunpack.i.h.bf16 %v8198_v19  ;;  %v8199_v57 = vunpack.i.l.bf16 %v8198_v19  ;;  %v5774_v22 = vsel %vm5564_vm11, %v5720_v1, %v8204_v26  ;;  %v5612_v33 = vsel %vm5564_vm11, %v5557_v63, %v8205_v48  ;;  %v8807_v26 = vld [vmem:[#allocation2 + $0x50] sm:$0xff] }
 0x6ac   : > { %8487 = vrot.lane.b32.xlu0 %v8486_v13, %s8936_s17  ;;  %v8213_v17 = vpop.permute.xlu1 %8212  ;;  %6231 = vmatprep.mubr.f32.mxu1 %v5774_v22  ;;  %v5461_v13 = vsel %vm2553_vm8, %v8806_v36, %v7819_v42  ;;  %v14291_v1 = vld [vmem:[#allocation2 + $0xf7] sm:$0xff] }
 0x6ad   : > { %6232 = vmatmul.mubr.f32.gmra.mrb[32].mxu1 %v5612_v33  ;;  %v5678_v50 = vsel %vm5509_vm10, %v5624_v55, %v8199_v57  ;;  %v5515_v61 = vsel %vm5509_vm10, %v5460_v4, %v8200_v58  ;;  %v8215_v14 = vunpack.i.h.bf16 %v8213_v17  ;;  %v8214_v41 = vunpack.i.l.bf16 %v8213_v17  ;;  %v14313_v4 = vld [vmem:[#allocation2 + $0xff] sm:$0xff] }
 0x6ae   : > { %v8208_v62 = vpop.permute.xlu0 %8207  ;;  %8502 = vrot.lane.b32.xlu1 %v8501_v39, %s8941_s14  ;;  %v7820_v55 = vunpack.i.h.bf16 %v16578_v3  ;;  %v14330_v36 = vld [vmem:[#allocation2 + $0xf9] sm:$0xff] }
 0x6af   : > { %v8210_v56 = vunpack.i.h.bf16 %v8208_v62  ;;  %v8209_v44 = vunpack.i.l.bf16 %v8208_v62  ;;  %v5625_v59 = vsel %vm2553_vm8, %v8807_v26, %v8215_v14  ;;  %v5503_v30 = vsel %vm2553_vm8, %v8808_v12, %v8214_v41  ;;  %v8809_v62 = vld [vmem:[#allocation2 + $0xf8] sm:$0xff]  ;;  %v8811_v41 = vld [vmem:[#allocation2 + $0x100] sm:$0xff] }
 0x6b0   : > { %8497 = vrot.lane.b32.xlu0 %v8496_v51, %s8940_s29  ;;  %v8223_v49 = vpop.permute.xlu1 %8222  ;;  %v8531_v31 = vpack.i.bf16 %v14237_v24, %v8809_v62 }
 0x6b1   : > { %v5732_v10 = vsel %vm5564_vm11, %v5678_v50, %v8209_v44  ;;  %v5570_v20 = vsel %vm5564_vm11, %v5515_v61, %v8210_v56  ;;  %v8225_v2 = vunpack.i.h.bf16 %v8223_v49  ;;  %v8224_v60 = vunpack.i.l.bf16 %v8223_v49  ;;  %v14306_v44 = vld [vmem:[#allocation2 + $0xe9] sm:$0xff] }
 0x6b2   : > { %v8218_v46 = vpop.permute.xlu0 %8217  ;;  %6021 = vmatprep.mubr.f32.mxu0 %v5732_v10  ;;  %8512 = vrot.lane.b32.xlu1 %v8511_v43, %s8936_s17  ;;  %v8526_v56 = vpack.i.bf16 %v14233_v23, %v14291_v1  ;;  %v8541_v50 = vpack.i.bf16 %v14235_v16, %v14313_v4  ;;  %v8536_v27 = vpack.i.bf16 %v14308_v15, %v14306_v44 }
 0x6b3   : > { %6022 = vmatmul.mubr.f32.gmra.mrb[64].mxu0 %v5570_v20  ;;  %v8220_v18 = vunpack.i.h.bf16 %v8218_v46  ;;  %v8219_v37 = vunpack.i.l.bf16 %v8218_v46  ;;  %v5679_v35 = vsel %vm5509_vm10, %v5625_v59, %v8224_v60  ;;  %v5516_v52 = vsel %vm5509_vm10, %v5461_v13, %v8225_v2  ;;  %v8813_v2 = vld [vmem:[#allocation2 + $0x58] sm:$0xff] }
 0x6b4   : > { %8507 = vrot.lane.b32.xlu0 %v8506_v8, %s8940_s29  ;;  %v8233_v54 = vpop.permute.xlu1 %8232  ;;  %v8546_v46 = vpack.i.bf16 %v14247_v28, %v8811_v41  ;;  %v8551_v8 = vpack.i.bf16 %v14259_v47, %v14322_v29 }
 0x6b5   : > { %v8235_v19 = vunpack.i.h.bf16 %v8233_v54  ;;  %v8234_v48 = vunpack.i.l.bf16 %v8233_v54  ;;  %v5721_v58 = vsel %vm5509_vm10, %v5667_v53, %v8219_v37  ;;  %v5558_v22 = vsel %vm5509_vm10, %v5503_v30, %v8220_v18  ;;  %v8814_v18 = vld [vmem:[#allocation2 + $0x3f] sm:$0xff]  ;;  %v8816_v53 = vld [vmem:[#allocation2 + $0x18f] sm:$0xff] }
 0x6b6   : > { %v8228_v9 = vpop.permute.xlu0 %8227  ;;  %8522 = vrot.lane.b32.xlu1 %v8521_v11, %s8940_s29  ;;  %v5462_v37 = vsel %vm2553_vm8, %v8814_v18, %v7820_v55  ;;  %v8815_v11 = vld [vmem:[#allocation2 + $0x1a8] sm:$0xff] }
 0x6b7   : > { %v8230_v38 = vunpack.i.h.bf16 %v8228_v9  ;;  %v8229_v25 = vunpack.i.l.bf16 %v8228_v9  ;;  %v5733_v63 = vsel %vm5564_vm11, %v5679_v35, %v8234_v48  ;;  %v5571_v57 = vsel %vm5564_vm11, %v5516_v52, %v8235_v19  ;;  %v14342_v52 = vld [vmem:[#allocation2 + $0x101] sm:$0xff] }
 0x6b8   : > { %8517 = vrot.lane.b32.xlu0 %v8516_v45, %s8941_s14  ;;  %v14298_v33 = vpop.permute.xlu1 %8242  ;;  %6026 = vmatprep.mubr.f32.mxu0 %v5733_v63  ;;  %v8561_v63 = vpack.i.bf16 %v14342_v52, %v14330_v36 }
 0x6b9   : > { %v5775_v17 = vsel %vm5564_vm11, %v5721_v58, %v8229_v25  ;;  %v5613_v39 = vsel %vm5564_vm11, %v5558_v22, %v8230_v38  ;;  %6027 = vmatmul.mubr.f32.gmra.mrb[66].mxu0 %v5571_v57  ;;  %v8244_v21 = vunpack.i.l.bf16 %v14298_v33  ;;  %v8245_v58 = vunpack.i.h.bf16 %v14298_v33  ;;  %v8818_v22 = vld [vmem:[#allocation2 + $0x108] sm:$0xff] }
 0x6ba   : > { %v8238_v51 = vpop.permute.xlu0 %8237  ;;  %6236 = vmatprep.mubr.f32.mxu1 %v5775_v17  ;;  %8532 = vrot.lane.b32.xlu1 %v8531_v31, %s8940_s29  ;;  %v8556_v17 = vpack.i.bf16 %v14277_v32, %v8818_v22 }
 0x6bb   : > { %6237 = vmatmul.mubr.f32.gmra.mrb[34].mxu1 %v5613_v39  ;;  %v8240_v61 = vunpack.i.h.bf16 %v8238_v51  ;;  %v8239_v43 = vunpack.i.l.bf16 %v8238_v51  ;;  %v5626_v60 = vsel %vm2553_vm8, %v8813_v2, %v8244_v21  ;;  %v8820_v21 = vld [vmem:[#allocation2 + $0x197] sm:$0xff] }
 0x6bc   : > { %8527 = vrot.lane.b32.xlu0 %v8526_v56, %s8941_s14  ;;  %v8253_v24 = vpop.permute.xlu1 %8252  ;;  %v8819_v56 = vld [vmem:[#allocation2 + $0x110] sm:$0xff] }
 0x6bd   : > { %v8255_v49 = vunpack.i.h.bf16 %v8253_v24  ;;  %v8254_v10 = vunpack.i.l.bf16 %v8253_v24  ;;  %v5668_v34 = vsel %vm2553_vm8, %v8815_v11, %v8239_v43  ;;  %v5504_v28 = vsel %vm2553_vm8, %v8816_v53, %v8240_v61  ;;  %v14352_v43 = vld [vmem:[#allocation2 + $0x10f] sm:$0xff] }
 0x6be   : > { %v8248_v42 = vpop.permute.xlu0 %8247  ;;  %8542 = vrot.lane.b32.xlu1 %v8541_v50, %s8941_s14  ;;  %v8571_v55 = vpack.i.bf16 %v14291_v1, %v8819_v56  ;;  %v8566_v32 = vpack.i.bf16 %v14261_v5, %v14352_v43 }
 0x6bf   : > { %v8250_v20 = vunpack.i.h.bf16 %v8248_v42  ;;  %v8249_v3 = vunpack.i.l.bf16 %v8248_v42  ;;  %v5680_v19 = vsel %vm5509_vm10, %v5626_v60, %v8254_v10  ;;  %v5517_v48 = vsel %vm5509_vm10, %v5462_v37, %v8255_v49  ;;  %v8822_v42 = vld [vmem:[#allocation2 + $0x1b0] sm:$0xff]  ;;  %v8823_v60 = vld [vmem:[#allocation2 + $0x118] sm:$0xff] }
 0x6c0   : > { %8537 = vrot.lane.b32.xlu0 %v8536_v27, %s8936_s17  ;;  %v8263_v14 = vpop.permute.xlu1 %8262  ;;  %v5669_v27 = vsel %vm2553_vm8, %v8822_v42, %v8245_v58  ;;  %v16579_v49 = vld [vmem:[#allocation56_spill] sm:$0xff]  ;;  %v8581_v18 = vpack.i.bf16 %v14313_v4, %v8823_v60  ;;  %v7026_v42 = vld [vmem:[%s455_s19] sm:$0xff] }
 0x6c1   : > { %v8265_v45 = vunpack.i.h.bf16 %v8263_v14  ;;  %v8264_v0 = vunpack.i.l.bf16 %v8263_v14  ;;  %v5722_v59 = vsel %vm5509_vm10, %v5668_v34, %v8249_v3  ;;  %v5559_v30 = vsel %vm5509_vm10, %v5504_v28, %v8250_v20  ;;  %v8825_v34 = vld [vmem:[#allocation2 + $0x60] sm:$0xff] }
 0x6c2   : > { %v8258_v54 = vpop.permute.xlu0 %8257  ;;  %8552 = vrot.lane.b32.xlu1 %v8551_v8, %s8941_s14  ;;  %v7824_v10 = vunpack.i.l.bf16 %v16579_v49  ;;  %v8826_v28 = vld [vmem:[#allocation2 + $0x47] sm:$0xff] }
 0x6c3   : > { %v8260_v13 = vunpack.i.h.bf16 %v8258_v54  ;;  %v8259_v9 = vunpack.i.l.bf16 %v8258_v54  ;;  %v5734_v26 = vsel %vm5564_vm11, %v5680_v19, %v8264_v0  ;;  %v5572_v12 = vsel %vm5564_vm11, %v5517_v48, %v8265_v45  ;;  %v8824_v54 = vld [vmem:[#allocation2 + $0x117] sm:$0xff] }
 0x6c4   : > { %8547 = vrot.lane.b32.xlu0 %v8546_v46, %s8940_s29  ;;  %v8273_v38 = vpop.permute.xlu1 %8272  ;;  %6031 = vmatprep.mubr.f32.mxu0 %v5734_v26  ;;  %v8576_v45 = vpack.i.bf16 %v14306_v44, %v8824_v54 }
 0x6c5   : > { %v5776_v25 = vsel %vm5564_vm11, %v5722_v59, %v8259_v9  ;;  %v5614_v35 = vsel %vm5564_vm11, %v5559_v30, %v8260_v13  ;;  %6032 = vmatmul.mubr.f32.gmra.mrb[68].mxu0 %v5572_v12  ;;  %v8275_v62 = vunpack.i.h.bf16 %v8273_v38  ;;  %v8274_v31 = vunpack.i.l.bf16 %v8273_v38  ;;  %v8827_v59 = vld [vmem:[#allocation2 + $0x11f] sm:$0xff] }
 0x6c6   : > { %v8268_v57 = vpop.permute.xlu0 %8267  ;;  %6241 = vmatprep.mubr.f32.mxu1 %v5776_v25  ;;  %8562 = vrot.lane.b32.xlu1 %v8561_v63, %s8936_s17  ;;  %v5463_v13 = vsel %vm2553_vm8, %v8826_v28, %v7824_v10  ;;  %v8591_v12 = vpack.i.bf16 %v14308_v15, %v8827_v59  ;;  %v14379_v63 = vld [vmem:[#allocation2 + $0x111] sm:$0xff]  ;;  %v7052_v10 = vcombine.high %v7026_v42, %v7026_v42 }
 0x6c7   : > { %v8269_v39 = vunpack.i.l.bf16 %v8268_v57  ;;  %6242 = vmatmul.mubr.f32.gmra.mrb[36].mxu1 %v5614_v35  ;;  %v8270_v20 = vunpack.i.h.bf16 %v8268_v57  ;;  %v5723_v1 = vsel %vm5509_vm10, %v5669_v27, %v8274_v31  ;;  %v14377_v35 = vld [vmem:[#allocation2 + $0x109] sm:$0xff] }
 0x6c8   : > { %8557 = vrot.lane.b32.xlu0 %v8556_v17, %s8940_s29  ;;  %v8283_v51 = vpop.permute.xlu1 %8282  ;;  %v8586_v58 = vpack.i.bf16 %v14379_v63, %v14377_v35  ;;  %v7825_v17 = vunpack.i.h.bf16 %v16579_v49  ;;  %7372 = vmatprep.subr.msk.mxu0 %vm2783_vm0, %v7052_v10 }
 0x6c9   : > { %v5505_v33 = vsel %vm2553_vm8, %v8820_v21, %v8269_v39  ;;  %v8285_v50 = vunpack.i.h.bf16 %v8283_v51  ;;  %v8284_v61 = vunpack.i.l.bf16 %v8283_v51  ;;  %v5627_v53 = vsel %vm2553_vm8, %v8825_v34, %v8270_v20  ;;  %v8831_v51 = vld [vmem:[#allocation2 + $0x127] sm:$0xff]  ;;  %7373 = vmatpush1.msk.msra.mxu0 %vm2783_vm0, %v7026_v42 }
 0x6ca   : > { %v8278_v24 = vpop.permute.xlu0 %8277  ;;  %8572 = vrot.lane.b32.xlu1 %v8571_v55, %s8940_s29  ;;  %v5560_v3 = vsel %vm5509_vm10, %v5505_v33, %v8275_v62  ;;  %v8830_v62 = vld [vmem:[#allocation2 + $0x120] sm:$0xff]  ;;  %v8601_v56 = vpack.i.bf16 %v14330_v36, %v8831_v51 }
 0x6cb   : > { %v8280_v14 = vunpack.i.h.bf16 %v8278_v24  ;;  %v8279_v41 = vunpack.i.l.bf16 %v8278_v24  ;;  %v5777_v46 = vsel %vm5564_vm11, %v5723_v1, %v8284_v61  ;;  %v5615_v8 = vsel %vm5564_vm11, %v5560_v3, %v8285_v50  ;;  %v8832_v24 = vld [vmem:[#allocation2 + $0x1b8] sm:$0xff] }
 0x6cc   : > { %8567 = vrot.lane.b32.xlu0 %v8566_v32, %s8941_s14  ;;  %v8293_v2 = vpop.permute.xlu1 %8292  ;;  %6246 = vmatprep.mubr.f32.mxu1 %v5777_v46  ;;  %v8596_v31 = vpack.i.bf16 %v14322_v29, %v8830_v62  ;;  %v8833_v61 = vld [vmem:[#allocation2 + $0x19f] sm:$0xff] }
 0x6cd   : > { %6247 = vmatmul.mubr.f32.gmra.mrb[38].mxu1 %v5615_v8  ;;  %v5681_v9 = vsel %vm5509_vm10, %v5627_v53, %v8279_v41  ;;  %v5518_v4 = vsel %vm5509_vm10, %v5463_v13, %v8280_v14  ;;  %v8295_v30 = vunpack.i.h.bf16 %v8293_v2  ;;  %v8294_v38 = vunpack.i.l.bf16 %v8293_v2  ;;  %v8834_v8 = vld [vmem:[#allocation2 + $0x128] sm:$0xff]  ;;  %v16580_v53 = vld [vmem:[#allocation249_spill] sm:$0xff] }
 0x6ce   : > { %v8288_v37 = vpop.permute.xlu0 %8287  ;;  %8582 = vrot.lane.b32.xlu1 %v8581_v18, %s8940_s29  ;;  %v8606_v2 = vpack.i.bf16 %v14352_v43, %v8834_v8  ;;  %v7829_v28 = vunpack.i.l.bf16 %v16580_v53 }
 0x6cf   : > { %v8290_v0 = vunpack.i.h.bf16 %v8288_v37  ;;  %v8289_v11 = vunpack.i.l.bf16 %v8288_v37  ;;  %v5670_v50 = vsel %vm2553_vm8, %v8832_v24, %v8294_v38  ;;  %v5506_v32 = vsel %vm2553_vm8, %v8833_v61, %v8295_v30  ;;  %v8835_v37 = vld [vmem:[#allocation2 + $0x68] sm:$0xff] }
 0x6d0   : > { %8577 = vrot.lane.b32.xlu0 %v8576_v45, %s8941_s14  ;;  %v8303_v19 = vpop.permute.xlu1 %8302  ;;  %v8836_v45 = vld [vmem:[#allocation2 + $0x4f] sm:$0xff] }
 0x6d1   : > { %v5735_v48 = vsel %vm5564_vm11, %v5681_v9, %v8289_v11  ;;  %v5573_v26 = vsel %vm5564_vm11, %v5518_v4, %v8290_v0  ;;  %v8305_v57 = vunpack.i.h.bf16 %v8303_v19  ;;  %v8304_v22 = vunpack.i.l.bf16 %v8303_v19  ;;  %v7027_v19 = vld [vmem:[%s15365_s12] sm:$0xff] }
 0x6d2   : > { %v14375_v25 = vpop.permute.xlu0 %8297  ;;  %6036 = vmatprep.mubr.f32.mxu0 %v5735_v48  ;;  %8592 = vrot.lane.b32.xlu1 %v8591_v12, %s8941_s14  ;;  %v5464_v0 = vsel %vm2553_vm8, %v8836_v45, %v7825_v17 }
 0x6d3   : > { %6037 = vmatmul.mubr.f32.gmra.mrb[70].mxu0 %v5573_v26  ;;  %v8299_v27 = vunpack.i.l.bf16 %v14375_v25  ;;  %v5724_v29 = vsel %vm5509_vm10, %v5670_v50, %v8304_v22  ;;  %v5561_v49 = vsel %vm5509_vm10, %v5506_v32, %v8305_v57  ;;  %v8300_v43 = vunpack.i.h.bf16 %v14375_v25  ;;  %v7028_v57 = vld [vmem:[%s15365_s12 + $0x8] sm:$0xff]  ;;  %v8837_v22 = vld [vmem:[#allocation2 + $0x1c0] sm:$0xff] }
 0x6d4   : > { %8587 = vrot.lane.b32.xlu0 %v8586_v58, %s8936_s17  ;;  %v8313_v39 = vpop.permute.xlu1 %8312 }
 0x6d5   : > { %v8315_v21 = vunpack.i.h.bf16 %v8313_v39  ;;  %v8314_v33 = vunpack.i.l.bf16 %v8313_v39  ;;  %v5628_v54 = vsel %vm2553_vm8, %v8835_v37, %v8299_v27  ;;  %v5671_v17 = vsel %vm2553_vm8, %v8837_v22, %v8300_v43  ;;  %v8838_v39 = vld [vmem:[#allocation2 + $0x57] sm:$0xff] }
 0x6d6   : > { %v8308_v55 = vpop.permute.xlu0 %8307  ;;  %8602 = vrot.lane.b32.xlu1 %v8601_v56, %s8941_s14  ;;  %v5465_v62 = vsel %vm2553_vm8, %v8838_v39, %v7829_v28  ;;  %v16581_v28 = vld [vmem:[#allocation159_spill] sm:$0xff] }
 0x6d7   : > { %v8310_v20 = vunpack.i.h.bf16 %v8308_v55  ;;  %v8309_v1 = vunpack.i.l.bf16 %v8308_v55  ;;  %v5778_v3 = vsel %vm5564_vm11, %v5724_v29, %v8314_v33  ;;  %v5616_v14 = vsel %vm5564_vm11, %v5561_v49, %v8315_v21  ;;  %v8839_v55 = vld [vmem:[#allocation2 + $0x70] sm:$0xff]  ;;  %v8840_v33 = vld [vmem:[#allocation2 + $0x1a7] sm:$0xff] }
 0x6d8   : > { %8597 = vrot.lane.b32.xlu0 %v8596_v31, %s8940_s29  ;;  %v8323_v41 = vpop.permute.xlu1 %8322  ;;  %6251 = vmatprep.mubr.f32.mxu1 %v5778_v3  ;;  %v7834_v43 = vunpack.i.l.bf16 %v16581_v28 }
 0x6d9   : > { %6252 = vmatmul.mubr.f32.gmra.mrb[40].mxu1 %v5616_v14  ;;  %v5682_v11 = vsel %vm5509_vm10, %v5628_v54, %v8309_v1  ;;  %v5519_v34 = vsel %vm5509_vm10, %v5464_v0, %v8310_v20  ;;  %v8325_v48 = vunpack.i.h.bf16 %v8323_v41  ;;  %v8324_v26 = vunpack.i.l.bf16 %v8323_v41  ;;  %v7029_v14 = vld [vmem:[%s15365_s12 + $0x10] sm:$0xff] }
 0x6da   : > { %v8318_v46 = vpop.permute.xlu0 %8317 }
 0x6db   : > { %v8320_v60 = vunpack.i.h.bf16 %v8318_v46  ;;  %v8319_v18 = vunpack.i.l.bf16 %v8318_v46  ;;  %v5629_v21 = vsel %vm2553_vm8, %v8839_v55, %v8325_v48  ;;  %v5507_v24 = vsel %vm2553_vm8, %v8840_v33, %v8324_v26 }
 0x6dc   : > { %8607 = vrot.lane.b32.xlu0 %v8606_v2, %s8940_s29  ;;  %v8333_v13 = vpop.permute.xlu1 %8332  ;;  %v7830_v46 = vunpack.i.h.bf16 %v16580_v53 }
 0x6dd   : > { %v5736_v9 = vsel %vm5564_vm11, %v5682_v11, %v8319_v18  ;;  %v5574_v4 = vsel %vm5564_vm11, %v5519_v34, %v8320_v60  ;;  %v8335_v12 = vunpack.i.h.bf16 %v8333_v13  ;;  %v8334_v30 = vunpack.i.l.bf16 %v8333_v13  ;;  %v7030_v60 = vld [vmem:[%s15365_s12 + $0x18] sm:$0xff] }
 0x6de   : > { %v8328_v59 = vpop.permute.xlu0 %8327  ;;  %6041 = vmatprep.mubr.f32.mxu0 %v5736_v9 }
 0x6df   : > { %6042 = vmatmul.mubr.f32.gmra.mrb[72].mxu0 %v5574_v4  ;;  %v8330_v38 = vunpack.i.h.bf16 %v8328_v59  ;;  %v8329_v58 = vunpack.i.l.bf16 %v8328_v59  ;;  %v5683_v32 = vsel %vm5509_vm10, %v5629_v21, %v8334_v30  ;;  %v5520_v42 = vsel %vm5509_vm10, %v5465_v62, %v8335_v12  ;;  %v8841_v4 = vld [vmem:[#allocation2 + $0x78] sm:$0xff]  ;;  %v8843_v30 = vld [vmem:[#allocation2 + $0x1c8] sm:$0xff] }
 0x6e0   : > { %7033 = vperm.xlu0 %7799, %v7027_v19   ;;  %v8343_v25 = vpop.permute.xlu1 %8342  ;;  %v8842_v19 = vld [vmem:[#allocation2 + $0x5f] sm:$0xff] }
 0x6e1   : > { %v8345_v51 = vunpack.i.h.bf16 %v8343_v25  ;;  %v8344_v56 = vunpack.i.l.bf16 %v8343_v25  ;;  %v5725_v29 = vsel %vm5509_vm10, %v5671_v17, %v8329_v58  ;;  %v5562_v10 = vsel %vm5509_vm10, %v5507_v24, %v8330_v38  ;;  %v8844_v58 = vld [vmem:[#allocation2 + $0x1af] sm:$0xff] }
 0x6e2   : > { %v8338_v31 = vpop.permute.xlu0 %8337  ;;  %v5466_v48 = vsel %vm2553_vm8, %v8842_v19, %v7830_v46 }
 0x6e3   : > { %v8340_v50 = vunpack.i.h.bf16 %v8338_v31  ;;  %v8339_v61 = vunpack.i.l.bf16 %v8338_v31  ;;  %v5737_v27 = vsel %vm5564_vm11, %v5683_v32, %v8344_v56  ;;  %v5575_v49 = vsel %vm5564_vm11, %v5520_v42, %v8345_v51 }
 0x6e4   : > { %7038 = vperm.xlu0 %7799, %v7028_v57   ;;  %v8353_v20 = vpop.permute.xlu1 %8352  ;;  %6046 = vmatprep.mubr.f32.mxu0 %v5737_v27  ;;  %v8845_v27 = vld [vmem:[#allocation2 + $0x39] sm:$0xff] }
 0x6e5   : > { %v5779_v1 = vsel %vm5564_vm11, %v5725_v29, %v8339_v61  ;;  %v5617_v3 = vsel %vm5564_vm11, %v5562_v10, %v8340_v50  ;;  %6047 = vmatmul.mubr.f32.gmra.mrb[74].mxu0 %v5575_v49  ;;  %v8354_v8 = vunpack.i.l.bf16 %v8353_v20  ;;  %v8355_v13 = vunpack.i.h.bf16 %v8353_v20  ;;  %v8846_v29 = vld [vmem:[#allocation2 + $0x80] sm:$0xff] }
 0x6e6   : > { %v8348_v41 = vpop.permute.xlu0 %8347  ;;  %6255 = vmatprep.mubr.f32.mxu1 %v5779_v1  ;;  %v8847_v10 = vld [vmem:[#allocation2 + $0x67] sm:$0xff] }
 0x6e7   : > { %6256 = vmatmul.mubr.f32.gmra.mrb[42].mxu1 %v5617_v3  ;;  %v8350_v18 = vunpack.i.h.bf16 %v8348_v41  ;;  %v8349_v37 = vunpack.i.l.bf16 %v8348_v41  ;;  %v5630_v53 = vsel %vm2553_vm8, %v8841_v4, %v8354_v8  ;;  %v5631_v49 = vsel %vm2553_vm8, %v8846_v29, %v8355_v13 }
 0x6e8   : > { %7043 = vperm.xlu0 %7799, %v7029_v14   ;;  %v8363_v2 = vpop.permute.xlu1 %8362  ;;  %v5467_v20 = vsel %vm2553_vm8, %v8847_v10, %v7834_v43  ;;  %v7835_v41 = vunpack.i.h.bf16 %v16581_v28  ;;  %v8851_v43 = vld [vmem:[#allocation2 + $0x6f] sm:$0xff] }
 0x6e9   : > { %v8365_v45 = vunpack.i.h.bf16 %v8363_v2  ;;  %v8364_v0 = vunpack.i.l.bf16 %v8363_v2  ;;  %v5672_v38 = vsel %vm2553_vm8, %v8843_v30, %v8349_v37  ;;  %v5508_v25 = vsel %vm2553_vm8, %v8844_v58, %v8350_v18  ;;  %v8848_v18 = vld [vmem:[#allocation2 + $0x41] sm:$0xff]  ;;  %v8853_v30 = vld [vmem:[#allocation2 + $0x59] sm:$0xff] }
 0x6ea   : > { %v8358_v54 = vpop.permute.xlu0 %8357  ;;  %v5468_v13 = vsel %vm2553_vm8, %v8851_v43, %v7835_v41  ;;  %v16583_v41 = vld [vmem:[#allocation206_spill] sm:$0xff] }
 0x6eb   : > { %v8360_v11 = vunpack.i.h.bf16 %v8358_v54  ;;  %v8359_v34 = vunpack.i.l.bf16 %v8358_v54  ;;  %v5684_v17 = vsel %vm5509_vm10, %v5630_v53, %v8364_v0  ;;  %v5521_v39 = vsel %vm5509_vm10, %v5466_v48, %v8365_v45  ;;  %v8849_v45 = vld [vmem:[#allocation2 + $0x49] sm:$0xff] }
 0x6ec   : > { %7048 = vperm.xlu0 %7799, %v7030_v60   ;;  %v8373_v9 = vpop.permute.xlu1 %8372 }
 0x6ed   : > { %v8375_v59 = vunpack.i.h.bf16 %v8373_v9  ;;  %v8374_v12 = vunpack.i.l.bf16 %v8373_v9  ;;  %v5726_v31 = vsel %vm5509_vm10, %v5672_v38, %v8359_v34  ;;  %v5563_v56 = vsel %vm5509_vm10, %v5508_v25, %v8360_v11  ;;  %v8850_v11 = vld [vmem:[#allocation2 + $0x88] sm:$0xff] }
 0x6ee   : > { %v8368_v26 = vpop.permute.xlu0 %8367  ;;  %v16582_v9 = vld [vmem:[#allocation35_spill] sm:$0xff] }
 0x6ef   : > { %v8370_v57 = vunpack.i.h.bf16 %v8368_v26  ;;  %v8369_v22 = vunpack.i.l.bf16 %v8368_v26  ;;  %v5738_v62 = vsel %vm5564_vm11, %v5684_v17, %v8374_v12  ;;  %v5576_v51 = vsel %vm5564_vm11, %v5521_v39, %v8375_v59  ;;  %v8852_v26 = vld [vmem:[#allocation2 + $0x51] sm:$0xff] }
 0x6f0   : > { %v8383_v55 = vpop.permute.xlu1 %8382  ;;  %6051 = vmatprep.mubr.f32.mxu0 %v5738_v62  ;;  %v7839_v4 = vunpack.i.l.bf16 %v16582_v9 }
 0x6f1   : > { %v5780_v21 = vsel %vm5564_vm11, %v5726_v31, %v8369_v22  ;;  %v5618_v33 = vsel %vm5564_vm11, %v5563_v56, %v8370_v57  ;;  %v8385_v50 = vunpack.i.h.bf16 %v8383_v55  ;;  %v8384_v61 = vunpack.i.l.bf16 %v8383_v55  ;;  %6052 = vmatmul.mubr.f32.gmra.mrb[76].mxu0 %v5576_v51  ;;  %v8854_v31 = vld [vmem:[#allocation2 + $0x61] sm:$0xff]  ;;  %v8855_v51 = vld [vmem:[#allocation2 + $0x90] sm:$0xff] }
 0x6f2   : > { %v8378_v24 = vpop.permute.xlu0 %8377  ;;  %6259 = vmatprep.mubr.f32.mxu1 %v5780_v21  ;;  %v8856_v55 = vld [vmem:[#allocation2 + $0x77] sm:$0xff] }
 0x6f3   : > { %v8380_v32 = vunpack.i.h.bf16 %v8378_v24  ;;  %v8379_v42 = vunpack.i.l.bf16 %v8378_v24  ;;  %6260 = vmatmul.mubr.f32.gmra.mrb[44].mxu1 %v5618_v33  ;;  %v5469_v21 = vsel %vm2553_vm8, %v8856_v55, %v7839_v4  ;;  %v7840_v33 = vunpack.i.h.bf16 %v16582_v9  ;;  %v8867_v55 = vld [vmem:[#allocation2 + $0x99] sm:$0xff] }
 0x6f4   : > { %7598 = vmatprep.mubr.msk.f32.mxu1 %vm2553_vm8, %v8845_v27  ;;  %v8393_v1 = vpop.permute.xlu1 %8392 }
 0x6f5   : > { %v5685_v3 = vsel %vm5509_vm10, %v5631_v49, %v8379_v42  ;;  %v5522_v14 = vsel %vm5509_vm10, %v5467_v20, %v8380_v32  ;;  %v8395_v37 = vunpack.i.h.bf16 %v8393_v1  ;;  %v8394_v54 = vunpack.i.l.bf16 %v8393_v1 }
 0x6f6   : > { %v8388_v46 = vpop.permute.xlu0 %8387  ;;  %v5739_v8 = vsel %vm5564_vm11, %v5685_v3, %v8384_v61  ;;  %v5577_v2 = vsel %vm5564_vm11, %v5522_v14, %v8385_v50  ;;  %v8857_v50 = vld [vmem:[#allocation2 + $0x69] sm:$0xff]  ;;  %v8858_v14 = vld [vmem:[#allocation2 + $0x71] sm:$0xff] }
 0x6f7   : > { %v8389_v60 = vunpack.i.l.bf16 %v8388_v46  ;;  %6056 = vmatprep.mubr.f32.mxu0 %v5739_v8  ;;  %7599 = vmatmul.mubr.msk.f32.vlgmr.msra.gmra.mrb[46].mxu1 %vm2553_vm8, %v8848_v18  ;;  %v8390_v53 = vunpack.i.h.bf16 %v8388_v46  ;;  %v5523_v58 = vsel %vm5509_vm10, %v5468_v13, %v8395_v37  ;;  %v7844_v46 = vunpack.i.l.bf16 %v16583_v41  ;;  %v8861_v37 = vld [vmem:[#allocation2 + $0x7f] sm:$0xff] }
 0x6f8   : > { %6057 = vmatmul.mubr.f32.gmra.mrb[78].mxu0 %v5577_v2  ;;  %7601 = vmatprep.mubr.msk.f32.mxu1 %vm2553_vm8, %v8849_v45  ;;  %v8403_v0 = vpop.permute.xlu1 %8402  ;;  %v8859_v2 = vld [vmem:[#allocation2 + $0x79] sm:$0xff] }
 0x6f9   : > { %v5632_v34 = vsel %vm2553_vm8, %v8850_v11, %v8389_v60  ;;  %v8405_v59 = vunpack.i.h.bf16 %v8403_v0  ;;  %v8404_v12 = vunpack.i.l.bf16 %v8403_v0  ;;  %v5633_v56 = vsel %vm2553_vm8, %v8855_v51, %v8390_v53  ;;  %v8860_v60 = vld [vmem:[#allocation2 + $0x98] sm:$0xff] }
 0x6fa   : > { %v8398_v28 = vpop.permute.xlu0 %8397  ;;  %v5686_v38 = vsel %vm5509_vm10, %v5632_v34, %v8394_v54  ;;  %v5470_v54 = vsel %vm2553_vm8, %v8861_v37, %v7840_v33  ;;  %v8868_v33 = vld [vmem:[#allocation2 + $0xa8] sm:$0xff] }
 0x6fb   : > { %v8400_v19 = vunpack.i.h.bf16 %v8398_v28  ;;  %v8399_v48 = vunpack.i.l.bf16 %v8398_v28  ;;  %7602 = vmatmul.mubr.msk.f32.gmra.mrb[48].mxu1 %vm2553_vm8, %v8852_v26  ;;  %v5687_v61 = vsel %vm5509_vm10, %v5633_v56, %v8404_v12  ;;  %v5524_v32 = vsel %vm5509_vm10, %v5469_v21, %v8405_v59  ;;  %v8864_v26 = vld [vmem:[#allocation2 + $0xa0] sm:$0xff] }
 0x6fc   : > { %7604 = vmatprep.mubr.msk.f32.mxu1 %vm2553_vm8, %v8853_v30  ;;  %v8413_v25 = vpop.permute.xlu1 %8412  ;;  %v8865_v12 = vld [vmem:[#allocation2 + $0x87] sm:$0xff] }
 0x6fd   : > { %v5740_v57 = vsel %vm5564_vm11, %v5686_v38, %v8399_v48  ;;  %v5578_v22 = vsel %vm5564_vm11, %v5523_v58, %v8400_v19  ;;  %v8414_v24 = vunpack.i.l.bf16 %v8413_v25  ;;  %v8415_v8 = vunpack.i.h.bf16 %v8413_v25  ;;  %v8862_v19 = vld [vmem:[#allocation2 + $0x81] sm:$0xff]  ;;  %v8863_v48 = vld [vmem:[#allocation2 + $0x89] sm:$0xff] }
 0x6fe   : > { %v8408_v17 = vpop.permute.xlu0 %8407  ;;  %6061 = vmatprep.mubr.f32.mxu0 %v5740_v57  ;;  %v5471_v30 = vsel %vm2553_vm8, %v8865_v12, %v7844_v46  ;;  %v7845_v57 = vunpack.i.h.bf16 %v16583_v41 }
 0x6ff   : > { %v8410_v39 = vunpack.i.h.bf16 %v8408_v17  ;;  %v8409_v62 = vunpack.i.l.bf16 %v8408_v17  ;;  %6062 = vmatmul.mubr.f32.gmra.mrb[80].mxu0 %v5578_v22  ;;  %7605 = vmatmul.mubr.msk.f32.gmra.mrb[50].mxu1 %vm2553_vm8, %v8854_v31  ;;  %v5634_v18 = vsel %vm2553_vm8, %v8860_v60, %v8414_v24  ;;  %v5635_v59 = vsel %vm2553_vm8, %v8864_v26, %v8415_v8  ;;  %v8866_v31 = vld [vmem:[#allocation2 + $0x91] sm:$0xff] }
 0x700   : > { %7607 = vmatprep.mubr.msk.f32.mxu1 %vm2553_vm8, %v8857_v50  ;;  %v8423_v42 = vpop.permute.xlu1 %8422 }
 0x701   : > { %v5741_v27 = vsel %vm5564_vm11, %v5687_v61, %v8409_v62  ;;  %v5579_v29 = vsel %vm5564_vm11, %v5524_v32, %v8410_v39  ;;  %v8425_v10 = vunpack.i.h.bf16 %v8423_v42  ;;  %v8424_v20 = vunpack.i.l.bf16 %v8423_v42  ;;  %v8869_v61 = vld [vmem:[#allocation2 + $0x8f] sm:$0xff]  ;;  %v16584_v42 = vld [vmem:[#allocation121_spill] sm:$0xff] }
 0x702   : > { %v8418_v49 = vpop.permute.xlu0 %8417  ;;  %6066 = vmatprep.mubr.f32.mxu0 %v5741_v27  ;;  %v5472_v32 = vsel %vm2553_vm8, %v8869_v61, %v7845_v57  ;;  %v7849_v27 = vunpack.i.l.bf16 %v16584_v42 }
 0x703   : > { %v8420_v1 = vunpack.i.h.bf16 %v8418_v49  ;;  %v8419_v3 = vunpack.i.l.bf16 %v8418_v49  ;;  %6067 = vmatmul.mubr.f32.gmra.mrb[82].mxu0 %v5579_v29  ;;  %7608 = vmatmul.mubr.msk.f32.gmra.mrb[52].mxu1 %vm2553_vm8, %v8858_v14 }
 0x704   : > { %7610 = vmatprep.mubr.msk.f32.mxu1 %vm2553_vm8, %v8859_v2  ;;  %v8433_v45 = vpop.permute.xlu1 %8432 }
 0x705   : > { %v5688_v0 = vsel %vm5509_vm10, %v5634_v18, %v8419_v3  ;;  %v5525_v11 = vsel %vm5509_vm10, %v5470_v54, %v8420_v1  ;;  %v8435_v28 = vunpack.i.h.bf16 %v8433_v45  ;;  %v8434_v43 = vunpack.i.l.bf16 %v8433_v45  ;;  %v8871_v45 = vld [vmem:[#allocation2 + $0xb1] sm:$0xff] }
 0x706   : > { %v8428_v34 = vpop.permute.xlu0 %8427  ;;  %v5742_v13 = vsel %vm5564_vm11, %v5688_v0, %v8424_v20  ;;  %v5580_v9 = vsel %vm5564_vm11, %v5525_v11, %v8425_v10  ;;  %v8870_v20 = vld [vmem:[#allocation2 + $0xa1] sm:$0xff]  ;;  %v8873_v11 = vld [vmem:[#allocation2 + $0x97] sm:$0xff] }
 0x707   : > { %v8430_v4 = vunpack.i.h.bf16 %v8428_v34  ;;  %v8429_v53 = vunpack.i.l.bf16 %v8428_v34  ;;  %6071 = vmatprep.mubr.f32.mxu0 %v5742_v13  ;;  %7611 = vmatmul.mubr.msk.f32.gmra.mrb[54].mxu1 %vm2553_vm8, %v8862_v19  ;;  %v5473_v34 = vsel %vm2553_vm8, %v8873_v11, %v7849_v27  ;;  %v8877_v27 = vld [vmem:[#allocation2 + $0xa7] sm:$0xff] }
 0x708   : > { %6072 = vmatmul.mubr.f32.gmra.mrb[84].mxu0 %v5580_v9  ;;  %7613 = vmatprep.mubr.msk.f32.mxu1 %vm2553_vm8, %v8863_v48  ;;  %v8443_v38 = vpop.permute.xlu1 %8442 }
 0x709   : > { %v5689_v58 = vsel %vm5509_vm10, %v5635_v59, %v8429_v53  ;;  %v5526_v25 = vsel %vm5509_vm10, %v5471_v30, %v8430_v4  ;;  %v8445_v51 = vunpack.i.h.bf16 %v8443_v38  ;;  %v8444_v56 = vunpack.i.l.bf16 %v8443_v38 }
 0x70a   : > { %v8438_v22 = vpop.permute.xlu0 %8437  ;;  %v5743_v17 = vsel %vm5564_vm11, %v5689_v58, %v8434_v43  ;;  %v5581_v39 = vsel %vm5564_vm11, %v5526_v25, %v8435_v28  ;;  %v7850_v28 = vunpack.i.h.bf16 %v16584_v42 }
 0x70b   : > { %v8439_v62 = vunpack.i.l.bf16 %v8438_v22  ;;  %6076 = vmatprep.mubr.f32.mxu0 %v5743_v17  ;;  %7614 = vmatmul.mubr.msk.f32.gmra.mrb[56].mxu1 %vm2553_vm8, %v8866_v31  ;;  %v8440_v29 = vunpack.i.h.bf16 %v8438_v22  ;;  %v5527_v41 = vsel %vm5509_vm10, %v5472_v32, %v8445_v51  ;;  %v8874_v17 = vld [vmem:[#allocation2 + $0xb8] sm:$0xff]  ;;  %v8876_v32 = vld [vmem:[#allocation2 + $0xc0] sm:$0xff] }
 0x70c   : > { %6077 = vmatmul.mubr.f32.gmra.mrb[86].mxu0 %v5581_v39  ;;  %7616 = vmatprep.mubr.msk.f32.mxu1 %vm2553_vm8, %v8867_v55  ;;  %v8453_v21 = vpop.permute.xlu1 %8452 }
 0x70d   : > { %v5636_v24 = vsel %vm2553_vm8, %v8868_v33, %v8439_v62  ;;  %v8455_v1 = vunpack.i.h.bf16 %v8453_v21  ;;  %v8454_v3 = vunpack.i.l.bf16 %v8453_v21  ;;  %v8875_v62 = vld [vmem:[#allocation2 + $0x9f] sm:$0xff] }
 0x70e   : > { %v8448_v50 = vpop.permute.xlu0 %8447  ;;  %v5690_v14 = vsel %vm5509_vm10, %v5636_v24, %v8444_v56  ;;  %v5474_v31 = vsel %vm2553_vm8, %v8875_v62, %v7850_v28 }
 0x70f   : > { %v8450_v49 = vunpack.i.h.bf16 %v8448_v50  ;;  %v8449_v10 = vunpack.i.l.bf16 %v8448_v50  ;;  %7617 = vmatmul.mubr.msk.f32.gmra.mrb[58].mxu1 %vm2553_vm8, %v8870_v20  ;;  %v5528_v4 = vsel %vm5509_vm10, %v5473_v34, %v8455_v1  ;;  %v16586_v34 = vld [vmem:[#allocation248_spill] sm:$0xff] }
 0x710   : > { %7619 = vmatprep.mubr.msk.f32.mxu1 %vm2553_vm8, %v14163_v40  ;;  %v8463_v46 = vpop.permute.xlu1 %8462  ;;  %v8872_v40 = vld [vmem:[#allocation2 + $0xb0] sm:$0xff]  ;;  %v7859_v28 = vunpack.i.l.bf16 %v16586_v34 }
 0x711   : > { %v5744_v8 = vsel %vm5564_vm11, %v5690_v14, %v8449_v10  ;;  %v5582_v2 = vsel %vm5564_vm11, %v5527_v41, %v8450_v49  ;;  %v5637_v0 = vsel %vm2553_vm8, %v8872_v40, %v8440_v29  ;;  %v8464_v43 = vunpack.i.l.bf16 %v8463_v46 }
 0x712   : > { %v8458_v60 = vpop.permute.xlu0 %8457  ;;  %6081 = vmatprep.mubr.f32.mxu0 %v5744_v8  ;;  %v5691_v9 = vsel %vm5509_vm10, %v5637_v0, %v8454_v3  ;;  %v8465_v57 = vunpack.i.h.bf16 %v8463_v46  ;;  %v8879_v0 = vld [vmem:[#allocation2 + $0xaf] sm:$0xff] }
 0x713   : > { %v8460_v18 = vunpack.i.h.bf16 %v8458_v60  ;;  %v8459_v37 = vunpack.i.l.bf16 %v8458_v60  ;;  %6082 = vmatmul.mubr.f32.gmra.mrb[88].mxu0 %v5582_v2  ;;  %v14509_v54 = vpop.f32.mrb[0].mxu1  ;;  %7620 = vmatmul.mubr.msk.f32.gmra.mrb[60].mxu1 %vm2553_vm8, %v8871_v45  ;;  %v5638_v39 = vsel %vm2553_vm8, %v8874_v17, %v8464_v43 }
 0x714   : > { %v6155_v13 = vpop.f32.mrb[1].mxu1  ;;  %7622 = vmatprep.mubr.msk.f32.mxu1 %vm2553_vm8, %v14195_v7  ;;  %v8473_v53 = vpop.permute.xlu1 %8472  ;;  %v16585_v7 = vld [vmem:[#allocation61_spill] sm:$0xff]  ;;  %v5639_v42 = vsel %vm2553_vm8, %v8876_v32, %v8465_v57 }
 0x715   : > { %v5745_v19 = vsel %vm5564_vm11, %v5691_v9, %v8459_v37  ;;  %v5583_v48 = vsel %vm5564_vm11, %v5528_v4, %v8460_v18  ;;  %v8475_v59 = vunpack.i.h.bf16 %v8473_v53  ;;  %v8474_v12 = vunpack.i.l.bf16 %v8473_v53  ;;  %v8878_v18 = vld [vmem:[#allocation2 + $0xc8] sm:$0xff] }
 0x716   : > { %v8468_v26 = vpop.permute.xlu0 %8467  ;;  %6086 = vmatprep.mubr.f32.mxu0 %v5745_v19  ;;  %v7854_v25 = vunpack.i.l.bf16 %v16585_v7  ;;  %v7855_v1 = vunpack.i.h.bf16 %v16585_v7 }
 0x717   : > { %v8470_v30 = vunpack.i.h.bf16 %v8468_v26  ;;  %v8469_v38 = vunpack.i.l.bf16 %v8468_v26  ;;  %6087 = vmatmul.mubr.f32.gmra.mrb[90].mxu0 %v5583_v48  ;;  %v14521_v58 = vpop.f32.mrb[2].mxu1  ;;  %7623 = vmatmul.mubr.msk.f32.gmra.mrb[62].mxu1 %vm2553_vm8, %v14197_v6 }
 0x718   : > { %v6160_v22 = vpop.f32.mrb[3].mxu1  ;;  %7625 = vmatprep.mubr.msk.f32.mxu1 %vm2553_vm8, %v14233_v23  ;;  %v8483_v51 = vpop.permute.xlu1 %8482  ;;  %v5475_v29 = vsel %vm2553_vm8, %v8877_v27, %v7854_v25  ;;  %v5476_v11 = vsel %vm2553_vm8, %v8879_v0, %v7855_v1  ;;  %v8881_v25 = vld [vmem:[#allocation2 + $0xb7] sm:$0xff]  ;;  %v8888_v0 = vld [vmem:[#allocation2 + $0xc7] sm:$0xff] }
 0x719   : > { %v5692_v56 = vsel %vm5509_vm10, %v5638_v39, %v8469_v38  ;;  %v5529_v55 = vsel %vm5509_vm10, %v5474_v31, %v8470_v30  ;;  %v8485_v6 = vunpack.i.h.bf16 %v8483_v51  ;;  %v8484_v33 = vunpack.i.l.bf16 %v8483_v51  ;;  %v8883_v27 = vld [vmem:[#allocation2 + $0xd8] sm:$0xff] }
 0x71a   : > { %v8478_v21 = vpop.permute.xlu0 %8477  ;;  %v5746_v24 = vsel %vm5564_vm11, %v5692_v56, %v8474_v12  ;;  %v5584_v50 = vsel %vm5564_vm11, %v5529_v55, %v8475_v59  ;;  %v5477_v57 = vsel %vm2553_vm8, %v8881_v25, %v7859_v28  ;;  %v7860_v22 = vunpack.i.h.bf16 %v16586_v34 }
 0x71b   : > { %v8480_v61 = vunpack.i.h.bf16 %v8478_v21  ;;  %v8479_v23 = vunpack.i.l.bf16 %v8478_v21  ;;  %6091 = vmatprep.mubr.f32.mxu0 %v5746_v24  ;;  %7626 = vmatmul.mubr.msk.f32.gmra.mrb[64].mxu1 %vm2553_vm8, %v14235_v16 }
 0x71c   : > { %6092 = vmatmul.mubr.f32.gmra.mrb[92].mxu0 %v5584_v50  ;;  %7628 = vmatprep.mubr.msk.f32.mxu1 %vm2553_vm8, %v14259_v47  ;;  %v8493_v49 = vpop.permute.xlu1 %8492 }
 0x71d   : > { %v5693_v10 = vsel %vm5509_vm10, %v5639_v42, %v8479_v23  ;;  %v5530_v20 = vsel %vm5509_vm10, %v5475_v29, %v8480_v61  ;;  %v8495_v8 = vunpack.i.h.bf16 %v8493_v49  ;;  %v8494_v2 = vunpack.i.l.bf16 %v8493_v49  ;;  %v8882_v42 = vld [vmem:[#allocation2 + $0x119] sm:$0xff] }
 0x71e   : > { %v14543_v3 = vpop.f32.mrb[4].mxu1  ;;  %v8488_v16 = vpop.permute.xlu0 %8487  ;;  %v5747_v14 = vsel %vm5564_vm11, %v5693_v10, %v8484_v33  ;;  %v5585_v47 = vsel %vm5564_vm11, %v5530_v20, %v8485_v6  ;;  %v8884_v49 = vld [vmem:[#allocation2 + $0xbf] sm:$0xff] }
 0x71f   : > { %v8489_v41 = vunpack.i.l.bf16 %v8488_v16  ;;  %6096 = vmatprep.mubr.f32.mxu0 %v5747_v14  ;;  %v6165_v46 = vpop.f32.mrb[5].mxu1  ;;  %7629 = vmatmul.mubr.msk.f32.gmra.mrb[66].mxu1 %vm2553_vm8, %v14261_v5  ;;  %v8490_v43 = vunpack.i.h.bf16 %v8488_v16  ;;  %v5531_v19 = vsel %vm5509_vm10, %v5476_v11, %v8495_v8  ;;  %v5478_v10 = vsel %vm2553_vm8, %v8884_v49, %v7860_v22  ;;  %v8895_v49 = vld [vmem:[#allocation2 + $0x151] sm:$0xff] }
 0x720   : > { %6097 = vmatmul.mubr.f32.gmra.mrb[94].mxu0 %v5585_v47  ;;  %7631 = vmatprep.mubr.msk.f32.mxu1 %vm2553_vm8, %v14306_v44  ;;  %v8503_v60 = vpop.permute.xlu1 %8502 }
 0x721   : > { %v5640_v37 = vsel %vm2553_vm8, %v8878_v18, %v8489_v41  ;;  %v8505_v44 = vunpack.i.h.bf16 %v8503_v60  ;;  %v8504_v4 = vunpack.i.l.bf16 %v8503_v60  ;;  %v8885_v60 = vld [vmem:[#allocation2 + $0x121] sm:$0xff]  ;;  %v8886_v18 = vld [vmem:[#allocation2 + $0x129] sm:$0xff] }
 0x722   : > { %v14552_v45 = vpop.f32.mrb[6].mxu1  ;;  %v8498_v40 = vpop.permute.xlu0 %8497  ;;  %v5694_v53 = vsel %vm5509_vm10, %v5640_v37, %v8494_v2  ;;  %v8887_v37 = vld [vmem:[#allocation2 + $0xe0] sm:$0xff] }
 0x723   : > { %v8500_v5 = vunpack.i.h.bf16 %v8498_v40  ;;  %v8499_v13 = vunpack.i.l.bf16 %v8498_v40  ;;  %v6170_v9 = vpop.f32.mrb[7].mxu1  ;;  %7632 = vmatmul.mubr.msk.f32.gmra.mrb[68].mxu1 %vm2553_vm8, %v14308_v15  ;;  %v5532_v31 = vsel %vm5509_vm10, %v5477_v57, %v8505_v44  ;;  %v8892_v57 = vld [vmem:[#allocation2 + $0xcf] sm:$0xff] }
 0x724   : > { %7634 = vmatprep.mubr.msk.f32.mxu1 %vm2553_vm8, %v14330_v36  ;;  %v8513_v48 = vpop.permute.xlu1 %8512  ;;  %v8880_v36 = vld [vmem:[#allocation2 + $0xd0] sm:$0xff] }
 0x725   : > { %v5748_v26 = vsel %vm5564_vm11, %v5694_v53, %v8499_v13  ;;  %v5586_v59 = vsel %vm5564_vm11, %v5531_v19, %v8500_v5  ;;  %v5641_v7 = vsel %vm2553_vm8, %v8880_v36, %v8490_v43  ;;  %v8514_v17 = vunpack.i.l.bf16 %v8513_v48 }
 0x726   : > { %v8508_v12 = vpop.permute.xlu0 %8507  ;;  %6101 = vmatprep.mubr.f32.mxu0 %v5748_v26  ;;  %v5695_v62 = vsel %vm5509_vm10, %v5641_v7, %v8504_v4  ;;  %v8515_v23 = vunpack.i.h.bf16 %v8513_v48  ;;  %v8889_v48 = vld [vmem:[#allocation2 + $0x131] sm:$0xff] }
 0x727   : > { %v8510_v30 = vunpack.i.h.bf16 %v8508_v12  ;;  %v8509_v38 = vunpack.i.l.bf16 %v8508_v12  ;;  %6102 = vmatmul.mubr.f32.gmra.mrb[96].mxu0 %v5586_v59  ;;  %v14564_v15 = vpop.f32.mrb[8].mxu1  ;;  %7635 = vmatmul.mubr.msk.f32.gmra.mrb[70].mxu1 %vm2553_vm8, %v14342_v52  ;;  %v5642_v29 = vsel %vm2553_vm8, %v8883_v27, %v8514_v17  ;;  %v8890_v12 = vld [vmem:[#allocation2 + $0x139] sm:$0xff] }
 0x728   : > { %v6175_v39 = vpop.f32.mrb[9].mxu1  ;;  %7637 = vmatprep.mubr.msk.f32.mxu1 %vm2553_vm8, %v14377_v35  ;;  %v8523_v51 = vpop.permute.xlu1 %8522  ;;  %v16587_v35 = vld [vmem:[#allocation164_spill] sm:$0xff]  ;;  %v5643_v40 = vsel %vm2553_vm8, %v8887_v37, %v8515_v23  ;;  %v16588_v17 = vld [vmem:[#allocation34_spill] sm:$0xff] }
 0x729   : > { %v5749_v52 = vsel %vm5564_vm11, %v5695_v62, %v8509_v38  ;;  %v5587_v56 = vsel %vm5564_vm11, %v5532_v31, %v8510_v30  ;;  %v8525_v21 = vunpack.i.h.bf16 %v8523_v51  ;;  %v8524_v6 = vunpack.i.l.bf16 %v8523_v51  ;;  %v8891_v38 = vld [vmem:[#allocation2 + $0xe8] sm:$0xff] }
 0x72a   : > { %v8518_v55 = vpop.permute.xlu0 %8517  ;;  %6106 = vmatprep.mubr.f32.mxu0 %v5749_v52  ;;  %v7864_v61 = vunpack.i.l.bf16 %v16587_v35  ;;  %v7865_v5 = vunpack.i.h.bf16 %v16587_v35  ;;  %v7869_v39 = vunpack.i.l.bf16 %v16588_v17 }
 0x72b   : > { %v8520_v33 = vunpack.i.h.bf16 %v8518_v55  ;;  %v8519_v24 = vunpack.i.l.bf16 %v8518_v55  ;;  %6107 = vmatmul.mubr.f32.gmra.mrb[98].mxu0 %v5587_v56  ;;  %v14577_v50 = vpop.f32.mrb[10].mxu1  ;;  %7638 = vmatmul.mubr.msk.f32.gmra.mrb[72].mxu1 %vm2553_vm8, %v14379_v63  ;;  %v8893_v56 = vld [vmem:[#allocation2 + $0x141] sm:$0xff] }
 0x72c   : > { %v6180_v32 = vpop.f32.mrb[11].mxu1  ;;  %7640 = vmatprep.mubr.msk.f32.mxu1 %vm2553_vm8, %v8882_v42  ;;  %v8533_v20 = vpop.permute.xlu1 %8532  ;;  %v5479_v11 = vsel %vm2553_vm8, %v8888_v0, %v7864_v61  ;;  %v5480_v22 = vsel %vm2553_vm8, %v8892_v57, %v7865_v5  ;;  %v16589_v5 = vld [vmem:[#allocation209_spill] sm:$0xff] }
 0x72d   : > { %v5696_v1 = vsel %vm5509_vm10, %v5642_v29, %v8519_v24  ;;  %v5533_v16 = vsel %vm5509_vm10, %v5478_v10, %v8520_v33  ;;  %v8535_v63 = vunpack.i.h.bf16 %v8533_v20  ;;  %v8534_v47 = vunpack.i.l.bf16 %v8533_v20  ;;  %v8896_v10 = vld [vmem:[#allocation2 + $0xf0] sm:$0xff] }
 0x72e   : > { %v8528_v14 = vpop.permute.xlu0 %8527  ;;  %v5750_v41 = vsel %vm5564_vm11, %v5696_v1, %v8524_v6  ;;  %v5588_v46 = vsel %vm5564_vm11, %v5533_v16, %v8525_v21  ;;  %v8894_v6 = vld [vmem:[#allocation2 + $0x149] sm:$0xff]  ;;  %v8897_v1 = vld [vmem:[#allocation2 + $0xd7] sm:$0xff] }
 0x72f   : > { %v8530_v8 = vunpack.i.h.bf16 %v8528_v14  ;;  %v8529_v2 = vunpack.i.l.bf16 %v8528_v14  ;;  %6111 = vmatprep.mubr.f32.mxu0 %v5750_v41  ;;  %7641 = vmatmul.mubr.msk.f32.gmra.mrb[74].mxu1 %vm2553_vm8, %v8885_v60  ;;  %v5481_v16 = vsel %vm2553_vm8, %v8897_v1, %v7869_v39  ;;  %v7870_v14 = vunpack.i.h.bf16 %v16588_v17  ;;  %v8898_v41 = vld [vmem:[#allocation2 + $0x159] sm:$0xff] }
 0x730   : > { %6112 = vmatmul.mubr.f32.gmra.mrb[100].mxu0 %v5588_v46  ;;  %7643 = vmatprep.mubr.msk.f32.mxu1 %vm2553_vm8, %v8886_v18  ;;  %v8543_v34 = vpop.permute.xlu1 %8542 }
 0x731   : > { %v5697_v28 = vsel %vm5509_vm10, %v5643_v40, %v8529_v2  ;;  %v5534_v43 = vsel %vm5509_vm10, %v5479_v11, %v8530_v8  ;;  %v8545_v26 = vunpack.i.h.bf16 %v8543_v34  ;;  %v8544_v59 = vunpack.i.l.bf16 %v8543_v34 }
 0x732   : > { %v14596_v13 = vpop.f32.mrb[12].mxu1  ;;  %v8538_v9 = vpop.permute.xlu0 %8537  ;;  %v5751_v44 = vsel %vm5564_vm11, %v5697_v28, %v8534_v47  ;;  %v5589_v4 = vsel %vm5564_vm11, %v5534_v43, %v8535_v63  ;;  %v8899_v43 = vld [vmem:[#allocation2 + $0x161] sm:$0xff] }
 0x733   : > { %v8539_v53 = vunpack.i.l.bf16 %v8538_v9  ;;  %6116 = vmatprep.mubr.f32.mxu0 %v5751_v44  ;;  %v6185_v19 = vpop.f32.mrb[13].mxu1  ;;  %7644 = vmatmul.mubr.msk.f32.gmra.mrb[76].mxu1 %vm2553_vm8, %v8889_v48  ;;  %v8540_v62 = vunpack.i.h.bf16 %v8538_v9  ;;  %v5535_v24 = vsel %vm5509_vm10, %v5480_v22, %v8545_v26  ;;  %v7874_v9 = vunpack.i.l.bf16 %v16589_v5  ;;  %v8902_v26 = vld [vmem:[#allocation2 + $0xdf] sm:$0xff] }
 0x734   : > { %6117 = vmatmul.mubr.f32.gmra.mrb[102].mxu0 %v5589_v4  ;;  %7646 = vmatprep.mubr.msk.f32.mxu1 %vm2553_vm8, %v8890_v12  ;;  %v8553_v30 = vpop.permute.xlu1 %8552  ;;  %v8901_v19 = vld [vmem:[#allocation2 + $0xf8] sm:$0xff] }
 0x735   : > { %v5644_v36 = vsel %vm2553_vm8, %v8891_v38, %v8539_v53  ;;  %v8555_v55 = vunpack.i.h.bf16 %v8553_v30  ;;  %v8554_v21 = vunpack.i.l.bf16 %v8553_v30  ;;  %v5645_v20 = vsel %vm2553_vm8, %v8896_v10, %v8540_v62  ;;  %v8900_v53 = vld [vmem:[#allocation2 + $0x169] sm:$0xff]  ;;  %v8907_v10 = vld [vmem:[#allocation2 + $0x181] sm:$0xff] }
 0x736   : > { %v14603_v7 = vpop.f32.mrb[14].mxu1  ;;  %v8548_v25 = vpop.permute.xlu0 %8547  ;;  %v5698_v33 = vsel %vm5509_vm10, %v5644_v36, %v8544_v59  ;;  %v5482_v59 = vsel %vm2553_vm8, %v8902_v26, %v7870_v14 }
 0x737   : > { %v8550_v31 = vunpack.i.h.bf16 %v8548_v25  ;;  %v8549_v51 = vunpack.i.l.bf16 %v8548_v25  ;;  %v6190_v52 = vpop.f32.mrb[15].mxu1  ;;  %7647 = vmatmul.mubr.msk.f32.gmra.mrb[78].mxu1 %vm2553_vm8, %v8893_v56  ;;  %v5699_v46 = vsel %vm5509_vm10, %v5645_v20, %v8554_v21  ;;  %v5536_v8 = vsel %vm5509_vm10, %v5481_v16, %v8555_v55  ;;  %v8906_v55 = vld [vmem:[#allocation2 + $0xe7] sm:$0xff] }
 0x738   : > { %7649 = vmatprep.mubr.msk.f32.mxu1 %vm2553_vm8, %v8894_v6  ;;  %v14611_v35 = vpop.permute.xlu1 %8562  ;;  %v8905_v52 = vld [vmem:[#allocation2 + $0x100] sm:$0xff]  ;;  %v5483_v21 = vsel %vm2553_vm8, %v8906_v55, %v7874_v9  ;;  %v8908_v16 = vld [vmem:[#allocation2 + $0x189] sm:$0xff]  ;;  %v16591_v55 = vmov 0.0  }
 0x739   : > { %v5752_v61 = vsel %vm5564_vm11, %v5698_v33, %v8549_v51  ;;  %v5590_v23 = vsel %vm5564_vm11, %v5535_v24, %v8550_v31  ;;  %v8564_v63 = vunpack.i.l.bf16 %v14611_v35  ;;  %v8565_v44 = vunpack.i.h.bf16 %v14611_v35  ;;  %v8903_v31 = vld [vmem:[#allocation2 + $0x171] sm:$0xff]  ;;  %v8904_v51 = vld [vmem:[#allocation2 + $0x179] sm:$0xff] }
 0x73a   : > { %v8558_v32 = vpop.permute.xlu0 %8557  ;;  %6121 = vmatprep.mubr.f32.mxu0 %v5752_v61  ;;  %v7875_v35 = vunpack.i.h.bf16 %v16589_v5 }
 0x73b   : > { %v8560_v42 = vunpack.i.h.bf16 %v8558_v32  ;;  %v8559_v27 = vunpack.i.l.bf16 %v8558_v32  ;;  %6122 = vmatmul.mubr.f32.gmra.mrb[104].mxu0 %v5590_v23  ;;  %v14615_v29 = vpop.f32.mrb[16].mxu1  ;;  %7650 = vmatmul.mubr.msk.f32.gmra.mrb[80].mxu1 %vm2553_vm8, %v8895_v49  ;;  %v5646_v48 = vsel %vm2553_vm8, %v8901_v19, %v8564_v63  ;;  %v5647_v56 = vsel %vm2553_vm8, %v8905_v52, %v8565_v44  ;;  %v8909_v63 = vld [vmem:[#allocation2 + $0x108] sm:$0xff]  ;;  %v8917_v52 = vld [vmem:[#allocation2 + $0x1b1] sm:$0xff] }
 0x73c   : > { %v6195_v47 = vpop.f32.mrb[17].mxu1  ;;  %7652 = vmatprep.mubr.msk.f32.mxu1 %vm2553_vm8, %v8898_v41  ;;  %v8573_v2 = vpop.permute.xlu1 %8572 }
 0x73d   : > { %v5753_v60 = vsel %vm5564_vm11, %v5699_v46, %v8559_v27  ;;  %v5591_v18 = vsel %vm5564_vm11, %v5536_v8, %v8560_v42  ;;  %v8575_v40 = vunpack.i.h.bf16 %v8573_v2  ;;  %v8574_v0 = vunpack.i.l.bf16 %v8573_v2  ;;  %v8910_v46 = vld [vmem:[#allocation2 + $0xef] sm:$0xff] }
 0x73e   : > { %v8568_v37 = vpop.permute.xlu0 %8567  ;;  %6126 = vmatprep.mubr.f32.mxu0 %v5753_v60  ;;  %v5484_v8 = vsel %vm2553_vm8, %v8910_v46, %v7875_v35  ;;  %v16590_v2 = vld [vmem:[#allocation60_spill] sm:$0xff] }
 0x73f   : > { %v8570_v11 = vunpack.i.h.bf16 %v8568_v37  ;;  %v8569_v34 = vunpack.i.l.bf16 %v8568_v37  ;;  %6127 = vmatmul.mubr.f32.gmra.mrb[106].mxu0 %v5591_v18  ;;  %v14627_v28 = vpop.f32.mrb[18].mxu1  ;;  %7653 = vmatmul.mubr.msk.f32.gmra.mrb[82].mxu1 %vm2553_vm8, %v8899_v43  ;;  %v7879_v60 = vunpack.i.l.bf16 %v16590_v2  ;;  %v8912_v43 = vld [vmem:[#allocation2 + $0x199] sm:$0xff]  ;;  %v8920_v35 = vld [vmem:[#allocation2 + $0x1c9] sm:$0xff] }
 0x740   : > { %v6200_v4 = vpop.f32.mrb[19].mxu1  ;;  %7655 = vmatprep.mubr.msk.f32.mxu1 %vm2553_vm8, %v8900_v53  ;;  %v8583_v12 = vpop.permute.xlu1 %8582 }
 0x741   : > { %v5700_v30 = vsel %vm5509_vm10, %v5646_v48, %v8569_v34  ;;  %v5537_v38 = vsel %vm5509_vm10, %v5482_v59, %v8570_v11  ;;  %v8585_v25 = vunpack.i.h.bf16 %v8583_v12  ;;  %v8584_v57 = vunpack.i.l.bf16 %v8583_v12 }
 0x742   : > { %v8578_v36 = vpop.permute.xlu0 %8577  ;;  %v5754_v22 = vsel %vm5564_vm11, %v5700_v30, %v8574_v0  ;;  %v5592_v17 = vsel %vm5564_vm11, %v5537_v38, %v8575_v40  ;;  %v8911_v0 = vld [vmem:[#allocation2 + $0x191] sm:$0xff]  ;;  %v8913_v38 = vld [vmem:[#allocation2 + $0x1a1] sm:$0xff] }
 0x743   : > { %v8580_v39 = vunpack.i.h.bf16 %v8578_v36  ;;  %v8579_v62 = vunpack.i.l.bf16 %v8578_v36  ;;  %6131 = vmatprep.mubr.f32.mxu0 %v5754_v22  ;;  %7656 = vmatmul.mubr.msk.f32.gmra.mrb[84].mxu1 %vm2553_vm8, %v8903_v31  ;;  %v8914_v36 = vld [vmem:[#allocation2 + $0x110] sm:$0xff] }
 0x744   : > { %6132 = vmatmul.mubr.f32.gmra.mrb[108].mxu0 %v5592_v17  ;;  %7658 = vmatprep.mubr.msk.f32.mxu1 %vm2553_vm8, %v8904_v51  ;;  %v8593_v6 = vpop.permute.xlu1 %8592  ;;  %v8916_v17 = vld [vmem:[#allocation2 + $0x1a9] sm:$0xff] }
 0x745   : > { %v5701_v33 = vsel %vm5509_vm10, %v5647_v56, %v8579_v62  ;;  %v5538_v24 = vsel %vm5509_vm10, %v5483_v21, %v8580_v39  ;;  %v8595_v20 = vunpack.i.h.bf16 %v8593_v6  ;;  %v8594_v1 = vunpack.i.l.bf16 %v8593_v6  ;;  %v8918_v56 = vld [vmem:[#allocation2 + $0x1b9] sm:$0xff] }
 0x746   : > { %v14646_v61 = vpop.f32.mrb[20].mxu1  ;;  %v8588_v23 = vpop.permute.xlu0 %8587  ;;  %v5755_v32 = vsel %vm5564_vm11, %v5701_v33, %v8584_v57  ;;  %v5593_v42 = vsel %vm5564_vm11, %v5538_v24, %v8585_v25  ;;  %v8915_v57 = vld [vmem:[#allocation2 + $0xf7] sm:$0xff]  ;;  %v7022_v21 = vld [vmem:[%s15364_s11] sm:$0xff] }
 0x747   : > { %v8589_v27 = vunpack.i.l.bf16 %v8588_v23  ;;  %6136 = vmatprep.mubr.f32.mxu0 %v5755_v32  ;;  %v6205_v49 = vpop.f32.mrb[21].mxu1  ;;  %7659 = vmatmul.mubr.msk.f32.gmra.mrb[86].mxu1 %vm2553_vm8, %v8907_v10  ;;  %v8590_v18 = vunpack.i.h.bf16 %v8588_v23  ;;  %v5539_v9 = vsel %vm5509_vm10, %v5484_v8, %v8595_v20  ;;  %v5485_v22 = vsel %vm2553_vm8, %v8915_v57, %v7879_v60  ;;  %v8919_v24 = vld [vmem:[#allocation2 + $0x1c1] sm:$0xff]  ;;  %v4306_v23 = vld [vmem:[#allocation2 + $0x1d1] sm:$0xff] }
 0x748   : > { %6137 = vmatmul.mubr.f32.gmra.mrb[110].mxu0 %v5593_v42  ;;  %7661 = vmatprep.mubr.msk.f32.mxu1 %vm2553_vm8, %v8908_v16  ;;  %v8603_v14 = vpop.permute.xlu1 %8602  ;;  %v7023_v32 = vld [vmem:[%s15364_s11 + $0x8] sm:$0xff]  ;;  %v7024_v49 = vld [vmem:[%s15364_s11 + $0x10] sm:$0xff]  ;;  %v7025_v10 = vld [vmem:[%s15364_s11 + $0x18] sm:$0xff] }
 0x749   : > { %v5648_v47 = vsel %vm2553_vm8, %v8909_v63, %v8589_v27  ;;  %v8605_v11 = vunpack.i.h.bf16 %v8603_v14  ;;  %v8604_v34 = vunpack.i.l.bf16 %v8603_v14  ;;  %v5649_v25 = vsel %vm2553_vm8, %v8914_v36, %v8590_v18 }
 0x74a   : > { %v8598_v41 = vpop.permute.xlu0 %8597  ;;  %v5702_v5 = vsel %vm5509_vm10, %v5648_v47, %v8594_v1 }
 0x74b   : > { %v8600_v37 = vunpack.i.h.bf16 %v8598_v41  ;;  %v8599_v40 = vunpack.i.l.bf16 %v8598_v41  ;;  %7662 = vmatmul.mubr.msk.f32.gmra.mrb[88].mxu1 %vm2553_vm8, %v8911_v0  ;;  %v5703_v39 = vsel %vm5509_vm10, %v5649_v25, %v8604_v34  ;;  %v5540_v62 = vsel %vm5509_vm10, %v5485_v22, %v8605_v11 }
 0x74c   : > { %7664 = vmatprep.mubr.msk.f32.mxu1 %vm2553_vm8, %v8912_v43  ;;  %v6001_v44 = vpop.f32.mrb[54].mxu0 }
 0x74d   : > { %v5756_v4 = vsel %vm5564_vm11, %v5702_v5, %v8599_v40  ;;  %v5594_v53 = vsel %vm5564_vm11, %v5539_v9, %v8600_v37  ;;  %v6002_v12 = vpop.f32.mrb[55].mxu0 }
 0x74e   : > { %v14661_v19 = vpop.f32.mrb[22].mxu1  ;;  %v8608_v48 = vpop.permute.xlu0 %8607  ;;  %6141 = vmatprep.mubr.f32.mxu0 %v5756_v4 }
 0x74f   : > { %v8610_v26 = vunpack.i.h.bf16 %v8608_v48  ;;  %v8609_v59 = vunpack.i.l.bf16 %v8608_v48  ;;  %6142 = vmatmul.mubr.f32.gmra.mrb[112].mxu0 %v5594_v53  ;;  %v6210_v30 = vpop.f32.mrb[23].mxu1  ;;  %7665 = vmatmul.mubr.msk.f32.gmra.mrb[90].mxu1 %vm2553_vm8, %v8913_v38 }
 0x750   : > { %7667 = vmatprep.mubr.msk.f32.mxu1 %vm2553_vm8, %v8916_v17 }
 0x751   : > { %v5757_v31 = vsel %vm5564_vm11, %v5703_v39, %v8609_v59  ;;  %v5595_v51 = vsel %vm5564_vm11, %v5540_v62, %v8610_v26 }
 0x752   : > { %6146 = vmatprep.mubr.f32.mxu0 %v5757_v31 }
 0x753   : > { %6147 = vmatmul.mubr.f32.gmra.mrb[114].mxu0 %v5595_v51  ;;  %7668 = vmatmul.mubr.msk.f32.gmra.mrb[92].mxu1 %vm2553_vm8, %v8917_v52 }
 0x754   : > { %7670 = vmatprep.mubr.msk.f32.mxu1 %vm2553_vm8, %v8918_v56  ;;  %7133 = vmatprep.mubr.f32.mxu0 %v16591_v55  ;;  %v14677_v6 = vpop.f32.mrb[24].mxu1 }
 0x755   : > { %v6215_v33 = vpop.f32.mrb[25].mxu1 }
 0x757   : > { %7671 = vmatmul.mubr.msk.f32.gmra.mrb[94].mxu1 %vm2553_vm8, %v8919_v24  ;;  %7374 = vmatmul.mubr.msk.f32.vlgmr.msra.gmra.mrb[116].mxu0 %vm2168_vm1, %v7022_v21  ;;  %v14715_v24 = vld [vmem:[%s15361_s8] ss:$0 sm:$0xff] }
 0x758   : > { %7673 = vmatprep.mubr.msk.f32.mxu1 %vm2553_vm8, %v8920_v35  ;;  %7139 = vmatprep.mubr.f32.mxu0 %v16591_v55 }
 0x75a   : > { %v6005_v42 = vpop.f32.mrb[56].mxu0 }
 0x75b   : > { %v6006_v27 = vpop.f32.mrb[57].mxu0  ;;  %7674 = vmatmul.mubr.msk.f32.gmra.mrb[96].mxu1 %vm2553_vm8, %v4306_v23  ;;  %7375 = vmatmul.mubr.msk.f32.gmra.mrb[118].mxu0 %vm2168_vm1, %v7023_v32 }
 0x75c   : > { %7145 = vmatprep.mubr.f32.mxu0 %v16591_v55 }
 0x75f   : > { %7376 = vmatmul.mubr.msk.f32.gmra.mrb[120].mxu0 %vm2168_vm1, %v7024_v49 }
 0x760   : > { %7151 = vmatprep.mubr.f32.mxu0 %v16591_v55  ;;  %v6009_v20 = vpop.f32.mrb[58].mxu0 }
 0x761   : > { %v6010_v16 = vpop.f32.mrb[59].mxu0 }
 0x762   : > { %v14697_v1 = vpop.f32.mrb[26].mxu1 }
 0x763   : > { %v6220_v14 = vpop.f32.mrb[27].mxu1  ;;  %7377 = vmatmul.mubr.msk.f32.gmra.mrb[122].mxu0 %vm2168_vm1, %v7025_v10 }
 0x76c   : > { %v6013_v63 = vpop.f32.mrb[60].mxu0 }
 0x76d   : > { %v6015_v41 = vpop.f32.mrb[61].mxu0  ;;  %v6014_v23 = vadd.f32 %v14715_v24, %v6013_v63 }
 0x76e   : > { %v14700_v47 = vpop.f32.mrb[28].mxu1 }
 0x76f   : > { %v6225_v46 = vpop.f32.mrb[29].mxu1 }
 0x774   : > { %v14702_v8 = vpop.f32.mrb[30].mxu1 }
 0x775   : > { %v6230_v2 = vpop.f32.mrb[31].mxu1 }
 0x77a   : > { %v6018_v60 = vpop.f32.mrb[62].mxu0 }
 0x77b   : > { %v6020_v18 = vpop.f32.mrb[63].mxu0  ;;  %v6019_v10 = vadd.f32 %v14715_v24, %v6018_v60 }
 0x780   : > { %v14704_v37 = vpop.f32.mrb[32].mxu1 }
 0x781   : > { %v6235_v40 = vpop.f32.mrb[33].mxu1 }
 0x786   : > { %v6023_v0 = vpop.f32.mrb[64].mxu0 }
 0x787   : > { %v6025_v11 = vpop.f32.mrb[65].mxu0  ;;  %v6024_v49 = vadd.f32 %v14715_v24, %v6023_v0 }
 0x78c   : > { %v6028_v34 = vpop.f32.mrb[66].mxu0 }
 0x78d   : > { %v6030_v5 = vpop.f32.mrb[67].mxu0  ;;  %v6029_v63 = vadd.f32 %v14715_v24, %v6028_v34 }
 0x78e   : > { %v14706_v43 = vpop.f32.mrb[34].mxu1 }
 0x78f   : > { %v6240_v9 = vpop.f32.mrb[35].mxu1 }
 0x798   : > { %v6033_v44 = vpop.f32.mrb[68].mxu0 }
 0x799   : > { %v6035_v53 = vpop.f32.mrb[69].mxu0  ;;  %v6034_v18 = vadd.f32 %v14715_v24, %v6033_v44 }
 0x79a   : > { %v14708_v4 = vpop.f32.mrb[36].mxu1 }
 0x79b   : > { %v6245_v48 = vpop.f32.mrb[37].mxu1 }
 0x7a0   : > { %v14710_v26 = vpop.f32.mrb[38].mxu1 }
 0x7a1   : > { %v6250_v59 = vpop.f32.mrb[39].mxu1 }
 0x7a6   : > { %v6038_v12 = vpop.f32.mrb[70].mxu0 }
 0x7a7   : > { %v6040_v30 = vpop.f32.mrb[71].mxu0  ;;  %v6039_v48 = vadd.f32 %v14715_v24, %v6038_v12 }
 0x7ac   : > { %v6253_v38 = vpop.f32.mrb[40].mxu1 }
 0x7ad   : > { %v6254_v36 = vpop.f32.mrb[41].mxu1 }
 0x7b2   : > { %v6043_v25 = vpop.f32.mrb[72].mxu0 }
 0x7b3   : > { %v6045_v57 = vpop.f32.mrb[73].mxu0  ;;  %v6044_v53 = vadd.f32 %v14715_v24, %v6043_v25 }
 0x7b8   : > { %v6048_v22 = vpop.f32.mrb[74].mxu0 }
 0x7b9   : > { %v6050_v39 = vpop.f32.mrb[75].mxu0 }
 0x7ba   : > { %v6257_v17 = vpop.f32.mrb[42].mxu1 }
 0x7bb   : > { %v6258_v62 = vpop.f32.mrb[43].mxu1  ;;  %v6049_v17 = vadd.f32 %v14715_v24, %v6048_v22 }
 0x7c4   : > { %v6053_v31 = vpop.f32.mrb[76].mxu0 }
 0x7c5   : > { %v6055_v52 = vpop.f32.mrb[77].mxu0  ;;  %v6054_v57 = vadd.f32 %v14715_v24, %v6053_v31 }
 0x7c6   : > { %v6261_v51 = vpop.f32.mrb[44].mxu1 }
 0x7c7   : > { %v6262_v56 = vpop.f32.mrb[45].mxu1 }
 0x7ca   : > { %v7600_v55 = vpop.f32.mrb[46].mxu1 }
 0x7cb   : > { %v6058_v21 = vpop.f32.mrb[78].mxu0  ;;  %v6330_v33 = vpop.f32.mrb[47].mxu1 }
 0x7cc   : > { %v6060_v35 = vpop.f32.mrb[79].mxu0  ;;  %v6059_v55 = vadd.f32 %v14715_v24, %v6058_v21 }
 0x7ce   : > { %v7603_v32 = vpop.f32.mrb[48].mxu1 }
 0x7cf   : > { %v6343_v42 = vadd.f32 %v7603_v32, %v6014_v23  ;;  %v6338_v27 = vpop.f32.mrb[49].mxu1 }
 0x7d1   : > { %6594 = vst.msk [vmem:[#allocation3 - $0x1] sm:$0xfe] %vm6593_vm12, %v6343_v42 }
 0x7d2   : > { %v6063_v20 = vpop.f32.mrb[80].mxu0  ;;  %v7606_v16 = vpop.f32.mrb[50].mxu1 }
 0x7d3   : > { %v6353_v14 = vadd.f32 %v7606_v16, %v6024_v49  ;;  %v6065_v41 = vpop.f32.mrb[81].mxu0  ;;  %v6347_v46 = vpop.f32.mrb[51].mxu1  ;;  %v6064_v56 = vadd.f32 %v14715_v24, %v6063_v20 }
 0x7d4   : > { %v6348_v2 = vadd.f32 %v6347_v46, %v6019_v10 }
 0x7d5   : > { %6597 = vst.msk [vmem:[#allocation3 + $0xf] sm:$0x1] %vm6596_vm13, %v6353_v14 }
 0x7d6   : > { %6595 = vst.msk [vmem:[#allocation3 + $0x7] sm:$0xff] %vm2553_vm8, %v6348_v2  ;;  %v6068_v40 = vpop.f32.mrb[82].mxu0  ;;  %v7609_v0 = vpop.f32.mrb[52].mxu1  ;;  %v4307_v2 = vld [vmem:[#allocation2 + $0x1d9] sm:$0xff] }
 0x7d7   : > { %v6363_v11 = vadd.f32 %v7609_v0, %v6034_v18  ;;  %v6070_v5 = vpop.f32.mrb[83].mxu0  ;;  %v6357_v60 = vpop.f32.mrb[53].mxu1  ;;  %v6069_v32 = vadd.f32 %v14715_v24, %v6068_v40  ;;  %v4308_v18 = vld [vmem:[#allocation2 + $0x1e1] sm:$0xff]  ;;  %7676 = vmatprep.mubr.msk.f32.mxu1 %vm2553_vm8, %v4307_v2 }
 0x7d8   : > { %v6358_v9 = vadd.f32 %v6357_v60, %v6029_v63  ;;  %7677 = vmatmul.mubr.msk.f32.gmra.mrb[98].mxu1 %vm2553_vm8, %v4308_v18 }
 0x7d9   : > { %6599 = vst.msk [vmem:[#allocation3 + $0x17] sm:$0xff] %vm2553_vm8, %v6363_v11 }
 0x7da   : > { %6598 = vst.msk [vmem:[#allocation3 + $0xf] sm:$0xfe] %vm6593_vm12, %v6358_v9  ;;  %v7612_v44 = vpop.f32.mrb[54].mxu1 }
 0x7db   : > { %v6373_v59 = vadd.f32 %v7612_v44, %v6044_v53  ;;  %v6073_v30 = vpop.f32.mrb[84].mxu0  ;;  %v6367_v34 = vpop.f32.mrb[55].mxu1 }
 0x7dc   : > { %v6368_v38 = vadd.f32 %v6367_v34, %v6039_v48  ;;  %v6075_v36 = vpop.f32.mrb[85].mxu0  ;;  %v6074_v23 = vadd.f32 %v14715_v24, %v6073_v30 }
 0x7dd   : > { %6601 = vst.msk [vmem:[#allocation3 + $0x1f] sm:$0xfe] %vm6593_vm12, %v6373_v59 }
 0x7de   : > { %6600 = vst.msk [vmem:[#allocation3 + $0x1f] sm:$0x1] %vm6596_vm13, %v6368_v38  ;;  %v7615_v25 = vpop.f32.mrb[56].mxu1 }
 0x7df   : > { %v6383_v39 = vadd.f32 %v7615_v25, %v6054_v57  ;;  %v6078_v62 = vpop.f32.mrb[86].mxu0  ;;  %v6377_v12 = vpop.f32.mrb[57].mxu1 }
 0x7e0   : > { %v6378_v51 = vadd.f32 %v6377_v12, %v6049_v17  ;;  %v6080_v52 = vpop.f32.mrb[87].mxu0  ;;  %v6079_v14 = vadd.f32 %v14715_v24, %v6078_v62 }
 0x7e1   : > { %6603 = vst.msk [vmem:[#allocation3 + $0x2f] sm:$0x1] %vm6596_vm13, %v6383_v39 }
 0x7e2   : > { %6602 = vst.msk [vmem:[#allocation3 + $0x27] sm:$0xff] %vm2553_vm8, %v6378_v51  ;;  %v7618_v31 = vpop.f32.mrb[58].mxu1 }
 0x7e3   : > { %v6393_v33 = vadd.f32 %v7618_v31, %v6064_v56  ;;  %v6387_v35 = vpop.f32.mrb[59].mxu1 }
 0x7e4   : > { %v6388_v22 = vadd.f32 %v6387_v35, %v6059_v55 }
 0x7e5   : > { %6605 = vst.msk [vmem:[#allocation3 + $0x37] sm:$0xff] %vm2553_vm8, %v6393_v33 }
 0x7e6   : > { %6604 = vst.msk [vmem:[#allocation3 + $0x2f] sm:$0xfe] %vm6593_vm12, %v6388_v22  ;;  %v6083_v42 = vpop.f32.mrb[88].mxu0  ;;  %v7621_v27 = vpop.f32.mrb[60].mxu1 }
 0x7e7   : > { %v6403_v49 = vadd.f32 %v7621_v27, %v6074_v23  ;;  %v6085_v10 = vpop.f32.mrb[89].mxu0  ;;  %v6397_v20 = vpop.f32.mrb[61].mxu1  ;;  %v6084_v16 = vadd.f32 %v14715_v24, %v6083_v42 }
 0x7e8   : > { %v6398_v21 = vadd.f32 %v6397_v20, %v6069_v32 }
 0x7e9   : > { %6607 = vst.msk [vmem:[#allocation3 + $0x3f] sm:$0xfe] %vm6593_vm12, %v6403_v49 }
 0x7ea   : > { %6606 = vst.msk [vmem:[#allocation3 + $0x3f] sm:$0x1] %vm6596_vm13, %v6398_v21  ;;  %v6088_v41 = vpop.f32.mrb[90].mxu0  ;;  %v7624_v46 = vpop.f32.mrb[62].mxu1 }
 0x7eb   : > { %v6413_v63 = vadd.f32 %v7624_v46, %v6084_v16  ;;  %v6090_v40 = vpop.f32.mrb[91].mxu0  ;;  %v6407_v0 = vpop.f32.mrb[63].mxu1  ;;  %v6089_v5 = vadd.f32 %v14715_v24, %v6088_v41  ;;  %v6154_v16 = vadd.f32 %v14715_v24, %v14509_v54  ;;  %v14772_v41 = vld [vmem:[#allocation3 + $0x8] sm:$0xff]  ;;  %v6164_v54 = vadd.f32 %v14715_v24, %v14543_v3 }
 0x7ec   : > { %v6408_v11 = vadd.f32 %v6407_v0, %v6079_v14  ;;  %v14770_v14 = vld [vmem:[#allocation3] sm:$0xff]  ;;  %v14776_v0 = vld [vmem:[#allocation3 + $0x10] sm:$0xff] }
 0x7ed   : > { %6609 = vst.msk [vmem:[#allocation3 + $0x4f] sm:$0x1] %vm6596_vm13, %v6413_v63 }
 0x7ee   : > { %6608 = vst.msk [vmem:[#allocation3 + $0x47] sm:$0xff] %vm2553_vm8, %v6408_v11  ;;  %v7627_v60 = vpop.f32.mrb[64].mxu1 }
 0x7ef   : > { %v6093_v9 = vpop.f32.mrb[92].mxu0  ;;  %v6417_v53 = vpop.f32.mrb[65].mxu1 }
 0x7f0   : > { %v6094_v48 = vadd.f32 %v14715_v24, %v6093_v9  ;;  %v6418_v44 = vadd.f32 %v6417_v53, %v6089_v5  ;;  %v6095_v59 = vpop.f32.mrb[93].mxu0  ;;  %v6678_v9 = vsel %vm2553_vm8, %v14772_v41, 0.0  ;;  %v6159_v53 = vadd.f32 %v14715_v24, %v14521_v58 }
 0x7f2   : > { %v6423_v30 = vadd.f32 %v7627_v60, %v6094_v48  ;;  %6610 = vst.msk [vmem:[#allocation3 + $0x4f] sm:$0xfe] %vm6593_vm12, %v6418_v44  ;;  %v7630_v34 = vpop.f32.mrb[66].mxu1  ;;  %v6677_v60 = vsel %vm2553_vm8, %v14770_v14, 0.0  ;;  %v14789_v48 = vld [vmem:[#allocation3 + $0x18] sm:$0xff] }
 0x7f3   : > { %v6098_v38 = vpop.f32.mrb[94].mxu0  ;;  %v6427_v36 = vpop.f32.mrb[67].mxu1  ;;  %v6682_v58 = vsel %vm2553_vm8, %v14789_v48, 0.0 }
 0x7f4   : > { %6611 = vst.msk [vmem:[#allocation3 + $0x57] sm:$0xff] %vm2553_vm8, %v6423_v30  ;;  %v6099_v57 = vadd.f32 %v14715_v24, %v6098_v38  ;;  %v6100_v17 = vpop.f32.mrb[95].mxu0  ;;  %v6680_v30 = vsel %vm2553_vm8, %v14776_v0, 0.0  ;;  %v6679_v38 = vadd.f32 %v6678_v9, %v6677_v60  ;;  %v14828_v9 = vld [vmem:[#allocation3 + $0x38] sm:$0xff] }
 0x7f5   : > { %v6174_v17 = vadd.f32 %v14715_v24, %v14564_v15 }
 0x7f6   : > { %v6428_v25 = vadd.f32 %v6427_v36, %v6099_v57  ;;  %v7633_v39 = vpop.f32.mrb[68].mxu1  ;;  %v14793_v36 = vld [vmem:[#allocation3 + $0x20] sm:$0xff] }
 0x7f7   : > { %v6437_v62 = vpop.f32.mrb[69].mxu1 }
 0x7f8   : > { %6612 = vst.msk [vmem:[#allocation3 + $0x5f] sm:$0x1] %vm6596_vm13, %v6428_v25  ;;  %v6169_v25 = vadd.f32 %v14715_v24, %v14552_v45  ;;  %v6179_v45 = vadd.f32 %v14715_v24, %v14577_v50  ;;  %v6194_v50 = vadd.f32 %v14715_v24, %v14615_v29 }
 0x7fa   : > { %v6103_v12 = vpop.f32.mrb[96].mxu0  ;;  %v7636_v51 = vpop.f32.mrb[70].mxu1 }
 0x7fb   : > { %v6104_v52 = vadd.f32 %v14715_v24, %v6103_v12  ;;  %v6105_v56 = vpop.f32.mrb[97].mxu0  ;;  %v6447_v55 = vpop.f32.mrb[71].mxu1 }
 0x7fd   : > { %v6433_v31 = vadd.f32 %v7630_v34, %v6104_v52  ;;  %v6684_v52 = vsel %vm2553_vm8, %v14793_v36, 0.0 }
 0x7fe   : > { %v6108_v33 = vpop.f32.mrb[98].mxu0  ;;  %v14756_v35 = vpop.f32.mrb[72].mxu1 }
 0x7ff   : > { %6613 = vst.msk [vmem:[#allocation3 + $0x5f] sm:$0xfe] %vm6593_vm12, %v6433_v31  ;;  %v6109_v22 = vadd.f32 %v14715_v24, %v6108_v33  ;;  %v6110_v23 = vpop.f32.mrb[99].mxu0  ;;  %v14760_v32 = vpop.f32.mrb[73].mxu1 }
 0x800   : > { %v6184_v23 = vadd.f32 %v14715_v24, %v14596_v13 }
 0x801   : > { %v6438_v42 = vadd.f32 %v6437_v62, %v6109_v22 }
 0x802   : > { %v14762_v27 = vpop.f32.mrb[74].mxu1 }
 0x803   : > { %6614 = vst.msk [vmem:[#allocation3 + $0x67] sm:$0xff] %vm2553_vm8, %v6438_v42  ;;  %v6113_v49 = vpop.f32.mrb[100].mxu0  ;;  %v14765_v10 = vpop.f32.mrb[75].mxu1 }
 0x804   : > { %v6114_v20 = vadd.f32 %v14715_v24, %v6113_v49  ;;  %v6115_v21 = vpop.f32.mrb[101].mxu0  ;;  %v14812_v49 = vld [vmem:[#allocation3 + $0x28] sm:$0xff] }
 0x806   : > { %v6443_v46 = vadd.f32 %v7633_v39, %v6114_v20  ;;  %v7645_v2 = vpop.f32.mrb[76].mxu1  ;;  %v6681_v39 = vadd.f32 %v6680_v30, %v6679_v38  ;;  %v14834_v38 = vld [vmem:[#allocation3 + $0x40] sm:$0xff] }
 0x807   : > { %v6483_v18 = vadd.f32 %v7645_v2, %v6154_v16  ;;  %v6118_v63 = vpop.f32.mrb[102].mxu0  ;;  %v14774_v40 = vpop.f32.mrb[77].mxu1 }
 0x808   : > { %6615 = vst.msk [vmem:[#allocation3 + $0x6f] sm:$0x1] %vm6596_vm13, %v6443_v46  ;;  %v6119_v11 = vadd.f32 %v14715_v24, %v6118_v63  ;;  %v6120_v5 = vpop.f32.mrb[103].mxu0  ;;  %v6683_v33 = vadd.f32 %v6682_v58, %v6681_v39 }
 0x809   : > { %6623 = vst.msk [vmem:[#allocation3 + $0x97] sm:$0xff] %vm2553_vm8, %v6483_v18 }
 0x80a   : > { %v6448_v44 = vadd.f32 %v6447_v55, %v6119_v11  ;;  %v7648_v59 = vpop.f32.mrb[78].mxu1  ;;  %v6685_v20 = vadd.f32 %v6684_v52, %v6683_v33  ;;  %v6686_v11 = vsel %vm2553_vm8, %v14812_v49, 0.0 }
 0x80b   : > { %v6493_v34 = vadd.f32 %v7648_v59, %v6164_v54  ;;  %v6487_v3 = vpop.f32.mrb[79].mxu1  ;;  %v6189_v54 = vadd.f32 %v14715_v24, %v14603_v7  ;;  %v6204_v7 = vadd.f32 %v14715_v24, %v14646_v61  ;;  %v6692_v61 = vsel %vm2553_vm8, %v14834_v38, 0.0 }
 0x80c   : > { %6616 = vst.msk [vmem:[#allocation3 + $0x6f] sm:$0xfe] %vm6593_vm12, %v6448_v44  ;;  %v6488_v57 = vadd.f32 %v6487_v3, %v6159_v53  ;;  %v6687_v53 = vadd.f32 %v6686_v11, %v6685_v20 }
 0x80d   : > { %6625 = vst.msk [vmem:[#allocation3 + $0x9f] sm:$0xfe] %vm6593_vm12, %v6493_v34 }
 0x80e   : > { %6624 = vst.msk [vmem:[#allocation3 + $0x9f] sm:$0x1] %vm6596_vm13, %v6488_v57  ;;  %v6123_v62 = vpop.f32.mrb[104].mxu0  ;;  %v7651_v12 = vpop.f32.mrb[80].mxu1  ;;  %v6690_v57 = vsel %vm2553_vm8, %v14828_v9, 0.0 }
 0x80f   : > { %v6124_v56 = vadd.f32 %v14715_v24, %v6123_v62  ;;  %v6503_v55 = vadd.f32 %v7651_v12, %v6174_v17  ;;  %v6125_v15 = vpop.f32.mrb[105].mxu0  ;;  %v6497_v31 = vpop.f32.mrb[81].mxu1  ;;  %v6199_v17 = vadd.f32 %v14715_v24, %v14627_v28  ;;  %v6214_v28 = vadd.f32 %v14715_v24, %v14677_v6 }
 0x810   : > { %v6498_v22 = vadd.f32 %v6497_v31, %v6169_v25 }
 0x811   : > { %v6453_v42 = vadd.f32 %v7636_v51, %v6124_v56  ;;  %6627 = vst.msk [vmem:[#allocation3 + $0xaf] sm:$0x1] %vm6596_vm13, %v6503_v55  ;;  %v14817_v51 = vld [vmem:[#allocation3 + $0x30] sm:$0xff] }
 0x812   : > { %6626 = vst.msk [vmem:[#allocation3 + $0xa7] sm:$0xff] %vm2553_vm8, %v6498_v22  ;;  %v6128_v21 = vpop.f32.mrb[106].mxu0  ;;  %v7654_v16 = vpop.f32.mrb[82].mxu1  ;;  %v6688_v30 = vsel %vm2553_vm8, %v14817_v51, 0.0 }
 0x813   : > { %6617 = vst.msk [vmem:[#allocation3 + $0x77] sm:$0xff] %vm2553_vm8, %v6453_v42  ;;  %v6129_v46 = vadd.f32 %v14715_v24, %v6128_v21  ;;  %v6513_v2 = vadd.f32 %v7654_v16, %v6184_v23  ;;  %v6130_v18 = vpop.f32.mrb[107].mxu0  ;;  %v6507_v13 = vpop.f32.mrb[83].mxu1  ;;  %v6689_v39 = vadd.f32 %v6688_v30, %v6687_v53  ;;  %v14856_v23 = vld [vmem:[#allocation3 + $0x48] sm:$0xff]  ;;  %v14858_v42 = vld [vmem:[#allocation3 + $0x50] sm:$0xff]  ;;  %v14861_v16 = vld [vmem:[#allocation3 + $0x58] sm:$0xff] }
 0x814   : > { %v6508_v63 = vadd.f32 %v6507_v13, %v6179_v45 }
 0x815   : > { %v6458_v5 = vadd.f32 %v14760_v32, %v6129_v46  ;;  %6629 = vst.msk [vmem:[#allocation3 + $0xb7] sm:$0xff] %vm2553_vm8, %v6513_v2  ;;  %v6691_v31 = vadd.f32 %v6690_v57, %v6689_v39  ;;  %v6696_v46 = vsel %vm2553_vm8, %v14858_v42, 0.0  ;;  %v6219_v2 = vadd.f32 %v14715_v24, %v14697_v1 }
 0x816   : > { %6628 = vst.msk [vmem:[#allocation3 + $0xaf] sm:$0xfe] %vm6593_vm12, %v6508_v63  ;;  %v7657_v60 = vpop.f32.mrb[84].mxu1  ;;  %v14873_v63 = vld [vmem:[#allocation3 + $0x60] sm:$0xff]  ;;  %v6234_v1 = vadd.f32 %v14715_v24, %v14704_v37 }
 0x817   : > { %6618 = vst.msk [vmem:[#allocation3 + $0x7f] sm:$0x1] %vm6596_vm13, %v6458_v5  ;;  %v6523_v44 = vadd.f32 %v7657_v60, %v6194_v50  ;;  %v6133_v29 = vpop.f32.mrb[108].mxu0  ;;  %v6517_v59 = vpop.f32.mrb[85].mxu1  ;;  %v6693_v45 = vadd.f32 %v6692_v61, %v6691_v31  ;;  %v6698_v60 = vsel %vm2553_vm8, %v14861_v16, 0.0  ;;  %v6700_v30 = vsel %vm2553_vm8, %v14873_v63, 0.0 }
 0x818   : > { %v6134_v32 = vadd.f32 %v14715_v24, %v6133_v29  ;;  %v6518_v34 = vadd.f32 %v6517_v59, %v6189_v54  ;;  %v6135_v3 = vpop.f32.mrb[109].mxu0 }
 0x819   : > { %6631 = vst.msk [vmem:[#allocation3 + $0xbf] sm:$0xfe] %vm6593_vm12, %v6523_v44  ;;  %v14878_v44 = vld [vmem:[#allocation3 + $0x68] sm:$0xff] }
 0x81a   : > { %v6463_v58 = vadd.f32 %v14756_v35, %v6134_v32  ;;  %6630 = vst.msk [vmem:[#allocation3 + $0xbf] sm:$0x1] %vm6596_vm13, %v6518_v34  ;;  %v7660_v25 = vpop.f32.mrb[86].mxu1  ;;  %v6209_v35 = vadd.f32 %v14715_v24, %v14661_v19  ;;  %v6224_v19 = vadd.f32 %v14715_v24, %v14700_v47  ;;  %v6229_v32 = vadd.f32 %v14715_v24, %v14702_v8 }
 0x81b   : > { %v6533_v62 = vadd.f32 %v7660_v25, %v6204_v7  ;;  %v6138_v12 = vpop.f32.mrb[110].mxu0  ;;  %v6527_v52 = vpop.f32.mrb[87].mxu1  ;;  %v14889_v7 = vld [vmem:[#allocation3 + $0x70] sm:$0xff]  ;;  %v6702_v25 = vsel %vm2553_vm8, %v14878_v44, 0.0 }
 0x81c   : > { %6619 = vst.msk [vmem:[#allocation3 + $0x7f] sm:$0xfe] %vm6593_vm12, %v6463_v58  ;;  %v6139_v56 = vadd.f32 %v14715_v24, %v6138_v12  ;;  %v6528_v55 = vadd.f32 %v6527_v52, %v6199_v17  ;;  %v6140_v15 = vpop.f32.mrb[111].mxu0  ;;  %v6244_v12 = vadd.f32 %v14715_v24, %v14708_v4  ;;  %v6704_v61 = vsel %vm2553_vm8, %v14889_v7, 0.0 }
 0x81d   : > { %6633 = vst.msk [vmem:[#allocation3 + $0xcf] sm:$0x1] %vm6596_vm13, %v6533_v62 }
 0x81e   : > { %v6468_v33 = vadd.f32 %v14765_v10, %v6139_v56  ;;  %6632 = vst.msk [vmem:[#allocation3 + $0xc7] sm:$0xff] %vm2553_vm8, %v6528_v55  ;;  %v7663_v22 = vpop.f32.mrb[88].mxu1  ;;  %v6694_v10 = vsel %vm2553_vm8, %v14856_v23, 0.0  ;;  %v14895_v62 = vld [vmem:[#allocation3 + $0x78] sm:$0xff]  ;;  %v6239_v56 = vadd.f32 %v14715_v24, %v14706_v43 }
 0x81f   : > { %v6543_v20 = vadd.f32 %v7663_v22, %v6214_v28  ;;  %v6537_v21 = vpop.f32.mrb[89].mxu1  ;;  %v6695_v50 = vadd.f32 %v6694_v10, %v6693_v45 }
 0x820   : > { %6620 = vst.msk [vmem:[#allocation3 + $0x87] sm:$0xff] %vm2553_vm8, %v6468_v33  ;;  %v6538_v6 = vadd.f32 %v6537_v21, %v6209_v35  ;;  %v6706_v33 = vsel %vm2553_vm8, %v14895_v62, 0.0 }
 0x821   : > { %6635 = vst.msk [vmem:[#allocation3 + $0xd7] sm:$0xff] %vm2553_vm8, %v6543_v20  ;;  %v6697_v29 = vadd.f32 %v6696_v46, %v6695_v50  ;;  %v6249_v20 = vadd.f32 %v14715_v24, %v14710_v26  ;;  %v14932_v26 = vld [vmem:[#allocation3 + $0x98] sm:$0xff] }
 0x822   : > { %6634 = vst.msk [vmem:[#allocation3 + $0xcf] sm:$0xfe] %vm6593_vm12, %v6538_v6  ;;  %v6143_v18 = vpop.f32.mrb[112].mxu0  ;;  %v7666_v13 = vpop.f32.mrb[90].mxu1 }
 0x823   : > { %v6144_v47 = vadd.f32 %v14715_v24, %v6143_v18  ;;  %v6553_v11 = vadd.f32 %v7666_v13, %v6224_v19  ;;  %v6145_v5 = vpop.f32.mrb[113].mxu0  ;;  %v6547_v54 = vpop.f32.mrb[91].mxu1  ;;  %v6699_v57 = vadd.f32 %v6698_v60, %v6697_v29  ;;  %v14940_v60 = vld [vmem:[#allocation3 + $0xa0] sm:$0xff]  ;;  %v6714_v29 = vsel %vm2553_vm8, %v14932_v26, 0.0 }
 0x824   : > { %v6548_v53 = vadd.f32 %v6547_v54, %v6219_v2 }
 0x825   : > { %v6473_v59 = vadd.f32 %v14762_v27, %v6144_v47  ;;  %6637 = vst.msk [vmem:[#allocation3 + $0xdf] sm:$0xfe] %vm6593_vm12, %v6553_v11  ;;  %v6701_v8 = vadd.f32 %v6700_v30, %v6699_v57 }
 0x826   : > { %6636 = vst.msk [vmem:[#allocation3 + $0xdf] sm:$0x1] %vm6596_vm13, %v6548_v53  ;;  %v6148_v34 = vpop.f32.mrb[114].mxu0  ;;  %v7669_v3 = vpop.f32.mrb[92].mxu1 }
 0x827   : > { %6621 = vst.msk [vmem:[#allocation3 + $0x8f] sm:$0x1] %vm6596_vm13, %v6473_v59  ;;  %v6149_v37 = vadd.f32 %v14715_v24, %v6148_v34  ;;  %v6563_v27 = vadd.f32 %v7669_v3, %v6234_v1  ;;  %v6150_v17 = vpop.f32.mrb[115].mxu0  ;;  %v6557_v58 = vpop.f32.mrb[93].mxu1  ;;  %v14908_v31 = vld [vmem:[#allocation3 + $0x80] sm:$0xff]  ;;  %v6703_v28 = vadd.f32 %v6702_v25, %v6701_v8  ;;  %v14944_v1 = vld [vmem:[#allocation3 + $0xa8] sm:$0xff] }
 0x828   : > { %v6558_v39 = vadd.f32 %v6557_v58, %v6229_v32  ;;  %v6708_v43 = vsel %vm2553_vm8, %v14908_v31, 0.0  ;;  %v6716_v32 = vsel %vm2553_vm8, %v14940_v60, 0.0  ;;  %v14952_v3 = vld [vmem:[#allocation3 + $0xb0] sm:$0xff]  ;;  %v14960_v25 = vld [vmem:[#allocation3 + $0xc0] sm:$0xff] }
 0x829   : > { %v6478_v52 = vadd.f32 %v14774_v40, %v6149_v37  ;;  %6639 = vst.msk [vmem:[#allocation3 + $0xef] sm:$0x1] %vm6596_vm13, %v6563_v27  ;;  %v6705_v45 = vadd.f32 %v6704_v61, %v6703_v28  ;;  %v6718_v37 = vsel %vm2553_vm8, %v14944_v1, 0.0  ;;  %v14956_v27 = vld [vmem:[#allocation3 + $0xb8] sm:$0xff]  ;;  %v6720_v58 = vsel %vm2553_vm8, %v14952_v3, 0.0 }
 0x82a   : > { %6638 = vst.msk [vmem:[#allocation3 + $0xe7] sm:$0xff] %vm2553_vm8, %v6558_v39  ;;  %v7672_v55 = vpop.f32.mrb[94].mxu1  ;;  %v14906_v15 = vpop.f32.mrb[116].mxu0  ;;  %v6722_v8 = vsel %vm2553_vm8, %v14956_v27, 0.0  ;;  %v6724_v61 = vsel %vm2553_vm8, %v14960_v25, 0.0 }
 0x82b   : > { %6622 = vst.msk [vmem:[#allocation3 + $0x8f] sm:$0xfe] %vm6593_vm12, %v6478_v52  ;;  %v6573_v4 = vadd.f32 %v7672_v55, %v6244_v12  ;;  %v6567_v40 = vpop.f32.mrb[95].mxu1  ;;  %v14911_v35 = vpop.f32.mrb[117].mxu0  ;;  %v6707_v10 = vadd.f32 %v6706_v33, %v6705_v45  ;;  %v14964_v12 = vld [vmem:[#allocation3 + $0xc8] sm:$0xff] }
 0x82c   : > { %v6568_v22 = vadd.f32 %v6567_v40, %v6239_v56  ;;  %v14968_v56 = vld [vmem:[#allocation3 + $0xd0] sm:$0xff]  ;;  %v6726_v28 = vsel %vm2553_vm8, %v14964_v12, 0.0 }
 0x82d   : > { %6641 = vst.msk [vmem:[#allocation3 + $0xf7] sm:$0xff] %vm2553_vm8, %v6573_v4  ;;  %v6709_v50 = vadd.f32 %v6708_v43, %v6707_v10  ;;  %v14972_v4 = vld [vmem:[#allocation3 + $0xd8] sm:$0xff]  ;;  %v6728_v33 = vsel %vm2553_vm8, %v14968_v56, 0.0 }
 0x82e   : > { %6640 = vst.msk [vmem:[#allocation3 + $0xef] sm:$0xfe] %vm6593_vm12, %v6568_v22  ;;  %v7675_v21 = vpop.f32.mrb[96].mxu1  ;;  %v14921_v6 = vpop.f32.mrb[118].mxu0  ;;  %v14923_v19 = vld [vmem:[#allocation3 + $0x88] sm:$0xff]  ;;  %v6730_v43 = vsel %vm2553_vm8, %v14972_v4, 0.0 }
 0x82f   : > { %v6577_v46 = vpop.f32.mrb[97].mxu1  ;;  %v6710_v2 = vsel %vm2553_vm8, %v14923_v19, 0.0  ;;  %v14927_v18 = vpop.f32.mrb[119].mxu0 }
 0x830   : > { %v6578_v13 = vadd.f32 %v6577_v46, %v6249_v20  ;;  %v6711_v24 = vadd.f32 %v6710_v2, %v6709_v50 }
 0x831   : > { %v14976_v22 = vld [vmem:[#allocation3 + $0xe0] sm:$0xff]  ;;  %v14980_v20 = vld [vmem:[#allocation3 + $0xe8] sm:$0xff] }
 0x832   : > { %6642 = vst.msk [vmem:[#allocation3 + $0xff] sm:$0x1] %vm6596_vm13, %v6578_v13  ;;  %v14930_v47 = vld [vmem:[#allocation3 + $0x90] sm:$0xff]  ;;  %v14934_v11 = vpop.f32.mrb[120].mxu0  ;;  %v6732_v10 = vsel %vm2553_vm8, %v14976_v22, 0.0  ;;  %v6734_v13 = vsel %vm2553_vm8, %v14980_v20, 0.0 }
 0x833   : > { %v6712_v5 = vsel %vm2553_vm8, %v14930_v47, 0.0  ;;  %v14938_v54 = vpop.f32.mrb[121].mxu0 }
 0x834   : > { %v6713_v53 = vadd.f32 %v6712_v5, %v6711_v24 }
 0x835   : > { %v14984_v46 = vld [vmem:[#allocation3 + $0xf0] sm:$0xff] }
 0x836   : > { %v6715_v59 = vadd.f32 %v6714_v29, %v6713_v53  ;;  %v14946_v30 = vpop.f32.mrb[122].mxu0  ;;  %v6736_v5 = vsel %vm2553_vm8, %v14984_v46, 0.0 }
 0x837   : > { %v14950_v34 = vpop.f32.mrb[123].mxu0 }
 0x838   : > { %v6717_v57 = vadd.f32 %v6716_v32, %v6715_v59 }
 0x839   : > { %v14988_v50 = vld [vmem:[#allocation3 + $0xf8] sm:$0xff] }
 0x83a   : > { %v6719_v17 = vadd.f32 %v6718_v37, %v6717_v57  ;;  %v6738_v29 = vsel %vm2553_vm8, %v14988_v50, 0.0 }
 0x83c   : > { %v6721_v39 = vadd.f32 %v6720_v58, %v6719_v17 }
 0x83e   : > { %v6723_v52 = vadd.f32 %v6722_v8, %v6721_v39 }
 0x840   : > { %v6725_v55 = vadd.f32 %v6724_v61, %v6723_v52 }
 0x842   : > { %v6727_v40 = vadd.f32 %v6726_v28, %v6725_v55 }
 0x844   : > { %v6729_v45 = vadd.f32 %v6728_v33, %v6727_v40 }
 0x846   : > { %v6731_v21 = vadd.f32 %v6730_v43, %v6729_v45 }
 0x848   : > { %v6733_v2 = vadd.f32 %v6732_v10, %v6731_v21 }
 0x84a   : > { %v6735_v24 = vadd.f32 %v6734_v13, %v6733_v2 }
 0x84c   : > { %v6737_v53 = vadd.f32 %v6736_v5, %v6735_v24 }
 0x84e   : > { %v6739_v59 = vadd.f32 %v6738_v29, %v6737_v53 }
 0x850   : > { %v6740_v32 = vrot.slane %v6739_v59, 4 }
 0x852   : > { %v6741_v57 = vadd.f32 %v6740_v32, %v6739_v59 }
 0x854   : > { %v6742_v37 = vrot.slane %v6741_v57, 2 }
 0x856   : > { %v6743_v17 = vadd.f32 %v6742_v37, %v6741_v57 }
 0x858   : > { %v6744_v58 = vrot.slane %v6743_v17, 1 }
 0x85a   : > { %v6745_v39 = vadd.f32 %v6744_v58, %v6743_v17 }
 0x85c   : > { %v14994_v8 = vmul.f32 0.00390625, %v6745_v39 }
 0x85e   : > { %v14998_v52 = vsub.f32 %v14770_v14, %v14994_v8  ;;  %v15002_v61 = vsub.f32 %v14772_v41, %v14994_v8  ;;  %v15006_v55 = vsub.f32 %v14776_v0, %v14994_v8  ;;  %v15014_v33 = vsub.f32 %v14789_v48, %v14994_v8 }
 0x85f   : > { %v15022_v0 = vsub.f32 %v14793_v36, %v14994_v8  ;;  %v15029_v48 = vsub.f32 %v14812_v49, %v14994_v8  ;;  %v15033_v13 = vsub.f32 %v14817_v51, %v14994_v8  ;;  %v15042_v29 = vsub.f32 %v14828_v9, %v14994_v8 }
 0x860   : > { %v6779_v28 = vmul.f32 %v14998_v52, %v14998_v52  ;;  %v6780_v40 = vmul.f32 %v15002_v61, %v15002_v61  ;;  %v6781_v14 = vmul.f32 %v15006_v55, %v15006_v55  ;;  %v6782_v21 = vmul.f32 %v15014_v33, %v15014_v33 }
 0x861   : > { %v6783_v24 = vmul.f32 %v15022_v0, %v15022_v0  ;;  %v6784_v53 = vmul.f32 %v15029_v48, %v15029_v48  ;;  %v6785_v49 = vmul.f32 %v15033_v13, %v15033_v13  ;;  %v15049_v51 = vsub.f32 %v14834_v38, %v14994_v8 }
 0x862   : > { %v6811_v41 = vsel %vm2553_vm8, %v6779_v28, 0.0  ;;  %v6812_v45 = vsel %vm2553_vm8, %v6780_v40, 0.0  ;;  %v6814_v10 = vsel %vm2553_vm8, %v6781_v14, 0.0  ;;  %v6816_v36 = vsel %vm2553_vm8, %v6782_v21, 0.0 }
 0x863   : > { %v6813_v43 = vadd.f32 %v6812_v45, %v6811_v41  ;;  %v6818_v59 = vsel %vm2553_vm8, %v6783_v24, 0.0  ;;  %v15053_v57 = vsub.f32 %v14856_v23, %v14994_v8  ;;  %v6786_v37 = vmul.f32 %v15042_v29, %v15042_v29 }
 0x864   : > { %v6820_v9 = vsel %vm2553_vm8, %v6784_v53, 0.0  ;;  %v15060_v58 = vsub.f32 %v14858_v42, %v14994_v8  ;;  %v6787_v39 = vmul.f32 %v15049_v51, %v15049_v51  ;;  %v6822_v38 = vsel %vm2553_vm8, %v6785_v49, 0.0 }
 0x865   : > { %v6815_v2 = vadd.f32 %v6814_v10, %v6813_v43  ;;  %v15067_v23 = vsub.f32 %v14861_v16, %v14994_v8  ;;  %v6788_v40 = vmul.f32 %v15053_v57, %v15053_v57  ;;  %v6824_v14 = vsel %vm2553_vm8, %v6786_v37, 0.0 }
 0x866   : > { %v15074_v42 = vsub.f32 %v14873_v63, %v14994_v8  ;;  %v6789_v45 = vmul.f32 %v15060_v58, %v15060_v58  ;;  %v6826_v43 = vsel %vm2553_vm8, %v6787_v39, 0.0  ;;  %v15081_v16 = vsub.f32 %v14878_v44, %v14994_v8 }
 0x867   : > { %v6817_v5 = vadd.f32 %v6816_v36, %v6815_v2  ;;  %v6790_v10 = vmul.f32 %v15067_v23, %v15067_v23  ;;  %v6828_v2 = vsel %vm2553_vm8, %v6788_v40, 0.0  ;;  %v15088_v63 = vsub.f32 %v14889_v7, %v14994_v8 }
 0x868   : > { %v6791_v36 = vmul.f32 %v15074_v42, %v15074_v42  ;;  %v15095_v44 = vsub.f32 %v14895_v62, %v14994_v8  ;;  %v6792_v49 = vmul.f32 %v15081_v16, %v15081_v16  ;;  %v15102_v7 = vsub.f32 %v14908_v31, %v14994_v8 }
 0x869   : > { %v6819_v32 = vadd.f32 %v6818_v59, %v6817_v5  ;;  %v6830_v5 = vsel %vm2553_vm8, %v6789_v45, 0.0  ;;  %v6832_v59 = vsel %vm2553_vm8, %v6790_v10, 0.0  ;;  %v6793_v37 = vmul.f32 %v15088_v63, %v15088_v63 }
 0x86a   : > { %v15109_v62 = vsub.f32 %v14923_v19, %v14994_v8  ;;  %v6794_v39 = vmul.f32 %v15095_v44, %v15095_v44  ;;  %v15116_v31 = vsub.f32 %v14930_v47, %v14994_v8  ;;  %v6795_v40 = vmul.f32 %v15102_v7, %v15102_v7 }
 0x86b   : > { %v6821_v17 = vadd.f32 %v6820_v9, %v6819_v32  ;;  %v6834_v9 = vsel %vm2553_vm8, %v6791_v36, 0.0  ;;  %v15123_v19 = vsub.f32 %v14932_v26, %v14994_v8  ;;  %v15130_v47 = vsub.f32 %v14940_v60, %v14994_v8 }
 0x86c   : > { %v6796_v45 = vmul.f32 %v15109_v62, %v15109_v62  ;;  %v6797_v10 = vmul.f32 %v15116_v31, %v15116_v31  ;;  %v15137_v26 = vsub.f32 %v14944_v1, %v14994_v8  ;;  %v15144_v60 = vsub.f32 %v14952_v3, %v14994_v8 }
 0x86d   : > { %v6823_v28 = vadd.f32 %v6822_v38, %v6821_v17  ;;  %v6836_v38 = vsel %vm2553_vm8, %v6792_v49, 0.0  ;;  %v6798_v36 = vmul.f32 %v15123_v19, %v15123_v19  ;;  %v6799_v49 = vmul.f32 %v15130_v47, %v15130_v47 }
 0x86e   : > { %v15151_v1 = vsub.f32 %v14956_v27, %v14994_v8  ;;  %v15158_v3 = vsub.f32 %v14960_v25, %v14994_v8  ;;  %v15165_v27 = vsub.f32 %v14964_v12, %v14994_v8  ;;  %v15172_v25 = vsub.f32 %v14968_v56, %v14994_v8 }
 0x86f   : > { %v6825_v41 = vadd.f32 %v6824_v14, %v6823_v28  ;;  %v6838_v14 = vsel %vm2553_vm8, %v6793_v37, 0.0  ;;  %v6800_v37 = vmul.f32 %v15137_v26, %v15137_v26  ;;  %v15179_v12 = vsub.f32 %v14972_v4, %v14994_v8 }
 0x870   : > { %v15186_v56 = vsub.f32 %v14976_v22, %v14994_v8  ;;  %v15193_v4 = vsub.f32 %v14980_v20, %v14994_v8  ;;  %v15200_v22 = vsub.f32 %v14984_v46, %v14994_v8  ;;  %v15207_v20 = vsub.f32 %v14988_v50, %v14994_v8 }
 0x871   : > { %v6827_v21 = vadd.f32 %v6826_v43, %v6825_v41  ;;  %v6840_v43 = vsel %vm2553_vm8, %v6794_v39, 0.0  ;;  %v6801_v39 = vmul.f32 %v15144_v60, %v15144_v60 }
 0x872   : > { %v6809_v46 = vmul.f32 %v15200_v22, %v15200_v22 }
 0x873   : > { %v6829_v24 = vadd.f32 %v6828_v2, %v6827_v21  ;;  %v6842_v2 = vsel %vm2553_vm8, %v6795_v40, 0.0  ;;  %v6802_v40 = vmul.f32 %v15151_v1, %v15151_v1 }
 0x874   : > { %v6870_v50 = vsel %vm2553_vm8, %v6809_v46, 0.0 }
 0x875   : > { %v6831_v53 = vadd.f32 %v6830_v5, %v6829_v24  ;;  %v6844_v5 = vsel %vm2553_vm8, %v6796_v45, 0.0  ;;  %v6803_v45 = vmul.f32 %v15158_v3, %v15158_v3 }
 0x877   : > { %v6833_v32 = vadd.f32 %v6832_v59, %v6831_v53  ;;  %v6846_v59 = vsel %vm2553_vm8, %v6797_v10, 0.0  ;;  %v6804_v10 = vmul.f32 %v15165_v27, %v15165_v27 }
 0x879   : > { %v6835_v17 = vadd.f32 %v6834_v9, %v6833_v32  ;;  %v6848_v9 = vsel %vm2553_vm8, %v6798_v36, 0.0  ;;  %v6805_v36 = vmul.f32 %v15172_v25, %v15172_v25 }
 0x87b   : > { %v6837_v28 = vadd.f32 %v6836_v38, %v6835_v17  ;;  %v6850_v38 = vsel %vm2553_vm8, %v6799_v49, 0.0  ;;  %v6806_v49 = vmul.f32 %v15179_v12, %v15179_v12 }
 0x87d   : > { %v6839_v41 = vadd.f32 %v6838_v14, %v6837_v28  ;;  %v6852_v14 = vsel %vm2553_vm8, %v6800_v37, 0.0  ;;  %v6807_v37 = vmul.f32 %v15186_v56, %v15186_v56 }
 0x87f   : > { %v6841_v21 = vadd.f32 %v6840_v43, %v6839_v41  ;;  %v6854_v43 = vsel %vm2553_vm8, %v6801_v39, 0.0  ;;  %v6808_v39 = vmul.f32 %v15193_v4, %v15193_v4 }
 0x881   : > { %v6843_v24 = vadd.f32 %v6842_v2, %v6841_v21  ;;  %v6856_v2 = vsel %vm2553_vm8, %v6802_v40, 0.0  ;;  %v6866_v40 = vsel %vm2553_vm8, %v6807_v37, 0.0 }
 0x883   : > { %v6845_v53 = vadd.f32 %v6844_v5, %v6843_v24  ;;  %v6858_v5 = vsel %vm2553_vm8, %v6803_v45, 0.0  ;;  %v6868_v45 = vsel %vm2553_vm8, %v6808_v39, 0.0 }
 0x885   : > { %v6847_v32 = vadd.f32 %v6846_v59, %v6845_v53  ;;  %v6860_v59 = vsel %vm2553_vm8, %v6804_v10, 0.0 }
 0x887   : > { %v6849_v17 = vadd.f32 %v6848_v9, %v6847_v32  ;;  %v6862_v9 = vsel %vm2553_vm8, %v6805_v36, 0.0 }
 0x889   : > { %v6851_v28 = vadd.f32 %v6850_v38, %v6849_v17  ;;  %v6864_v38 = vsel %vm2553_vm8, %v6806_v49, 0.0 }
 0x88b   : > { %v6853_v41 = vadd.f32 %v6852_v14, %v6851_v28 }
 0x88d   : > { %v6855_v21 = vadd.f32 %v6854_v43, %v6853_v41  ;;  %v6810_v41 = vmul.f32 %v15207_v20, %v15207_v20 }
 0x88f   : > { %v6857_v24 = vadd.f32 %v6856_v2, %v6855_v21  ;;  %v6872_v21 = vsel %vm2553_vm8, %v6810_v41, 0.0 }
 0x891   : > { %v6859_v53 = vadd.f32 %v6858_v5, %v6857_v24 }
 0x893   : > { %v6861_v32 = vadd.f32 %v6860_v59, %v6859_v53 }
 0x895   : > { %v6863_v17 = vadd.f32 %v6862_v9, %v6861_v32 }
 0x897   : > { %v6865_v28 = vadd.f32 %v6864_v38, %v6863_v17  ;;  %v6675_v17 = vld [vmem:[%s15362_s9] sm:$0x1] }
 0x899   : > { %v6867_v14 = vadd.f32 %v6866_v40, %v6865_v28  ;;  %v16592_v28 = vld [vmem:[#allocation27_spill] sm:$0xff] }
 0x89a   : > { %v16593_v46 = vsub.s32 0, %v16592_v28 }
 0x89b   : > { %v6869_v43 = vadd.f32 %v6868_v45, %v6867_v14  ;;  %v15230_v14 = vld [vmem:[%s15363_s10] ss:$0 sm:$0xff] }
 0x89d   : > { %v6871_v8 = vadd.f32 %v6870_v50, %v6869_v43 }
 0x89f   : > { %v6873_v10 = vadd.f32 %v6872_v21, %v6871_v8 }
 0x8a1   : > { %v6874_v2 = vrot.slane %v6873_v10, 4 }
 0x8a3   : > { %v6875_v24 = vadd.f32 %v6874_v2, %v6873_v10 }
 0x8a5   : > { %v6876_v36 = vrot.slane %v6875_v24, 2 }
 0x8a7   : > { %v6877_v5 = vadd.f32 %v6876_v36, %v6875_v24 }
 0x8a9   : > { %v6878_v53 = vrot.slane %v6877_v5, 1 }
 0x8ab   : > { %v6879_v49 = vadd.f32 %v6878_v53, %v6877_v5  ;;  %v7678_v37 = vpop.f32.mrb[98].mxu1 }
 0x8ac   : > { %v6586_v9 = vpop.f32.mrb[99].mxu1 }
 0x8ad   : > { %v6880_v59 = vmul.f32 0.00390625, %v6879_v49 }
 0x8af   : > { %v6881_v32 = vadd.f32 1e-05, %v6880_v59 }
 0x8b1   : > { %8614 = vrsqrt.f32 %v6881_v32 }
 0x8bb   : > { %v8615_v39 = vpop.eup %8614 }
 0x8bc   : > { %v6883_v38 = vmul.f32 %v8615_v39, %v6675_v17 }
 0x8be   : > { %v15225_v40 = vrot.slane %v6883_v38, %v16593_v46 }
 0x8c0   : > { %v6904_v41 = vmul.f32 %v15225_v40, %v15102_v7  ;;  %v6888_v45 = vmul.f32 %v15225_v40, %v14998_v52  ;;  %v6905_v8 = vmul.f32 %v15225_v40, %v15109_v62  ;;  %v6889_v21 = vmul.f32 %v15225_v40, %v15002_v61 }
 0x8c1   : > { %v6906_v7 = vmul.f32 %v15225_v40, %v15116_v31  ;;  %v6890_v52 = vmul.f32 %v15225_v40, %v15006_v55  ;;  %v6907_v61 = vmul.f32 %v15225_v40, %v15123_v19  ;;  %v6891_v36 = vmul.f32 %v15225_v40, %v15014_v33 }
 0x8c2   : > { %v6942_v43 = vadd.f32 %v15230_v14, %v6904_v41  ;;  %v6926_v50 = vadd.f32 %v15230_v14, %v6888_v45  ;;  %v6943_v10 = vadd.f32 %v15230_v14, %v6905_v8  ;;  %v6927_v2 = vadd.f32 %v15230_v14, %v6889_v21 }
 0x8c3   : > { %v6944_v24 = vadd.f32 %v15230_v14, %v6906_v7  ;;  %v6928_v62 = vadd.f32 %v15230_v14, %v6890_v52  ;;  %v6945_v5 = vadd.f32 %v15230_v14, %v6907_v61  ;;  %v6929_v31 = vadd.f32 %v15230_v14, %v6891_v36 }
 0x8c4   : > { %6990 = vxpose.xlu0.b32.start [1/16] (narrow) %v6942_v43, 32  ;;  %6958 = vxpose.xlu1.b32.start [1/16] (narrow) %v6926_v50, 32  ;;  %v6908_v55 = vmul.f32 %v15225_v40, %v15130_v47  ;;  %v6892_v53 = vmul.f32 %v15225_v40, %v15022_v0  ;;  %v6909_v33 = vmul.f32 %v15225_v40, %v15137_v26 }
 0x8c5   : > { %v6893_v59 = vmul.f32 %v15225_v40, %v15029_v48  ;;  %v6910_v0 = vmul.f32 %v15225_v40, %v15144_v60  ;;  %v6894_v37 = vmul.f32 %v15225_v40, %v15033_v13  ;;  %v6911_v48 = vmul.f32 %v15225_v40, %v15151_v1 }
 0x8c6   : > { %v6946_v49 = vadd.f32 %v15230_v14, %v6908_v55  ;;  %v6930_v19 = vadd.f32 %v15230_v14, %v6892_v53  ;;  %v6947_v32 = vadd.f32 %v15230_v14, %v6909_v33  ;;  %v6895_v17 = vmul.f32 %v15225_v40, %v15042_v29 }
 0x8c7   : > { %v6931_v47 = vadd.f32 %v15230_v14, %v6893_v59  ;;  %v6948_v9 = vadd.f32 %v15230_v14, %v6910_v0  ;;  %v6932_v26 = vadd.f32 %v15230_v14, %v6894_v37  ;;  %v6949_v39 = vadd.f32 %v15230_v14, %v6911_v48 }
 0x8c8   : > { %6991 = vxpose.xlu0.b32.cont [2/16] (narrow) %v6943_v10, 32  ;;  %6959 = vxpose.xlu1.b32.cont [2/16] (narrow) %v6927_v2, 32  ;;  %v6933_v60 = vadd.f32 %v15230_v14, %v6895_v17  ;;  %v6912_v13 = vmul.f32 %v15225_v40, %v15158_v3  ;;  %v6896_v38 = vmul.f32 %v15225_v40, %v15049_v51 }
 0x8c9   : > { %v6913_v29 = vmul.f32 %v15225_v40, %v15165_v27  ;;  %v6897_v46 = vmul.f32 %v15225_v40, %v15053_v57  ;;  %v6914_v51 = vmul.f32 %v15225_v40, %v15172_v25  ;;  %v6898_v45 = vmul.f32 %v15225_v40, %v15060_v58 }
 0x8ca   : > { %v6950_v28 = vadd.f32 %v15230_v14, %v6912_v13  ;;  %v6934_v1 = vadd.f32 %v15230_v14, %v6896_v38  ;;  %v6915_v57 = vmul.f32 %v15225_v40, %v15179_v12  ;;  %v6899_v50 = vmul.f32 %v15225_v40, %v15067_v23 }
 0x8cb   : > { %v6951_v41 = vadd.f32 %v15230_v14, %v6913_v29  ;;  %v6935_v3 = vadd.f32 %v15230_v14, %v6897_v46  ;;  %v6952_v43 = vadd.f32 %v15230_v14, %v6914_v51  ;;  %v6936_v27 = vadd.f32 %v15230_v14, %v6898_v45 }
 0x8cc   : > { %6992 = vxpose.xlu0.b32.cont [3/16] (narrow) %v6944_v24, 32  ;;  %6960 = vxpose.xlu1.b32.cont [3/16] (narrow) %v6928_v62, 32  ;;  %v6953_v8 = vadd.f32 %v15230_v14, %v6915_v57  ;;  %v6937_v25 = vadd.f32 %v15230_v14, %v6899_v50  ;;  %v6916_v58 = vmul.f32 %v15225_v40, %v15186_v56 }
 0x8cd   : > { %v6900_v21 = vmul.f32 %v15225_v40, %v15074_v42  ;;  %v6917_v23 = vmul.f32 %v15225_v40, %v15193_v4  ;;  %v6901_v2 = vmul.f32 %v15225_v40, %v15081_v16  ;;  %v6918_v42 = vmul.f32 %v15225_v40, %v15200_v22 }
 0x8ce   : > { %v6954_v10 = vadd.f32 %v15230_v14, %v6916_v58  ;;  %v6902_v52 = vmul.f32 %v15225_v40, %v15088_v63  ;;  %v6919_v16 = vmul.f32 %v15225_v40, %v15207_v20  ;;  %v6903_v62 = vmul.f32 %v15225_v40, %v15095_v44  ;;  %v7034_v63 = vpop.permute.xlu0 %7033 }
 0x8cf   : > { %v6938_v12 = vadd.f32 %v15230_v14, %v6900_v21  ;;  %v6955_v7 = vadd.f32 %v15230_v14, %v6917_v23  ;;  %v6939_v56 = vadd.f32 %v15230_v14, %v6901_v2  ;;  %v6956_v24 = vadd.f32 %v15230_v14, %v6918_v42 }
 0x8d0   : > { %6993 = vxpose.xlu0.b32.cont [4/16] (narrow) %v6945_v5, 32  ;;  %6961 = vxpose.xlu1.b32.cont [4/16] (narrow) %v6929_v31, 32  ;;  %v6940_v4 = vadd.f32 %v15230_v14, %v6902_v52  ;;  %v6957_v22 = vadd.f32 %v15230_v14, %v6919_v16  ;;  %v6941_v61 = vadd.f32 %v15230_v14, %v6903_v62 }
 0x8d1   : > { %v7136_v55 = vadd.f32 %v14906_v15, %v7034_v63  ;;  %v7138_v53 = vadd.f32 %v14911_v35, %v7034_v63 }
 0x8d2   : > { %v7039_v36 = vpop.permute.xlu0 %7038 }
 0x8d3   : > { %v7142_v14 = vadd.f32 %v14921_v6, %v7039_v36 }
 0x8d4   : > { %6994 = vxpose.xlu0.b32.cont [5/16] (narrow) %v6946_v49, 32  ;;  %6962 = vxpose.xlu1.b32.cont [5/16] (narrow) %v6930_v19, 32  ;;  %v7144_v19 = vadd.f32 %v14927_v18, %v7039_v36 }
 0x8d6   : > { %v7044_v5 = vpop.permute.xlu0 %7043 }
 0x8d7   : > { %v7148_v0 = vadd.f32 %v14934_v11, %v7044_v5  ;;  %v7150_v37 = vadd.f32 %v14938_v54, %v7044_v5 }
 0x8d8   : > { %6995 = vxpose.xlu0.b32.cont [6/16] (narrow) %v6947_v32, 32  ;;  %6963 = vxpose.xlu1.b32.cont [6/16] (narrow) %v6931_v47, 32 }
 0x8da   : > { %v7049_v31 = vpop.permute.xlu0 %7048 }
 0x8dc   : > { %6996 = vxpose.xlu0.b32.cont [7/16] (narrow) %v6948_v9, 32  ;;  %6964 = vxpose.xlu1.b32.cont [7/16] (narrow) %v6932_v26, 32 }
 0x8e0   : > { %6997 = vxpose.xlu0.b32.cont [8/16] (narrow) %v6949_v39, 32  ;;  %6965 = vxpose.xlu1.b32.cont [8/16] (narrow) %v6933_v60, 32  ;;  %v7154_v39 = vadd.f32 %v14946_v30, %v7049_v31  ;;  %v7156_v60 = vadd.f32 %v14950_v34, %v7049_v31 }
 0x8e4   : > { %6998 = vxpose.xlu0.b32.cont [9/16] (narrow) %v6950_v28, 32  ;;  %6966 = vxpose.xlu1.b32.cont [9/16] (narrow) %v6934_v1, 32 }
 0x8e8   : > { %6999 = vxpose.xlu0.b32.cont [10/16] (narrow) %v6951_v41, 32  ;;  %6967 = vxpose.xlu1.b32.cont [10/16] (narrow) %v6935_v3, 32 }
 0x8ec   : > { %7000 = vxpose.xlu0.b32.cont [11/16] (narrow) %v6952_v43, 32  ;;  %6968 = vxpose.xlu1.b32.cont [11/16] (narrow) %v6936_v27, 32 }
 0x8f0   : > { %7001 = vxpose.xlu0.b32.cont [12/16] (narrow) %v6953_v8, 32  ;;  %6969 = vxpose.xlu1.b32.cont [12/16] (narrow) %v6937_v25, 32 }
 0x8f4   : > { %7002 = vxpose.xlu0.b32.cont [13/16] (narrow) %v6954_v10, 32  ;;  %6970 = vxpose.xlu1.b32.cont [13/16] (narrow) %v6938_v12, 32 }
 0x8f8   : > { %7003 = vxpose.xlu0.b32.cont [14/16] (narrow) %v6955_v7, 32  ;;  %6971 = vxpose.xlu1.b32.cont [14/16] (narrow) %v6939_v56, 32 }
 0x8fc   : > { %7004 = vxpose.xlu0.b32.cont [15/16] (narrow) %v6956_v24, 32  ;;  %6972 = vxpose.xlu1.b32.cont [15/16] (narrow) %v6940_v4, 32 }
 0x900   : > { %7005 = vxpose.xlu0.b32.end [16/16] (narrow) %v6957_v22, 32  ;;  %6973 = vxpose.xlu1.b32.end [16/16] (narrow) %v6941_v61, 32 }
 0x944   : > { %v7006_v20 = vpop.trf.xlu0  ;;  %v6974_v49 = vpop.trf.xlu1 }
 0x945   : > { %v7159_v44 = vadd.f32 %v7138_v53, %v7006_v20  ;;  %v7158_v40 = vadd.f32 %v7136_v55, %v6974_v49 }
 0x947   : > { %v7167_v15 = vmax.f32 %v7159_v44, 0.0  ;;  %v7166_v35 = vmax.f32 %v7158_v40, 0.0 }
 0x948   : > { %v7007_v33 = vpop.trf.xlu0  ;;  %v6975_v59 = vpop.trf.xlu1 }
 0x949   : > { %7175 = vst [vmem:[%s15334_s28 + $0x8] sm:$0xff] %v7167_v15  ;;  %7174 = vst [vmem:[%s15334_s28] sm:$0xff] %v7166_v35  ;;  %v7161_v32 = vadd.f32 %v7144_v19, %v7007_v33  ;;  %v7160_v47 = vadd.f32 %v7142_v14, %v6975_v59 }
 0x94b   : > { %v7169_v9 = vmax.f32 %v7161_v32, 0.0  ;;  %v7168_v6 = vmax.f32 %v7160_v47, 0.0 }
 0x94c   : > { %v7008_v26 = vpop.trf.xlu0  ;;  %v6976_v48 = vpop.trf.xlu1 }
 0x94d   : > { %7177 = vst [vmem:[%s15334_s28 + $0x18] sm:$0xff] %v7169_v9  ;;  %7176 = vst [vmem:[%s15334_s28 + $0x10] sm:$0xff] %v7168_v6  ;;  %v7163_v18 = vadd.f32 %v7150_v37, %v7008_v26  ;;  %v7162_v17 = vadd.f32 %v7148_v0, %v6976_v48 }
 0x94f   : > { %v7171_v13 = vmax.f32 %v7163_v18, 0.0  ;;  %v7170_v11 = vmax.f32 %v7162_v17, 0.0 }
 0x950   : > { %v7009_v38 = vpop.trf.xlu0  ;;  %v6977_v28 = vpop.trf.xlu1 }
 0x951   : > { %7179 = vst [vmem:[%s15334_s28 + $0x28] sm:$0xff] %v7171_v13  ;;  %7178 = vst [vmem:[%s15334_s28 + $0x20] sm:$0xff] %v7170_v11  ;;  %v7165_v54 = vadd.f32 %v7156_v60, %v7009_v38  ;;  %v7164_v1 = vadd.f32 %v7154_v39, %v6977_v28 }
 0x953   : > { %v7173_v29 = vmax.f32 %v7165_v54, 0.0  ;;  %v7172_v46 = vmax.f32 %v7164_v1, 0.0 }
 0x955   : > { %7181 = vst [vmem:[%s15334_s28 + $0x38] sm:$0xff] %v7173_v29  ;;  %7180 = vst [vmem:[%s15334_s28 + $0x30] sm:$0xff] %v7172_v46 }
 0x956 PF: > { %s23_s25 = sadd.s32 1, %s8927_s25  }
 0x957   : > { %p20_p4 = scmp.ge.s32.totalorder %s23_s25, 4  }
 0x959   :  { %22 = sbr.rel (!%p20_p4) target bundleno = 1 (0x1), region = 105 }

</bundles_post_ra>
